<compile_context>
chip_gen: v7x
topology: tpu7x:2x2x1
jax: 0.10.0
libtpu: 0.0.40
codegen_flags: <defaults>
</compile_context>

<pallas_src>
import functools

import numpy as np
import jax
import jax.numpy as jnp
from jax.experimental import pallas as pl
from jax.experimental.pallas import tpu as pltpu

K_OFF = 27  # 3x3x3 kernel offsets
_OFFSETS = np.stack(
    np.meshgrid(np.arange(-1, 2), np.arange(-1, 2), np.arange(-1, 2),
                indexing="ij"),
    axis=-1).reshape(-1, 3).astype(np.int32)
_CENTER = int(np.argmax(np.all(_OFFSETS == 0, axis=-1)))  # == 13


# ----------------------------- Pallas kernels ------------------------------ #

def _gates_kernel(gh_ref, gx_ref, h_ref, wh_ref, wx_ref, b_ref,
                  z_ref, rh_ref, qx_ref):
    """Fused gates.  One wide matmul pair produces z, r and the x-part of q.

    gh/gx: gathered h / x neighborhoods (bf16); weights bf16 with the
    point-transform folded into the center offset; f32 accumulation.
    Outputs: z (f32), r*h (bf16, single rounding), qx_pre = gx@wq_x + bq (f32).
    """
    ch = h_ref.shape[1]
    acc_x = jnp.dot(gx_ref[...], wx_ref[...],
                    preferred_element_type=jnp.float32)        # (tm, 3*CH)
    acc_h = jnp.dot(gh_ref[...], wh_ref[...],
                    preferred_element_type=jnp.float32)        # (tm, 2*CH)
    pre = acc_x + b_ref[...]                                   # + [bz|br|bq]
    zr = jax.nn.sigmoid(pre[:, :2 * ch] + acc_h)
    z = zr[:, :ch]
    r = zr[:, ch:]
    z_ref[...] = z
    rh_ref[...] = (r * h_ref[...]).astype(rh_ref.dtype)        # bf16 store
    qx_ref[...] = pre[:, 2 * ch:]


def _update_kernel(grh_ref, h_ref, z_ref, qx_ref, wq_ref, out_ref):
    """Candidate q and final GRU update h <- (1-z)*h + z*q (f32 state path)."""
    q = jnp.tanh(
        jnp.dot(grh_ref[...], wq_ref[...], preferred_element_type=jnp.float32)
        + qx_ref[...])
    z = z_ref[...]
    out_ref[...] = (1.0 - z) * h_ref[...] + z * q


# ------------------------------ pallas_call glue ---------------------------- #

def _round_up(x, m):
    return ((x + m - 1) // m) * m


def _vmem_capacity_bytes():
    """Generation-aware VMEM capacity (v5e/v6e ~128 MiB, v7x 64 MiB)."""
    try:
        return int(pltpu.get_tpu_info().vmem_capacity_bytes)
    except Exception:
        return 64 << 20        # conservative (v7x-sized) fallback


def _mosaic_params(streamed_bytes, resident_bytes):
    # Double-buffered streamed blocks + (double-buffered) resident weights +
    # headroom, clamped to the physical VMEM of the current generation.
    cap = min(_vmem_capacity_bytes(), 127 << 20) - (4 << 20)
    need = 2 * streamed_bytes + 2 * resident_bytes + (4 << 20)
    vmem = int(min(max(need, 32 << 20), max(cap, 32 << 20)))
    return pltpu.CompilerParams(dimension_semantics=("parallel",),
                                vmem_limit_bytes=vmem)


def _pick_tm(n, requested):
    """Row tile: multiple of 128 when possible (bf16 sublane packing, full MXU
    M-dim), multiple of 16 otherwise, and capped so the grid has >= 2 steps
    (both v7x TensorCores busy, DMA pipeline can overlap)."""
    n_r = _round_up(n, 16)
    tm = max(16, min(requested, n_r))
    if n_r >= 32:
        tm = min(tm, max(16, n_r // 2))
    if tm >= 128:
        tm = (tm // 128) * 128
    else:
        tm = _round_up(tm, 16)
    return tm


def _call_gates(gh, gx, h, wh, wx, b, *, tm):
    n_pad, ch = h.shape
    kch, kci = gh.shape[1], gx.shape[1]
    grid = (n_pad // tm,)
    streamed = tm * (2 * kch + 2 * kci + 4 * ch)          # inputs per step
    streamed += tm * (4 * ch + 2 * ch + 4 * ch)           # z / rh / qx outputs
    resident = 2 * (wh.size + wx.size) + 4 * b.size
    out_shapes = (
        jax.ShapeDtypeStruct((n_pad, ch), jnp.float32),   # z
        jax.ShapeDtypeStruct((n_pad, ch), jnp.bfloat16),  # r*h
        jax.ShapeDtypeStruct((n_pad, ch), jnp.float32),   # qx_pre (+ bq)
    )
    return pl.pallas_call(
        _gates_kernel,
        out_shape=out_shapes,
        grid=grid,
        in_specs=[
            pl.BlockSpec((tm, kch), lambda i: (i, 0)),
            pl.BlockSpec((tm, kci), lambda i: (i, 0)),
            pl.BlockSpec((tm, ch), lambda i: (i, 0)),
            pl.BlockSpec(wh.shape, lambda i: (0, 0)),
            pl.BlockSpec(wx.shape, lambda i: (0, 0)),
            pl.BlockSpec(b.shape, lambda i: (0, 0)),
        ],
        out_specs=(
            pl.BlockSpec((tm, ch), lambda i: (i, 0)),
            pl.BlockSpec((tm, ch), lambda i: (i, 0)),
            pl.BlockSpec((tm, ch), lambda i: (i, 0)),
        ),
        compiler_params=_mosaic_params(streamed, resident),
    )(gh, gx, h, wh, wx, b)


def _call_update(grh, h, z, qx, wq, *, tm):
    n_pad, ch = h.shape
    kch = grh.shape[1]
    grid = (n_pad // tm,)
    streamed = tm * (2 * kch + 4 * ch * 3 + 4 * ch)
    resident = 2 * wq.size
    return pl.pallas_call(
        _update_kernel,
        out_shape=jax.ShapeDtypeStruct((n_pad, ch), jnp.float32),
        grid=grid,
        in_specs=[
            pl.BlockSpec((tm, kch), lambda i: (i, 0)),
            pl.BlockSpec((tm, ch), lambda i: (i, 0)),
            pl.BlockSpec((tm, ch), lambda i: (i, 0)),
            pl.BlockSpec((tm, ch), lambda i: (i, 0)),
            pl.BlockSpec(wq.shape, lambda i: (0, 0)),
        ],
        out_specs=pl.BlockSpec((tm, ch), lambda i: (i, 0)),
        compiler_params=_mosaic_params(streamed, resident),
    )(grh, h, z, qx, wq)


# ---------------------------- sparse-conv helpers --------------------------- #

def _neighbor_index(coords):
    """(N, 27) int32 neighbor table.  idx == N means 'missing' (contributes 0).

    TODO(synk): O(N^2 * 27) all-pairs match; replace with hash/sort kernel map
    for realistic point counts.
    """
    n = coords.shape[0]
    offsets = jnp.asarray(_OFFSETS)
    tgt = coords[:, None, :] + offsets[None, :, :]                    # (N,K,3)
    eq = jnp.all(tgt[:, :, None, :] == coords[None, None, :, :], -1)  # (N,K,N)
    has = jnp.any(eq, axis=-1)
    return jnp.where(has, jnp.argmax(eq, axis=-1), n).astype(jnp.int32)


def _gather_rows(feat, idx_full):
    """feat (N, C) + idx table (N_pad, 27) -> (N_pad, 27*C); missing -> zeros."""
    n, c = feat.shape
    padded = jnp.concatenate([feat, jnp.zeros((1, c), feat.dtype)], axis=0)
    return padded[idx_full].reshape(idx_full.shape[0], K_OFF * c)


def _fold_and_fuse(params, ch, ci):
    """Fold point-transforms into the conv-center block and fuse gate weights.

    Valid only when the center offset gathers the point itself (unique integer
    coordinates, pres = vres = 1).  Returns:
      wzr_h  (27*CH, 2*CH)  bf16   h-rows of [wz | wr]
      wzrq_x (27*CI, 3*CH)  bf16   x-rows of [wz | wr | wq]  (gx read once)
      wq_h   (27*CH, CH)    bf16   h-rows of wq (consumes gathered r*h)
      b3     (1, 3*CH)      f32    [bz | br | bq]
    """
    chx = ch + ci

    def fold(wc, wp):
        wc = wc.reshape(K_OFF, chx, -1)
        return wc.at[_CENTER].add(wp)       # add Linear into center offset

    wz = fold(params["wzc"], params["wzp"])
    wr = fold(params["wrc"], params["wrp"])
    wq = fold(params["wqc"], params["wqp"])

    wzr_h = jnp.concatenate([wz[:, :ch, :], wr[:, :ch, :]], axis=-1)
    wzr_h = wzr_h.reshape(K_OFF * ch, 2 * ch).astype(jnp.bfloat16)
    wzrq_x = jnp.concatenate([wz[:, ch:, :], wr[:, ch:, :], wq[:, ch:, :]],
                             axis=-1)
    wzrq_x = wzrq_x.reshape(K_OFF * ci, 3 * ch).astype(jnp.bfloat16)
    wq_h = wq[:, :ch, :].reshape(K_OFF * ch, ch).astype(jnp.bfloat16)
    b3 = jnp.concatenate([params["bz"], params["br"], params["bq"]],
                         axis=-1).astype(jnp.float32)
    return wzr_h, wzrq_x, wq_h, b3


# ------------------------------- ConvGRU forward ---------------------------- #

@functools.partial(jax.jit, static_argnames=("tm",))
def conv_gru_forward(h_F, x_F, coords, params, *, tm=512):
    """ConvGRU forward.  NOTE: assumes unique integer coords (pres=vres=1) so
    the point-transform fold into the conv center is exact (guarded in main)."""
    n, ch = h_F.shape
    ci = x_F.shape[1]

    wzr_h, wzrq_x, wq_h, b3 = _fold_and_fuse(params, ch, ci)

    # Neighbor index table built ONCE and reused for all gathers.
    idx = _neighbor_index(coords)                              # (n, 27)

    tm = _pick_tm(n, tm)
    n_pad = pl.cdiv(n, tm) * tm
    idx_full = jnp.full((n_pad, K_OFF), n, jnp.int32).at[:n].set(idx)

    h_pad = jnp.pad(h_F, ((0, n_pad - n), (0, 0))).astype(jnp.float32)

    # TODO(synk): gathers still materialize (n_pad, 27*C) bf16 tensors in HBM
    # via XLA take; an in-kernel gather (scalar-prefetched idx + vectorized row
    # gather from a VMEM-resident table) would cut HBM traffic ~27x, but there
    # is no robust Mosaic dynamic row-gather path today.
    gh = _gather_rows(h_F.astype(jnp.bfloat16), idx_full)      # (n_pad, 27*ch)
    gx = _gather_rows(x_F.astype(jnp.bfloat16), idx_full)      # (n_pad, 27*ci)

    # Kernel 1: fused gates -> z (f32), r*h (bf16), qx_pre (f32).
    z, rh, qx = _call_gates(gh, gx, h_pad, wzr_h, wzrq_x, b3, tm=tm)

    # Only r*h needs a second gather; gx is NOT re-read (wq_x folded above).
    grh = _gather_rows(rh[:n], idx_full)                       # (n_pad, 27*ch)

    # Kernel 2: q = tanh(grh @ wq_h + qx);  h <- (1-z)*h + z*q  (f32 state).
    h_new = _call_update(grh, h_pad, z, qx, wq_h, tm=tm)
    return h_new[:n]


def conv_gru_reference(h_F, x_F, coords, params):
    """Pure-JAX f32 reference of the original module semantics."""
    n = h_F.shape[0]
    idx = _neighbor_index(coords)

    def gather(feat):
        padded = jnp.concatenate([feat, jnp.zeros((1, feat.shape[1]),
                                                  feat.dtype)], axis=0)
        return padded[idx].reshape(n, -1)

    def sconv(feat, wc, wp, b):
        return gather(feat) @ wc + feat @ wp + b

    hx = jnp.concatenate([h_F, x_F], axis=1)
    z = jax.nn.sigmoid(sconv(hx, params["wzc"], params["wzp"], params["bz"]))
    r = jax.nn.sigmoid(sconv(hx, params["wrc"], params["wrp"], params["br"]))
    rhx = jnp.concatenate([r * h_F, x_F], axis=1)
    q = jnp.tanh(sconv(rhx, params["wqc"], params["wqp"], params["bq"]))
    return (1.0 - z) * h_F + z * q


# ----------------------------------- main ----------------------------------- #

if __name__ == "__main__":
    N = 256          # number of points (small demo)
    CH = 128         # hidden_dim (module default; keeps outputs lane-dense)
    CI = 128         # input_dim (kept small for the demo)
    CHX = CH + CI    # SConv3d input channels

    key = jax.random.PRNGKey(0)
    keys = jax.random.split(key, 12)

    # Unique integer voxel coordinates on an 8^3 grid (pres = vres = 1).
    cells = jax.random.permutation(keys[0], 8 * 8 * 8)[:N]
    coords = jnp.stack([cells // 64, (cells // 8) % 8, cells % 8],
                       axis=-1).astype(jnp.int32)
    # Guard for the point-transform fold: coordinates must be unique.
    assert len(set(np.asarray(cells).tolist())) == N

    h_F = jax.random.normal(keys[1], (N, CH), jnp.float32)
    x_F = jax.random.normal(keys[2], (N, CI), jnp.float32)

    def init_w(k, shape):
        fan_in = shape[0]
        return jax.random.normal(k, shape, jnp.float32) / jnp.sqrt(
            jnp.float32(fan_in))

    params = {
        # spnn.Conv3d weights: (27, Cin, Cout) flattened -> (27*Cin, Cout), no bias.
        "wzc": init_w(keys[3], (K_OFF * CHX, CH)),
        "wrc": init_w(keys[4], (K_OFF * CHX, CH)),
        "wqc": init_w(keys[5], (K_OFF * CHX, CH)),
        # point_transforms nn.Linear(Cin, Cout) with bias.
        "wzp": init_w(keys[6], (CHX, CH)),
        "wrp": init_w(keys[7], (CHX, CH)),
        "wqp": init_w(keys[8], (CHX, CH)),
        "bz": 0.01 * jax.random.normal(keys[9], (1, CH), jnp.float32),
        "br": 0.01 * jax.random.normal(keys[10], (1, CH), jnp.float32),
        "bq": 0.01 * jax.random.normal(keys[11], (1, CH), jnp.float32),
    }

    h_new = conv_gru_forward(h_F, x_F, coords, params)
    jax.block_until_ready(h_new)

    h_ref = conv_gru_reference(h_F, x_F, coords, params)
    assert h_new.shape == (N, CH)
    # Tolerance accounts for bf16 matmul operands (f32 accumulation/state).
    err = float(jnp.max(jnp.abs(h_new - h_ref)))
    assert err < 1e-1, f"mismatch vs reference: max abs err {err}"

    print("KERNEL_OK")
</pallas_src>

<mosaic_0001>
module attributes {stable_mosaic.version = 11 : i64} {
  func.func @_gates_kernel(%arg0: i32, %arg1: memref<128x3456xbf16, #tpu.memory_space<vmem>>, %arg2: memref<128x3456xbf16, #tpu.memory_space<vmem>>, %arg3: memref<128x128xf32, #tpu.memory_space<vmem>>, %arg4: memref<3456x256xbf16, #tpu.memory_space<vmem>>, %arg5: memref<3456x384xbf16, #tpu.memory_space<vmem>>, %arg6: memref<1x384xf32, #tpu.memory_space<vmem>>, %arg7: memref<128x128xf32, #tpu.memory_space<vmem>>, %arg8: memref<128x128xbf16, #tpu.memory_space<vmem>>, %arg9: memref<128x128xf32, #tpu.memory_space<vmem>>) attributes {dimension_semantics = [#tpu.dimension_semantics<parallel>], iteration_bounds = array<i64: 2>, scalar_prefetch = 0 : i64, scratch_operands = 0 : i64, tpu.core_type = #tpu.core_type<tc>, window_params = [{transform_indices = @transform_0, window_bounds = array<i64: 128, 3456>}, {transform_indices = @transform_1, window_bounds = array<i64: 128, 3456>}, {transform_indices = @transform_2, window_bounds = array<i64: 128, 128>}, {pipeline_mode = #tpu.pipeline_mode<synchronous>, transform_indices = @transform_3, window_bounds = array<i64: 3456, 256>}, {pipeline_mode = #tpu.pipeline_mode<synchronous>, transform_indices = @transform_4, window_bounds = array<i64: 3456, 384>}, {pipeline_mode = #tpu.pipeline_mode<synchronous>, transform_indices = @transform_5, window_bounds = array<i64: 1, 384>}, {transform_indices = @transform_6, window_bounds = array<i64: 128, 128>}, {transform_indices = @transform_7, window_bounds = array<i64: 128, 128>}, {transform_indices = @transform_8, window_bounds = array<i64: 128, 128>}]} {
    %c0 = arith.constant 0 : index
    %c0_0 = arith.constant 0 : index
    %0 = vector.load %arg2[%c0, %c0_0] : memref<128x3456xbf16, #tpu.memory_space<vmem>>, vector<128x3456xbf16>
    %c0_1 = arith.constant 0 : index
    %c0_2 = arith.constant 0 : index
    %1 = vector.load %arg5[%c0_1, %c0_2] : memref<3456x384xbf16, #tpu.memory_space<vmem>>, vector<3456x384xbf16>
    %cst = arith.constant dense<0.000000e+00> : vector<128x384xf32>
    %2 = tpu.matmul %0, %1, %cst {dimension_numbers = #tpu.dot_dimension_numbers<[1], [0], [0], [1], [0, 0, 1, 1], [], []>} : vector<128x3456xbf16>, vector<3456x384xbf16>, vector<128x384xf32> -> vector<128x384xf32>
    %c0_3 = arith.constant 0 : index
    %c0_4 = arith.constant 0 : index
    %3 = vector.load %arg1[%c0_3, %c0_4] : memref<128x3456xbf16, #tpu.memory_space<vmem>>, vector<128x3456xbf16>
    %c0_5 = arith.constant 0 : index
    %c0_6 = arith.constant 0 : index
    %4 = vector.load %arg4[%c0_5, %c0_6] : memref<3456x256xbf16, #tpu.memory_space<vmem>>, vector<3456x256xbf16>
    %cst_7 = arith.constant dense<0.000000e+00> : vector<128x256xf32>
    %5 = tpu.matmul %3, %4, %cst_7 {dimension_numbers = #tpu.dot_dimension_numbers<[1], [0], [0], [1], [0, 0, 1, 1], [], []>} : vector<128x3456xbf16>, vector<3456x256xbf16>, vector<128x256xf32> -> vector<128x256xf32>
    %c0_8 = arith.constant 0 : index
    %c0_9 = arith.constant 0 : index
    %6 = vector.load %arg6[%c0_8, %c0_9] : memref<1x384xf32, #tpu.memory_space<vmem>>, vector<1x384xf32>
    %7 = vector.broadcast %6 : vector<1x384xf32> to vector<128x384xf32>
    %8 = arith.addf %2, %7 : vector<128x384xf32>
    %9 = vector.extract_strided_slice %8 {offsets = [0, 0], sizes = [128, 256], strides = [1, 1]} : vector<128x384xf32> to vector<128x256xf32>
    %10 = arith.addf %9, %5 : vector<128x256xf32>
    %11 = arith.negf %10 : vector<128x256xf32>
    %12 = math.exp %11 : vector<128x256xf32>
    %cst_10 = arith.constant 1.000000e+00 : f32
    %13 = vector.broadcast %cst_10 : f32 to vector<128x256xf32>
    %14 = arith.addf %13, %12 : vector<128x256xf32>
    %15 = arith.divf %13, %14 : vector<128x256xf32>
    %16 = vector.extract_strided_slice %15 {offsets = [0, 0], sizes = [128, 128], strides = [1, 1]} : vector<128x256xf32> to vector<128x128xf32>
    %17 = vector.extract_strided_slice %15 {offsets = [0, 128], sizes = [128, 128], strides = [1, 1]} : vector<128x256xf32> to vector<128x128xf32>
    %c0_11 = arith.constant 0 : index
    %c0_12 = arith.constant 0 : index
    %18 = vector.load %arg7[%c0_11, %c0_12] : memref<128x128xf32, #tpu.memory_space<vmem>>, vector<128x128xf32>
    tpu.vector_store %arg7[%c0_11, %c0_12], %16 {strides = array<i32>} : memref<128x128xf32, #tpu.memory_space<vmem>>, vector<128x128xf32>,
    %c0_13 = arith.constant 0 : index
    %c0_14 = arith.constant 0 : index
    %19 = vector.load %arg3[%c0_13, %c0_14] : memref<128x128xf32, #tpu.memory_space<vmem>>, vector<128x128xf32>
    %20 = arith.mulf %17, %19 : vector<128x128xf32>
    %21 = arith.truncf %20 : vector<128x128xf32> to vector<128x128xbf16>
    %c0_15 = arith.constant 0 : index
    %c0_16 = arith.constant 0 : index
    %22 = vector.load %arg8[%c0_15, %c0_16] : memref<128x128xbf16, #tpu.memory_space<vmem>>, vector<128x128xbf16>
    tpu.vector_store %arg8[%c0_15, %c0_16], %21 {strides = array<i32>} : memref<128x128xbf16, #tpu.memory_space<vmem>>, vector<128x128xbf16>,
    %23 = vector.extract_strided_slice %8 {offsets = [0, 256], sizes = [128, 128], strides = [1, 1]} : vector<128x384xf32> to vector<128x128xf32>
    %c0_17 = arith.constant 0 : index
    %c0_18 = arith.constant 0 : index
    %24 = vector.load %arg9[%c0_17, %c0_18] : memref<128x128xf32, #tpu.memory_space<vmem>>, vector<128x128xf32>
    tpu.vector_store %arg9[%c0_17, %c0_18], %23 {strides = array<i32>} : memref<128x128xf32, #tpu.memory_space<vmem>>, vector<128x128xf32>,
    return
  }
  func.func @transform_0(%arg0: i32) -> (i32, i32) {
    %c0_i32 = arith.constant 0 : i32
    %c0_i32_0 = arith.constant 0 : i32
    return %arg0, %c0_i32 : i32, i32
  }
  func.func @transform_1(%arg0: i32) -> (i32, i32) {
    %c0_i32 = arith.constant 0 : i32
    %c0_i32_0 = arith.constant 0 : i32
    return %arg0, %c0_i32 : i32, i32
  }
  func.func @transform_2(%arg0: i32) -> (i32, i32) {
    %c0_i32 = arith.constant 0 : i32
    %c0_i32_0 = arith.constant 0 : i32
    return %arg0, %c0_i32 : i32, i32
  }
  func.func @transform_3(%arg0: i32) -> (i32, i32) {
    %c0_i32 = arith.constant 0 : i32
    %c0_i32_0 = arith.constant 0 : i32
    %c0_i32_1 = arith.constant 0 : i32
    return %c0_i32, %c0_i32_0 : i32, i32
  }
  func.func @transform_4(%arg0: i32) -> (i32, i32) {
    %c0_i32 = arith.constant 0 : i32
    %c0_i32_0 = arith.constant 0 : i32
    %c0_i32_1 = arith.constant 0 : i32
    return %c0_i32, %c0_i32_0 : i32, i32
  }
  func.func @transform_5(%arg0: i32) -> (i32, i32) {
    %c0_i32 = arith.constant 0 : i32
    %c0_i32_0 = arith.constant 0 : i32
    %c0_i32_1 = arith.constant 0 : i32
    return %c0_i32, %c0_i32_0 : i32, i32
  }
  func.func @transform_6(%arg0: i32) -> (i32, i32) {
    %c0_i32 = arith.constant 0 : i32
    %c0_i32_0 = arith.constant 0 : i32
    return %arg0, %c0_i32 : i32, i32
  }
  func.func @transform_7(%arg0: i32) -> (i32, i32) {
    %c0_i32 = arith.constant 0 : i32
    %c0_i32_0 = arith.constant 0 : i32
    return %arg0, %c0_i32 : i32, i32
  }
  func.func @transform_8(%arg0: i32) -> (i32, i32) {
    %c0_i32 = arith.constant 0 : i32
    %c0_i32_0 = arith.constant 0 : i32
    return %arg0, %c0_i32 : i32, i32
  }
}

module attributes {stable_mosaic.version = 11 : i64} {
  func.func @_update_kernel(%arg0: i32, %arg1: memref<128x3456xbf16, #tpu.memory_space<vmem>>, %arg2: memref<128x128xf32, #tpu.memory_space<vmem>>, %arg3: memref<128x128xf32, #tpu.memory_space<vmem>>, %arg4: memref<128x128xf32, #tpu.memory_space<vmem>>, %arg5: memref<3456x128xbf16, #tpu.memory_space<vmem>>, %arg6: memref<128x128xf32, #tpu.memory_space<vmem>>) attributes {dimension_semantics = [#tpu.dimension_semantics<parallel>], iteration_bounds = array<i64: 2>, scalar_prefetch = 0 : i64, scratch_operands = 0 : i64, tpu.core_type = #tpu.core_type<tc>, window_params = [{transform_indices = @transform_0, window_bounds = array<i64: 128, 3456>}, {transform_indices = @transform_1, window_bounds = array<i64: 128, 128>}, {transform_indices = @transform_2, window_bounds = array<i64: 128, 128>}, {transform_indices = @transform_3, window_bounds = array<i64: 128, 128>}, {pipeline_mode = #tpu.pipeline_mode<synchronous>, transform_indices = @transform_4, window_bounds = array<i64: 3456, 128>}, {transform_indices = @transform_5, window_bounds = array<i64: 128, 128>}]} {
    %c0 = arith.constant 0 : index
    %c0_0 = arith.constant 0 : index
    %0 = vector.load %arg1[%c0, %c0_0] : memref<128x3456xbf16, #tpu.memory_space<vmem>>, vector<128x3456xbf16>
    %c0_1 = arith.constant 0 : index
    %c0_2 = arith.constant 0 : index
    %1 = vector.load %arg5[%c0_1, %c0_2] : memref<3456x128xbf16, #tpu.memory_space<vmem>>, vector<3456x128xbf16>
    %cst = arith.constant dense<0.000000e+00> : vector<128x128xf32>
    %2 = tpu.matmul %0, %1, %cst {dimension_numbers = #tpu.dot_dimension_numbers<[1], [0], [0], [1], [0, 0, 1, 1], [], []>} : vector<128x3456xbf16>, vector<3456x128xbf16>, vector<128x128xf32> -> vector<128x128xf32>
    %c0_3 = arith.constant 0 : index
    %c0_4 = arith.constant 0 : index
    %3 = vector.load %arg4[%c0_3, %c0_4] : memref<128x128xf32, #tpu.memory_space<vmem>>, vector<128x128xf32>
    %4 = arith.addf %2, %3 : vector<128x128xf32>
    %5 = math.tanh %4 : vector<128x128xf32>
    %c0_5 = arith.constant 0 : index
    %c0_6 = arith.constant 0 : index
    %6 = vector.load %arg3[%c0_5, %c0_6] : memref<128x128xf32, #tpu.memory_space<vmem>>, vector<128x128xf32>
    %cst_7 = arith.constant 1.000000e+00 : f32
    %7 = vector.broadcast %cst_7 : f32 to vector<128x128xf32>
    %8 = arith.subf %7, %6 : vector<128x128xf32>
    %c0_8 = arith.constant 0 : index
    %c0_9 = arith.constant 0 : index
    %9 = vector.load %arg2[%c0_8, %c0_9] : memref<128x128xf32, #tpu.memory_space<vmem>>, vector<128x128xf32>
    %10 = arith.mulf %8, %9 : vector<128x128xf32>
    %11 = arith.mulf %6, %5 : vector<128x128xf32>
    %12 = arith.addf %10, %11 : vector<128x128xf32>
    %c0_10 = arith.constant 0 : index
    %c0_11 = arith.constant 0 : index
    %13 = vector.load %arg6[%c0_10, %c0_11] : memref<128x128xf32, #tpu.memory_space<vmem>>, vector<128x128xf32>
    tpu.vector_store %arg6[%c0_10, %c0_11], %12 {strides = array<i32>} : memref<128x128xf32, #tpu.memory_space<vmem>>, vector<128x128xf32>,
    return
  }
  func.func @transform_0(%arg0: i32) -> (i32, i32) {
    %c0_i32 = arith.constant 0 : i32
    %c0_i32_0 = arith.constant 0 : i32
    return %arg0, %c0_i32 : i32, i32
  }
  func.func @transform_1(%arg0: i32) -> (i32, i32) {
    %c0_i32 = arith.constant 0 : i32
    %c0_i32_0 = arith.constant 0 : i32
    return %arg0, %c0_i32 : i32, i32
  }
  func.func @transform_2(%arg0: i32) -> (i32, i32) {
    %c0_i32 = arith.constant 0 : i32
    %c0_i32_0 = arith.constant 0 : i32
    return %arg0, %c0_i32 : i32, i32
  }
  func.func @transform_3(%arg0: i32) -> (i32, i32) {
    %c0_i32 = arith.constant 0 : i32
    %c0_i32_0 = arith.constant 0 : i32
    return %arg0, %c0_i32 : i32, i32
  }
  func.func @transform_4(%arg0: i32) -> (i32, i32) {
    %c0_i32 = arith.constant 0 : i32
    %c0_i32_0 = arith.constant 0 : i32
    %c0_i32_1 = arith.constant 0 : i32
    return %c0_i32, %c0_i32_0 : i32, i32
  }
  func.func @transform_5(%arg0: i32) -> (i32, i32) {
    %c0_i32 = arith.constant 0 : i32
    %c0_i32_0 = arith.constant 0 : i32
    return %arg0, %c0_i32 : i32, i32
  }
}

</mosaic_0001>

<bundles_post_ra>
// kernel: conv_gru_forward.3
= control target key start
LH: loop header
LB: loop body
LE: loop exit
PB: predicated region body
PF: predicated region fallthrough
CT: control target
= control target key end

     0   :  { %10 = vsyncpa [#allocation3], 0  ;;  %s8373_s0 = inlined_call_operand.vmem [shape: bf16[256,3456], index: 0, kind: input, shape index: {}]   ;;  %s8374_s1 = inlined_call_operand.vmem [shape: f32[256,128], index: 1, kind: input, shape index: {}]   ;;  %s8375_s2 = inlined_call_operand.vmem [shape: f32[256,128], index: 2, kind: input, shape index: {}]   ;;  %s8376_s3 = inlined_call_operand.vmem [shape: f32[256,128], index: 3, kind: input, shape index: {}]   ;;  %s8377_s4 = inlined_call_operand.vmem [shape: bf16[3456,128], index: 4, kind: input, shape index: {}]   ;;  %s8378_s5 = inlined_call_operand.hbm [shape: f32[256,128], index: 5, kind: output, shape index: {}]  }
   0x1   :  { %12 = vsyncpa [#allocation3 + $0x1], 0  ;;  %s6988_s18 = smov 0   ;;  %s6990_s19 = smov 0  }
   0x2   :  { %s6992_s20 = smov 0   ;;  %s6994_s21 = smov 0  }
   0x3 LB: > { %s7009_s22 = sadd.s32 4294967295, %s6953_s21   ;;  %s4950_s23 = sadd.s32 4294967294, %s6953_s21   ;;  %s6953_s21 = sphi %s6994_s21, %s8384_s21   ;;  %s6949_s20 = sphi %s6992_s20, %s8383_s20   ;;  %s6945_s19 = sphi %s6990_s19, %s8382_s19   ;;  %s6941_s18 = sphi %s6988_s18, %s8381_s18  }
   0x4   : > { %s7013_s24 = sadd.s32 1, %s6953_s21   ;;  %s150_s25 = sadd.s32 1, %s6949_s20 }
   0x5   : > { %s147_s26 = ssub.s32 %s6953_s21, %s7013_s24  ;;  %p160_p0 = scmp.ne.s32.totalorder %s6949_s20, %s6945_s19 }
   0x6   : > { %p148_p1 = scmp.eq.s32.totalorder %s147_s26, 0  ;;  %p161_p2 = scmp.eq.s32.totalorder %s7009_s22, 1 }
   0x7   : > { %p166_p3 = scmp.ne.s32.totalorder %s6945_s19, %s6941_s18  ;;  %p167_p4 = scmp.eq.s32.totalorder %s4950_s23, 1 }
   0x8   : > { %s7024_s27 = scalar_select %p148_p1, %s6949_s20, %s150_s25  }
   0x9   : > { %p7026_p5 = por %p161_p2, %p160_p0  ;;  %p7030_p6 = por %p167_p4, %p166_p3 }
   0xa   : > { %p4953_p7 = scmp.ge.s32.totalorder %s6953_s21, 1  ;;  %p225_p8 = scmp.lt.s32.totalorder %s6953_s21, 3 }
   0xc   : > { %p226_p9 = pnand %p4953_p7, %p225_p8 }
   0xd   : > { %v6323_v0 = vld [vmem:[%s8377_s4 + $0x40] sm:$0xff] (!%p226_p9)   ;;  %v6327_v4 = vld [vmem:[%s8377_s4 + $0x48] sm:$0xff] (!%p226_p9)   ;;  %v6331_v8 = vld [vmem:[%s8377_s4 + $0x50] sm:$0xff] (!%p226_p9)   ;;  %s4955_s17 = sshll.u32 (!%p226_p9), %s7009_s22, 4  ;;  %s266_s14 = sand.u32 (!%p226_p9), 1, %s6945_s19  }
   0xe   : > { %229 = sbr.rel (%p226_p9) target bundleno = 737 (0x2e1), region = 40  ;;  %v6324_v1 = vld [vmem:[%s8377_s4] sm:$0xff] (!%p226_p9)   ;;  %5401 = vmatprep.subr.bf16.mxu0 (!%p226_p9), %v6323_v0  ;;  %v6328_v5 = vld [vmem:[%s8377_s4 + $0x8] sm:$0xff] (!%p226_p9)   ;;  %v6332_v9 = vld [vmem:[%s8377_s4 + $0x10] sm:$0xff] (!%p226_p9)   ;;  %p270_p10 = scmp.lt.s32.totalorder (!%p226_p9), %s4955_s17, 31 }
   0xf   : > { %v6325_v2 = vld [vmem:[%s8377_s4 + $0xc0] sm:$0xff] (!%p226_p9)   ;;  %5402 = vmatpush3.bf16.msra.mxu0 (!%p226_p9), %v6324_v1  ;;  %v6329_v6 = vld [vmem:[%s8377_s4 + $0xc8] sm:$0xff] (!%p226_p9)   ;;  %v6333_v10 = vld [vmem:[%s8377_s4 + $0xd0] sm:$0xff] (!%p226_p9)   ;;  %s5400_s23 = sshll.u32 (!%p226_p9), %s7009_s22, 11  ;;  %s8332_s7 = scalar_lea.sflag (!%p226_p9), [#allocation3], %s266_s14 }
  0x10   : > { %v6326_v3 = vld [vmem:[%s8377_s4 + $0x80] sm:$0xff] (!%p226_p9)   ;;  %5465 = vmatprep.subr.bf16.mxu1 (!%p226_p9), %v6325_v2  ;;  %5403 = vmatprep.subr.bf16.mxu0 (!%p226_p9), %v6327_v4  ;;  %v6330_v7 = vld [vmem:[%s8377_s4 + $0x88] sm:$0xff] (!%p226_p9)   ;;  %v6334_v11 = vld [vmem:[%s8377_s4 + $0x90] sm:$0xff] (!%p226_p9)   ;;  %s8324_s6 = scalar_lea.hbm (!%p226_p9), %s8378_s5, %s5400_s23  ;;  %s6955_s8 = smov (!%p226_p9), [#allocation2]  }
  0x11   : > { %5466 = vmatpush3.bf16.msra.mxu1 (!%p226_p9), %v6326_v3  ;;  %v6335_v12 = vld [vmem:[%s8377_s4 + $0x58] sm:$0xff] (!%p226_p9)   ;;  %v6339_v16 = vld [vmem:[%s8377_s4 + $0x60] sm:$0xff] (!%p226_p9)   ;;  %v6343_v20 = vld [vmem:[%s8377_s4 + $0x68] sm:$0xff] (!%p226_p9)  }
  0x12   : > { %5467 = vmatprep.subr.bf16.mxu1 (!%p226_p9), %v6329_v6  ;;  %v6336_v13 = vld [vmem:[%s8377_s4 + $0x18] sm:$0xff] (!%p226_p9)   ;;  %v6340_v17 = vld [vmem:[%s8377_s4 + $0x20] sm:$0xff] (!%p226_p9)   ;;  %v6344_v21 = vld [vmem:[%s8377_s4 + $0x28] sm:$0xff] (!%p226_p9)  }
  0x13   : > { %5404 = vmatpush3.bf16.msra.mxu0 (!%p226_p9), %v6328_v5  ;;  %v6337_v14 = vld [vmem:[%s8377_s4 + $0xd8] sm:$0xff] (!%p226_p9)   ;;  %v6341_v18 = vld [vmem:[%s8377_s4 + $0xe0] sm:$0xff] (!%p226_p9)   ;;  %v6345_v22 = vld [vmem:[%s8377_s4 + $0xe8] sm:$0xff] (!%p226_p9)  }
  0x14   : > { %5405 = vmatprep.subr.bf16.mxu0 (!%p226_p9), %v6331_v8  ;;  %v6338_v15 = vld [vmem:[%s8377_s4 + $0x98] sm:$0xff] (!%p226_p9)   ;;  %v6342_v19 = vld [vmem:[%s8377_s4 + $0xa0] sm:$0xff] (!%p226_p9)   ;;  %v6346_v23 = vld [vmem:[%s8377_s4 + $0xa8] sm:$0xff] (!%p226_p9)  }
  0x15   : > { %5468 = vmatpush3.bf16.msra.mxu1 %v6330_v7  ;;  %s8386_s17 = smov (!%p270_p10, %s4955_s17), 31  ;;  %v6347_v24 = vld [vmem:[%s8377_s4 + $0x70] sm:$0xff]   ;;  %v6351_v28 = vld [vmem:[%s8377_s4 + $0x78] sm:$0xff]   ;;  %v6358_v34 = vld [vmem:[%s8377_s4 + $0x140] sm:$0xff]  }
  0x16   : > { %5469 = vmatprep.subr.bf16.mxu1 %v6333_v10  ;;  %s6281_s9 = smul.u32 108, %s8386_s17  ;;  %v6348_v25 = vld [vmem:[%s8377_s4 + $0x30] sm:$0xff]   ;;  %v6352_v29 = vld [vmem:[%s8377_s4 + $0x38] sm:$0xff]   ;;  %v6362_v37 = vld [vmem:[%s8377_s4 + $0x100] sm:$0xff]   ;;  %s7593_s16 = sshll.u32 %s8386_s17, 3 }
  0x17   : > { %5406 = vmatpush3.bf16.msra.mxu0 %v6332_v9  ;;  %v6349_v26 = vld [vmem:[%s8377_s4 + $0xf0] sm:$0xff]   ;;  %v6353_v30 = vld [vmem:[%s8377_s4 + $0xf8] sm:$0xff]   ;;  %v6366_v40 = vld [vmem:[%s8377_s4 + $0x148] sm:$0xff]   ;;  %s7606_s17 = scalar_lea.vmem %s8376_s3, %s7593_s16  ;;  %s8223_s13 = scalar_lea.vmem %s8374_s1, %s7593_s16 }
  0x18   : > { %5407 = vmatprep.subr.bf16.mxu0 %v6335_v12  ;;  %v6350_v27 = vld [vmem:[%s8377_s4 + $0xb0] sm:$0xff]   ;;  %s7130_s30 = scalar_lea.vmem %s8373_s0, %s6281_s9  ;;  %v6357_v33 = vld [vmem:[%s8377_s4 + $0xb8] sm:$0xff]   ;;  %v6369_v42 = vld [vmem:[%s8377_s4 + $0x108] sm:$0xff]   ;;  %s8216_s9 = scalar_lea.vmem %s8375_s2, %s7593_s16 }
  0x19   : > { %5470 = vmatpush3.bf16.msra.mxu1 %v6334_v11  ;;  %v6354_v31 = vld [vmem:[%s7130_s30] ss:$108 sps:$4 sm:$0xff]   ;;  %v6356_v32 = vld [vmem:[%s7130_s30 + $0x4] ss:$108 sps:$4 sm:$0xff]   ;;  %v6359_v35 = vld [vmem:[%s7130_s30 + $0x8] ss:$108 sps:$4 sm:$0xff]  }
  0x1a   : > { %5471 = vmatprep.subr.bf16.mxu1 %v6337_v14  ;;  %3384 = vmatprep.mubr.bf16.mxu0 %v6356_v32  ;;  %v6361_v36 = vld [vmem:[%s7130_s30 + $0xc] ss:$108 sps:$4 sm:$0xff]   ;;  %v6363_v38 = vld [vmem:[%s7130_s30 + $0xdc] ss:$108 sps:$4 sm:$0xff]   ;;  %v6367_v41 = vld [vmem:[%s7130_s30 + $0xe4] ss:$108 sps:$4 sm:$0xff]  }
  0x1b   : > { %5408 = vmatpush3.bf16.msra.mxu0 %v6336_v13  ;;  %3481 = vmatprep.mubr.bf16.mxu1 %v6361_v36  ;;  %v6365_v39 = vld [vmem:[%s7130_s30 + $0xd8] ss:$108 sps:$4 sm:$0xff]   ;;  %v6370_v43 = vld [vmem:[%s7130_s30 + $0xe0] ss:$108 sps:$4 sm:$0xff]   ;;  %v6374_v45 = vld [vmem:[%s8377_s4 + $0x150] sm:$0xff]   ;;  %s4954_s16 = sshll.u32 %s266_s14, 7 }
  0x1c   : > { %5409 = vmatprep.subr.bf16.mxu0 %v6339_v16  ;;  %v6371_v44 = vld [vmem:[%s7130_s30 + $0x1b4] ss:$108 sps:$4 sm:$0xff]   ;;  %v6375_v46 = vld [vmem:[%s7130_s30 + $0x1bc] ss:$108 sps:$4 sm:$0xff]   ;;  %v6379_v49 = vld [vmem:[%s7130_s30 + $0x28c] ss:$108 sps:$4 sm:$0xff]  }
  0x1d   : > { %5472 = vmatpush3.bf16.msra.mxu1 %v6338_v15  ;;  %v6377_v47 = vld [vmem:[%s8377_s4 + $0x110] sm:$0xff]   ;;  %v6382_v50 = vld [vmem:[%s8377_s4 + $0x158] sm:$0xff]   ;;  %v6390_v54 = vld [vmem:[%s8377_s4 + $0x160] sm:$0xff]   ;;  %s8250_s15 = scalar_lea.vmem [#allocation2], %s4954_s16 }
  0x1e   : > { %5473 = vmatprep.subr.bf16.mxu1 %v6341_v18  ;;  %v6373_v48 = vld [vmem:[%s7130_s30 + $0x1b0] ss:$108 sps:$4 sm:$0xff]   ;;  %v6378_v51 = vld [vmem:[%s7130_s30 + $0x1b8] ss:$108 sps:$4 sm:$0xff]   ;;  %v6383_v53 = vld [vmem:[%s7130_s30 + $0x294] ss:$108 sps:$4 sm:$0xff]  }
  0x1f   : > { %5410 = vmatpush3.bf16.msra.mxu0 %v6340_v17  ;;  %v6385_v52 = vld [vmem:[%s8377_s4 + $0x118] sm:$0xff]   ;;  %v6381_v55 = vld [vmem:[%s7130_s30 + $0x288] ss:$108 sps:$4 sm:$0xff]   ;;  %v6393_v56 = vld [vmem:[%s8377_s4 + $0x120] sm:$0xff]  }
  0x20   : > { %5411 = vmatprep.subr.bf16.mxu0 %v6343_v20  ;;  %v6387_v57 = vld [vmem:[%s7130_s30 + $0x364] ss:$108 sps:$4 sm:$0xff]   ;;  %v6397_v61 = vld [vmem:[%s8377_s4 + $0x1c8] sm:$0xff]   ;;  %v6409_v7 = vld [vmem:[%s8377_s4 + $0x1d8] sm:$0xff]  }
  0x21   : > { %5474 = vmatpush3.bf16.msra.mxu1 %v6342_v19  ;;  %v6386_v58 = vld [vmem:[%s7130_s30 + $0x290] ss:$108 sps:$4 sm:$0xff]   ;;  %v6395_v59 = vld [vmem:[%s8377_s4 + $0x1c0] sm:$0xff]   ;;  %v6391_v62 = vld [vmem:[%s7130_s30 + $0x36c] ss:$108 sps:$4 sm:$0xff]  }
  0x22   : > { %5475 = vmatprep.subr.bf16.mxu1 %v6345_v22  ;;  %v6396_v60 = vld [vmem:[%s8377_s4 + $0x180] sm:$0xff]   ;;  %v6400_v63 = vld [vmem:[%s8377_s4 + $0x188] sm:$0xff]   ;;  %v6407_v5 = vld [vmem:[%s8377_s4 + $0x1d0] sm:$0xff]  }
  0x23   : > { %5412 = vmatpush3.bf16.msra.mxu0 %v6344_v21  ;;  %v6402_v0 = vld [vmem:[%s8377_s4 + $0x168] sm:$0xff]   ;;  %v6408_v6 = vld [vmem:[%s8377_s4 + $0x190] sm:$0xff]   ;;  %v6412_v9 = vld [vmem:[%s8377_s4 + $0x198] sm:$0xff]  }
  0x24   : > { %5413 = vmatprep.subr.bf16.mxu0 %v6347_v24  ;;  %v6389_v1 = vld [vmem:[%s7130_s30 + $0x360] ss:$108 sps:$4 sm:$0xff]   ;;  %v6398_v2 = vld [vmem:[%s7130_s30 + $0x43c] ss:$108 sps:$4 sm:$0xff]   ;;  %v6403_v8 = vld [vmem:[%s7130_s30 + $0x444] ss:$108 sps:$4 sm:$0xff]  }
  0x25   : > { %5476 = vmatpush3.bf16.msra.mxu1 %v6346_v23  ;;  %v6405_v3 = vld [vmem:[%s8377_s4 + $0x128] sm:$0xff]   ;;  %v6414_v10 = vld [vmem:[%s8377_s4 + $0x170] sm:$0xff]   ;;  %v6401_v11 = vld [vmem:[%s7130_s30 + $0x438] ss:$108 sps:$4 sm:$0xff]  }
  0x26   : > { %5477 = vmatprep.subr.bf16.mxu1 %v6349_v26  ;;  %v6394_v4 = vld [vmem:[%s7130_s30 + $0x368] ss:$108 sps:$4 sm:$0xff]   ;;  %v6406_v12 = vld [vmem:[%s7130_s30 + $0x440] ss:$108 sps:$4 sm:$0xff]   ;;  %v6413_v19 = vld [vmem:[%s7130_s30 + $0x510] ss:$108 sps:$4 sm:$0xff]  }
  0x27   : > { %5414 = vmatpush3.bf16.msra.mxu0 %v6348_v25  ;;  %v6410_v13 = vld [vmem:[%s7130_s30 + $0x514] ss:$108 sps:$4 sm:$0xff]   ;;  %v6415_v15 = vld [vmem:[%s7130_s30 + $0x51c] ss:$108 sps:$4 sm:$0xff]   ;;  %v6422_v22 = vld [vmem:[%s7130_s30 + $0x5ec] ss:$108 sps:$4 sm:$0xff]  }
  0x28   : > { %5415 = vmatprep.subr.bf16.mxu0 %v6351_v28  ;;  %v6417_v14 = vld [vmem:[%s8377_s4 + $0x130] sm:$0xff]   ;;  %v6419_v16 = vld [vmem:[%s8377_s4 + $0x1e0] sm:$0xff]   ;;  %v6421_v18 = vld [vmem:[%s8377_s4 + $0x1e8] sm:$0xff]  }
  0x29   : > { %5478 = vmatpush3.bf16.msra.mxu1 %v6350_v27  ;;  %v6420_v17 = vld [vmem:[%s8377_s4 + $0x1a0] sm:$0xff]   ;;  %v6424_v20 = vld [vmem:[%s8377_s4 + $0x1a8] sm:$0xff]   ;;  %v6426_v21 = vld [vmem:[%s8377_s4 + $0x178] sm:$0xff]  }
  0x2a   : > { %5479 = vmatprep.subr.bf16.mxu1 %v6353_v30  ;;  %v6418_v23 = vld [vmem:[%s7130_s30 + $0x518] ss:$108 sps:$4 sm:$0xff]   ;;  %v6427_v25 = vld [vmem:[%s7130_s30 + $0x5f4] ss:$108 sps:$4 sm:$0xff]  }
  0x2b   : > { %5416 = vmatpush3.bf16.msra.mxu0 %v6352_v29  ;;  %v6429_v24 = vld [vmem:[%s8377_s4 + $0x138] sm:$0xff]   ;;  %v6431_v26 = vld [vmem:[%s8377_s4 + $0x1f0] sm:$0xff]   ;;  %v6442_v36 = vld [vmem:[%s8377_s4 + $0x200] sm:$0xff]  }
  0x2c   : > { %5529 = vmatprep.subr.bf16.mxu0 %v6358_v34  ;;  %v6432_v27 = vld [vmem:[%s8377_s4 + $0x1b0] sm:$0xff]   ;;  %v6433_v28 = vld [vmem:[%s8377_s4 + $0x1f8] sm:$0xff]  }
  0x2d   : > { %5480 = vmatpush3.bf16.msra.mxu1 %v6357_v33  ;;  %v6425_v29 = vld [vmem:[%s7130_s30 + $0x5e8] ss:$108 sps:$4 sm:$0xff]   ;;  %v6437_v30 = vld [vmem:[%s8377_s4 + $0x1b8] sm:$0xff]  }
  0x2e   : > { %3385 = vmatmul.mubr.bf16.vlgmr.msra.gmra.mrb[0].mxu0 %v6354_v31  ;;  %5593 = vmatprep.subr.bf16.mxu1 %v6395_v59  ;;  %v6438_v31 = vld [vmem:[%s8377_s4 + $0x240] sm:$0xff]   ;;  %v6430_v33 = vld [vmem:[%s7130_s30 + $0x5f0] ss:$108 sps:$4 sm:$0xff]   ;;  %v6482_v59 = vld [vmem:[%s8377_s4 + $0x268] sm:$0xff]  }
  0x2f   : > { %5530 = vmatpush3.bf16.msra.mxu0 %v6362_v37  ;;  %3392 = vmatprep.mubr.bf16.mxu0 %v6363_v38  ;;  %v6436_v32 = vld [vmem:[%s7130_s30 + $0x14] ss:$108 sps:$4 sm:$0xff]   ;;  %v6441_v34 = vld [vmem:[%s7130_s30 + $0x1c] ss:$108 sps:$4 sm:$0xff]   ;;  %v6443_v37 = vld [vmem:[%s7130_s30 + $0xec] ss:$108 sps:$4 sm:$0xff]  }
  0x30   : > { %3482 = vmatmul.mubr.bf16.vlgmr.msra.gmra.mrb[0].mxu1 %v6359_v35  ;;  %5531 = vmatprep.subr.bf16.mxu0 %v6366_v40  ;;  %v6434_v35 = vld [vmem:[%s7130_s30 + $0x10] ss:$108 sps:$4 sm:$0xff]   ;;  %v6446_v38 = vld [vmem:[%s8377_s4 + $0x248] sm:$0xff]   ;;  %v6447_v40 = vld [vmem:[%s7130_s30 + $0xf4] ss:$108 sps:$4 sm:$0xff]  }
  0x31   : > { %3489 = vmatprep.mubr.bf16.mxu1 %v6367_v41  ;;  %5594 = vmatpush3.bf16.msra.mxu1 %v6396_v60  ;;  %v6449_v41 = vld [vmem:[%s8377_s4 + $0x208] sm:$0xff]   ;;  %v6463_v60 = vld [vmem:[%s7130_s30 + $0x2a4] ss:$108 sps:$4 sm:$0xff]  }
  0x32   : > { %5595 = vmatprep.subr.bf16.mxu1 %v6397_v61  ;;  %v6485_v61 = vld [vmem:[%s8377_s4 + $0x228] sm:$0xff]  }
  0x33   : > { %5532 = vmatpush3.bf16.msra.mxu0 %v6369_v42  ;;  %v6454_v42 = vld [vmem:[%s8377_s4 + $0x250] sm:$0xff]  }
  0x34   : > { %5533 = vmatprep.subr.bf16.mxu0 %v6374_v45  ;;  %v6457_v45 = vld [vmem:[%s8377_s4 + $0x210] sm:$0xff]  }
  0x35   : > { %5596 = vmatpush3.bf16.msra.mxu1 %v6400_v63  ;;  %v6467_v63 = vld [vmem:[%s7130_s30 + $0x374] ss:$108 sps:$4 sm:$0xff]  }
  0x36   : > { %3393 = vmatmul.mubr.bf16.gmra.mrb[4].mxu0 %v6365_v39  ;;  %5597 = vmatprep.subr.bf16.mxu1 %v6407_v5  ;;  %v6439_v39 = vld [vmem:[%s7130_s30 + $0x18] ss:$108 sps:$4 sm:$0xff]  }
  0x37   : > { %3400 = vmatprep.mubr.bf16.mxu0 %v6371_v44  ;;  %5534 = vmatpush3.bf16.msra.mxu0 %v6377_v47  ;;  %v6451_v44 = vld [vmem:[%s7130_s30 + $0x1c4] ss:$108 sps:$4 sm:$0xff]   ;;  %v6492_v5 = vld [vmem:[%s8377_s4 + $0x298] sm:$0xff]  }
  0x38   : > { %3490 = vmatmul.mubr.bf16.gmra.mrb[4].mxu1 %v6370_v43  ;;  %5535 = vmatprep.subr.bf16.mxu0 %v6382_v50  ;;  %v6445_v43 = vld [vmem:[%s7130_s30 + $0xe8] ss:$108 sps:$4 sm:$0xff]   ;;  %v6450_v47 = vld [vmem:[%s7130_s30 + $0xf0] ss:$108 sps:$4 sm:$0xff]   ;;  %v6470_v50 = vld [vmem:[%s8377_s4 + $0x260] sm:$0xff]  }
  0x39   : > { %3497 = vmatprep.mubr.bf16.mxu1 %v6375_v46  ;;  %5598 = vmatpush3.bf16.msra.mxu1 %v6408_v6  ;;  %v6462_v46 = vld [vmem:[%s8377_s4 + $0x258] sm:$0xff]   ;;  %v6494_v6 = vld [vmem:[%s8377_s4 + $0x270] sm:$0xff]  }
  0x3a   : > { %5599 = vmatprep.subr.bf16.mxu1 %v6409_v7  ;;  %v6469_v7 = vld [vmem:[%s7130_s30 + $0x370] ss:$108 sps:$4 sm:$0xff]  }
  0x3b   : > { %5536 = vmatpush3.bf16.msra.mxu0 %v6385_v52  ;;  %v6475_v52 = vld [vmem:[%s8377_s4 + $0x2c0] sm:$0xff]  }
  0x3c   : > { %5537 = vmatprep.subr.bf16.mxu0 %v6390_v54  ;;  %v6476_v54 = vld [vmem:[%s8377_s4 + $0x280] sm:$0xff]  }
  0x3d   : > { %5600 = vmatpush3.bf16.msra.mxu1 %v6412_v9  ;;  %v6478_v9 = vld [vmem:[%s7130_s30 + $0x44c] ss:$108 sps:$4 sm:$0xff]  }
  0x3e   : > { %3401 = vmatmul.mubr.bf16.gmra.mrb[8].mxu0 %v6373_v48  ;;  %5601 = vmatprep.subr.bf16.mxu1 %v6419_v16  ;;  %v6455_v48 = vld [vmem:[%s7130_s30 + $0x1cc] ss:$108 sps:$4 sm:$0xff]  }
  0x3f   : > { %3408 = vmatprep.mubr.bf16.mxu0 %v6379_v49  ;;  %5538 = vmatpush3.bf16.msra.mxu0 %v6393_v56  ;;  %v6465_v49 = vld [vmem:[%s8377_s4 + $0x218] sm:$0xff]   ;;  %v6473_v56 = vld [vmem:[%s8377_s4 + $0x220] sm:$0xff]  }
  0x40   : > { %3498 = vmatmul.mubr.bf16.gmra.mrb[8].mxu1 %v6378_v51  ;;  %5539 = vmatprep.subr.bf16.mxu0 %v6402_v0  ;;  %v6453_v51 = vld [vmem:[%s7130_s30 + $0x1c0] ss:$108 sps:$4 sm:$0xff]   ;;  %v6487_v0 = vld [vmem:[%s8377_s4 + $0x2d0] sm:$0xff]   ;;  %v6506_v16 = vld [vmem:[%s8377_s4 + $0x278] sm:$0xff]  }
  0x41   : > { %3505 = vmatprep.mubr.bf16.mxu1 %v6383_v53  ;;  %5602 = vmatpush3.bf16.msra.mxu1 %v6420_v17  ;;  %v6459_v53 = vld [vmem:[%s7130_s30 + $0x29c] ss:$108 sps:$4 sm:$0xff]  }
  0x42   : > { %5603 = vmatprep.subr.bf16.mxu1 %v6421_v18  ;;  %v6481_v17 = vld [vmem:[%s7130_s30 + $0x448] ss:$108 sps:$4 sm:$0xff]   ;;  %v6490_v18 = vld [vmem:[%s7130_s30 + $0x524] ss:$108 sps:$4 sm:$0xff]  }
  0x43   : > { %5540 = vmatpush3.bf16.msra.mxu0 %v6405_v3  ;;  %v6466_v3 = vld [vmem:[%s7130_s30 + $0x2a0] ss:$108 sps:$4 sm:$0xff]  }
  0x44   : > { %5541 = vmatprep.subr.bf16.mxu0 %v6414_v10  ;;  %v6499_v10 = vld [vmem:[%s8377_s4 + $0x2e0] sm:$0xff]  }
  0x45   : > { %5604 = vmatpush3.bf16.msra.mxu1 %v6424_v20  ;;  %v6511_v20 = vld [vmem:[%s8377_s4 + $0x2f0] sm:$0xff]  }
  0x46   : > { %3409 = vmatmul.mubr.bf16.gmra.mrb[12].mxu0 %v6381_v55  ;;  %5605 = vmatprep.subr.bf16.mxu1 %v6431_v26  ;;  %v6477_v55 = vld [vmem:[%s8377_s4 + $0x2c8] sm:$0xff]   ;;  %v6518_v26 = vld [vmem:[%s8377_s4 + $0x340] sm:$0xff]  }
  0x47   : > { %3416 = vmatprep.mubr.bf16.mxu0 %v6387_v57  ;;  %5542 = vmatpush3.bf16.msra.mxu0 %v6417_v14  ;;  %v6458_v57 = vld [vmem:[%s7130_s30 + $0x1c8] ss:$108 sps:$4 sm:$0xff]  }
  0x48   : > { %3506 = vmatmul.mubr.bf16.gmra.mrb[12].mxu1 %v6386_v58  ;;  %5543 = vmatprep.subr.bf16.mxu0 %v6426_v21  ;;  %v6480_v58 = vld [vmem:[%s8377_s4 + $0x288] sm:$0xff]   ;;  %v6512_v21 = vld [vmem:[%s8377_s4 + $0x2b0] sm:$0xff]  }
  0x49   : > { %3513 = vmatprep.mubr.bf16.mxu1 %v6391_v62  ;;  %5606 = vmatpush3.bf16.msra.mxu1 %v6432_v27  ;;  %v6461_v62 = vld [vmem:[%s7130_s30 + $0x298] ss:$108 sps:$4 sm:$0xff]   ;;  %v6504_v14 = vld [vmem:[%s8377_s4 + $0x2a8] sm:$0xff]  }
  0x4a   : > { %5607 = vmatprep.subr.bf16.mxu1 %v6433_v28  ;;  %v6493_v27 = vld [vmem:[%s7130_s30 + $0x520] ss:$108 sps:$4 sm:$0xff]   ;;  %v6502_v28 = vld [vmem:[%s7130_s30 + $0x5fc] ss:$108 sps:$4 sm:$0xff]  }
  0x4b   : > { %5544 = vmatpush3.bf16.msra.mxu0 %v6429_v24  ;;  %v6495_v24 = vld [vmem:[%s7130_s30 + $0x52c] ss:$108 sps:$4 sm:$0xff]  }
  0x4c   : > { %5657 = vmatprep.subr.bf16.mxu0 %v6438_v31  ;;  %v6505_v31 = vld [vmem:[%s7130_s30 + $0x5f8] ss:$108 sps:$4 sm:$0xff]  }
  0x4d   : > { %5608 = vmatpush3.bf16.msra.mxu1 %v6437_v30  ;;  %v6507_v30 = vld [vmem:[%s7130_s30 + $0x604] ss:$108 sps:$4 sm:$0xff]  }
  0x4e   : > { %3417 = vmatmul.mubr.bf16.gmra.mrb[16].mxu0 %v6389_v1  ;;  %5721 = vmatprep.subr.bf16.mxu1 %v6475_v52  ;;  %v6488_v1 = vld [vmem:[%s8377_s4 + $0x290] sm:$0xff]   ;;  %v6535_v52 = vld [vmem:[%s7130_s30 + $0x1dc] ss:$108 sps:$4 sm:$0xff]  }
  0x4f   : > { %3424 = vmatprep.mubr.bf16.mxu0 %v6398_v2  ;;  %v6489_v2 = vld [vmem:[%s8377_s4 + $0x2d8] sm:$0xff]  }
  0x50   : > { %3514 = vmatmul.mubr.bf16.gmra.mrb[16].mxu1 %v6394_v4  ;;  %v6471_v4 = vld [vmem:[%s7130_s30 + $0x37c] ss:$108 sps:$4 sm:$0xff]  }
  0x51   : > { %3521 = vmatprep.mubr.bf16.mxu1 %v6403_v8  ;;  %v6497_v8 = vld [vmem:[%s8377_s4 + $0x230] sm:$0xff]  }
  0x56   : > { %3425 = vmatmul.mubr.bf16.gmra.mrb[20].mxu0 %v6401_v11  ;;  %v6500_v11 = vld [vmem:[%s8377_s4 + $0x2a0] sm:$0xff]  }
  0x57   : > { %3432 = vmatprep.mubr.bf16.mxu0 %v6410_v13  ;;  %v6474_v13 = vld [vmem:[%s7130_s30 + $0x378] ss:$108 sps:$4 sm:$0xff]  }
  0x58   : > { %3522 = vmatmul.mubr.bf16.gmra.mrb[20].mxu1 %v6406_v12  ;;  %v6501_v12 = vld [vmem:[%s8377_s4 + $0x2e8] sm:$0xff]  }
  0x59   : > { %3529 = vmatprep.mubr.bf16.mxu1 %v6415_v15  ;;  %v6483_v15 = vld [vmem:[%s7130_s30 + $0x454] ss:$108 sps:$4 sm:$0xff]  }
  0x5e   : > { %3433 = vmatmul.mubr.bf16.gmra.mrb[24].mxu0 %v6413_v19  ;;  %v6509_v19 = vld [vmem:[%s8377_s4 + $0x238] sm:$0xff]  }
  0x5f   : > { %3440 = vmatprep.mubr.bf16.mxu0 %v6422_v22  ;;  %v6513_v22 = vld [vmem:[%s8377_s4 + $0x2f8] sm:$0xff]  }
  0x60   : > { %3530 = vmatmul.mubr.bf16.gmra.mrb[24].mxu1 %v6418_v23  ;;  %v6486_v23 = vld [vmem:[%s7130_s30 + $0x450] ss:$108 sps:$4 sm:$0xff]  }
  0x61   : > { %3537 = vmatprep.mubr.bf16.mxu1 %v6427_v25  ;;  %v6517_v25 = vld [vmem:[%s8377_s4 + $0x2b8] sm:$0xff]  }
  0x66   : > { %3441 = vmatmul.mubr.bf16.gmra.mrb[28].mxu0 %v6425_v29  ;;  %v6498_v29 = vld [vmem:[%s7130_s30 + $0x528] ss:$108 sps:$4 sm:$0xff]  }
  0x67   : > { %3578 = vmatprep.mubr.bf16.mxu0 %v6436_v32  ;;  %v6516_v32 = vld [vmem:[%s7130_s30 + $0x24] ss:$108 sps:$4 sm:$0xff]  }
  0x68   : > { %3538 = vmatmul.mubr.bf16.gmra.mrb[28].mxu1 %v6430_v33  ;;  %v6510_v33 = vld [vmem:[%s7130_s30 + $0x600] ss:$108 sps:$4 sm:$0xff]  }
  0x69   : > { %3675 = vmatprep.mubr.bf16.mxu1 %v6441_v34  ;;  %v6521_v34 = vld [vmem:[%s7130_s30 + $0x2c] ss:$108 sps:$4 sm:$0xff]  }
  0x6e   : > { %3579 = vmatmul.mubr.bf16.vlgmr.msra.gmra.mrb[32].mxu0 %v6434_v35  ;;  %v6514_v35 = vld [vmem:[%s7130_s30 + $0x20] ss:$108 sps:$4 sm:$0xff]  }
  0x6f   : > { %5658 = vmatpush3.bf16.msra.mxu0 %v6442_v36  ;;  %3586 = vmatprep.mubr.bf16.mxu0 %v6443_v37  ;;  %v6522_v36 = vld [vmem:[%s8377_s4 + $0x300] sm:$0xff]   ;;  %v6519_v37 = vld [vmem:[%s7130_s30 + $0x28] ss:$108 sps:$4 sm:$0xff]  }
  0x70   : > { %5659 = vmatprep.subr.bf16.mxu0 %v6446_v38  ;;  %3676 = vmatmul.mubr.bf16.vlgmr.msra.gmra.mrb[32].mxu1 %v6439_v39  ;;  %v6523_v38 = vld [vmem:[%s7130_s30 + $0xfc] ss:$108 sps:$4 sm:$0xff]  }
  0x71   : > { %3683 = vmatprep.mubr.bf16.mxu1 %v6447_v40  ;;  %5722 = vmatpush3.bf16.msra.mxu1 %v6476_v54  ;;  %v6526_v39 = vld [vmem:[%s8377_s4 + $0x348] sm:$0xff]   ;;  %v6527_v40 = vld [vmem:[%s7130_s30 + $0x104] ss:$108 sps:$4 sm:$0xff]  }
  0x72   : > { %5723 = vmatprep.subr.bf16.mxu1 %v6477_v55  ;;  %v6550_v54 = vld [vmem:[%s8377_s4 + $0x360] sm:$0xff]   ;;  %v6567_v55 = vld [vmem:[%s8377_s4 + $0x3d0] sm:$0xff]  }
  0x73   : > { %5660 = vmatpush3.bf16.msra.mxu0 %v6449_v41  ;;  %v6529_v41 = vld [vmem:[%s8377_s4 + $0x308] sm:$0xff]  }
  0x74   : > { %5661 = vmatprep.subr.bf16.mxu0 %v6454_v42  ;;  %v6555_v42 = vld [vmem:[%s8377_s4 + $0x3c0] sm:$0xff]  }
  0x75   : > { %5724 = vmatpush3.bf16.msra.mxu1 %v6480_v58  ;;  %v6533_v58 = vld [vmem:[%s7130_s30 + $0x1d0] ss:$108 sps:$4 sm:$0xff]  }
  0x76   : > { %3587 = vmatmul.mubr.bf16.gmra.mrb[36].mxu0 %v6445_v43  ;;  %5725 = vmatprep.subr.bf16.mxu1 %v6487_v0  ;;  %v6556_v43 = vld [vmem:[%s8377_s4 + $0x380] sm:$0xff]   ;;  %v6562_v0 = vld [vmem:[%s8377_s4 + $0x368] sm:$0xff]  }
  0x77   : > { %3594 = vmatprep.mubr.bf16.mxu0 %v6451_v44  ;;  %5662 = vmatpush3.bf16.msra.mxu0 %v6457_v45  ;;  %v6557_v44 = vld [vmem:[%s8377_s4 + $0x3c8] sm:$0xff]   ;;  %v6525_v45 = vld [vmem:[%s7130_s30 + $0xf8] ss:$108 sps:$4 sm:$0xff]  }
  0x78   : > { %5663 = vmatprep.subr.bf16.mxu0 %v6462_v46  ;;  %3684 = vmatmul.mubr.bf16.gmra.mrb[36].mxu1 %v6450_v47  ;;  %v6534_v46 = vld [vmem:[%s8377_s4 + $0x350] sm:$0xff]  }
  0x79   : > { %3691 = vmatprep.mubr.bf16.mxu1 %v6455_v48  ;;  %5726 = vmatpush3.bf16.msra.mxu1 %v6488_v1  ;;  %v6531_v47 = vld [vmem:[%s7130_s30 + $0x1d4] ss:$108 sps:$4 sm:$0xff]   ;;  %v6560_v48 = vld [vmem:[%s8377_s4 + $0x388] sm:$0xff]  }
  0x7a   : > { %5727 = vmatprep.subr.bf16.mxu1 %v6489_v2  ;;  %v6565_v1 = vld [vmem:[%s8377_s4 + $0x328] sm:$0xff]   ;;  %v6574_v2 = vld [vmem:[%s8377_s4 + $0x370] sm:$0xff]  }
  0x7b   : > { %5664 = vmatpush3.bf16.msra.mxu0 %v6465_v49  ;;  %v6530_v49 = vld [vmem:[%s7130_s30 + $0x100] ss:$108 sps:$4 sm:$0xff]  }
  0x7c   : > { %5665 = vmatprep.subr.bf16.mxu0 %v6470_v50  ;;  %v6537_v50 = vld [vmem:[%s8377_s4 + $0x310] sm:$0xff]  }
  0x7d   : > { %5728 = vmatpush3.bf16.msra.mxu1 %v6492_v5  ;;  %v6580_v5 = vld [vmem:[%s8377_s4 + $0x3a0] sm:$0xff]  }
  0x7e   : > { %3595 = vmatmul.mubr.bf16.gmra.mrb[40].mxu0 %v6453_v51  ;;  %5729 = vmatprep.subr.bf16.mxu1 %v6499_v10  ;;  %v6542_v51 = vld [vmem:[%s8377_s4 + $0x358] sm:$0xff]  }
  0x7f   : > { %3602 = vmatprep.mubr.bf16.mxu0 %v6459_v53  ;;  %5666 = vmatpush3.bf16.msra.mxu0 %v6473_v56  ;;  %v6545_v53 = vld [vmem:[%s8377_s4 + $0x318] sm:$0xff]   ;;  %v6568_v56 = vld [vmem:[%s8377_s4 + $0x390] sm:$0xff]  }
  0x80   : > { %5667 = vmatprep.subr.bf16.mxu0 %v6482_v59  ;;  %3692 = vmatmul.mubr.bf16.gmra.mrb[40].mxu1 %v6458_v57  ;;  %v6569_v57 = vld [vmem:[%s8377_s4 + $0x3d8] sm:$0xff]  }
  0x81   : > { %3699 = vmatprep.mubr.bf16.mxu1 %v6463_v60  ;;  %5730 = vmatpush3.bf16.msra.mxu1 %v6500_v11  ;;  %v6539_v59 = vld [vmem:[%s7130_s30 + $0x2ac] ss:$108 sps:$4 sm:$0xff]   ;;  %v6546_v11 = vld [vmem:[%s7130_s30 + $0x2b0] ss:$108 sps:$4 sm:$0xff]  }
  0x82   : > { %5731 = vmatprep.subr.bf16.mxu1 %v6501_v12  ;;  %v6572_v60 = vld [vmem:[%s8377_s4 + $0x398] sm:$0xff]  }
  0x83   : > { %5668 = vmatpush3.bf16.msra.mxu0 %v6485_v61  ;;  %v6538_v61 = vld [vmem:[%s7130_s30 + $0x1d8] ss:$108 sps:$4 sm:$0xff]  }
  0x84   : > { %5669 = vmatprep.subr.bf16.mxu0 %v6494_v6  ;;  %v6581_v6 = vld [vmem:[%s8377_s4 + $0x3e8] sm:$0xff]   ;;  %v6586_v10 = vld [vmem:[%s8377_s4 + $0x378] sm:$0xff]  }
  0x85   : > { %5732 = vmatpush3.bf16.msra.mxu1 %v6504_v14  ;;  %v6551_v12 = vld [vmem:[%s7130_s30 + $0x38c] ss:$108 sps:$4 sm:$0xff]   ;;  %v6591_v14 = vld [vmem:[%s8377_s4 + $0x3f0] sm:$0xff]  }
  0x86   : > { %3603 = vmatmul.mubr.bf16.gmra.mrb[44].mxu0 %v6461_v62  ;;  %5733 = vmatprep.subr.bf16.mxu1 %v6511_v20  ;;  %v6553_v62 = vld [vmem:[%s8377_s4 + $0x320] sm:$0xff]   ;;  %v6597_v20 = vld [vmem:[%s8377_s4 + $0x3b8] sm:$0xff]  }
  0x87   : > { %3610 = vmatprep.mubr.bf16.mxu0 %v6467_v63  ;;  %5670 = vmatpush3.bf16.msra.mxu0 %v6497_v8  ;;  %v6543_v63 = vld [vmem:[%s7130_s30 + $0x2b4] ss:$108 sps:$4 sm:$0xff]  }
  0x88   : > { %3700 = vmatmul.mubr.bf16.gmra.mrb[44].mxu1 %v6466_v3  ;;  %5671 = vmatprep.subr.bf16.mxu0 %v6506_v16  ;;  %v6579_v3 = vld [vmem:[%s8377_s4 + $0x3e0] sm:$0xff]   ;;  %v6577_v8 = vld [vmem:[%s8377_s4 + $0x330] sm:$0xff]   ;;  %v6593_v16 = vld [vmem:[%s8377_s4 + $0x3f8] sm:$0xff]  }
  0x89   : > { %3707 = vmatprep.mubr.bf16.mxu1 %v6471_v4  ;;  %5734 = vmatpush3.bf16.msra.mxu1 %v6512_v21  ;;  %v6541_v4 = vld [vmem:[%s7130_s30 + $0x2a8] ss:$108 sps:$4 sm:$0xff]   ;;  %v6598_v21 = vld [vmem:[%s8377_s4 + $0x440] sm:$0xff]  }
  0x8a   : > { %5735 = vmatprep.subr.bf16.mxu1 %v6513_v22  ;;  %v6563_v22 = vld [vmem:[%s7130_s30 + $0x464] ss:$108 sps:$4 sm:$0xff]  }
  0x8b   : > { %5672 = vmatpush3.bf16.msra.mxu0 %v6509_v19  ;;  %v6558_v19 = vld [vmem:[%s7130_s30 + $0x45c] ss:$108 sps:$4 sm:$0xff]  }
  0x8c   : > { %5785 = vmatprep.subr.bf16.mxu0 %v6518_v26  ;;  %v6575_v26 = vld [vmem:[%s7130_s30 + $0x53c] ss:$108 sps:$4 sm:$0xff]  }
  0x8d   : > { %5736 = vmatpush3.bf16.msra.mxu1 %v6517_v25  ;;  %v6566_v25 = vld [vmem:[%s7130_s30 + $0x460] ss:$108 sps:$4 sm:$0xff]  }
  0x8e   : > { %3611 = vmatmul.mubr.bf16.gmra.mrb[48].mxu0 %v6469_v7  ;;  %5849 = vmatprep.subr.bf16.mxu1 %v6555_v42  ;;  %v6547_v7 = vld [vmem:[%s7130_s30 + $0x384] ss:$108 sps:$4 sm:$0xff]  }
  0x8f   : > { %3618 = vmatprep.mubr.bf16.mxu0 %v6478_v9  ;;  %v6584_v9 = vld [vmem:[%s8377_s4 + $0x3a8] sm:$0xff]   ;;  %v6636_v42 = vld [vmem:[%s8377_s4 + $0x480] sm:$0xff]  }
  0x90   : > { %3708 = vmatmul.mubr.bf16.gmra.mrb[48].mxu1 %v6474_v13  ;;  %v6589_v13 = vld [vmem:[%s8377_s4 + $0x338] sm:$0xff]  }
  0x91   : > { %3715 = vmatprep.mubr.bf16.mxu1 %v6483_v15  ;;  %v6592_v15 = vld [vmem:[%s8377_s4 + $0x3b0] sm:$0xff]  }
  0x96   : > { %3619 = vmatmul.mubr.bf16.gmra.mrb[52].mxu0 %v6481_v17  ;;  %v6549_v17 = vld [vmem:[%s7130_s30 + $0x380] ss:$108 sps:$4 sm:$0xff]  }
  0x97   : > { %3626 = vmatprep.mubr.bf16.mxu0 %v6490_v18  ;;  %v6554_v18 = vld [vmem:[%s7130_s30 + $0x388] ss:$108 sps:$4 sm:$0xff]  }
  0x98   : > { %3716 = vmatmul.mubr.bf16.gmra.mrb[52].mxu1 %v6486_v23  ;;  %v6561_v23 = vld [vmem:[%s7130_s30 + $0x458] ss:$108 sps:$4 sm:$0xff]  }
  0x99   : > { %3723 = vmatprep.mubr.bf16.mxu1 %v6495_v24  ;;  %v6570_v24 = vld [vmem:[%s7130_s30 + $0x534] ss:$108 sps:$4 sm:$0xff]  }
  0x9e   : > { %3627 = vmatmul.mubr.bf16.gmra.mrb[56].mxu0 %v6493_v27  ;;  %v6573_v27 = vld [vmem:[%s7130_s30 + $0x530] ss:$108 sps:$4 sm:$0xff]  }
  0x9f   : > { %3634 = vmatprep.mubr.bf16.mxu0 %v6502_v28  ;;  %v6582_v28 = vld [vmem:[%s7130_s30 + $0x60c] ss:$108 sps:$4 sm:$0xff]  }
  0xa0   : > { %3724 = vmatmul.mubr.bf16.gmra.mrb[56].mxu1 %v6498_v29  ;;  %v6578_v29 = vld [vmem:[%s7130_s30 + $0x538] ss:$108 sps:$4 sm:$0xff]  }
  0xa1   : > { %3731 = vmatprep.mubr.bf16.mxu1 %v6507_v30  ;;  %v6587_v30 = vld [vmem:[%s7130_s30 + $0x614] ss:$108 sps:$4 sm:$0xff]  }
  0xa6   : > { %3635 = vmatmul.mubr.bf16.gmra.mrb[60].mxu0 %v6505_v31  ;;  %v6585_v31 = vld [vmem:[%s7130_s30 + $0x608] ss:$108 sps:$4 sm:$0xff]  }
  0xa7   : > { %3772 = vmatprep.mubr.bf16.mxu0 %v6516_v32  ;;  %v6596_v32 = vld [vmem:[%s7130_s30 + $0x34] ss:$108 sps:$4 sm:$0xff]  }
  0xa8   : > { %3732 = vmatmul.mubr.bf16.gmra.mrb[60].mxu1 %v6510_v33  ;;  %v6635_v33 = vld [vmem:[%s8377_s4 + $0x4c0] sm:$0xff]  }
  0xa9   : > { %3869 = vmatprep.mubr.bf16.mxu1 %v6521_v34  ;;  %v6590_v34 = vld [vmem:[%s7130_s30 + $0x610] ss:$108 sps:$4 sm:$0xff]  }
  0xae   : > { %3773 = vmatmul.mubr.bf16.vlgmr.msra.gmra.mrb[64].mxu0 %v6514_v35  ;;  %v6601_v35 = vld [vmem:[%s7130_s30 + $0x3c] ss:$108 sps:$4 sm:$0xff]  }
  0xaf   : > { %5786 = vmatpush3.bf16.msra.mxu0 %v6522_v36  ;;  %3780 = vmatprep.mubr.bf16.mxu0 %v6523_v38  ;;  %v6594_v36 = vld [vmem:[%s7130_s30 + $0x30] ss:$108 sps:$4 sm:$0xff]   ;;  %v6603_v38 = vld [vmem:[%s7130_s30 + $0x10c] ss:$108 sps:$4 sm:$0xff]  }
  0xb0   : > { %5787 = vmatprep.subr.bf16.mxu0 %v6526_v39  ;;  %3870 = vmatmul.mubr.bf16.vlgmr.msra.gmra.mrb[64].mxu1 %v6519_v37  ;;  %v6602_v37 = vld [vmem:[%s8377_s4 + $0x400] sm:$0xff]  }
  0xb1   : > { %3877 = vmatprep.mubr.bf16.mxu1 %v6527_v40  ;;  %5850 = vmatpush3.bf16.msra.mxu1 %v6556_v43  ;;  %v6599_v39 = vld [vmem:[%s7130_s30 + $0x38] ss:$108 sps:$4 sm:$0xff]   ;;  %v6606_v40 = vld [vmem:[%s8377_s4 + $0x448] sm:$0xff]  }
  0xb2   : > { %5851 = vmatprep.subr.bf16.mxu1 %v6557_v44  ;;  %v6609_v43 = vld [vmem:[%s8377_s4 + $0x408] sm:$0xff]  }
  0xb3   : > { %5788 = vmatpush3.bf16.msra.mxu0 %v6529_v41  ;;  %v6607_v41 = vld [vmem:[%s7130_s30 + $0x114] ss:$108 sps:$4 sm:$0xff]   ;;  %v6637_v44 = vld [vmem:[%s8377_s4 + $0x4c8] sm:$0xff]  }
  0xb4   : > { %5789 = vmatprep.subr.bf16.mxu0 %v6534_v46  ;;  %v6614_v46 = vld [vmem:[%s8377_s4 + $0x450] sm:$0xff]  }
  0xb5   : > { %5852 = vmatpush3.bf16.msra.mxu1 %v6560_v48  ;;  %v6617_v48 = vld [vmem:[%s8377_s4 + $0x410] sm:$0xff]  }
  0xb6   : > { %3781 = vmatmul.mubr.bf16.gmra.mrb[68].mxu0 %v6525_v45  ;;  %5853 = vmatprep.subr.bf16.mxu1 %v6567_v55  ;;  %v6605_v45 = vld [vmem:[%s7130_s30 + $0x108] ss:$108 sps:$4 sm:$0xff]  }
  0xb7   : > { %3788 = vmatprep.mubr.bf16.mxu0 %v6531_v47  ;;  %5790 = vmatpush3.bf16.msra.mxu0 %v6537_v50  ;;  %v6611_v47 = vld [vmem:[%s7130_s30 + $0x1e4] ss:$108 sps:$4 sm:$0xff]  }
  0xb8   : > { %5791 = vmatprep.subr.bf16.mxu0 %v6542_v51  ;;  %3878 = vmatmul.mubr.bf16.gmra.mrb[68].mxu1 %v6530_v49  ;;  %v6640_v49 = vld [vmem:[%s8377_s4 + $0x488] sm:$0xff]   ;;  %v6610_v50 = vld [vmem:[%s7130_s30 + $0x110] ss:$108 sps:$4 sm:$0xff]  }
  0xb9   : > { %3885 = vmatprep.mubr.bf16.mxu1 %v6535_v52  ;;  %5854 = vmatpush3.bf16.msra.mxu1 %v6568_v56  ;;  %v6622_v51 = vld [vmem:[%s8377_s4 + $0x458] sm:$0xff]   ;;  %v6648_v55 = vld [vmem:[%s8377_s4 + $0x490] sm:$0xff]  }
  0xba   : > { %5855 = vmatprep.subr.bf16.mxu1 %v6569_v57  ;;  %v6615_v52 = vld [vmem:[%s7130_s30 + $0x1ec] ss:$108 sps:$4 sm:$0xff]  }
  0xbb   : > { %5792 = vmatpush3.bf16.msra.mxu0 %v6545_v53  ;;  %v6647_v53 = vld [vmem:[%s8377_s4 + $0x4d0] sm:$0xff]   ;;  %v6649_v56 = vld [vmem:[%s8377_s4 + $0x4d8] sm:$0xff]   ;;  %v6613_v57 = vld [vmem:[%s7130_s30 + $0x1e0] ss:$108 sps:$4 sm:$0xff]  }
  0xbc   : > { %5793 = vmatprep.subr.bf16.mxu0 %v6550_v54  ;;  %v6625_v54 = vld [vmem:[%s8377_s4 + $0x418] sm:$0xff]  }
  0xbd   : > { %5856 = vmatpush3.bf16.msra.mxu1 %v6572_v60  ;;  %v6633_v60 = vld [vmem:[%s8377_s4 + $0x420] sm:$0xff]  }
  0xbe   : > { %3789 = vmatmul.mubr.bf16.gmra.mrb[72].mxu0 %v6533_v58  ;;  %5857 = vmatprep.subr.bf16.mxu1 %v6579_v3  ;;  %v6630_v58 = vld [vmem:[%s8377_s4 + $0x460] sm:$0xff]   ;;  %v6645_v3 = vld [vmem:[%s8377_s4 + $0x428] sm:$0xff]  }
  0xbf   : > { %3796 = vmatprep.mubr.bf16.mxu0 %v6539_v59  ;;  %5794 = vmatpush3.bf16.msra.mxu0 %v6553_v62  ;;  %v6619_v59 = vld [vmem:[%s7130_s30 + $0x2bc] ss:$108 sps:$4 sm:$0xff]  }
  0xc0   : > { %5795 = vmatprep.subr.bf16.mxu0 %v6562_v0  ;;  %3886 = vmatmul.mubr.bf16.gmra.mrb[72].mxu1 %v6538_v61  ;;  %v6652_v61 = vld [vmem:[%s8377_s4 + $0x498] sm:$0xff]   ;;  %v6618_v62 = vld [vmem:[%s7130_s30 + $0x1e8] ss:$108 sps:$4 sm:$0xff]   ;;  %v6659_v0 = vld [vmem:[%s8377_s4 + $0x4e0] sm:$0xff]  }
  0xc1   : > { %3893 = vmatprep.mubr.bf16.mxu1 %v6543_v63  ;;  %5858 = vmatpush3.bf16.msra.mxu1 %v6580_v5  ;;  %v6642_v63 = vld [vmem:[%s8377_s4 + $0x468] sm:$0xff]   ;;  %v6621_v5 = vld [vmem:[%s7130_s30 + $0x2b8] ss:$108 sps:$4 sm:$0xff]  }
  0xc2   : > { %5859 = vmatprep.subr.bf16.mxu1 %v6581_v6  ;;  %v6654_v6 = vld [vmem:[%s8377_s4 + $0x470] sm:$0xff]  }
  0xc3   : > { %5796 = vmatpush3.bf16.msra.mxu0 %v6565_v1  ;;  %v6623_v1 = vld [vmem:[%s7130_s30 + $0x2c4] ss:$108 sps:$4 sm:$0xff]  }
  0xc4   : > { %5797 = vmatprep.subr.bf16.mxu0 %v6574_v2  ;;  %v6660_v2 = vld [vmem:[%s8377_s4 + $0x4a0] sm:$0xff]  }
  0xc5   : > { %5860 = vmatpush3.bf16.msra.mxu1 %v6584_v9  ;;  %v6627_v9 = vld [vmem:[%s7130_s30 + $0x394] ss:$108 sps:$4 sm:$0xff]  }
  0xc6   : > { %3797 = vmatmul.mubr.bf16.gmra.mrb[76].mxu0 %v6541_v4  ;;  %5861 = vmatprep.subr.bf16.mxu1 %v6591_v14  ;;  %v6661_v4 = vld [vmem:[%s8377_s4 + $0x4e8] sm:$0xff]  }
  0xc7   : > { %3804 = vmatprep.mubr.bf16.mxu0 %v6547_v7  ;;  %5798 = vmatpush3.bf16.msra.mxu0 %v6577_v8  ;;  %v952_v8 = vld [vmem:[%s7606_s17] sm:$0xff] }
  0xc8   : > { %5799 = vmatprep.subr.bf16.mxu0 %v6586_v10  ;;  %3894 = vmatmul.mubr.bf16.gmra.mrb[76].mxu1 %v6546_v11  ;;  %v953_v11 = vld [vmem:[%s7606_s17 + $0x8] sm:$0xff] }
  0xc9   : > { %3901 = vmatprep.mubr.bf16.mxu1 %v6551_v12  ;;  %5862 = vmatpush3.bf16.msra.mxu1 %v6592_v15  ;;  %v6664_v12 = vld [vmem:[%s8377_s4 + $0x4a8] sm:$0xff]  }
  0xca   : > { %5863 = vmatprep.subr.bf16.mxu1 %v6593_v16  ;;  %v6626_v15 = vld [vmem:[%s7130_s30 + $0x2c0] ss:$108 sps:$4 sm:$0xff]   ;;  %v6657_v16 = vld [vmem:[%s8377_s4 + $0x430] sm:$0xff]  }
  0xcb   : > { %5800 = vmatpush3.bf16.msra.mxu0 %v6589_v13 }
  0xcc   : > { %5913 = vmatprep.subr.bf16.mxu0 %v6598_v21  ;;  %v6671_v21 = vld [vmem:[%s8377_s4 + $0x4f0] sm:$0xff]  }
  0xcd   : > { %5864 = vmatpush3.bf16.msra.mxu1 %v6597_v20  ;;  %v6666_v20 = vld [vmem:[%s8377_s4 + $0x478] sm:$0xff]  }
  0xce   : > { %3805 = vmatmul.mubr.bf16.gmra.mrb[80].mxu0 %v6549_v17  ;;  %5977 = vmatprep.subr.bf16.mxu1 %v6635_v33 }
  0xcf   : > { %3812 = vmatprep.mubr.bf16.mxu0 %v6558_v19  ;;  %v6631_v19 = vld [vmem:[%s7130_s30 + $0x39c] ss:$108 sps:$4 sm:$0xff]  }
  0xd0   : > { %3902 = vmatmul.mubr.bf16.gmra.mrb[80].mxu1 %v6554_v18 }
  0xd1   : > { %3909 = vmatprep.mubr.bf16.mxu1 %v6563_v22 }
  0xd6   : > { %3813 = vmatmul.mubr.bf16.gmra.mrb[84].mxu0 %v6561_v23 }
  0xd7   : > { %3820 = vmatprep.mubr.bf16.mxu0 %v6570_v24 }
  0xd8   : > { %3910 = vmatmul.mubr.bf16.gmra.mrb[84].mxu1 %v6566_v25  ;;  %v6669_v25 = vld [vmem:[%s8377_s4 + $0x438] sm:$0xff]  }
  0xd9   : > { %3917 = vmatprep.mubr.bf16.mxu1 %v6575_v26 }
  0xde   : > { %3821 = vmatmul.mubr.bf16.gmra.mrb[88].mxu0 %v6573_v27 }
  0xdf   : > { %3828 = vmatprep.mubr.bf16.mxu0 %v6582_v28  ;;  %v6672_v28 = vld [vmem:[%s8377_s4 + $0x4b0] sm:$0xff]  }
  0xe0   : > { %3918 = vmatmul.mubr.bf16.gmra.mrb[88].mxu1 %v6578_v29 }
  0xe1   : > { %3925 = vmatprep.mubr.bf16.mxu1 %v6587_v30 }
  0xe6   : > { %3829 = vmatmul.mubr.bf16.gmra.mrb[92].mxu0 %v6585_v31  ;;  %v6673_v31 = vld [vmem:[%s8377_s4 + $0x4f8] sm:$0xff]  }
  0xe7   : > { %3966 = vmatprep.mubr.bf16.mxu0 %v6596_v32 }
  0xe8   : > { %3926 = vmatmul.mubr.bf16.gmra.mrb[92].mxu1 %v6590_v34  ;;  %v6678_v34 = vld [vmem:[%s8377_s4 + $0x540] sm:$0xff]  }
  0xe9   : > { %4063 = vmatprep.mubr.bf16.mxu1 %v6601_v35 }
  0xee   : > { %3967 = vmatmul.mubr.bf16.vlgmr.msra.gmra.mrb[96].mxu0 %v6594_v36  ;;  %v954_v36 = vld [vmem:[%s7606_s17 + $0x10] sm:$0xff] }
  0xef   : > { %5914 = vmatpush3.bf16.msra.mxu0 %v6602_v37  ;;  %3974 = vmatprep.mubr.bf16.mxu0 %v6603_v38  ;;  %v6629_v37 = vld [vmem:[%s7130_s30 + $0x390] ss:$108 sps:$4 sm:$0xff]  }
  0xf0   : > { %5915 = vmatprep.subr.bf16.mxu0 %v6606_v40  ;;  %4064 = vmatmul.mubr.bf16.vlgmr.msra.gmra.mrb[96].mxu1 %v6599_v39  ;;  %v6677_v40 = vld [vmem:[%s8377_s4 + $0x4b8] sm:$0xff]  }
  0xf1   : > { %4071 = vmatprep.mubr.bf16.mxu1 %v6607_v41  ;;  %5978 = vmatpush3.bf16.msra.mxu1 %v6636_v42 }
  0xf2   : > { %5979 = vmatprep.subr.bf16.mxu1 %v6637_v44  ;;  %v6638_v44 = vld [vmem:[%s7130_s30 + $0x46c] ss:$108 sps:$4 sm:$0xff]  }
  0xf3   : > { %5916 = vmatpush3.bf16.msra.mxu0 %v6609_v43  ;;  %v955_v43 = vld [vmem:[%s7606_s17 + $0x18] sm:$0xff] }
  0xf4   : > { %5917 = vmatprep.subr.bf16.mxu0 %v6614_v46 }
  0xf5   : > { %5980 = vmatpush3.bf16.msra.mxu1 %v6640_v49 }
  0xf6   : > { %3975 = vmatmul.mubr.bf16.gmra.mrb[100].mxu0 %v6605_v45  ;;  %5981 = vmatprep.subr.bf16.mxu1 %v6647_v53  ;;  %v6643_v53 = vld [vmem:[%s7130_s30 + $0x474] ss:$108 sps:$4 sm:$0xff]  }
  0xf7   : > { %3982 = vmatprep.mubr.bf16.mxu0 %v6611_v47  ;;  %5918 = vmatpush3.bf16.msra.mxu0 %v6617_v48 }
  0xf8   : > { %5919 = vmatprep.subr.bf16.mxu0 %v6622_v51  ;;  %4072 = vmatmul.mubr.bf16.gmra.mrb[100].mxu1 %v6610_v50  ;;  %v6634_v50 = vld [vmem:[%s7130_s30 + $0x398] ss:$108 sps:$4 sm:$0xff]  }
  0xf9   : > { %4079 = vmatprep.mubr.bf16.mxu1 %v6615_v52  ;;  %5982 = vmatpush3.bf16.msra.mxu1 %v6648_v55 }
  0xfa   : > { %5983 = vmatprep.subr.bf16.mxu1 %v6649_v56 }
  0xfb   : > { %5920 = vmatpush3.bf16.msra.mxu0 %v6625_v54 }
  0xfc   : > { %5921 = vmatprep.subr.bf16.mxu0 %v6630_v58 }
  0xfd   : > { %5984 = vmatpush3.bf16.msra.mxu1 %v6652_v61 }
  0xfe   : > { %3983 = vmatmul.mubr.bf16.gmra.mrb[104].mxu0 %v6613_v57  ;;  %5985 = vmatprep.subr.bf16.mxu1 %v6659_v0 }
  0xff   : > { %3990 = vmatprep.mubr.bf16.mxu0 %v6619_v59  ;;  %5922 = vmatpush3.bf16.msra.mxu0 %v6633_v60  ;;  %v956_v59 = vld [vmem:[%s7606_s17 + $0x20] sm:$0xff] }
 0x100   : > { %5923 = vmatprep.subr.bf16.mxu0 %v6642_v63  ;;  %4080 = vmatmul.mubr.bf16.gmra.mrb[104].mxu1 %v6618_v62  ;;  %v6641_v62 = vld [vmem:[%s7130_s30 + $0x468] ss:$108 sps:$4 sm:$0xff]  }
 0x101   : > { %v5417_v7 = vpop.f32.mrb[0].mxu0  ;;  %4087 = vmatprep.mubr.bf16.mxu1 %v6623_v1  ;;  %5986 = vmatpush3.bf16.msra.mxu1 %v6660_v2  ;;  %v957_v1 = vld [vmem:[%s7606_s17 + $0x28] sm:$0xff]  ;;  %v6650_v2 = vld [vmem:[%s7130_s30 + $0x544] ss:$108 sps:$4 sm:$0xff]  }
 0x102   : > { %v5418_v10 = vpop.f32.mrb[1].mxu0  ;;  %5987 = vmatprep.subr.bf16.mxu1 %v6661_v4 }
 0x103   : > { %v5419_v13 = vadd.f32 %v5418_v10, %v5417_v7  ;;  %v5420_v14 = vpop.f32.mrb[2].mxu0  ;;  %5924 = vmatpush3.bf16.msra.mxu0 %v6645_v3  ;;  %v5481_v17 = vpop.f32.mrb[0].mxu1 }
 0x104   : > { %v5421_v18 = vpop.f32.mrb[3].mxu0  ;;  %5925 = vmatprep.subr.bf16.mxu0 %v6654_v6  ;;  %v5482_v24 = vpop.f32.mrb[1].mxu1 }
 0x105   : > { %v3387_v22 = vadd.f32 %v5419_v13, %v952_v8  ;;  %v5422_v23 = vadd.f32 %v5421_v18, %v5420_v14  ;;  %v5483_v26 = vadd.f32 %v5482_v24, %v5481_v17  ;;  %v5484_v27 = vpop.f32.mrb[2].mxu1  ;;  %5988 = vmatpush3.bf16.msra.mxu1 %v6664_v12  ;;  %v958_v17 = vld [vmem:[%s7606_s17 + $0x30] sm:$0xff]  ;;  %v6653_v18 = vld [vmem:[%s7130_s30 + $0x540] ss:$108 sps:$4 sm:$0xff]  }
 0x106   : > { %3991 = vmatmul.mubr.bf16.gmra.mrb[108].mxu0 %v6621_v5  ;;  %v5485_v30 = vpop.f32.mrb[3].mxu1  ;;  %5989 = vmatprep.subr.bf16.mxu1 %v6671_v21  ;;  %v6646_v5 = vld [vmem:[%s7130_s30 + $0x470] ss:$108 sps:$4 sm:$0xff]   ;;  %v6658_v24 = vld [vmem:[%s7130_s30 + $0x548] ss:$108 sps:$4 sm:$0xff]  }
 0x107   : > { %v3390_v29 = vadd.f32 %v5422_v23, %v953_v11  ;;  %3998 = vmatprep.mubr.bf16.mxu0 %v6627_v9  ;;  %5926 = vmatpush3.bf16.msra.mxu0 %v6657_v16  ;;  %v7647_v32 = vadd.f32 %v5483_v26, %v3387_v22  ;;  %v5486_v33 = vadd.f32 %v5485_v30, %v5484_v27  ;;  %v6655_v9 = vld [vmem:[%s7130_s30 + $0x54c] ss:$108 sps:$4 sm:$0xff]  }
 0x108   : > { %5927 = vmatprep.subr.bf16.mxu0 %v6666_v20  ;;  %4088 = vmatmul.mubr.bf16.gmra.mrb[108].mxu1 %v6626_v15  ;;  %v959_v21 = vld [vmem:[%s7606_s17 + $0x38] sm:$0xff] }
 0x109   : > { %v5423_v35 = vpop.f32.mrb[4].mxu0  ;;  %v7654_v38 = vadd.f32 %v5486_v33, %v3390_v29  ;;  %4095 = vmatprep.mubr.bf16.mxu1 %v6631_v19  ;;  %5990 = vmatpush3.bf16.msra.mxu1 %v6672_v28 }
 0x10a   : > { %v5424_v39 = vpop.f32.mrb[5].mxu0  ;;  %5991 = vmatprep.subr.bf16.mxu1 %v6673_v31  ;;  %v6667_v31 = vld [vmem:[%s7130_s30 + $0x624] ss:$108 sps:$4 sm:$0xff]  }
 0x10b   : > { %v5425_v41 = vadd.f32 %v5424_v39, %v5423_v35  ;;  %v5426_v42 = vpop.f32.mrb[6].mxu0  ;;  %5928 = vmatpush3.bf16.msra.mxu0 %v6669_v25  ;;  %v5487_v45 = vpop.f32.mrb[4].mxu1  ;;  %v6662_v25 = vld [vmem:[%s7130_s30 + $0x61c] ss:$108 sps:$4 sm:$0xff]   ;;  %v6715_v35 = vld [vmem:[%s8377_s4 + $0x5c0] sm:$0xff]  }
 0x10c   : > { %v5427_v46 = vpop.f32.mrb[7].mxu0  ;;  %6041 = vmatprep.subr.bf16.mxu0 %v6678_v34  ;;  %v5488_v49 = vpop.f32.mrb[5].mxu1 }
 0x10d   : > { %v3395_v47 = vadd.f32 %v5425_v41, %v954_v36  ;;  %v5428_v48 = vadd.f32 %v5427_v46, %v5426_v42  ;;  %v5489_v51 = vadd.f32 %v5488_v49, %v5487_v45  ;;  %v5490_v52 = vpop.f32.mrb[6].mxu1  ;;  %5992 = vmatpush3.bf16.msra.mxu1 %v6677_v40  ;;  %v6665_v42 = vld [vmem:[%s7130_s30 + $0x618] ss:$108 sps:$4 sm:$0xff]   ;;  %v961_v49 = vld [vmem:[%s7606_s17 + $0x48] sm:$0xff] }
 0x10e   : > { %3999 = vmatmul.mubr.bf16.gmra.mrb[112].mxu0 %v6629_v37  ;;  %v5491_v55 = vpop.f32.mrb[7].mxu1  ;;  %6105 = vmatprep.subr.bf16.mxu1 %v6715_v35  ;;  %v6676_v46 = vld [vmem:[%s7130_s30 + $0x44] ss:$108 sps:$4 sm:$0xff]  }
 0x10f   : > { %v3398_v54 = vadd.f32 %v5428_v48, %v955_v43  ;;  %4006 = vmatprep.mubr.bf16.mxu0 %v6638_v44  ;;  %v7663_v56 = vadd.f32 %v5489_v51, %v3395_v47  ;;  %v5492_v57 = vadd.f32 %v5491_v55, %v5490_v52  ;;  %v960_v44 = vld [vmem:[%s7606_s17 + $0x40] sm:$0xff] }
 0x110   : > { %4096 = vmatmul.mubr.bf16.gmra.mrb[112].mxu1 %v6634_v50  ;;  %v6670_v52 = vld [vmem:[%s7130_s30 + $0x620] ss:$108 sps:$4 sm:$0xff]  }
 0x111   : > { %v5429_v58 = vpop.f32.mrb[8].mxu0  ;;  %v7666_v60 = vadd.f32 %v5492_v57, %v3398_v54  ;;  %4103 = vmatprep.mubr.bf16.mxu1 %v6643_v53 }
 0x112   : > { %v5430_v61 = vpop.f32.mrb[9].mxu0 }
 0x113   : > { %v5431_v63 = vadd.f32 %v5430_v61, %v5429_v58  ;;  %v5432_v0 = vpop.f32.mrb[10].mxu0  ;;  %v5493_v3 = vpop.f32.mrb[8].mxu1 }
 0x114   : > { %v5433_v4 = vpop.f32.mrb[11].mxu0  ;;  %v5494_v8 = vpop.f32.mrb[9].mxu1 }
 0x115   : > { %v3403_v6 = vadd.f32 %v5431_v63, %v956_v59  ;;  %v5434_v7 = vadd.f32 %v5433_v4, %v5432_v0  ;;  %v5495_v10 = vadd.f32 %v5494_v8, %v5493_v3  ;;  %v5496_v11 = vpop.f32.mrb[10].mxu1  ;;  %v6681_v59 = vld [vmem:[%s7130_s30 + $0x4c] ss:$108 sps:$4 sm:$0xff]  }
 0x116   : > { %4007 = vmatmul.mubr.bf16.gmra.mrb[116].mxu0 %v6641_v62  ;;  %v5497_v13 = vpop.f32.mrb[11].mxu1 }
 0x117   : > { %v3406_v12 = vadd.f32 %v5434_v7, %v957_v1  ;;  %4014 = vmatprep.mubr.bf16.mxu0 %v6650_v2  ;;  %v7673_v14 = vadd.f32 %v5495_v10, %v3403_v6  ;;  %v5498_v15 = vadd.f32 %v5497_v13, %v5496_v11  ;;  %v962_v2 = vld [vmem:[%s7606_s17 + $0x50] sm:$0xff]  ;;  %v6674_v6 = vld [vmem:[%s7130_s30 + $0x40] ss:$108 sps:$4 sm:$0xff]   ;;  %v6683_v11 = vld [vmem:[%s7130_s30 + $0x11c] ss:$108 sps:$4 sm:$0xff]  }
 0x118   : > { %4104 = vmatmul.mubr.bf16.gmra.mrb[116].mxu1 %v6646_v5  ;;  %v963_v5 = vld [vmem:[%s7606_s17 + $0x58] sm:$0xff]  ;;  %v6682_v7 = vld [vmem:[%s8377_s4 + $0x500] sm:$0xff]   ;;  %v6679_v10 = vld [vmem:[%s7130_s30 + $0x48] ss:$108 sps:$4 sm:$0xff]  }
 0x119   : > { %v5435_v16 = vpop.f32.mrb[12].mxu0  ;;  %v7677_v19 = vadd.f32 %v5498_v15, %v3406_v12  ;;  %4111 = vmatprep.mubr.bf16.mxu1 %v6655_v9  ;;  %v6686_v12 = vld [vmem:[%s8377_s4 + $0x548] sm:$0xff]  }
 0x11a   : > { %v5436_v20 = vpop.f32.mrb[13].mxu0 }
 0x11b   : > { %v5437_v22 = vadd.f32 %v5436_v20, %v5435_v16  ;;  %v5438_v23 = vpop.f32.mrb[14].mxu0  ;;  %v5499_v26 = vpop.f32.mrb[12].mxu1  ;;  %v6687_v16 = vld [vmem:[%s7130_s30 + $0x124] ss:$108 sps:$4 sm:$0xff]  }
 0x11c   : > { %v5439_v27 = vpop.f32.mrb[15].mxu0  ;;  %v5500_v30 = vpop.f32.mrb[13].mxu1 }
 0x11d   : > { %v3411_v28 = vadd.f32 %v5437_v22, %v958_v17  ;;  %v5440_v29 = vadd.f32 %v5439_v27, %v5438_v23  ;;  %v5501_v33 = vadd.f32 %v5500_v30, %v5499_v26  ;;  %v5502_v34 = vpop.f32.mrb[14].mxu1  ;;  %v6694_v27 = vld [vmem:[%s8377_s4 + $0x550] sm:$0xff]  }
 0x11e   : > { %4015 = vmatmul.mubr.bf16.gmra.mrb[120].mxu0 %v6653_v18  ;;  %v5503_v37 = vpop.f32.mrb[15].mxu1 }
 0x11f   : > { %v3414_v36 = vadd.f32 %v5440_v29, %v959_v21  ;;  %4022 = vmatprep.mubr.bf16.mxu0 %v6662_v25  ;;  %v7686_v39 = vadd.f32 %v5501_v33, %v3411_v28  ;;  %v5504_v40 = vadd.f32 %v5503_v37, %v5502_v34  ;;  %v6689_v21 = vld [vmem:[%s8377_s4 + $0x508] sm:$0xff]   ;;  %v964_v34 = vld [vmem:[%s7606_s17 + $0x60] sm:$0xff] }
 0x120   : > { %4112 = vmatmul.mubr.bf16.gmra.mrb[120].mxu1 %v6658_v24  ;;  %v6716_v24 = vld [vmem:[%s8377_s4 + $0x580] sm:$0xff]   ;;  %v6717_v28 = vld [vmem:[%s8377_s4 + $0x5c8] sm:$0xff]  }
 0x121   : > { %v5441_v41 = vpop.f32.mrb[16].mxu0  ;;  %v7689_v43 = vadd.f32 %v5504_v40, %v3414_v36  ;;  %4119 = vmatprep.mubr.bf16.mxu1 %v6667_v31  ;;  %v6685_v31 = vld [vmem:[%s7130_s30 + $0x118] ss:$108 sps:$4 sm:$0xff]   ;;  %v965_v37 = vld [vmem:[%s7606_s17 + $0x68] sm:$0xff] }
 0x122   : > { %v5442_v45 = vpop.f32.mrb[17].mxu0  ;;  %v6720_v40 = vld [vmem:[%s8377_s4 + $0x588] sm:$0xff]  }
 0x123   : > { %v5443_v47 = vadd.f32 %v5442_v45, %v5441_v41  ;;  %v5444_v48 = vpop.f32.mrb[18].mxu0  ;;  %v5505_v50 = vpop.f32.mrb[16].mxu1  ;;  %v6691_v45 = vld [vmem:[%s7130_s30 + $0x1f4] ss:$108 sps:$4 sm:$0xff]  }
 0x124   : > { %v5445_v51 = vpop.f32.mrb[19].mxu0  ;;  %v5506_v55 = vpop.f32.mrb[17].mxu1 }
 0x125   : > { %v3419_v53 = vadd.f32 %v5443_v47, %v960_v44  ;;  %v5446_v54 = vadd.f32 %v5445_v51, %v5444_v48  ;;  %v5507_v57 = vadd.f32 %v5506_v55, %v5505_v50  ;;  %v5508_v58 = vpop.f32.mrb[18].mxu1  ;;  %v6690_v44 = vld [vmem:[%s7130_s30 + $0x120] ss:$108 sps:$4 sm:$0xff]   ;;  %v6702_v50 = vld [vmem:[%s8377_s4 + $0x558] sm:$0xff]   ;;  %v6727_v51 = vld [vmem:[%s8377_s4 + $0x5d0] sm:$0xff]  }
 0x126   : > { %4023 = vmatmul.mubr.bf16.gmra.mrb[124].mxu0 %v6665_v42  ;;  %v5509_v62 = vpop.f32.mrb[19].mxu1  ;;  %v6705_v55 = vld [vmem:[%s8377_s4 + $0x518] sm:$0xff]  }
 0x127   : > { %v3422_v61 = vadd.f32 %v5446_v54, %v961_v49  ;;  %4160 = vmatprep.mubr.bf16.mxu0 %v6676_v46  ;;  %v7696_v63 = vadd.f32 %v5507_v57, %v3419_v53  ;;  %v5510_v0 = vadd.f32 %v5509_v62, %v5508_v58  ;;  %v6697_v46 = vld [vmem:[%s8377_s4 + $0x510] sm:$0xff]   ;;  %v6695_v49 = vld [vmem:[%s7130_s30 + $0x1fc] ss:$108 sps:$4 sm:$0xff]  }
 0x128   : > { %4120 = vmatmul.mubr.bf16.gmra.mrb[124].mxu1 %v6670_v52 }
 0x129   : > { %v5447_v1 = vpop.f32.mrb[20].mxu0  ;;  %v7699_v3 = vadd.f32 %v5510_v0, %v3422_v61  ;;  %4257 = vmatprep.mubr.bf16.mxu1 %v6681_v59  ;;  %v6728_v59 = vld [vmem:[%s8377_s4 + $0x590] sm:$0xff]   ;;  %v6729_v0 = vld [vmem:[%s8377_s4 + $0x5d8] sm:$0xff]  }
 0x12a   : > { %v5448_v4 = vpop.f32.mrb[21].mxu0 }
 0x12b   : > { %v5449_v8 = vadd.f32 %v5448_v4, %v5447_v1  ;;  %v5450_v9 = vpop.f32.mrb[22].mxu0  ;;  %v5511_v13 = vpop.f32.mrb[20].mxu1  ;;  %v6693_v4 = vld [vmem:[%s7130_s30 + $0x1f0] ss:$108 sps:$4 sm:$0xff]  }
 0x12c   : > { %v5451_v15 = vpop.f32.mrb[23].mxu0  ;;  %v5512_v20 = vpop.f32.mrb[21].mxu1 }
 0x12d   : > { %v3427_v17 = vadd.f32 %v5449_v8, %v962_v2  ;;  %v5452_v18 = vadd.f32 %v5451_v15, %v5450_v9  ;;  %v5513_v22 = vadd.f32 %v5512_v20, %v5511_v13  ;;  %v5514_v23 = vpop.f32.mrb[22].mxu1  ;;  %v6699_v8 = vld [vmem:[%s7130_s30 + $0x2cc] ss:$108 sps:$4 sm:$0xff]  }
 0x12e   : > { %4161 = vmatmul.mubr.bf16.vlgmr.msra.gmra.mrb[128].mxu0 %v6674_v6  ;;  %v5515_v26 = vpop.f32.mrb[23].mxu1 }
 0x12f   : > { %v3430_v25 = vadd.f32 %v5452_v18, %v963_v5  ;;  %6042 = vmatpush3.bf16.msra.mxu0 %v6682_v7  ;;  %4168 = vmatprep.mubr.bf16.mxu0 %v6683_v11  ;;  %v7724_v29 = vadd.f32 %v5513_v22, %v3427_v17  ;;  %v5516_v30 = vadd.f32 %v5515_v26, %v5514_v23  ;;  %v6710_v5 = vld [vmem:[%s8377_s4 + $0x560] sm:$0xff]   ;;  %v966_v7 = vld [vmem:[%s7606_s17 + $0x70] sm:$0xff]  ;;  %v967_v11 = vld [vmem:[%s7606_s17 + $0x78] sm:$0xff]  ;;  %s4852_s17 = sshll.u32 %s8250_s15, 4  ;;  %s8326_s17 = int_to_ptr.vmem [resolvable:$true] %s4852_s17 }
 0x130   : > { %6043 = vmatprep.subr.bf16.mxu0 %v6686_v12  ;;  %4258 = vmatmul.mubr.bf16.vlgmr.msra.gmra.mrb[128].mxu1 %v6679_v10  ;;  %v6732_v12 = vld [vmem:[%s8377_s4 + $0x598] sm:$0xff]   ;;  %v6713_v17 = vld [vmem:[%s8377_s4 + $0x520] sm:$0xff]   ;;  %v6722_v22 = vld [vmem:[%s8377_s4 + $0x568] sm:$0xff]   ;;  %s6891_s22 = scalar_lea.vmem %s8326_s17, 2048 }
 0x131   : > { %v5453_v33 = vpop.f32.mrb[24].mxu0  ;;  %v7728_v35 = vadd.f32 %v5516_v30, %v3430_v25  ;;  %4265 = vmatprep.mubr.bf16.mxu1 %v6687_v16  ;;  %6106 = vmatpush3.bf16.msra.mxu1 %v6716_v24  ;;  %v6698_v16 = vld [vmem:[%s7130_s30 + $0x1f8] ss:$108 sps:$4 sm:$0xff]   ;;  %p6892_p11 = scmp.ne.s32.totalorder %s8326_s17, %s6891_s22 }
 0x132   : > { %v5454_v36 = vpop.f32.mrb[25].mxu0  ;;  %6107 = vmatprep.subr.bf16.mxu1 %v6717_v28  ;;  %v6739_v23 = vld [vmem:[%s8377_s4 + $0x5e0] sm:$0xff]  }
 0x133   : > { %v5455_v41 = vadd.f32 %v5454_v36, %v5453_v33  ;;  %v5456_v42 = vpop.f32.mrb[26].mxu0  ;;  %6044 = vmatpush3.bf16.msra.mxu0 %v6689_v21  ;;  %v5517_v47 = vpop.f32.mrb[24].mxu1  ;;  %v6703_v21 = vld [vmem:[%s7130_s30 + $0x2d4] ss:$108 sps:$4 sm:$0xff]   ;;  %v6741_v36 = vld [vmem:[%s8377_s4 + $0x5e8] sm:$0xff]   ;;  %p6893_p12 = pnand %p6892_p11, %p7026_p5 }
 0x134   : > { %v5457_v48 = vpop.f32.mrb[27].mxu0  ;;  %6045 = vmatprep.subr.bf16.mxu0 %v6694_v27  ;;  %v5518_v54 = vpop.f32.mrb[25].mxu1  ;;  %v6725_v27 = vld [vmem:[%s8377_s4 + $0x528] sm:$0xff]  }
 0x135   : > { %v3435_v52 = vadd.f32 %v5455_v41, %v964_v34  ;;  %v5458_v53 = vadd.f32 %v5457_v48, %v5456_v42  ;;  %v5519_v57 = vadd.f32 %v5518_v54, %v5517_v47  ;;  %v5520_v58 = vpop.f32.mrb[26].mxu1  ;;  %6108 = vmatpush3.bf16.msra.mxu1 %v6720_v40  ;;  %v6734_v41 = vld [vmem:[%s8377_s4 + $0x570] sm:$0xff]   ;;  %p6894_p13 = pneg %p6893_p12 }
 0x136   : > { %4169 = vmatmul.mubr.bf16.gmra.mrb[132].mxu0 %v6685_v31  ;;  %v5521_v62 = vpop.f32.mrb[27].mxu1  ;;  %6109 = vmatprep.subr.bf16.mxu1 %v6727_v51  ;;  %v6740_v31 = vld [vmem:[%s8377_s4 + $0x5a0] sm:$0xff]   ;;  %v6737_v48 = vld [vmem:[%s8377_s4 + $0x530] sm:$0xff]  }
 0x137   : > { %v3438_v61 = vadd.f32 %v5458_v53, %v965_v37  ;;  %4176 = vmatprep.mubr.bf16.mxu0 %v6691_v45  ;;  %6046 = vmatpush3.bf16.msra.mxu0 %v6697_v46  ;;  %v7755_v1 = vadd.f32 %v5519_v57, %v3435_v52  ;;  %v5522_v2 = vadd.f32 %v5521_v62, %v5520_v58  ;;  %v6707_v47 = vld [vmem:[%s7130_s30 + $0x3a4] ss:$108 sps:$4 sm:$0xff]   ;;  %v6746_v57 = vld [vmem:[%s8377_s4 + $0x578] sm:$0xff]  }
 0x138   : > { %6047 = vmatprep.subr.bf16.mxu0 %v6702_v50  ;;  %4266 = vmatmul.mubr.bf16.gmra.mrb[132].mxu1 %v6690_v44  ;;  %v6701_v44 = vld [vmem:[%s7130_s30 + $0x2c8] ss:$108 sps:$4 sm:$0xff]   ;;  %v6706_v52 = vld [vmem:[%s7130_s30 + $0x2d0] ss:$108 sps:$4 sm:$0xff]  }
 0x139   : > { %v5459_v6 = vpop.f32.mrb[28].mxu0  ;;  %v7763_v9 = vadd.f32 %v5522_v2, %v3438_v61  ;;  %4273 = vmatprep.mubr.bf16.mxu1 %v6695_v49  ;;  %6110 = vmatpush3.bf16.msra.mxu1 %v6728_v59  ;;  %v6744_v49 = vld [vmem:[%s8377_s4 + $0x5a8] sm:$0xff]   ;;  %v6751_v58 = vld [vmem:[%s8377_s4 + $0x5f0] sm:$0xff]  }
 0x13a   : > { %v5460_v10 = vpop.f32.mrb[29].mxu0  ;;  %6111 = vmatprep.subr.bf16.mxu1 %v6729_v0 }
 0x13b   : > { %v5461_v13 = vadd.f32 %v5460_v10, %v5459_v6  ;;  %v5462_v15 = vpop.f32.mrb[30].mxu0  ;;  %6048 = vmatpush3.bf16.msra.mxu0 %v6705_v55  ;;  %v5523_v18 = vpop.f32.mrb[28].mxu1  ;;  %v6711_v55 = vld [vmem:[%s7130_s30 + $0x3ac] ss:$108 sps:$4 sm:$0xff]  }
 0x13c   : > { %v5463_v20 = vpop.f32.mrb[31].mxu0  ;;  %6049 = vmatprep.subr.bf16.mxu0 %v6710_v5  ;;  %v5524_v26 = vpop.f32.mrb[29].mxu1  ;;  %v6752_v5 = vld [vmem:[%s8377_s4 + $0x5b0] sm:$0xff]  }
 0x13d   : > { %v3443_v24 = vadd.f32 %v5461_v13, %v966_v7  ;;  %v5464_v25 = vadd.f32 %v5463_v20, %v5462_v15  ;;  %v5525_v28 = vadd.f32 %v5524_v26, %v5523_v18  ;;  %v5526_v30 = vpop.f32.mrb[30].mxu1  ;;  %6112 = vmatpush3.bf16.msra.mxu1 %v6732_v12  ;;  %v6718_v20 = vld [vmem:[%s7130_s30 + $0x47c] ss:$108 sps:$4 sm:$0xff]  }
 0x13e   : > { %4177 = vmatmul.mubr.bf16.gmra.mrb[136].mxu0 %v6693_v4  ;;  %v5527_v34 = vpop.f32.mrb[31].mxu1  ;;  %6113 = vmatprep.subr.bf16.mxu1 %v6739_v23  ;;  %v6749_v4 = vld [vmem:[%s8377_s4 + $0x538] sm:$0xff]   ;;  %v6714_v26 = vld [vmem:[%s7130_s30 + $0x3a8] ss:$108 sps:$4 sm:$0xff]  }
 0x13f   : > { %v3446_v33 = vadd.f32 %v5464_v25, %v967_v11  ;;  %4184 = vmatprep.mubr.bf16.mxu0 %v6699_v8  ;;  %6050 = vmatpush3.bf16.msra.mxu0 %v6713_v17  ;;  %v7789_v37 = vadd.f32 %v5525_v28, %v3443_v24  ;;  %v5528_v40 = vadd.f32 %v5527_v34, %v5526_v30  ;;  %v6758_v8 = vld [vmem:[%s8377_s4 + $0x640] sm:$0xff]  }
 0x140   : > { %6051 = vmatprep.subr.bf16.mxu0 %v6722_v22  ;;  %4274 = vmatmul.mubr.bf16.gmra.mrb[136].mxu1 %v6698_v16  ;;  %v6757_v16 = vld [vmem:[%s8377_s4 + $0x5b8] sm:$0xff]   ;;  %v6723_v30 = vld [vmem:[%s7130_s30 + $0x484] ss:$108 sps:$4 sm:$0xff]  }
 0x141   : > { %v5545_v42 = vpop.f32.mrb[32].mxu0  ;;  %v7795_v45 = vadd.f32 %v5528_v40, %v3446_v33  ;;  %4281 = vmatprep.mubr.bf16.mxu1 %v6703_v21  ;;  %6114 = vmatpush3.bf16.msra.mxu1 %v6740_v31  ;;  %v6721_v40 = vld [vmem:[%s7130_s30 + $0x478] ss:$108 sps:$4 sm:$0xff]  }
 0x142   : > { %v5546_v46 = vpop.f32.mrb[33].mxu0  ;;  %6115 = vmatprep.subr.bf16.mxu1 %v6741_v36 }
 0x143   : > { %v5547_v50 = vadd.f32 %v5546_v46, %v5545_v42  ;;  %v5548_v51 = vpop.f32.mrb[34].mxu0  ;;  %6052 = vmatpush3.bf16.msra.mxu0 %v6725_v27  ;;  %v5609_v53 = vpop.f32.mrb[32].mxu1 }
 0x144   : > { %v5549_v54 = vpop.f32.mrb[35].mxu0  ;;  %6053 = vmatprep.subr.bf16.mxu0 %v6734_v41  ;;  %v5610_v62 = vpop.f32.mrb[33].mxu1 }
 0x145   : > { %v3581_v59 = vadd.f32 %v5547_v50, %v7647_v32  ;;  %v5550_v61 = vadd.f32 %v5549_v54, %v5548_v51  ;;  %v5611_v0 = vadd.f32 %v5610_v62, %v5609_v53  ;;  %v5612_v2 = vpop.f32.mrb[34].mxu1  ;;  %6116 = vmatpush3.bf16.msra.mxu1 %v6744_v49  ;;  %v6753_v32 = vld [vmem:[%s8377_s4 + $0x5f8] sm:$0xff]   ;;  %v7850_v53 = vld [vmem:[%s8377_s4 + $0x680] sm:$0xff]  }
 0x146   : > { %4185 = vmatmul.mubr.bf16.gmra.mrb[140].mxu0 %v6701_v44  ;;  %v5613_v7 = vpop.f32.mrb[35].mxu1  ;;  %6117 = vmatprep.subr.bf16.mxu1 %v6751_v58  ;;  %v6730_v44 = vld [vmem:[%s7130_s30 + $0x554] ss:$108 sps:$4 sm:$0xff]  }
 0x147   : > { %v3584_v6 = vadd.f32 %v5550_v61, %v7654_v38  ;;  %4192 = vmatprep.mubr.bf16.mxu0 %v6707_v47  ;;  %6054 = vmatpush3.bf16.msra.mxu0 %v6737_v48  ;;  %v7826_v10 = vadd.f32 %v5611_v0, %v3581_v59  ;;  %v5614_v11 = vadd.f32 %v5613_v7, %v5612_v2  ;;  %v6709_v38 = vld [vmem:[%s7130_s30 + $0x3a0] ss:$108 sps:$4 sm:$0xff]   ;;  %v6733_v0 = vld [vmem:[%s7130_s30 + $0x550] ss:$108 sps:$4 sm:$0xff]  }
 0x148   : > { %6055 = vmatprep.subr.bf16.mxu0 %v6746_v57  ;;  %4282 = vmatmul.mubr.bf16.gmra.mrb[140].mxu1 %v6706_v52  ;;  %v6735_v57 = vld [vmem:[%s7130_s30 + $0x55c] ss:$108 sps:$4 sm:$0xff]   ;;  %v6742_v7 = vld [vmem:[%s7130_s30 + $0x62c] ss:$108 sps:$4 sm:$0xff]  }
 0x149   : > { %v5551_v12 = vpop.f32.mrb[36].mxu0  ;;  %v7829_v13 = vadd.f32 %v5614_v11, %v3584_v6  ;;  %4289 = vmatprep.mubr.bf16.mxu1 %v6711_v55  ;;  %6118 = vmatpush3.bf16.msra.mxu1 %v6752_v5 }
 0x14a   : > { %v5552_v15 = vpop.f32.mrb[37].mxu0  ;;  %6119 = vmatprep.subr.bf16.mxu1 %v6753_v32 }
 0x14b   : > { %v5553_v17 = vadd.f32 %v5552_v15, %v5551_v12  ;;  %v5554_v18 = vpop.f32.mrb[38].mxu0  ;;  %6056 = vmatpush3.bf16.msra.mxu0 %v6749_v4  ;;  %v5615_v21 = vpop.f32.mrb[36].mxu1  ;;  %v6747_v15 = vld [vmem:[%s7130_s30 + $0x634] ss:$108 sps:$4 sm:$0xff]  }
 0x14c   : > { %v5555_v22 = vpop.f32.mrb[39].mxu0  ;;  %6169 = vmatprep.subr.bf16.mxu0 %v6758_v8  ;;  %v5616_v25 = vpop.f32.mrb[37].mxu1 }
 0x14d   : > { %v3589_v23 = vadd.f32 %v5553_v17, %v7663_v56  ;;  %v5556_v24 = vadd.f32 %v5555_v22, %v5554_v18  ;;  %v5617_v27 = vadd.f32 %v5616_v25, %v5615_v21  ;;  %v5618_v28 = vpop.f32.mrb[38].mxu1  ;;  %6120 = vmatpush3.bf16.msra.mxu1 %v6757_v16 }
 0x14e   : > { %4193 = vmatmul.mubr.bf16.gmra.mrb[144].mxu0 %v6709_v38  ;;  %v5619_v33 = vpop.f32.mrb[39].mxu1  ;;  %6249 = vmatprep.subr.bf16.mxu1 %v7850_v53  ;;  %v6738_v38 = vld [vmem:[%s7130_s30 + $0x558] ss:$108 sps:$4 sm:$0xff]  }
 0x14f   : > { %v3592_v31 = vadd.f32 %v5556_v24, %v7666_v60  ;;  %4200 = vmatprep.mubr.bf16.mxu0 %v6718_v20  ;;  %v7839_v34 = vadd.f32 %v5617_v27, %v3589_v23  ;;  %v5620_v36 = vadd.f32 %v5619_v33, %v5618_v28  ;;  %v6726_v60 = vld [vmem:[%s7130_s30 + $0x480] ss:$108 sps:$4 sm:$0xff]   ;;  %v6745_v24 = vld [vmem:[%s7130_s30 + $0x628] ss:$108 sps:$4 sm:$0xff]  }
 0x150   : > { %4290 = vmatmul.mubr.bf16.gmra.mrb[144].mxu1 %v6714_v26  ;;  %v6756_v28 = vld [vmem:[%s7130_s30 + $0x54] ss:$108 sps:$4 sm:$0xff]  }
 0x151   : > { %v5557_v56 = vpop.f32.mrb[40].mxu0  ;;  %v7842_v41 = vadd.f32 %v5620_v36, %v3592_v31  ;;  %4297 = vmatprep.mubr.bf16.mxu1 %v6723_v30  ;;  %v6750_v31 = vld [vmem:[%s7130_s30 + $0x630] ss:$108 sps:$4 sm:$0xff]  }
 0x152   : > { %v5558_v42 = vpop.f32.mrb[41].mxu0 }
 0x153   : > { %v5559_v46 = vadd.f32 %v5558_v42, %v5557_v56  ;;  %v5560_v47 = vpop.f32.mrb[42].mxu0  ;;  %v5621_v48 = vpop.f32.mrb[40].mxu1 }
 0x154   : > { %v5561_v49 = vpop.f32.mrb[43].mxu0  ;;  %v5622_v52 = vpop.f32.mrb[41].mxu1 }
 0x155   : > { %v3597_v50 = vadd.f32 %v5559_v46, %v7673_v14  ;;  %v5562_v51 = vadd.f32 %v5561_v49, %v5560_v47  ;;  %v5623_v54 = vadd.f32 %v5622_v52, %v5621_v48  ;;  %v5624_v55 = vpop.f32.mrb[42].mxu1  ;;  %v6762_v52 = vld [vmem:[%s8377_s4 + $0x600] sm:$0xff]  }
 0x156   : > { %4201 = vmatmul.mubr.bf16.gmra.mrb[148].mxu0 %v6721_v40  ;;  %v5625_v59 = vpop.f32.mrb[43].mxu1 }
 0x157   : > { %v3600_v58 = vadd.f32 %v5562_v51, %v7677_v19  ;;  %4208 = vmatprep.mubr.bf16.mxu0 %v6730_v44  ;;  %v7855_v14 = vadd.f32 %v5623_v54, %v3597_v50  ;;  %v5626_v61 = vadd.f32 %v5625_v59, %v5624_v55  ;;  %v6761_v44 = vld [vmem:[%s7130_s30 + $0x5c] ss:$108 sps:$4 sm:$0xff]  }
 0x158   : > { %4298 = vmatmul.mubr.bf16.gmra.mrb[148].mxu1 %v6726_v60  ;;  %v6754_v60 = vld [vmem:[%s7130_s30 + $0x50] ss:$108 sps:$4 sm:$0xff]  }
 0x159   : > { %v5563_v62 = vpop.f32.mrb[44].mxu0  ;;  %v7858_v2 = vadd.f32 %v5626_v61, %v3600_v58  ;;  %4305 = vmatprep.mubr.bf16.mxu1 %v6735_v57  ;;  %v6763_v57 = vld [vmem:[%s7130_s30 + $0x12c] ss:$108 sps:$4 sm:$0xff]  }
 0x15a   : > { %v5564_v4 = vpop.f32.mrb[45].mxu0  ;;  %v6766_v58 = vld [vmem:[%s8377_s4 + $0x648] sm:$0xff]  }
 0x15b   : > { %v5565_v5 = vadd.f32 %v5564_v4, %v5563_v62  ;;  %v5566_v6 = vpop.f32.mrb[46].mxu0  ;;  %v5627_v19 = vpop.f32.mrb[44].mxu1 }
 0x15c   : > { %v5567_v32 = vpop.f32.mrb[47].mxu0  ;;  %v5628_v12 = vpop.f32.mrb[45].mxu1 }
 0x15d   : > { %v3605_v8 = vadd.f32 %v5565_v5, %v7686_v39  ;;  %v5568_v11 = vadd.f32 %v5567_v32, %v5566_v6  ;;  %v5629_v16 = vadd.f32 %v5628_v12, %v5627_v19  ;;  %v5630_v17 = vpop.f32.mrb[46].mxu1  ;;  %v6767_v5 = vld [vmem:[%s7130_s30 + $0x134] ss:$108 sps:$4 sm:$0xff]  }
 0x15e   : > { %4209 = vmatmul.mubr.bf16.gmra.mrb[152].mxu0 %v6733_v0  ;;  %v5631_v20 = vpop.f32.mrb[47].mxu1 }
 0x15f   : > { %v3608_v18 = vadd.f32 %v5568_v11, %v7689_v43  ;;  %4216 = vmatprep.mubr.bf16.mxu0 %v6742_v7  ;;  %v7865_v21 = vadd.f32 %v5629_v16, %v3605_v8  ;;  %v5632_v22 = vadd.f32 %v5631_v20, %v5630_v17  ;;  %v6769_v8 = vld [vmem:[%s8377_s4 + $0x608] sm:$0xff]   ;;  %v6771_v16 = vld [vmem:[%s7130_s30 + $0x204] ss:$108 sps:$4 sm:$0xff]  }
 0x160   : > { %4306 = vmatmul.mubr.bf16.gmra.mrb[152].mxu1 %v6738_v38  ;;  %v6765_v38 = vld [vmem:[%s7130_s30 + $0x128] ss:$108 sps:$4 sm:$0xff]  }
 0x161   : > { %v5569_v23 = vpop.f32.mrb[48].mxu0  ;;  %v7868_v39 = vadd.f32 %v5632_v22, %v3608_v18  ;;  %4313 = vmatprep.mubr.bf16.mxu1 %v6747_v15  ;;  %v6777_v20 = vld [vmem:[%s8377_s4 + $0x610] sm:$0xff]  }
 0x162   : > { %v5570_v25 = vpop.f32.mrb[49].mxu0 }
 0x163   : > { %v5571_v26 = vadd.f32 %v5570_v25, %v5569_v23  ;;  %v5572_v27 = vpop.f32.mrb[50].mxu0  ;;  %v5633_v30 = vpop.f32.mrb[48].mxu1 }
 0x164   : > { %v5573_v43 = vpop.f32.mrb[51].mxu0  ;;  %v5634_v40 = vpop.f32.mrb[49].mxu1 }
 0x165   : > { %v3613_v33 = vadd.f32 %v5571_v26, %v7696_v63  ;;  %v5574_v36 = vadd.f32 %v5573_v43, %v5572_v27  ;;  %v5635_v56 = vadd.f32 %v5634_v40, %v5633_v30  ;;  %v5636_v42 = vpop.f32.mrb[50].mxu1  ;;  %v6782_v26 = vld [vmem:[%s8377_s4 + $0x658] sm:$0xff]   ;;  %v6805_v27 = vld [vmem:[%s8377_s4 + $0x690] sm:$0xff]  }
 0x166   : > { %4217 = vmatmul.mubr.bf16.gmra.mrb[156].mxu0 %v6745_v24  ;;  %v5637_v47 = vpop.f32.mrb[51].mxu1  ;;  %v6785_v40 = vld [vmem:[%s8377_s4 + $0x618] sm:$0xff]  }
 0x167   : > { %v3616_v46 = vadd.f32 %v5574_v36, %v7699_v3  ;;  %4354 = vmatprep.mubr.bf16.mxu0 %v6756_v28  ;;  %v7875_v48 = vadd.f32 %v5635_v56, %v3613_v33  ;;  %v5638_v49 = vadd.f32 %v5637_v47, %v5636_v42  ;;  %v6759_v3 = vld [vmem:[%s7130_s30 + $0x58] ss:$108 sps:$4 sm:$0xff]  }
 0x168   : > { %4314 = vmatmul.mubr.bf16.gmra.mrb[156].mxu1 %v6750_v31  ;;  %v6775_v31 = vld [vmem:[%s7130_s30 + $0x20c] ss:$108 sps:$4 sm:$0xff]   ;;  %v6790_v47 = vld [vmem:[%s8377_s4 + $0x660] sm:$0xff]  }
 0x169   : > { %v5575_v50 = vpop.f32.mrb[52].mxu0  ;;  %v7878_v63 = vadd.f32 %v5638_v49, %v3616_v46  ;;  %4451 = vmatprep.mubr.bf16.mxu1 %v6761_v44 }
 0x16a   : > { %v5576_v51 = vpop.f32.mrb[53].mxu0 }
 0x16b   : > { %v5577_v54 = vadd.f32 %v5576_v51, %v5575_v50  ;;  %v5578_v55 = vpop.f32.mrb[54].mxu0  ;;  %v5639_v59 = vpop.f32.mrb[52].mxu1  ;;  %v6779_v51 = vld [vmem:[%s7130_s30 + $0x2dc] ss:$108 sps:$4 sm:$0xff]  }
 0x16c   : > { %v5579_v61 = vpop.f32.mrb[55].mxu0  ;;  %v5640_v4 = vpop.f32.mrb[53].mxu1 }
 0x16d   : > { %v3621_v62 = vadd.f32 %v5577_v54, %v7724_v29  ;;  %v5580_v0 = vadd.f32 %v5579_v61, %v5578_v55  ;;  %v5641_v6 = vadd.f32 %v5640_v4, %v5639_v59  ;;  %v5642_v7 = vpop.f32.mrb[54].mxu1  ;;  %v6800_v29 = vld [vmem:[%s8377_s4 + $0x688] sm:$0xff]   ;;  %v6815_v59 = vld [vmem:[%s8377_s4 + $0x6a0] sm:$0xff]  }
 0x16e   : > { %4355 = vmatmul.mubr.bf16.vlgmr.msra.gmra.mrb[160].mxu0 %v6754_v60  ;;  %v5643_v32 = vpop.f32.mrb[55].mxu1  ;;  %v6778_v4 = vld [vmem:[%s7130_s30 + $0x208] ss:$108 sps:$4 sm:$0xff]  }
 0x16f   : > { %v3624_v19 = vadd.f32 %v5580_v0, %v7728_v35  ;;  %6170 = vmatpush3.bf16.msra.mxu0 %v6762_v52  ;;  %4362 = vmatprep.mubr.bf16.mxu0 %v6763_v57  ;;  %v7897_v11 = vadd.f32 %v5641_v6, %v3621_v62  ;;  %v5644_v12 = vadd.f32 %v5643_v32, %v5642_v7  ;;  %v6774_v35 = vld [vmem:[%s8377_s4 + $0x650] sm:$0xff]   ;;  %v6793_v52 = vld [vmem:[%s8377_s4 + $0x620] sm:$0xff]  }
 0x170   : > { %6171 = vmatprep.subr.bf16.mxu0 %v6766_v58  ;;  %4452 = vmatmul.mubr.bf16.vlgmr.msra.gmra.mrb[160].mxu1 %v6759_v3  ;;  %v6799_v58 = vld [vmem:[%s8377_s4 + $0x668] sm:$0xff]   ;;  %v6783_v7 = vld [vmem:[%s7130_s30 + $0x2e4] ss:$108 sps:$4 sm:$0xff]  }
 0x171   : > { %v5581_v15 = vpop.f32.mrb[56].mxu0  ;;  %v7904_v17 = vadd.f32 %v5644_v12, %v3624_v19  ;;  %4459 = vmatprep.mubr.bf16.mxu1 %v6767_v5  ;;  %6250 = vmatpush3.bf16.msra.mxu1 %v7850_v53  ;;  %v6770_v53 = vld [vmem:[%s7130_s30 + $0x130] ss:$108 sps:$4 sm:$0xff]  }
 0x172   : > { %v5582_v18 = vpop.f32.mrb[57].mxu0  ;;  %6251 = vmatprep.subr.bf16.mxu1 %v6800_v29 }
 0x173   : > { %v5583_v22 = vadd.f32 %v5582_v18, %v5581_v15  ;;  %v5584_v23 = vpop.f32.mrb[58].mxu0  ;;  %6172 = vmatpush3.bf16.msra.mxu0 %v6769_v8  ;;  %v5645_v24 = vpop.f32.mrb[56].mxu1  ;;  %v6803_v8 = vld [vmem:[%s8377_s4 + $0x628] sm:$0xff]  }
 0x174   : > { %v5585_v25 = vpop.f32.mrb[59].mxu0  ;;  %6173 = vmatprep.subr.bf16.mxu0 %v6774_v35  ;;  %v5646_v43 = vpop.f32.mrb[57].mxu1 }
 0x175   : > { %v3629_v28 = vadd.f32 %v5583_v22, %v7755_v1  ;;  %v5586_v30 = vadd.f32 %v5585_v25, %v5584_v23  ;;  %v5647_v33 = vadd.f32 %v5646_v43, %v5645_v24  ;;  %v5648_v36 = vpop.f32.mrb[58].mxu1  ;;  %6252 = vmatpush3.bf16.msra.mxu1 %v6800_v29  ;;  %v6810_v1 = vld [vmem:[%s8377_s4 + $0x698] sm:$0xff]   ;;  %v6787_v22 = vld [vmem:[%s7130_s30 + $0x3b4] ss:$108 sps:$4 sm:$0xff]  }
 0x176   : > { %4363 = vmatmul.mubr.bf16.gmra.mrb[164].mxu0 %v6765_v38  ;;  %v5649_v42 = vpop.f32.mrb[59].mxu1  ;;  %6253 = vmatprep.subr.bf16.mxu1 %v6805_v27  ;;  %v6813_v23 = vld [vmem:[%s8377_s4 + $0x630] sm:$0xff]  }
 0x177   : > { %v3632_v56 = vadd.f32 %v5586_v30, %v7763_v9  ;;  %4370 = vmatprep.mubr.bf16.mxu0 %v6771_v16  ;;  %6174 = vmatpush3.bf16.msra.mxu0 %v6777_v20  ;;  %v7926_v44 = vadd.f32 %v5647_v33, %v3629_v28  ;;  %v5650_v46 = vadd.f32 %v5649_v42, %v5648_v36  ;;  %v6773_v9 = vld [vmem:[%s7130_s30 + $0x200] ss:$108 sps:$4 sm:$0xff]   ;;  %v6781_v16 = vld [vmem:[%s7130_s30 + $0x2d8] ss:$108 sps:$4 sm:$0xff]   ;;  %v6791_v36 = vld [vmem:[%s7130_s30 + $0x3bc] ss:$108 sps:$4 sm:$0xff]  }
 0x178   : > { %6175 = vmatprep.subr.bf16.mxu0 %v6782_v26  ;;  %4460 = vmatmul.mubr.bf16.gmra.mrb[164].mxu1 %v6770_v53  ;;  %v6819_v26 = vld [vmem:[%s8377_s4 + $0x678] sm:$0xff]   ;;  %v6786_v53 = vld [vmem:[%s7130_s30 + $0x2e0] ss:$108 sps:$4 sm:$0xff]  }
 0x179   : > { %v5587_v49 = vpop.f32.mrb[60].mxu0  ;;  %v7932_v60 = vadd.f32 %v5650_v46, %v3632_v56  ;;  %4467 = vmatprep.mubr.bf16.mxu1 %v6775_v31  ;;  %6254 = vmatpush3.bf16.msra.mxu1 %v6805_v27  ;;  %v6825_v27 = vld [vmem:[%s8377_s4 + $0x6b0] sm:$0xff]   ;;  %v6823_v42 = vld [vmem:[%s8377_s4 + $0x638] sm:$0xff]  }
 0x17a   : > { %v5588_v50 = vpop.f32.mrb[61].mxu0  ;;  %6255 = vmatprep.subr.bf16.mxu1 %v6810_v1 }
 0x17b   : > { %v5589_v54 = vadd.f32 %v5588_v50, %v5587_v49  ;;  %v5590_v55 = vpop.f32.mrb[62].mxu0  ;;  %6176 = vmatpush3.bf16.msra.mxu0 %v6785_v40  ;;  %v5651_v3 = vpop.f32.mrb[60].mxu1 }
 0x17c   : > { %v5591_v57 = vpop.f32.mrb[63].mxu0  ;;  %6177 = vmatprep.subr.bf16.mxu0 %v6790_v47  ;;  %v5652_v0 = vpop.f32.mrb[61].mxu1 }
 0x17d   : > { %v3637_v61 = vadd.f32 %v5589_v54, %v7789_v37  ;;  %v5592_v62 = vadd.f32 %v5591_v57, %v5590_v55  ;;  %v5653_v5 = vadd.f32 %v5652_v0, %v5651_v3  ;;  %v5654_v6 = vpop.f32.mrb[62].mxu1  ;;  %6256 = vmatpush3.bf16.msra.mxu1 %v6810_v1  ;;  %v6820_v37 = vld [vmem:[%s8377_s4 + $0x6a8] sm:$0xff]   ;;  %v6801_v0 = vld [vmem:[%s7130_s30 + $0x494] ss:$108 sps:$4 sm:$0xff]  }
 0x17e   : > { %4371 = vmatmul.mubr.bf16.gmra.mrb[168].mxu0 %v6773_v9  ;;  %v5655_v32 = vpop.f32.mrb[63].mxu1  ;;  %6257 = vmatprep.subr.bf16.mxu1 %v6815_v59  ;;  %v6789_v9 = vld [vmem:[%s7130_s30 + $0x3b0] ss:$108 sps:$4 sm:$0xff]  }
 0x17f   : > { %v3640_v19 = vadd.f32 %v5592_v62, %v7795_v45  ;;  %4378 = vmatprep.mubr.bf16.mxu0 %v6779_v51  ;;  %6178 = vmatpush3.bf16.msra.mxu0 %v6793_v52  ;;  %v7954_v29 = vadd.f32 %v5653_v5, %v3637_v61  ;;  %v5656_v12 = vadd.f32 %v5655_v32, %v5654_v6  ;;  %v6809_v45 = vld [vmem:[%s8377_s4 + $0x670] sm:$0xff]   ;;  %v6796_v52 = vld [vmem:[%s7130_s30 + $0x48c] ss:$108 sps:$4 sm:$0xff]  }
 0x180   : > { %6179 = vmatprep.subr.bf16.mxu0 %v6799_v58  ;;  %4468 = vmatmul.mubr.bf16.gmra.mrb[168].mxu1 %v6778_v4 }
 0x181   : > { %v5673_v38 = vpop.f32.mrb[64].mxu0  ;;  %v7959_v35 = vadd.f32 %v5656_v12, %v3640_v19  ;;  %4475 = vmatprep.mubr.bf16.mxu1 %v6783_v7  ;;  %6258 = vmatpush3.bf16.msra.mxu1 %v6815_v59  ;;  %v6794_v59 = vld [vmem:[%s7130_s30 + $0x3b8] ss:$108 sps:$4 sm:$0xff]  }
 0x182   : > { %v5674_v15 = vpop.f32.mrb[65].mxu0  ;;  %6259 = vmatprep.subr.bf16.mxu1 %v6820_v37 }
 0x183   : > { %v5675_v18 = vadd.f32 %v5674_v15, %v5673_v38  ;;  %v5676_v20 = vpop.f32.mrb[66].mxu0  ;;  %6180 = vmatpush3.bf16.msra.mxu0 %v6803_v8  ;;  %v5737_v24 = vpop.f32.mrb[64].mxu1  ;;  %v6798_v8 = vld [vmem:[%s7130_s30 + $0x488] ss:$108 sps:$4 sm:$0xff]  }
 0x184   : > { %v5677_v25 = vpop.f32.mrb[67].mxu0  ;;  %6181 = vmatprep.subr.bf16.mxu0 %v6809_v45  ;;  %v5738_v43 = vpop.f32.mrb[65].mxu1  ;;  %v6806_v45 = vld [vmem:[%s7130_s30 + $0x564] ss:$108 sps:$4 sm:$0xff]  }
 0x185   : > { %v3775_v28 = vadd.f32 %v5675_v18, %v7826_v10  ;;  %v5678_v30 = vadd.f32 %v5677_v25, %v5676_v20  ;;  %v5739_v31 = vadd.f32 %v5738_v43, %v5737_v24  ;;  %v5740_v33 = vpop.f32.mrb[66].mxu1  ;;  %6260 = vmatpush3.bf16.msra.mxu1 %v6820_v37  ;;  %v6829_v10 = vld [vmem:[%s8377_s4 + $0x6b8] sm:$0xff]  }
 0x186   : > { %4379 = vmatmul.mubr.bf16.gmra.mrb[172].mxu0 %v6781_v16  ;;  %v5741_v56 = vpop.f32.mrb[67].mxu1  ;;  %6261 = vmatprep.subr.bf16.mxu1 %v6825_v27  ;;  %v6804_v20 = vld [vmem:[%s7130_s30 + $0x490] ss:$108 sps:$4 sm:$0xff]   ;;  %v6811_v24 = vld [vmem:[%s7130_s30 + $0x56c] ss:$108 sps:$4 sm:$0xff]  }
 0x187   : > { %v3778_v40 = vadd.f32 %v5678_v30, %v7829_v13  ;;  %4386 = vmatprep.mubr.bf16.mxu0 %v6787_v22  ;;  %6182 = vmatpush3.bf16.msra.mxu0 %v6813_v23  ;;  %v7982_v1 = vadd.f32 %v5739_v31, %v3775_v28  ;;  %v5742_v46 = vadd.f32 %v5741_v56, %v5740_v33 }
 0x188   : > { %6183 = vmatprep.subr.bf16.mxu0 %v6819_v26  ;;  %4476 = vmatmul.mubr.bf16.gmra.mrb[172].mxu1 %v6786_v53  ;;  %v6808_v53 = vld [vmem:[%s7130_s30 + $0x560] ss:$108 sps:$4 sm:$0xff]  }
 0x189   : > { %v5679_v47 = vpop.f32.mrb[68].mxu0  ;;  %v7984_v13 = vadd.f32 %v5742_v46, %v3778_v40  ;;  %4483 = vmatprep.mubr.bf16.mxu1 %v6791_v36  ;;  %6262 = vmatpush3.bf16.msra.mxu1 %v6825_v27  ;;  %v6816_v36 = vld [vmem:[%s7130_s30 + $0x63c] ss:$108 sps:$4 sm:$0xff]  }
 0x18a   : > { %v5680_v49 = vpop.f32.mrb[69].mxu0  ;;  %6263 = vmatprep.subr.bf16.mxu1 %v6829_v10  ;;  %v6814_v46 = vld [vmem:[%s7130_s30 + $0x568] ss:$108 sps:$4 sm:$0xff]  }
 0x18b   : > { %v5681_v50 = vadd.f32 %v5680_v49, %v5679_v47  ;;  %v5682_v51 = vpop.f32.mrb[70].mxu0  ;;  %6184 = vmatpush3.bf16.msra.mxu0 %v6823_v42  ;;  %v5743_v54 = vpop.f32.mrb[68].mxu1 }
 0x18c   : > { %v5683_v55 = vpop.f32.mrb[71].mxu0  ;;  %v5744_v58 = vpop.f32.mrb[69].mxu1 }
 0x18d   : > { %v3783_v3 = vadd.f32 %v5681_v50, %v7839_v34  ;;  %v5684_v57 = vadd.f32 %v5683_v55, %v5682_v51  ;;  %v5745_v61 = vadd.f32 %v5744_v58, %v5743_v54  ;;  %v5746_v62 = vpop.f32.mrb[70].mxu1  ;;  %6264 = vmatpush3.bf16.msra.mxu1 %v6829_v10 }
 0x18e   : > { %4387 = vmatmul.mubr.bf16.gmra.mrb[176].mxu0 %v6789_v9  ;;  %v5747_v5 = vpop.f32.mrb[71].mxu1  ;;  %v6821_v9 = vld [vmem:[%s7130_s30 + $0x644] ss:$108 sps:$4 sm:$0xff]  }
 0x18f   : > { %v3786_v4 = vadd.f32 %v5684_v57, %v7842_v41  ;;  %4394 = vmatprep.mubr.bf16.mxu0 %v6796_v52  ;;  %v7992_v6 = vadd.f32 %v5745_v61, %v3783_v3  ;;  %v5748_v7 = vadd.f32 %v5747_v5, %v5746_v62  ;;  %v6818_v57 = vld [vmem:[%s7130_s30 + $0x638] ss:$108 sps:$4 sm:$0xff]  }
 0x190   : > { %4484 = vmatmul.mubr.bf16.gmra.mrb[176].mxu1 %v6794_v59  ;;  %v6828_v61 = vld [vmem:[%s7130_s30 + $0x64] ss:$108 sps:$4 sm:$0xff]  }
 0x191   : > { %v5685_v34 = vpop.f32.mrb[72].mxu0  ;;  %v7994_v19 = vadd.f32 %v5748_v7, %v3786_v4  ;;  %4491 = vmatprep.mubr.bf16.mxu1 %v6801_v0  ;;  %v6824_v7 = vld [vmem:[%s7130_s30 + $0x640] ss:$108 sps:$4 sm:$0xff]  }
 0x192   : > { %v5686_v32 = vpop.f32.mrb[73].mxu0 }
 0x193   : > { %v5687_v37 = vadd.f32 %v5686_v32, %v5685_v34  ;;  %v5688_v12 = vpop.f32.mrb[74].mxu0  ;;  %v5749_v38 = vpop.f32.mrb[72].mxu1 }
 0x194   : > { %v5689_v15 = vpop.f32.mrb[75].mxu0  ;;  %v5750_v18 = vpop.f32.mrb[73].mxu1 }
 0x195   : > { %v3791_v41 = vadd.f32 %v5687_v37, %v7855_v14  ;;  %v5690_v16 = vadd.f32 %v5689_v15, %v5688_v12  ;;  %v5751_v22 = vadd.f32 %v5750_v18, %v5749_v38  ;;  %v5752_v23 = vpop.f32.mrb[74].mxu1 }
 0x196   : > { %4395 = vmatmul.mubr.bf16.gmra.mrb[180].mxu0 %v6798_v8  ;;  %v5753_v26 = vpop.f32.mrb[75].mxu1  ;;  %v6830_v8 = vld [vmem:[%s7130_s30 + $0x68] ss:$108 sps:$4 sm:$0xff]  }
 0x197   : > { %v3794_v25 = vadd.f32 %v5690_v16, %v7858_v2  ;;  %4402 = vmatprep.mubr.bf16.mxu0 %v6806_v45  ;;  %v8002_v27 = vadd.f32 %v5751_v22, %v3791_v41  ;;  %v5754_v28 = vadd.f32 %v5753_v26, %v5752_v23  ;;  %v6826_v16 = vld [vmem:[%s7130_s30 + $0x60] ss:$108 sps:$4 sm:$0xff]   ;;  %v6832_v22 = vld [vmem:[%s7130_s30 + $0x13c] ss:$108 sps:$4 sm:$0xff]  }
 0x198   : > { %4492 = vmatmul.mubr.bf16.gmra.mrb[180].mxu1 %v6804_v20 }
 0x199   : > { %v5691_v30 = vpop.f32.mrb[76].mxu0  ;;  %v8004_v14 = vadd.f32 %v5754_v28, %v3794_v25  ;;  %4499 = vmatprep.mubr.bf16.mxu1 %v6811_v24  ;;  %v6831_v28 = vld [vmem:[%s7130_s30 + $0x140] ss:$108 sps:$4 sm:$0xff]  }
 0x19a   : > { %v5692_v43 = vpop.f32.mrb[77].mxu0 }
 0x19b   : > { %v5693_v31 = vadd.f32 %v5692_v43, %v5691_v30  ;;  %v5694_v33 = vpop.f32.mrb[78].mxu0  ;;  %v5755_v40 = vpop.f32.mrb[76].mxu1 }
 0x19c   : > { %v5695_v56 = vpop.f32.mrb[79].mxu0  ;;  %v5756_v10 = vpop.f32.mrb[77].mxu1 }
 0x19d   : > { %v3799_v2 = vadd.f32 %v5693_v31, %v7865_v21  ;;  %v5696_v42 = vadd.f32 %v5695_v56, %v5694_v33  ;;  %v5757_v47 = vadd.f32 %v5756_v10, %v5755_v40  ;;  %v5758_v49 = vpop.f32.mrb[78].mxu1 }
 0x19e   : > { %4403 = vmatmul.mubr.bf16.gmra.mrb[184].mxu0 %v6808_v53  ;;  %v5759_v51 = vpop.f32.mrb[79].mxu1  ;;  %v6838_v53 = vld [vmem:[%s7130_s30 + $0x218] ss:$108 sps:$4 sm:$0xff]  }
 0x19f   : > { %v3802_v50 = vadd.f32 %v5696_v42, %v7868_v39  ;;  %4410 = vmatprep.mubr.bf16.mxu0 %v6816_v36  ;;  %v8012_v52 = vadd.f32 %v5757_v47, %v3799_v2  ;;  %v5760_v54 = vadd.f32 %v5759_v51, %v5758_v49  ;;  %v6834_v42 = vld [vmem:[%s7130_s30 + $0x138] ss:$108 sps:$4 sm:$0xff]   ;;  %v6835_v47 = vld [vmem:[%s7130_s30 + $0x214] ss:$108 sps:$4 sm:$0xff]  }
 0x1a0   : > { %4500 = vmatmul.mubr.bf16.gmra.mrb[184].mxu1 %v6814_v46 }
 0x1a1   : > { %v5697_v55 = vpop.f32.mrb[80].mxu0  ;;  %v8014_v21 = vadd.f32 %v5760_v54, %v3802_v50  ;;  %4507 = vmatprep.mubr.bf16.mxu1 %v6821_v9  ;;  %v6839_v54 = vld [vmem:[%s7130_s30 + $0x2f0] ss:$108 sps:$4 sm:$0xff]  }
 0x1a2   : > { %v5698_v3 = vpop.f32.mrb[81].mxu0 }
 0x1a3   : > { %v5699_v58 = vadd.f32 %v5698_v3, %v5697_v55  ;;  %v5700_v59 = vpop.f32.mrb[82].mxu0  ;;  %v5761_v62 = vpop.f32.mrb[80].mxu1 }
 0x1a4   : > { %v5701_v0 = vpop.f32.mrb[83].mxu0  ;;  %v5762_v5 = vpop.f32.mrb[81].mxu1 }
 0x1a5   : > { %v3807_v39 = vadd.f32 %v5699_v58, %v7875_v48  ;;  %v5702_v4 = vadd.f32 %v5701_v0, %v5700_v59  ;;  %v5763_v34 = vadd.f32 %v5762_v5, %v5761_v62  ;;  %v5764_v32 = vpop.f32.mrb[82].mxu1 }
 0x1a6   : > { %4411 = vmatmul.mubr.bf16.gmra.mrb[188].mxu0 %v6818_v57  ;;  %v5765_v12 = vpop.f32.mrb[83].mxu1  ;;  %v6846_v57 = vld [vmem:[%s7130_s30 + $0x3c8] ss:$108 sps:$4 sm:$0xff]  }
 0x1a7   : > { %v3810_v37 = vadd.f32 %v5702_v4, %v7878_v63  ;;  %4548 = vmatprep.mubr.bf16.mxu0 %v6828_v61  ;;  %v8022_v45 = vadd.f32 %v5763_v34, %v3807_v39  ;;  %v5766_v38 = vadd.f32 %v5765_v12, %v5764_v32  ;;  %v6837_v4 = vld [vmem:[%s7130_s30 + $0x210] ss:$108 sps:$4 sm:$0xff]   ;;  %v6840_v34 = vld [vmem:[%s7130_s30 + $0x2ec] ss:$108 sps:$4 sm:$0xff]  }
 0x1a8   : > { %4508 = vmatmul.mubr.bf16.gmra.mrb[188].mxu1 %v6824_v7 }
 0x1a9   : > { %v5703_v15 = vpop.f32.mrb[84].mxu0  ;;  %v8024_v48 = vadd.f32 %v5766_v38, %v3810_v37  ;;  %6265 = vmatprep.mubr.bf16.mxu1 %v6830_v8  ;;  %v6847_v38 = vld [vmem:[%s7130_s30 + $0x4a0] ss:$108 sps:$4 sm:$0xff]  }
 0x1aa   : > { %v5704_v41 = vpop.f32.mrb[85].mxu0 }
 0x1ab   : > { %v5705_v18 = vadd.f32 %v5704_v41, %v5703_v15  ;;  %v5706_v20 = vpop.f32.mrb[86].mxu0  ;;  %v5767_v23 = vpop.f32.mrb[84].mxu1 }
 0x1ac   : > { %v5707_v24 = vpop.f32.mrb[87].mxu0  ;;  %v5768_v26 = vpop.f32.mrb[85].mxu1 }
 0x1ad   : > { %v3815_v63 = vadd.f32 %v5705_v18, %v7897_v11  ;;  %v5708_v25 = vadd.f32 %v5707_v24, %v5706_v20  ;;  %v5769_v30 = vadd.f32 %v5768_v26, %v5767_v23  ;;  %v5770_v43 = vpop.f32.mrb[86].mxu1 }
 0x1ae   : > { %4549 = vmatmul.mubr.bf16.vlgmr.msra.gmra.mrb[192].mxu0 %v6826_v16  ;;  %v5771_v33 = vpop.f32.mrb[87].mxu1  ;;  %v6854_v16 = vld [vmem:[%s7130_s30 + $0x578] ss:$108 sps:$4 sm:$0xff]  }
 0x1af   : > { %v3818_v31 = vadd.f32 %v5708_v25, %v7904_v17  ;;  %4556 = vmatprep.mubr.bf16.mxu0 %v6832_v22  ;;  %v8032_v36 = vadd.f32 %v5769_v30, %v3815_v63  ;;  %v5772_v40 = vadd.f32 %v5771_v33, %v5770_v43  ;;  %v6842_v25 = vld [vmem:[%s7130_s30 + $0x2e8] ss:$108 sps:$4 sm:$0xff]   ;;  %v6843_v30 = vld [vmem:[%s7130_s30 + $0x3c4] ss:$108 sps:$4 sm:$0xff]  }
 0x1b0   : > { %6266 = vmatmul.mubr.bf16.vlgmr.msra.gmra.mrb[192].mxu1 %v6831_v28 }
 0x1b1   : > { %v5709_v56 = vpop.f32.mrb[88].mxu0  ;;  %v8034_v11 = vadd.f32 %v5772_v40, %v3818_v31  ;;  %6269 = vmatprep.mubr.bf16.mxu1 %v6838_v53  ;;  %v6855_v40 = vld [vmem:[%s7130_s30 + $0x650] ss:$108 sps:$4 sm:$0xff]  }
 0x1b2   : > { %v5710_v2 = vpop.f32.mrb[89].mxu0 }
 0x1b3   : > { %v5711_v10 = vadd.f32 %v5710_v2, %v5709_v56  ;;  %v5712_v46 = vpop.f32.mrb[90].mxu0  ;;  %v5773_v49 = vpop.f32.mrb[88].mxu1 }
 0x1b4   : > { %v5713_v9 = vpop.f32.mrb[91].mxu0  ;;  %v5774_v51 = vpop.f32.mrb[89].mxu1 }
 0x1b5   : > { %v3823_v17 = vadd.f32 %v5711_v10, %v7926_v44  ;;  %v5714_v50 = vadd.f32 %v5713_v9, %v5712_v46  ;;  %v5775_v55 = vadd.f32 %v5774_v51, %v5773_v49  ;;  %v5776_v3 = vpop.f32.mrb[90].mxu1 }
 0x1b6   : > { %4557 = vmatmul.mubr.bf16.gmra.mrb[196].mxu0 %v6834_v42  ;;  %v5777_v59 = vpop.f32.mrb[91].mxu1 }
 0x1b7   : > { %v3826_v58 = vadd.f32 %v5714_v50, %v7932_v60  ;;  %4564 = vmatprep.mubr.bf16.mxu0 %v6835_v47  ;;  %v8042_v61 = vadd.f32 %v5775_v55, %v3823_v17  ;;  %v5778_v62 = vadd.f32 %v5777_v59, %v5776_v3  ;;  %v6845_v17 = vld [vmem:[%s7130_s30 + $0x3c0] ss:$108 sps:$4 sm:$0xff]  }
 0x1b8   : > { %6270 = vmatmul.mubr.bf16.gmra.mrb[196].mxu1 %v6839_v54  ;;  %v6848_v54 = vld [vmem:[%s7130_s30 + $0x49c] ss:$108 sps:$4 sm:$0xff]  }
 0x1b9   : > { %v5715_v0 = vpop.f32.mrb[92].mxu0  ;;  %v8044_v44 = vadd.f32 %v5778_v62, %v3826_v58  ;;  %6273 = vmatprep.mubr.bf16.mxu1 %v6846_v57 }
 0x1ba   : > { %v5716_v39 = vpop.f32.mrb[93].mxu0 }
 0x1bb   : > { %v5717_v5 = vadd.f32 %v5716_v39, %v5715_v0  ;;  %v5718_v7 = vpop.f32.mrb[94].mxu0  ;;  %v5779_v32 = vpop.f32.mrb[92].mxu1 }
 0x1bc   : > { %v5719_v8 = vpop.f32.mrb[95].mxu0  ;;  %v5780_v12 = vpop.f32.mrb[93].mxu1 }
 0x1bd   : > { %v3831_v60 = vadd.f32 %v5717_v5, %v7954_v29  ;;  %v5720_v37 = vadd.f32 %v5719_v8, %v5718_v7  ;;  %v5781_v15 = vadd.f32 %v5780_v12, %v5779_v32  ;;  %v5782_v41 = vpop.f32.mrb[94].mxu1  ;;  %v6850_v8 = vld [vmem:[%s7130_s30 + $0x498] ss:$108 sps:$4 sm:$0xff]  }
 0x1be   : > { %4565 = vmatmul.mubr.bf16.gmra.mrb[200].mxu0 %v6837_v4  ;;  %v5783_v20 = vpop.f32.mrb[95].mxu1 }
 0x1bf   : > { %v3834_v18 = vadd.f32 %v5720_v37, %v7959_v35  ;;  %4572 = vmatprep.mubr.bf16.mxu0 %v6840_v34  ;;  %v8052_v22 = vadd.f32 %v5781_v15, %v3831_v60  ;;  %v5784_v23 = vadd.f32 %v5783_v20, %v5782_v41  ;;  %v6851_v37 = vld [vmem:[%s7130_s30 + $0x574] ss:$108 sps:$4 sm:$0xff]  }
 0x1c0   : > { %6274 = vmatmul.mubr.bf16.gmra.mrb[200].mxu1 %v6847_v38 }
 0x1c1   : > { %v5801_v24 = vpop.f32.mrb[96].mxu0  ;;  %v8054_v29 = vadd.f32 %v5784_v23, %v3834_v18  ;;  %6277 = vmatprep.mubr.bf16.mxu1 %v6854_v16 }
 0x1c2   : > { %v5802_v63 = vpop.f32.mrb[97].mxu0 }
 0x1c3   : > { %v5803_v26 = vadd.f32 %v5802_v63, %v5801_v24  ;;  %v5804_v28 = vpop.f32.mrb[98].mxu0  ;;  %v5865_v43 = vpop.f32.mrb[96].mxu1 }
 0x1c4   : > { %v5805_v53 = vpop.f32.mrb[99].mxu0  ;;  %v5866_v33 = vpop.f32.mrb[97].mxu1 }
 0x1c5   : > { %v3969_v35 = vadd.f32 %v5803_v26, %v7982_v1  ;;  %v5806_v31 = vadd.f32 %v5805_v53, %v5804_v28  ;;  %v5867_v56 = vadd.f32 %v5866_v33, %v5865_v43  ;;  %v5868_v2 = vpop.f32.mrb[98].mxu1  ;;  %v6856_v53 = vld [vmem:[%s7130_s30 + $0x64c] ss:$108 sps:$4 sm:$0xff]  }
 0x1c6   : > { %4573 = vmatmul.mubr.bf16.gmra.mrb[204].mxu0 %v6842_v25  ;;  %v5869_v10 = vpop.f32.mrb[99].mxu1 }
 0x1c7   : > { %v3972_v42 = vadd.f32 %v5806_v31, %v7984_v13  ;;  %4580 = vmatprep.mubr.bf16.mxu0 %v6843_v30  ;;  %v8061_v46 = vadd.f32 %v5867_v56, %v3969_v35  ;;  %v5870_v47 = vadd.f32 %v5869_v10, %v5868_v2  ;;  %v6853_v30 = vld [vmem:[%s7130_s30 + $0x570] ss:$108 sps:$4 sm:$0xff]  }
 0x1c8   : > { %6278 = vmatmul.mubr.bf16.gmra.mrb[204].mxu1 %v6855_v40 }
 0x1c9   : > { %v5807_v49 = vpop.f32.mrb[100].mxu0  ;;  %v8063_v9 = vadd.f32 %v5870_v47, %v3972_v42 }
 0x1ca   : > { %v5808_v1 = vpop.f32.mrb[101].mxu0 }
 0x1cb   : > { %v5809_v50 = vadd.f32 %v5808_v1, %v5807_v49  ;;  %v5810_v51 = vpop.f32.mrb[102].mxu0  ;;  %v5871_v55 = vpop.f32.mrb[100].mxu1 }
 0x1cc   : > { %v5811_v3 = vpop.f32.mrb[103].mxu0  ;;  %v5872_v58 = vpop.f32.mrb[101].mxu1 }
 0x1cd   : > { %v3977_v57 = vadd.f32 %v5809_v50, %v7992_v6  ;;  %v5812_v13 = vadd.f32 %v5811_v3, %v5810_v51  ;;  %v5873_v59 = vadd.f32 %v5872_v58, %v5871_v55  ;;  %v5874_v62 = vpop.f32.mrb[102].mxu1  ;;  %v6858_v51 = vld [vmem:[%s7130_s30 + $0x648] ss:$108 sps:$4 sm:$0xff]   ;;  %s6895_s30 = sshll.u32 %s6955_s8, 4  ;;  %s6896_s30 = int_to_ptr.vmem [resolvable:$false] %s6895_s30 }
 0x1ce   : > { %4581 = vmatmul.mubr.bf16.gmra.mrb[208].mxu0 %v6845_v17  ;;  %v5875_v39 = vpop.f32.mrb[103].mxu1  ;;  %s6897_s10 = scalar_lea.vmem %s6896_s30, 4096  ;;  %p6898_p0 = scmp.lt.s32.totalorder %s8326_s17, %s6896_s30 }
 0x1cf   : > { %v3980_v0 = vadd.f32 %v5812_v13, %v7994_v19  ;;  %4588 = vmatprep.mubr.bf16.mxu0 %v6848_v54  ;;  %v8069_v4 = vadd.f32 %v5873_v59, %v3977_v57  ;;  %v5876_v5 = vadd.f32 %v5875_v39, %v5874_v62  ;;  %p6899_p1 = scmp.lt.s32.totalorder %s6897_s10, %s6891_s22 }
 0x1d1   : > { %v5813_v7 = vpop.f32.mrb[104].mxu0  ;;  %v8071_v34 = vadd.f32 %v5876_v5, %v3980_v0  ;;  %p6900_p2 = por %p6899_p1, %p6898_p0 }
 0x1d2   : > { %v5814_v32 = vpop.f32.mrb[105].mxu0 }
 0x1d3   : > { %v5815_v60 = vadd.f32 %v5814_v32, %v5813_v7  ;;  %v5816_v6 = vpop.f32.mrb[106].mxu0  ;;  %v5877_v12 = vpop.f32.mrb[104].mxu1  ;;  %p6901_p3 = pnand %p6900_p2, %p6894_p13 }
 0x1d4   : > { %v5817_v38 = vpop.f32.mrb[107].mxu0  ;;  %v5878_v19 = vpop.f32.mrb[105].mxu1 }
 0x1d5   : > { %v3985_v15 = vadd.f32 %v5815_v60, %v8002_v27  ;;  %v5818_v41 = vadd.f32 %v5817_v38, %v5816_v6  ;;  %v5879_v16 = vadd.f32 %v5878_v19, %v5877_v12  ;;  %v5880_v18 = vpop.f32.mrb[106].mxu1 }
 0x1d6   : > { %4589 = vmatmul.mubr.bf16.gmra.mrb[212].mxu0 %v6850_v8  ;;  %v5881_v23 = vpop.f32.mrb[107].mxu1 }
 0x1d7   : > { %v3988_v20 = vadd.f32 %v5818_v41, %v8004_v14  ;;  %4596 = vmatprep.mubr.bf16.mxu0 %v6851_v37  ;;  %v8077_v24 = vadd.f32 %v5879_v16, %v3985_v15  ;;  %v5882_v63 = vadd.f32 %v5881_v23, %v5880_v18 }
 0x1d9   : > { %v5819_v25 = vpop.f32.mrb[108].mxu0  ;;  %v8079_v26 = vadd.f32 %v5882_v63, %v3988_v20 }
 0x1da   : > { %v5820_v28 = vpop.f32.mrb[109].mxu0 }
 0x1db   : > { %v5821_v43 = vadd.f32 %v5820_v28, %v5819_v25  ;;  %v5822_v27 = vpop.f32.mrb[110].mxu0  ;;  %v5883_v35 = vpop.f32.mrb[108].mxu1 }
 0x1dc   : > { %v5823_v31 = vpop.f32.mrb[111].mxu0  ;;  %v5884_v14 = vpop.f32.mrb[109].mxu1 }
 0x1dd   : > { %v3993_v33 = vadd.f32 %v5821_v43, %v8012_v52  ;;  %v5824_v40 = vadd.f32 %v5823_v31, %v5822_v27  ;;  %v5885_v56 = vadd.f32 %v5884_v14, %v5883_v35  ;;  %v5886_v2 = vpop.f32.mrb[110].mxu1 }
 0x1de   : > { %4597 = vmatmul.mubr.bf16.gmra.mrb[216].mxu0 %v6853_v30  ;;  %v5887_v10 = vpop.f32.mrb[111].mxu1 }
 0x1df   : > { %v3996_v42 = vadd.f32 %v5824_v40, %v8014_v21  ;;  %4604 = vmatprep.mubr.bf16.mxu0 %v6856_v53  ;;  %v8085_v47 = vadd.f32 %v5885_v56, %v3993_v33  ;;  %v5888_v49 = vadd.f32 %v5887_v10, %v5886_v2 }
 0x1e1   : > { %v5825_v1 = vpop.f32.mrb[112].mxu0  ;;  %v8087_v17 = vadd.f32 %v5888_v49, %v3996_v42 }
 0x1e2   : > { %v5826_v50 = vpop.f32.mrb[113].mxu0 }
 0x1e3   : > { %v5827_v54 = vadd.f32 %v5826_v50, %v5825_v1  ;;  %v5828_v55 = vpop.f32.mrb[114].mxu0  ;;  %v5889_v52 = vpop.f32.mrb[112].mxu1 }
 0x1e4   : > { %v5829_v3 = vpop.f32.mrb[115].mxu0  ;;  %v5890_v58 = vpop.f32.mrb[113].mxu1 }
 0x1e5   : > { %v4001_v57 = vadd.f32 %v5827_v54, %v8022_v45  ;;  %v5830_v13 = vadd.f32 %v5829_v3, %v5828_v55  ;;  %v5891_v59 = vadd.f32 %v5890_v58, %v5889_v52  ;;  %v5892_v21 = vpop.f32.mrb[114].mxu1 }
 0x1e6   : > { %4605 = vmatmul.mubr.bf16.gmra.mrb[220].mxu0 %v6858_v51  ;;  %v5893_v0 = vpop.f32.mrb[115].mxu1 }
 0x1e7   : > { %v4004_v62 = vadd.f32 %v5830_v13, %v8024_v48  ;;  %v8092_v39 = vadd.f32 %v5891_v59, %v4001_v57  ;;  %v5894_v5 = vadd.f32 %v5893_v0, %v5892_v21 }
 0x1e9   : > { %v5831_v7 = vpop.f32.mrb[116].mxu0  ;;  %v8094_v32 = vadd.f32 %v5894_v5, %v4004_v62 }
 0x1ea   : > { %v5832_v8 = vpop.f32.mrb[117].mxu0 }
 0x1eb   : > { %v5833_v60 = vadd.f32 %v5832_v8, %v5831_v7  ;;  %v5834_v6 = vpop.f32.mrb[118].mxu0  ;;  %v5895_v37 = vpop.f32.mrb[116].mxu1 }
 0x1ec   : > { %v5835_v12 = vpop.f32.mrb[119].mxu0  ;;  %v5896_v15 = vpop.f32.mrb[117].mxu1 }
 0x1ed   : > { %v4009_v45 = vadd.f32 %v5833_v60, %v8032_v36  ;;  %v5836_v38 = vadd.f32 %v5835_v12, %v5834_v6  ;;  %v5897_v41 = vadd.f32 %v5896_v15, %v5895_v37  ;;  %v5898_v19 = vpop.f32.mrb[118].mxu1 }
 0x1ee   : > { %v5899_v16 = vpop.f32.mrb[119].mxu1 }
 0x1ef   : > { %v4012_v48 = vadd.f32 %v5836_v38, %v8034_v11  ;;  %v8098_v18 = vadd.f32 %v5897_v41, %v4009_v45  ;;  %v5900_v20 = vadd.f32 %v5899_v16, %v5898_v19 }
 0x1f1   : > { %v5837_v23 = vpop.f32.mrb[120].mxu0  ;;  %v8100_v63 = vadd.f32 %v5900_v20, %v4012_v48 }
 0x1f2   : > { %v5838_v25 = vpop.f32.mrb[121].mxu0 }
 0x1f3   : > { %v5839_v28 = vadd.f32 %v5838_v25, %v5837_v23  ;;  %v5840_v30 = vpop.f32.mrb[122].mxu0  ;;  %v5901_v43 = vpop.f32.mrb[120].mxu1 }
 0x1f4   : > { %v5841_v27 = vpop.f32.mrb[123].mxu0  ;;  %v5902_v35 = vpop.f32.mrb[121].mxu1 }
 0x1f5   : > { %v4017_v36 = vadd.f32 %v5839_v28, %v8042_v61  ;;  %v5842_v53 = vadd.f32 %v5841_v27, %v5840_v30  ;;  %v5903_v31 = vadd.f32 %v5902_v35, %v5901_v43  ;;  %v5904_v33 = vpop.f32.mrb[122].mxu1 }
 0x1f6   : > { %v5905_v40 = vpop.f32.mrb[123].mxu1 }
 0x1f7   : > { %v4020_v11 = vadd.f32 %v5842_v53, %v8044_v44  ;;  %v8104_v14 = vadd.f32 %v5903_v31, %v4017_v36  ;;  %v5906_v56 = vadd.f32 %v5905_v40, %v5904_v33 }
 0x1f9   : > { %v5843_v2 = vpop.f32.mrb[124].mxu0  ;;  %v8106_v42 = vadd.f32 %v5906_v56, %v4020_v11 }
 0x1fa   : > { %v5844_v10 = vpop.f32.mrb[125].mxu0 }
 0x1fb   : > { %v5845_v49 = vadd.f32 %v5844_v10, %v5843_v2  ;;  %v5846_v1 = vpop.f32.mrb[126].mxu0  ;;  %v5907_v50 = vpop.f32.mrb[124].mxu1 }
 0x1fc   : > { %v5847_v51 = vpop.f32.mrb[127].mxu0  ;;  %v5908_v55 = vpop.f32.mrb[125].mxu1 }
 0x1fd   : > { %v4025_v61 = vadd.f32 %v5845_v49, %v8052_v22  ;;  %v5848_v54 = vadd.f32 %v5847_v51, %v5846_v1  ;;  %v5909_v52 = vadd.f32 %v5908_v55, %v5907_v50  ;;  %v5910_v3 = vpop.f32.mrb[126].mxu1 }
 0x1fe   : > { %v5911_v57 = vpop.f32.mrb[127].mxu1 }
 0x1ff   : > { %v4028_v44 = vadd.f32 %v5848_v54, %v8054_v29  ;;  %v8110_v13 = vadd.f32 %v5909_v52, %v4025_v61  ;;  %v5912_v58 = vadd.f32 %v5911_v57, %v5910_v3 }
 0x201   : > { %v5929_v59 = vpop.f32.mrb[128].mxu0  ;;  %v8112_v21 = vadd.f32 %v5912_v58, %v4028_v44 }
 0x202   : > { %v5930_v62 = vpop.f32.mrb[129].mxu0 }
 0x203   : > { %v5931_v0 = vadd.f32 %v5930_v62, %v5929_v59  ;;  %v5932_v5 = vpop.f32.mrb[130].mxu0  ;;  %v5993_v7 = vpop.f32.mrb[128].mxu1 }
 0x204   : > { %v5933_v8 = vpop.f32.mrb[131].mxu0  ;;  %v5994_v6 = vpop.f32.mrb[129].mxu1 }
 0x205   : > { %v4163_v22 = vadd.f32 %v5931_v0, %v8061_v46  ;;  %v5934_v60 = vadd.f32 %v5933_v8, %v5932_v5  ;;  %v5995_v37 = vadd.f32 %v5994_v6, %v5993_v7  ;;  %v5996_v12 = vpop.f32.mrb[130].mxu1 }
 0x206   : > { %v5997_v45 = vpop.f32.mrb[131].mxu1 }
 0x207   : > { %v4166_v29 = vadd.f32 %v5934_v60, %v8063_v9  ;;  %v8116_v38 = vadd.f32 %v5995_v37, %v4163_v22  ;;  %v5998_v15 = vadd.f32 %v5997_v45, %v5996_v12 }
 0x209   : > { %v5935_v41 = vpop.f32.mrb[132].mxu0  ;;  %v8118_v19 = vadd.f32 %v5998_v15, %v4166_v29 }
 0x20a   : > { %v5936_v48 = vpop.f32.mrb[133].mxu0 }
 0x20b   : > { %v5937_v16 = vadd.f32 %v5936_v48, %v5935_v41  ;;  %v5938_v20 = vpop.f32.mrb[134].mxu0  ;;  %v5999_v23 = vpop.f32.mrb[132].mxu1 }
 0x20c   : > { %v5939_v25 = vpop.f32.mrb[135].mxu0  ;;  %v6000_v30 = vpop.f32.mrb[133].mxu1 }
 0x20d   : > { %v4171_v46 = vadd.f32 %v5937_v16, %v8069_v4  ;;  %v5940_v28 = vadd.f32 %v5939_v25, %v5938_v20  ;;  %v6001_v43 = vadd.f32 %v6000_v30, %v5999_v23  ;;  %v6002_v27 = vpop.f32.mrb[134].mxu1 }
 0x20e   : > { %v6003_v36 = vpop.f32.mrb[135].mxu1 }
 0x20f   : > { %v4174_v9 = vadd.f32 %v5940_v28, %v8071_v34  ;;  %v8122_v53 = vadd.f32 %v6001_v43, %v4171_v46  ;;  %v6004_v35 = vadd.f32 %v6003_v36, %v6002_v27 }
 0x211   : > { %v5941_v31 = vpop.f32.mrb[136].mxu0  ;;  %v8124_v33 = vadd.f32 %v6004_v35, %v4174_v9 }
 0x212   : > { %v5942_v11 = vpop.f32.mrb[137].mxu0 }
 0x213   : > { %v5943_v40 = vadd.f32 %v5942_v11, %v5941_v31  ;;  %v5944_v56 = vpop.f32.mrb[138].mxu0  ;;  %v6005_v2 = vpop.f32.mrb[136].mxu1 }
 0x214   : > { %v5945_v10 = vpop.f32.mrb[139].mxu0  ;;  %v6006_v1 = vpop.f32.mrb[137].mxu1 }
 0x215   : > { %v4179_v4 = vadd.f32 %v5943_v40, %v8077_v24  ;;  %v5946_v49 = vadd.f32 %v5945_v10, %v5944_v56  ;;  %v6007_v50 = vadd.f32 %v6006_v1, %v6005_v2  ;;  %v6008_v51 = vpop.f32.mrb[138].mxu1 }
 0x216   : > { %v6009_v61 = vpop.f32.mrb[139].mxu1 }
 0x217   : > { %v4182_v34 = vadd.f32 %v5946_v49, %v8079_v26  ;;  %v8128_v54 = vadd.f32 %v6007_v50, %v4179_v4  ;;  %v6010_v55 = vadd.f32 %v6009_v61, %v6008_v51 }
 0x219   : > { %v5947_v52 = vpop.f32.mrb[140].mxu0  ;;  %v8130_v3 = vadd.f32 %v6010_v55, %v4182_v34 }
 0x21a   : > { %v5948_v44 = vpop.f32.mrb[141].mxu0 }
 0x21b   : > { %v5949_v57 = vadd.f32 %v5948_v44, %v5947_v52  ;;  %v5950_v58 = vpop.f32.mrb[142].mxu0  ;;  %v6011_v59 = vpop.f32.mrb[140].mxu1 }
 0x21c   : > { %v5951_v62 = vpop.f32.mrb[143].mxu0  ;;  %v6012_v5 = vpop.f32.mrb[141].mxu1 }
 0x21d   : > { %v4187_v24 = vadd.f32 %v5949_v57, %v8085_v47  ;;  %v5952_v0 = vadd.f32 %v5951_v62, %v5950_v58  ;;  %v6013_v7 = vadd.f32 %v6012_v5, %v6011_v59  ;;  %v6014_v8 = vpop.f32.mrb[142].mxu1 }
 0x21e   : > { %v6015_v22 = vpop.f32.mrb[143].mxu1 }
 0x21f   : > { %v4190_v26 = vadd.f32 %v5952_v0, %v8087_v17  ;;  %v8134_v60 = vadd.f32 %v6013_v7, %v4187_v24  ;;  %v6016_v6 = vadd.f32 %v6015_v22, %v6014_v8 }
 0x221   : > { %v5953_v37 = vpop.f32.mrb[144].mxu0  ;;  %v8136_v12 = vadd.f32 %v6016_v6, %v4190_v26 }
 0x222   : > { %v5954_v29 = vpop.f32.mrb[145].mxu0 }
 0x223   : > { %v5955_v45 = vadd.f32 %v5954_v29, %v5953_v37  ;;  %v5956_v15 = vpop.f32.mrb[146].mxu0  ;;  %v6017_v41 = vpop.f32.mrb[144].mxu1 }
 0x224   : > { %v5957_v48 = vpop.f32.mrb[147].mxu0  ;;  %v6018_v20 = vpop.f32.mrb[145].mxu1 }
 0x225   : > { %v4195_v47 = vadd.f32 %v5955_v45, %v8092_v39  ;;  %v5958_v16 = vadd.f32 %v5957_v48, %v5956_v15  ;;  %v6019_v23 = vadd.f32 %v6018_v20, %v6017_v41  ;;  %v6020_v25 = vpop.f32.mrb[146].mxu1 }
 0x226   : > { %v6021_v46 = vpop.f32.mrb[147].mxu1 }
 0x227   : > { %v4198_v17 = vadd.f32 %v5958_v16, %v8094_v32  ;;  %v8140_v28 = vadd.f32 %v6019_v23, %v4195_v47  ;;  %v6022_v30 = vadd.f32 %v6021_v46, %v6020_v25 }
 0x229   : > { %v5959_v43 = vpop.f32.mrb[148].mxu0  ;;  %v8142_v27 = vadd.f32 %v6022_v30, %v4198_v17 }
 0x22a   : > { %v5960_v9 = vpop.f32.mrb[149].mxu0 }
 0x22b   : > { %v5961_v36 = vadd.f32 %v5960_v9, %v5959_v43  ;;  %v5962_v35 = vpop.f32.mrb[150].mxu0  ;;  %v6023_v31 = vpop.f32.mrb[148].mxu1 }
 0x22c   : > { %v5963_v11 = vpop.f32.mrb[151].mxu0  ;;  %v6024_v56 = vpop.f32.mrb[149].mxu1 }
 0x22d   : > { %v4203_v39 = vadd.f32 %v5961_v36, %v8098_v18  ;;  %v5964_v40 = vadd.f32 %v5963_v11, %v5962_v35  ;;  %v6025_v2 = vadd.f32 %v6024_v56, %v6023_v31  ;;  %v6026_v10 = vpop.f32.mrb[150].mxu1 }
 0x22e   : > { %v6027_v4 = vpop.f32.mrb[151].mxu1 }
 0x22f   : > { %v4206_v32 = vadd.f32 %v5964_v40, %v8100_v63  ;;  %v8146_v49 = vadd.f32 %v6025_v2, %v4203_v39  ;;  %v6028_v1 = vadd.f32 %v6027_v4, %v6026_v10 }
 0x231   : > { %v5965_v50 = vpop.f32.mrb[152].mxu0  ;;  %v8148_v51 = vadd.f32 %v6028_v1, %v4206_v32 }
 0x232   : > { %v5966_v34 = vpop.f32.mrb[153].mxu0 }
 0x233   : > { %v5967_v61 = vadd.f32 %v5966_v34, %v5965_v50  ;;  %v5968_v55 = vpop.f32.mrb[154].mxu0  ;;  %v6029_v52 = vpop.f32.mrb[152].mxu1 }
 0x234   : > { %v5969_v44 = vpop.f32.mrb[155].mxu0  ;;  %v6030_v58 = vpop.f32.mrb[153].mxu1 }
 0x235   : > { %v4211_v18 = vadd.f32 %v5967_v61, %v8104_v14  ;;  %v5970_v57 = vadd.f32 %v5969_v44, %v5968_v55  ;;  %v6031_v59 = vadd.f32 %v6030_v58, %v6029_v52  ;;  %v6032_v62 = vpop.f32.mrb[154].mxu1 }
 0x236   : > { %v6033_v24 = vpop.f32.mrb[155].mxu1 }
 0x237   : > { %v4214_v63 = vadd.f32 %v5970_v57, %v8106_v42  ;;  %v8152_v0 = vadd.f32 %v6031_v59, %v4211_v18  ;;  %v6034_v5 = vadd.f32 %v6033_v24, %v6032_v62 }
 0x239   : > { %v5971_v7 = vpop.f32.mrb[156].mxu0  ;;  %v8154_v8 = vadd.f32 %v6034_v5, %v4214_v63 }
 0x23a   : > { %v5972_v26 = vpop.f32.mrb[157].mxu0 }
 0x23b   : > { %v5973_v22 = vadd.f32 %v5972_v26, %v5971_v7  ;;  %v5974_v6 = vpop.f32.mrb[158].mxu0  ;;  %v6035_v37 = vpop.f32.mrb[156].mxu1 }
 0x23c   : > { %v5975_v29 = vpop.f32.mrb[159].mxu0  ;;  %v6036_v15 = vpop.f32.mrb[157].mxu1 }
 0x23d   : > { %v4219_v14 = vadd.f32 %v5973_v22, %v8110_v13  ;;  %v5976_v45 = vadd.f32 %v5975_v29, %v5974_v6  ;;  %v6037_v41 = vadd.f32 %v6036_v15, %v6035_v37  ;;  %v6038_v48 = vpop.f32.mrb[158].mxu1 }
 0x23e   : > { %v6039_v47 = vpop.f32.mrb[159].mxu1 }
 0x23f   : > { %v4222_v42 = vadd.f32 %v5976_v45, %v8112_v21  ;;  %v8158_v16 = vadd.f32 %v6037_v41, %v4219_v14  ;;  %v6040_v20 = vadd.f32 %v6039_v47, %v6038_v48 }
 0x241   : > { %v6057_v23 = vpop.f32.mrb[160].mxu0  ;;  %v8160_v25 = vadd.f32 %v6040_v20, %v4222_v42 }
 0x242   : > { %v6058_v17 = vpop.f32.mrb[161].mxu0 }
 0x243   : > { %v6059_v46 = vadd.f32 %v6058_v17, %v6057_v23  ;;  %v6060_v30 = vpop.f32.mrb[162].mxu0  ;;  %v6121_v43 = vpop.f32.mrb[160].mxu1 }
 0x244   : > { %v6061_v9 = vpop.f32.mrb[163].mxu0  ;;  %v6122_v35 = vpop.f32.mrb[161].mxu1 }
 0x245   : > { %v4357_v13 = vadd.f32 %v6059_v46, %v8116_v38  ;;  %v6062_v36 = vadd.f32 %v6061_v9, %v6060_v30  ;;  %v6123_v31 = vadd.f32 %v6122_v35, %v6121_v43  ;;  %v6124_v11 = vpop.f32.mrb[162].mxu1 }
 0x246   : > { %v6125_v39 = vpop.f32.mrb[163].mxu1 }
 0x247   : > { %v4360_v21 = vadd.f32 %v6062_v36, %v8118_v19  ;;  %v8164_v40 = vadd.f32 %v6123_v31, %v4357_v13  ;;  %v6126_v56 = vadd.f32 %v6125_v39, %v6124_v11 }
 0x249   : > { %v6063_v2 = vpop.f32.mrb[164].mxu0  ;;  %v8166_v10 = vadd.f32 %v6126_v56, %v4360_v21 }
 0x24a   : > { %v6064_v32 = vpop.f32.mrb[165].mxu0 }
 0x24b   : > { %v6065_v4 = vadd.f32 %v6064_v32, %v6063_v2  ;;  %v6066_v1 = vpop.f32.mrb[166].mxu0  ;;  %v6127_v50 = vpop.f32.mrb[164].mxu1 }
 0x24c   : > { %v6067_v34 = vpop.f32.mrb[167].mxu0  ;;  %v6128_v55 = vpop.f32.mrb[165].mxu1 }
 0x24d   : > { %v4365_v38 = vadd.f32 %v6065_v4, %v8122_v53  ;;  %v6068_v61 = vadd.f32 %v6067_v34, %v6066_v1  ;;  %v6129_v52 = vadd.f32 %v6128_v55, %v6127_v50  ;;  %v6130_v44 = vpop.f32.mrb[166].mxu1 }
 0x24e   : > { %v6131_v18 = vpop.f32.mrb[167].mxu1 }
 0x24f   : > { %v4368_v19 = vadd.f32 %v6068_v61, %v8124_v33  ;;  %v8170_v57 = vadd.f32 %v6129_v52, %v4365_v38  ;;  %v6132_v58 = vadd.f32 %v6131_v18, %v6130_v44 }
 0x251   : > { %v6069_v59 = vpop.f32.mrb[168].mxu0  ;;  %v8172_v62 = vadd.f32 %v6132_v58, %v4368_v19 }
 0x252   : > { %v6070_v63 = vpop.f32.mrb[169].mxu0 }
 0x253   : > { %v6071_v24 = vadd.f32 %v6070_v63, %v6069_v59  ;;  %v6072_v5 = vpop.f32.mrb[170].mxu0  ;;  %v6133_v7 = vpop.f32.mrb[168].mxu1 }
 0x254   : > { %v6073_v26 = vpop.f32.mrb[171].mxu0  ;;  %v6134_v6 = vpop.f32.mrb[169].mxu1 }
 0x255   : > { %v4373_v53 = vadd.f32 %v6071_v24, %v8128_v54  ;;  %v6074_v22 = vadd.f32 %v6073_v26, %v6072_v5  ;;  %v6135_v37 = vadd.f32 %v6134_v6, %v6133_v7  ;;  %v6136_v29 = vpop.f32.mrb[170].mxu1 }
 0x256   : > { %v6137_v14 = vpop.f32.mrb[171].mxu1 }
 0x257   : > { %v4376_v33 = vadd.f32 %v6074_v22, %v8130_v3  ;;  %v8176_v45 = vadd.f32 %v6135_v37, %v4373_v53  ;;  %v6138_v15 = vadd.f32 %v6137_v14, %v6136_v29 }
 0x259   : > { %v6075_v41 = vpop.f32.mrb[172].mxu0  ;;  %v8178_v48 = vadd.f32 %v6138_v15, %v4376_v33 }
 0x25a   : > { %v6076_v42 = vpop.f32.mrb[173].mxu0 }
 0x25b   : > { %v6077_v47 = vadd.f32 %v6076_v42, %v6075_v41  ;;  %v6078_v20 = vpop.f32.mrb[174].mxu0  ;;  %v6139_v23 = vpop.f32.mrb[172].mxu1 }
 0x25c   : > { %v6079_v17 = vpop.f32.mrb[175].mxu0  ;;  %v6140_v30 = vpop.f32.mrb[173].mxu1 }
 0x25d   : > { %v4381_v54 = vadd.f32 %v6077_v47, %v8134_v60  ;;  %v6080_v46 = vadd.f32 %v6079_v17, %v6078_v20  ;;  %v6141_v43 = vadd.f32 %v6140_v30, %v6139_v23  ;;  %v6142_v9 = vpop.f32.mrb[174].mxu1 }
 0x25e   : > { %v6143_v13 = vpop.f32.mrb[175].mxu1 }
 0x25f   : > { %v4384_v3 = vadd.f32 %v6080_v46, %v8136_v12  ;;  %v8182_v36 = vadd.f32 %v6141_v43, %v4381_v54  ;;  %v6144_v35 = vadd.f32 %v6143_v13, %v6142_v9 }
 0x261   : > { %v6081_v31 = vpop.f32.mrb[176].mxu0  ;;  %v8184_v11 = vadd.f32 %v6144_v35, %v4384_v3 }
 0x262   : > { %v6082_v21 = vpop.f32.mrb[177].mxu0 }
 0x263   : > { %v6083_v39 = vadd.f32 %v6082_v21, %v6081_v31  ;;  %v6084_v56 = vpop.f32.mrb[178].mxu0  ;;  %v6145_v2 = vpop.f32.mrb[176].mxu1 }
 0x264   : > { %v6085_v32 = vpop.f32.mrb[179].mxu0  ;;  %v6146_v1 = vpop.f32.mrb[177].mxu1 }
 0x265   : > { %v4389_v60 = vadd.f32 %v6083_v39, %v8140_v28  ;;  %v6086_v4 = vadd.f32 %v6085_v32, %v6084_v56  ;;  %v6147_v50 = vadd.f32 %v6146_v1, %v6145_v2  ;;  %v6148_v34 = vpop.f32.mrb[178].mxu1 }
 0x266   : > { %v6149_v38 = vpop.f32.mrb[179].mxu1 }
 0x267   : > { %v4392_v12 = vadd.f32 %v6086_v4, %v8142_v27  ;;  %v8188_v61 = vadd.f32 %v6147_v50, %v4389_v60  ;;  %v6150_v55 = vadd.f32 %v6149_v38, %v6148_v34 }
 0x269   : > { %v6087_v52 = vpop.f32.mrb[180].mxu0  ;;  %v8190_v44 = vadd.f32 %v6150_v55, %v4392_v12 }
 0x26a   : > { %v6088_v19 = vpop.f32.mrb[181].mxu0 }
 0x26b   : > { %v6089_v18 = vadd.f32 %v6088_v19, %v6087_v52  ;;  %v6090_v58 = vpop.f32.mrb[182].mxu0  ;;  %v6151_v59 = vpop.f32.mrb[180].mxu1 }
 0x26c   : > { %v6091_v63 = vpop.f32.mrb[183].mxu0  ;;  %v6152_v5 = vpop.f32.mrb[181].mxu1 }
 0x26d   : > { %v4397_v28 = vadd.f32 %v6089_v18, %v8146_v49  ;;  %v6092_v24 = vadd.f32 %v6091_v63, %v6090_v58  ;;  %v6153_v7 = vadd.f32 %v6152_v5, %v6151_v59  ;;  %v6154_v26 = vpop.f32.mrb[182].mxu1 }
 0x26e   : > { %v6155_v53 = vpop.f32.mrb[183].mxu1 }
 0x26f   : > { %v4400_v27 = vadd.f32 %v6092_v24, %v8148_v51  ;;  %v8194_v22 = vadd.f32 %v6153_v7, %v4397_v28  ;;  %v6156_v6 = vadd.f32 %v6155_v53, %v6154_v26  ;;  %v4726_v26 = vld [vmem:[%s8216_s9] sm:$0xff] }
 0x271   : > { %v6093_v37 = vpop.f32.mrb[184].mxu0  ;;  %v8196_v29 = vadd.f32 %v6156_v6, %v4400_v27  ;;  %v4727_v6 = vld [vmem:[%s8216_s9 + $0x8] sm:$0xff] }
 0x272   : > { %v6094_v33 = vpop.f32.mrb[185].mxu0 }
 0x273   : > { %v6095_v14 = vadd.f32 %v6094_v33, %v6093_v37  ;;  %v6096_v15 = vpop.f32.mrb[186].mxu0  ;;  %v6157_v41 = vpop.f32.mrb[184].mxu1 }
 0x274   : > { %v6097_v42 = vpop.f32.mrb[187].mxu0  ;;  %v6158_v20 = vpop.f32.mrb[185].mxu1 }
 0x275   : > { %v4405_v49 = vadd.f32 %v6095_v14, %v8152_v0  ;;  %v6098_v47 = vadd.f32 %v6097_v42, %v6096_v15  ;;  %v6159_v23 = vadd.f32 %v6158_v20, %v6157_v41  ;;  %v6160_v17 = vpop.f32.mrb[186].mxu1  ;;  %v4742_v15 = vsub.f32 1.0, %v4726_v26  ;;  %v4758_v42 = vld [vmem:[%s8223_s13] sm:$0xff] }
 0x276   : > { %v6161_v54 = vpop.f32.mrb[187].mxu1 }
 0x277   : > { %v4408_v51 = vadd.f32 %v6098_v47, %v8154_v8  ;;  %v8200_v46 = vadd.f32 %v6159_v23, %v4405_v49  ;;  %v6162_v30 = vadd.f32 %v6161_v54, %v6160_v17  ;;  %v4743_v23 = vsub.f32 1.0, %v4727_v6  ;;  %v4759_v17 = vld [vmem:[%s8223_s13 + $0x8] sm:$0xff] }
 0x279   : > { %v6099_v43 = vpop.f32.mrb[188].mxu0  ;;  %v8202_v9 = vadd.f32 %v6162_v30, %v4408_v51 }
 0x27a   : > { %v6100_v3 = vpop.f32.mrb[189].mxu0 }
 0x27b   : > { %v6101_v13 = vadd.f32 %v6100_v3, %v6099_v43  ;;  %v6102_v35 = vpop.f32.mrb[190].mxu0  ;;  %v6163_v31 = vpop.f32.mrb[188].mxu1  ;;  %v4728_v3 = vld [vmem:[%s8216_s9 + $0x10] sm:$0xff] }
 0x27c   : > { %v6103_v21 = vpop.f32.mrb[191].mxu0  ;;  %v6164_v56 = vpop.f32.mrb[189].mxu1 }
 0x27d   : > { %v4413_v0 = vadd.f32 %v6101_v13, %v8158_v16  ;;  %v6104_v39 = vadd.f32 %v6103_v21, %v6102_v35  ;;  %v6165_v2 = vadd.f32 %v6164_v56, %v6163_v31  ;;  %v6166_v32 = vpop.f32.mrb[190].mxu1  ;;  %v4775_v21 = vmul.f32 %v4759_v17, %v4743_v23  ;;  %v4729_v56 = vld [vmem:[%s8216_s9 + $0x18] sm:$0xff] }
 0x27e   : > { %v6167_v60 = vpop.f32.mrb[191].mxu1 }
 0x27f   : > { %v4416_v8 = vadd.f32 %v6104_v39, %v8160_v25  ;;  %v8206_v4 = vadd.f32 %v6165_v2, %v4413_v0  ;;  %v6168_v1 = vadd.f32 %v6167_v60, %v6166_v32 }
 0x281   : > { %v6185_v50 = vpop.f32.mrb[192].mxu0  ;;  %v8208_v34 = vadd.f32 %v6168_v1, %v4416_v8 }
 0x282   : > { %v6186_v12 = vpop.f32.mrb[193].mxu0 }
 0x283   : > { %v6187_v38 = vadd.f32 %v6186_v12, %v6185_v50  ;;  %v6188_v55 = vpop.f32.mrb[194].mxu0  ;;  %v6267_v19 = vpop.f32.mrb[192].mxu1  ;;  %v4744_v50 = vsub.f32 1.0, %v4728_v3 }
 0x284   : > { %v6189_v52 = vpop.f32.mrb[195].mxu0  ;;  %v4647_v58 = vpop.f32.mrb[193].mxu1 }
 0x285   : > { %v6190_v16 = vadd.f32 %v6189_v52, %v6188_v55  ;;  %v4551_v18 = vadd.f32 %v6187_v38, %v8164_v40  ;;  %v6268_v59 = vpop.f32.mrb[194].mxu1  ;;  %v4760_v38 = vld [vmem:[%s8223_s13 + $0x10] sm:$0xff] }
 0x286   : > { %v4650_v28 = vpop.f32.mrb[195].mxu1 }
 0x287   : > { %v4648_v25 = vadd.f32 %v4647_v58, %v4551_v18  ;;  %v4554_v63 = vadd.f32 %v6190_v16, %v8166_v10  ;;  %v4745_v16 = vsub.f32 1.0, %v4729_v56  ;;  %v4761_v18 = vld [vmem:[%s8223_s13 + $0x18] sm:$0xff] }
 0x289   : > { %6859 = vtanh.f32 %v4648_v25  ;;  %v4651_v24 = vadd.f32 %v4650_v28, %v4554_v63  ;;  %v6191_v5 = vpop.f32.mrb[196].mxu0  ;;  %v4776_v25 = vmul.f32 %v4760_v38, %v4744_v50  ;;  %v4764_v38 = vld [vmem:[%s8223_s13 + $0x30] sm:$0xff] }
 0x28a   : > { %v6192_v7 = vpop.f32.mrb[197].mxu0 }
 0x28b   : > { %6861 = vtanh.f32 %v4651_v24  ;;  %v6193_v40 = vadd.f32 %v6192_v7, %v6191_v5  ;;  %v6194_v27 = vpop.f32.mrb[198].mxu0  ;;  %v8225_v53 = vpop.f32.mrb[196].mxu1  ;;  %v4730_v24 = vld [vmem:[%s8216_s9 + $0x20] sm:$0xff] }
 0x28c   : > { %v6195_v10 = vpop.f32.mrb[199].mxu0  ;;  %v4663_v14 = vpop.f32.mrb[197].mxu1 }
 0x28d   : > { %v4559_v37 = vadd.f32 %v6193_v40, %v8170_v57  ;;  %v6196_v33 = vadd.f32 %v6195_v10, %v6194_v27  ;;  %v8229_v41 = vpop.f32.mrb[198].mxu1  ;;  %v4774_v57 = vmul.f32 %v4758_v42, %v4742_v15 }
 0x28e   : > { %v4666_v20 = vpop.f32.mrb[199].mxu1 }
 0x28f   : > { %v4656_v49 = vadd.f32 %v6267_v19, %v4559_v37  ;;  %v4562_v47 = vadd.f32 %v6196_v33, %v8172_v62 }
 0x291   : > { %6863 = vtanh.f32 %v4656_v49  ;;  %v4659_v51 = vadd.f32 %v6268_v59, %v4562_v47  ;;  %v6197_v54 = vpop.f32.mrb[200].mxu0  ;;  %v4746_v49 = vsub.f32 1.0, %v4730_v24 }
 0x292   : > { %v6198_v30 = vpop.f32.mrb[201].mxu0 }
 0x293   : > { %v6860_v43 = vpop.eup %6859  ;;  %6865 = vtanh.f32 %v4659_v51  ;;  %v6199_v13 = vadd.f32 %v6198_v30, %v6197_v54  ;;  %v6200_v35 = vpop.f32.mrb[202].mxu0 }
 0x294   : > { %v4790_v31 = vmul.f32 %v6860_v43, %v4726_v26  ;;  %v6201_v62 = vpop.f32.mrb[203].mxu0  ;;  %v8238_v0 = vpop.f32.mrb[200].mxu1  ;;  %v4777_v26 = vmul.f32 %v4761_v18, %v4745_v16  ;;  %v4765_v18 = vld [vmem:[%s8223_s13 + $0x38] sm:$0xff] }
 0x295   : > { %v6862_v39 = vpop.eup %6861  ;;  %v6202_v2 = vadd.f32 %v6201_v62, %v6200_v35  ;;  %v4567_v32 = vadd.f32 %v6199_v13, %v8176_v45  ;;  %v8242_v8 = vpop.f32.mrb[201].mxu1 }
 0x296   : > { %v4806_v60 = vadd.f32 %v4790_v31, %v4774_v57  ;;  %v4791_v1 = vmul.f32 %v6862_v39, %v4727_v6  ;;  %v8244_v12 = vpop.f32.mrb[202].mxu1  ;;  %v4731_v6 = vld [vmem:[%s8216_s9 + $0x28] sm:$0xff]  ;;  %v4732_v31 = vld [vmem:[%s8216_s9 + $0x30] sm:$0xff] }
 0x297   : > { %v4664_v55 = vadd.f32 %v4663_v14, %v4567_v32  ;;  %v4570_v52 = vadd.f32 %v6202_v2, %v8178_v48  ;;  %v8248_v19 = vpop.f32.mrb[203].mxu1  ;;  %v4763_v57 = vld [vmem:[%s8223_s13 + $0x28] sm:$0xff]  ;;  %v4733_v2 = vld [vmem:[%s8216_s9 + $0x38] sm:$0xff]  ;;  %v4748_v50 = vsub.f32 1.0, %v4732_v31 }
 0x298   : > { %4822 = vst [vmem:[%s8250_s15] sm:$0xff] %v4806_v60  ;;  %v4807_v45 = vadd.f32 %v4791_v1, %v4775_v21  ;;  %v4749_v16 = vsub.f32 1.0, %v4733_v2 }
 0x299   : > { %6867 = vtanh.f32 %v4664_v55  ;;  %v4667_v58 = vadd.f32 %v4666_v20, %v4570_v52  ;;  %v6203_v59 = vpop.f32.mrb[204].mxu0  ;;  %v4762_v20 = vld [vmem:[%s8223_s13 + $0x20] sm:$0xff] }
 0x29a   : > { %4823 = vst [vmem:[%s8250_s15 + $0x8] sm:$0xff] %v4807_v45  ;;  %v6204_v63 = vpop.f32.mrb[205].mxu0 }
 0x29b   : > { %v6864_v28 = vpop.eup %6863  ;;  %6869 = vtanh.f32 %v4667_v58  ;;  %v6205_v48 = vadd.f32 %v6204_v63, %v6203_v59  ;;  %v6206_v5 = vpop.f32.mrb[206].mxu0 }
 0x29c   : > { %v4792_v7 = vmul.f32 %v6864_v28, %v4728_v3  ;;  %v6207_v40 = vpop.f32.mrb[207].mxu0  ;;  %v8256_v27 = vpop.f32.mrb[204].mxu1  ;;  %v4778_v3 = vmul.f32 %v4762_v20, %v4746_v49  ;;  %v4734_v28 = vld [vmem:[%s8216_s9 + $0x40] sm:$0xff] }
 0x29d   : > { %v6866_v10 = vpop.eup %6865  ;;  %v4575_v37 = vadd.f32 %v6205_v48, %v8182_v36  ;;  %v6208_v33 = vadd.f32 %v6207_v40, %v6206_v5  ;;  %v8260_v14 = vpop.f32.mrb[205].mxu1  ;;  %v4747_v36 = vsub.f32 1.0, %v4731_v6  ;;  %v4781_v48 = vmul.f32 %v4765_v18, %v4749_v16 }
 0x29e   : > { %v4808_v15 = vadd.f32 %v4792_v7, %v4776_v25  ;;  %v4793_v42 = vmul.f32 %v6866_v10, %v4729_v56  ;;  %v8262_v47 = vpop.f32.mrb[206].mxu1 }
 0x29f   : > { %v4672_v23 = vadd.f32 %v8225_v53, %v4575_v37  ;;  %v4578_v17 = vadd.f32 %v6208_v33, %v8184_v11  ;;  %v8267_v51 = vpop.f32.mrb[207].mxu1  ;;  %v4779_v62 = vmul.f32 %v4763_v57, %v4747_v36  ;;  %v4750_v37 = vsub.f32 1.0, %v4734_v28  ;;  %v4766_v33 = vld [vmem:[%s8223_s13 + $0x40] sm:$0xff] }
 0x2a0   : > { %4824 = vst [vmem:[%s8250_s15 + $0x10] sm:$0xff] %v4808_v15  ;;  %v4809_v54 = vadd.f32 %v4793_v42, %v4777_v26  ;;  %v4735_v26 = vld [vmem:[%s8216_s9 + $0x48] sm:$0xff] }
 0x2a1   : > { %6871 = vtanh.f32 %v4672_v23  ;;  %v4675_v30 = vadd.f32 %v8229_v41, %v4578_v17  ;;  %v6209_v43 = vpop.f32.mrb[208].mxu0  ;;  %v4751_v20 = vsub.f32 1.0, %v4735_v26  ;;  %v4767_v23 = vld [vmem:[%s8223_s13 + $0x48] sm:$0xff] }
 0x2a2   : > { %4825 = vst [vmem:[%s8250_s15 + $0x18] sm:$0xff] %v4809_v54  ;;  %v6210_v13 = vpop.f32.mrb[209].mxu0 }
 0x2a3   : > { %v6868_v35 = vpop.eup %6867  ;;  %6873 = vtanh.f32 %v4675_v30  ;;  %v6211_v11 = vadd.f32 %v6210_v13, %v6209_v43  ;;  %v6212_v53 = vpop.f32.mrb[210].mxu0  ;;  %v4736_v30 = vld [vmem:[%s8216_s9 + $0x50] sm:$0xff] }
 0x2a4   : > { %v4794_v21 = vmul.f32 %v6868_v35, %v4730_v24  ;;  %v6213_v39 = vpop.f32.mrb[211].mxu0 }
 0x2a5   : > { %v6870_v56 = vpop.eup %6869  ;;  %v6214_v32 = vadd.f32 %v6213_v39, %v6212_v53  ;;  %v4583_v41 = vadd.f32 %v6211_v11, %v8188_v61  ;;  %v4780_v61 = vmul.f32 %v4764_v38, %v4748_v50  ;;  %v4768_v39 = vld [vmem:[%s8223_s13 + $0x50] sm:$0xff] }
 0x2a6   : > { %v4810_v60 = vadd.f32 %v4794_v21, %v4778_v3  ;;  %v4795_v1 = vmul.f32 %v6870_v56, %v4731_v6  ;;  %v4783_v3 = vmul.f32 %v4767_v23, %v4751_v20  ;;  %v4773_v20 = vld [vmem:[%s8223_s13 + $0x78] sm:$0xff] }
 0x2a7   : > { %v4680_v55 = vadd.f32 %v8242_v8, %v4583_v41  ;;  %v4586_v52 = vadd.f32 %v6214_v32, %v8190_v44 }
 0x2a8   : > { %4826 = vst [vmem:[%s8250_s15 + $0x20] sm:$0xff] %v4810_v60  ;;  %v4811_v45 = vadd.f32 %v4795_v1, %v4779_v62  ;;  %v4752_v62 = vsub.f32 1.0, %v4736_v30  ;;  %v4769_v60 = vld [vmem:[%s8223_s13 + $0x58] sm:$0xff] }
 0x2a9   : > { %6875 = vtanh.f32 %v4680_v55  ;;  %v4683_v58 = vadd.f32 %v8248_v19, %v4586_v52  ;;  %v6215_v59 = vpop.f32.mrb[212].mxu0  ;;  %v4738_v52 = vld [vmem:[%s8216_s9 + $0x60] sm:$0xff] }
 0x2aa   : > { %4827 = vst [vmem:[%s8250_s15 + $0x28] sm:$0xff] %v4811_v45  ;;  %v6216_v25 = vpop.f32.mrb[213].mxu0 }
 0x2ab   : > { %v6872_v63 = vpop.eup %6871  ;;  %6877 = vtanh.f32 %v4683_v58  ;;  %v6217_v8 = vadd.f32 %v6216_v25, %v6215_v59  ;;  %v6218_v24 = vpop.f32.mrb[214].mxu0  ;;  %v4739_v59 = vld [vmem:[%s8216_s9 + $0x68] sm:$0xff] }
 0x2ac   : > { %v4796_v44 = vmul.f32 %v6872_v63, %v4732_v31  ;;  %v6219_v5 = vpop.f32.mrb[215].mxu0  ;;  %v4737_v31 = vld [vmem:[%s8216_s9 + $0x58] sm:$0xff] }
 0x2ad   : > { %v6874_v7 = vpop.eup %6873  ;;  %v4591_v19 = vadd.f32 %v6217_v8, %v8194_v22  ;;  %v6220_v40 = vadd.f32 %v6219_v5, %v6218_v24  ;;  %v4782_v22 = vmul.f32 %v4766_v33, %v4750_v37  ;;  %v4753_v41 = vsub.f32 1.0, %v4737_v31  ;;  %v4770_v8 = vld [vmem:[%s8223_s13 + $0x60] sm:$0xff] }
 0x2ae   : > { %v4812_v10 = vadd.f32 %v4796_v44, %v4780_v61  ;;  %v4797_v6 = vmul.f32 %v6874_v7, %v4733_v2  ;;  %v4755_v5 = vsub.f32 1.0, %v4739_v59  ;;  %v4771_v7 = vld [vmem:[%s8223_s13 + $0x68] sm:$0xff] }
 0x2af   : > { %v4688_v15 = vadd.f32 %v8238_v0, %v4591_v19  ;;  %v4594_v42 = vadd.f32 %v6220_v40, %v8196_v29  ;;  %v4785_v16 = vmul.f32 %v4769_v60, %v4753_v41  ;;  %v4740_v40 = vld [vmem:[%s8216_s9 + $0x70] sm:$0xff] }
 0x2b0   : > { %4828 = vst [vmem:[%s8250_s15 + $0x30] sm:$0xff] %v4812_v10  ;;  %v4813_v49 = vadd.f32 %v4797_v6, %v4781_v48  ;;  %v4787_v10 = vmul.f32 %v4771_v7, %v4755_v5  ;;  %v4741_v6 = vld [vmem:[%s8216_s9 + $0x78] sm:$0xff] }
 0x2b1   : > { %6879 = vtanh.f32 %v4688_v15  ;;  %v4691_v17 = vadd.f32 %v8244_v12, %v4594_v42  ;;  %v6221_v54 = vpop.f32.mrb[216].mxu0  ;;  %v4756_v15 = vsub.f32 1.0, %v4740_v40  ;;  %v4772_v42 = vld [vmem:[%s8223_s13 + $0x70] sm:$0xff] }
 0x2b2   : > { %4829 = vst [vmem:[%s8250_s15 + $0x38] sm:$0xff] %v4813_v49  ;;  %v6222_v36 = vpop.f32.mrb[217].mxu0  ;;  %v4757_v49 = vsub.f32 1.0, %v4741_v6 }
 0x2b3   : > { %v6876_v57 = vpop.eup %6875  ;;  %6881 = vtanh.f32 %v4691_v17  ;;  %v6223_v0 = vadd.f32 %v6222_v36, %v6221_v54  ;;  %v6224_v43 = vpop.f32.mrb[218].mxu0  ;;  %v4788_v23 = vmul.f32 %v4772_v42, %v4756_v15 }
 0x2b4   : > { %v4798_v29 = vmul.f32 %v6876_v57, %v4734_v28  ;;  %v6225_v13 = vpop.f32.mrb[219].mxu0  ;;  %v4754_v28 = vsub.f32 1.0, %v4738_v52 }
 0x2b5   : > { %v6878_v35 = vpop.eup %6877  ;;  %v6226_v11 = vadd.f32 %v6225_v13, %v6224_v43  ;;  %v4599_v12 = vadd.f32 %v6223_v0, %v8200_v46  ;;  %v4784_v46 = vmul.f32 %v4768_v39, %v4752_v62 }
 0x2b6   : > { %v4814_v53 = vadd.f32 %v4798_v29, %v4782_v22  ;;  %v4799_v21 = vmul.f32 %v6878_v35, %v4735_v26  ;;  %v4786_v26 = vmul.f32 %v4770_v8, %v4754_v28  ;;  %v4789_v22 = vmul.f32 %v4773_v20, %v4757_v49 }
 0x2b7   : > { %v4696_v56 = vadd.f32 %v8260_v14, %v4599_v12  ;;  %v4602_v2 = vadd.f32 %v6226_v11, %v8202_v9 }
 0x2b8   : > { %4830 = vst [vmem:[%s8250_s15 + $0x40] sm:$0xff] %v4814_v53  ;;  %v4815_v32 = vadd.f32 %v4799_v21, %v4783_v3 }
 0x2b9   : > { %6883 = vtanh.f32 %v4696_v56  ;;  %v4699_v1 = vadd.f32 %v8267_v51, %v4602_v2  ;;  %v6227_v50 = vpop.f32.mrb[220].mxu0 }
 0x2ba   : > { %4831 = vst [vmem:[%s8250_s15 + $0x48] sm:$0xff] %v4815_v32  ;;  %v6228_v38 = vpop.f32.mrb[221].mxu0 }
 0x2bb   : > { %v6880_v55 = vpop.eup %6879  ;;  %6885 = vtanh.f32 %v4699_v1  ;;  %v6229_v14 = vadd.f32 %v6228_v38, %v6227_v50  ;;  %v6230_v45 = vpop.f32.mrb[222].mxu0 }
 0x2bc   : > { %v4800_v9 = vmul.f32 %v6880_v55, %v4736_v30  ;;  %v6231_v18 = vpop.f32.mrb[223].mxu0 }
 0x2bd   : > { %v6882_v58 = vpop.eup %6881  ;;  %v4607_v51 = vadd.f32 %v6229_v14, %v8206_v4  ;;  %v6232_v61 = vadd.f32 %v6231_v18, %v6230_v45 }
 0x2be   : > { %v4816_v25 = vadd.f32 %v4800_v9, %v4784_v46  ;;  %v4801_v63 = vmul.f32 %v6882_v58, %v4737_v31 }
 0x2bf   : > { %v4704_v24 = vadd.f32 %v8256_v27, %v4607_v51  ;;  %v4610_v44 = vadd.f32 %v6232_v61, %v8208_v34 }
 0x2c0   : > { %4832 = vst [vmem:[%s8250_s15 + $0x50] sm:$0xff] %v4816_v25  ;;  %v4817_v48 = vadd.f32 %v4801_v63, %v4785_v16 }
 0x2c1   : > { %6887 = vtanh.f32 %v4704_v24  ;;  %v4707_v4 = vadd.f32 %v8262_v47, %v4610_v44 }
 0x2c2   : > { %4833 = vst [vmem:[%s8250_s15 + $0x58] sm:$0xff] %v4817_v48 }
 0x2c3   : > { %v6884_v19 = vpop.eup %6883  ;;  %6889 = vtanh.f32 %v4707_v4 }
 0x2c4   : > { %v4802_v27 = vmul.f32 %v6884_v19, %v4738_v52 }
 0x2c5   : > { %v6886_v34 = vpop.eup %6885 }
 0x2c6   : > { %v4818_v37 = vadd.f32 %v4802_v27, %v4786_v26  ;;  %v4803_v33 = vmul.f32 %v6886_v34, %v4739_v59 }
 0x2c8   : > { %4834 = vst [vmem:[%s8250_s15 + $0x60] sm:$0xff] %v4818_v37  ;;  %v4819_v47 = vadd.f32 %v4803_v33, %v4787_v10 }
 0x2ca   : > { %4835 = vst [vmem:[%s8250_s15 + $0x68] sm:$0xff] %v4819_v47 }
 0x2cb   : > { %v6888_v17 = vpop.eup %6887 }
 0x2cc   : > { %v4804_v54 = vmul.f32 %v6888_v17, %v4740_v40 }
 0x2cd   : > { %v6890_v36 = vpop.eup %6889 }
 0x2ce   : > { %v4820_v57 = vadd.f32 %v4804_v54, %v4788_v23  ;;  %v4805_v30 = vmul.f32 %v6890_v36, %v4741_v6 }
 0x2d0   : > { %4836 = vst [vmem:[%s8250_s15 + $0x70] sm:$0xff] %v4820_v57  ;;  %v4821_v0 = vadd.f32 %v4805_v30, %v4789_v22 }
 0x2d2   : > { %4837 = vst [vmem:[%s8250_s15 + $0x78] sm:$0xff] %v4821_v0 }
 0x2d3   : > { %6904 = shalt.err (!%p6901_p3)
}
 0x2d4   : > { %s6905_s9 = scalar_lea.hbm %s8324_s6, 2048  ;;  %s6909_s13 = scalar_lea.hbm %s8378_s5, 4096 }
 0x2d5   : > { %p6906_p4 = scmp.ne.s32.totalorder %s8324_s6, %s6905_s9  ;;  %p6910_p9 = scmp.lt.u32.totalorder %s8324_s6, %s8378_s5 }
 0x2d6   : > { %p6911_p10 = scmp.lt.u32.totalorder %s6909_s13, %s6905_s9  ;;  %p6913_p12 = scmp.lt.u32.totalorder %s6905_s9, %s8324_s6 }
 0x2d7   : > { %p6907_p7 = pnand %p6906_p4, %p7026_p5 }
 0x2d8   : > { %p6912_p11 = por %p6911_p10, %p6910_p9 }
 0x2d9   : > { %p6908_p8 = pneg %p6907_p7 }
 0x2da   : > { %p6914_p13 = por %p6913_p12, %p6912_p11 }
 0x2dc   : > { %p6915_p0 = pnand %p6914_p13, %p6908_p8 }
 0x2de   : > { %6918 = shalt.err (!%p6915_p0)
}
 0x2df   : > { %s6956_s15 = smov 128   ;;  %s6957_s23 = smov 8  }
 0x2e0   : > { %6282 = dma.vmem_to_hbm [thread:$0]  (%p7026_p5), %s8326_s17, 2048, %s8324_s6, %s8332_s7, %s6956_s15, %s6956_s15, %s6957_s23  }
 0x2e1 PF: > { %p6288_p1 = scmp.ge.s32.totalorder %s6953_s21, 2  ;;  %s4867_s25 = sand.u32 1, %s6941_s18  }
 0x2e2   : > { %s4868_s26 = scalar_lea.sflag [#allocation3], %s4867_s25 }
 0x2e3   : > { %p6285_p2 = pnand %p6288_p1, %p7030_p6 }
 0x2e5   : > { %6936 = dma.done.wait (!%p6285_p2), %s4868_s26, 2048  }
 0x2e6   : > { %6938 = vsyncadd (!%p6285_p2), %s4868_s26, 4294965248  ;;  %p15_p3 = scmp.ge.s32.totalorder %s7013_s24, 4   ;;  %s8381_s18 = smov %s6945_s19 }
 0x2e7   : > { %s8382_s19 = smov %s6949_s20  ;;  %s8383_s20 = smov %s7024_s27 }
 0x2e8   : > { %s8384_s21 = smov %s7013_s24  ;;  %17 = sbr.rel (!%p15_p3) target bundleno = 3 (0x3), region = 84 }
 0x2ef   :  { %4873 = vsyncpa [#allocation3], 1 }
 0x2f0   :  { %4875 = vsyncpa [#allocation3 + $0x1], 1 }

// kernel: conv_gru_forward.2
= control target key start
LH: loop header
LB: loop body
LE: loop exit
PB: predicated region body
PF: predicated region fallthrough
CT: control target
= control target key end

     0   :  { %s20741_s27 = smov 0   ;;  %s25328_s0 = inlined_call_operand.vmem [shape: bf16[256,3456], index: 0, kind: input, shape index: {}]   ;;  %s25329_s1 = inlined_call_operand.vmem [shape: bf16[256,3456], index: 1, kind: input, shape index: {}]   ;;  %s25330_s2 = inlined_call_operand.vmem [shape: f32[256,128], index: 2, kind: input, shape index: {}]   ;;  %s25331_s3 = inlined_call_operand.vmem [shape: bf16[3456,256], index: 3, kind: input, shape index: {}]   ;;  %s25332_s4 = inlined_call_operand.vmem [shape: bf16[3456,384], index: 4, kind: input, shape index: {}]   ;;  %s25333_s5 = inlined_call_operand.vmem [shape: f32[1,384], index: 5, kind: input, shape index: {}]   ;;  %s25334_s6 = inlined_call_operand.vmem [shape: f32[256,128], index: 6, kind: output, shape index: {0}]   ;;  %s25335_s7 = inlined_call_operand.vmem [shape: bf16[256,128], index: 7, kind: output, shape index: {1}]   ;;  %s25336_s8 = inlined_call_operand.vmem [shape: f32[256,128], index: 8, kind: output, shape index: {2}]  }
   0x1 LB: > { %s14978_s28 = sadd.s32 4294967295, %s20693_s27   ;;  %p14982_p0 = scmp.ge.s32.totalorder %s20693_s27, 1  ;;  %s20693_s27 = sphi %s20741_s27, %s19_s27  }
   0x2   : > { %p292_p1 = scmp.lt.s32.totalorder %s20693_s27, 3 }
   0x4   : > { %p293_p2 = pnand %p14982_p0, %p292_p1 }
   0x6   : > { %296 = sbr.rel (%p293_p2) target bundleno = 1667 (0x683), region = 44 }
   0xd   : > { %v18406_v0 = vld [vmem:[%s25331_s3 + $0x4] ss:$8 sps:$4 sm:$0xff]   ;;  %v18410_v2 = vld [vmem:[%s25331_s3] ss:$8 sps:$4 sm:$0xff]   ;;  %v18412_v4 = vld [vmem:[%s25331_s3 + $0x14] ss:$8 sps:$4 sm:$0xff]  }
   0xe   : > { %v18408_v1 = vld [vmem:[%s25331_s3 + $0x704] ss:$8 sps:$4 sm:$0xff]   ;;  %5379 = vmatprep.subr.bf16.mxu1 %v18406_v0  ;;  %v18411_v3 = vld [vmem:[%s25331_s3 + $0x700] ss:$8 sps:$4 sm:$0xff]   ;;  %v18414_v5 = vld [vmem:[%s25331_s3 + $0x714] ss:$8 sps:$4 sm:$0xff]  }
   0xf   : > { %6170 = vmatprep.subr.bf16.mxu0 %v18408_v1  ;;  %5380 = vmatpush1.bf16.msra.mxu1 %v18410_v2  ;;  %v18416_v6 = vld [vmem:[%s25331_s3 + $0x10] ss:$8 sps:$4 sm:$0xff]   ;;  %v18418_v8 = vld [vmem:[%s25331_s3 + $0x24] ss:$8 sps:$4 sm:$0xff]   ;;  %v18422_v10 = vld [vmem:[%s25331_s3 + $0x20] ss:$8 sps:$4 sm:$0xff]  }
  0x10   : > { %6171 = vmatpush1.bf16.msra.mxu0 %v18411_v3  ;;  %5381 = vmatprep.subr.bf16.mxu1 %v18412_v4  ;;  %v18417_v7 = vld [vmem:[%s25331_s3 + $0x710] ss:$8 sps:$4 sm:$0xff]   ;;  %v18420_v9 = vld [vmem:[%s25331_s3 + $0x724] ss:$8 sps:$4 sm:$0xff]   ;;  %v18423_v11 = vld [vmem:[%s25331_s3 + $0x720] ss:$8 sps:$4 sm:$0xff]  }
  0x11   : > { %6172 = vmatprep.subr.bf16.mxu0 %v18414_v5  ;;  %v18424_v12 = vld [vmem:[%s25331_s3 + $0x34] ss:$8 sps:$4 sm:$0xff]   ;;  %v18428_v14 = vld [vmem:[%s25331_s3 + $0x30] ss:$8 sps:$4 sm:$0xff]   ;;  %v18430_v16 = vld [vmem:[%s25331_s3 + $0x44] ss:$8 sps:$4 sm:$0xff]  }
  0x12   : > { %v18426_v13 = vld [vmem:[%s25331_s3 + $0x734] ss:$8 sps:$4 sm:$0xff]   ;;  %v18429_v15 = vld [vmem:[%s25331_s3 + $0x730] ss:$8 sps:$4 sm:$0xff]   ;;  %v18432_v17 = vld [vmem:[%s25331_s3 + $0x744] ss:$8 sps:$4 sm:$0xff]  }
  0x13   : > { %5382 = vmatpush1.bf16.msra.mxu1 %v18416_v6  ;;  %v18434_v18 = vld [vmem:[%s25331_s3 + $0x40] ss:$8 sps:$4 sm:$0xff]   ;;  %v18436_v20 = vld [vmem:[%s25331_s3 + $0x54] ss:$8 sps:$4 sm:$0xff]   ;;  %v18440_v22 = vld [vmem:[%s25331_s3 + $0x50] ss:$8 sps:$4 sm:$0xff]  }
  0x14   : > { %6173 = vmatpush1.bf16.msra.mxu0 %v18417_v7  ;;  %5383 = vmatprep.subr.bf16.mxu1 %v18418_v8  ;;  %v18435_v19 = vld [vmem:[%s25331_s3 + $0x740] ss:$8 sps:$4 sm:$0xff]   ;;  %v18438_v21 = vld [vmem:[%s25331_s3 + $0x754] ss:$8 sps:$4 sm:$0xff]   ;;  %v18441_v23 = vld [vmem:[%s25331_s3 + $0x750] ss:$8 sps:$4 sm:$0xff]  }
  0x15   : > { %6174 = vmatprep.subr.bf16.mxu0 %v18420_v9  ;;  %v18442_v24 = vld [vmem:[%s25331_s3 + $0x64] ss:$8 sps:$4 sm:$0xff]   ;;  %v18446_v26 = vld [vmem:[%s25331_s3 + $0x60] ss:$8 sps:$4 sm:$0xff]   ;;  %v18448_v28 = vld [vmem:[%s25331_s3 + $0x74] ss:$8 sps:$4 sm:$0xff]  }
  0x16   : > { %v18444_v25 = vld [vmem:[%s25331_s3 + $0x764] ss:$8 sps:$4 sm:$0xff]   ;;  %v18447_v27 = vld [vmem:[%s25331_s3 + $0x760] ss:$8 sps:$4 sm:$0xff]   ;;  %v18450_v29 = vld [vmem:[%s25331_s3 + $0x774] ss:$8 sps:$4 sm:$0xff]  }
  0x17   : > { %5384 = vmatpush1.bf16.msra.mxu1 %v18422_v10  ;;  %s14983_s29 = sshll.u32 %s14978_s28, 4  ;;  %v18452_v30 = vld [vmem:[%s25331_s3 + $0x70] ss:$8 sps:$4 sm:$0xff]   ;;  %v18454_v32 = vld [vmem:[%s25331_s3 + $0x84] ss:$8 sps:$4 sm:$0xff]  }
  0x18   : > { %6175 = vmatpush1.bf16.msra.mxu0 %v18423_v11  ;;  %5385 = vmatprep.subr.bf16.mxu1 %v18424_v12  ;;  %v18453_v31 = vld [vmem:[%s25331_s3 + $0x770] ss:$8 sps:$4 sm:$0xff]   ;;  %p349_p3 = scmp.lt.s32.totalorder %s14983_s29, 31  ;;  %v18456_v33 = vld [vmem:[%s25331_s3 + $0x784] ss:$8 sps:$4 sm:$0xff]  }
  0x19   : > { %6176 = vmatprep.subr.bf16.mxu0 %v18426_v13  ;;  %v18458_v34 = vld [vmem:[%s25331_s3 + $0x80] ss:$8 sps:$4 sm:$0xff]   ;;  %v18460_v36 = vld [vmem:[%s25331_s3 + $0x94] ss:$8 sps:$4 sm:$0xff]   ;;  %v18464_v38 = vld [vmem:[%s25331_s3 + $0x90] ss:$8 sps:$4 sm:$0xff]  }
  0x1a   : > { %v18459_v35 = vld [vmem:[%s25331_s3 + $0x780] ss:$8 sps:$4 sm:$0xff]   ;;  %s25349_s29 = smov (!%p349_p3, %s14983_s29), 31  ;;  %v18462_v37 = vld [vmem:[%s25331_s3 + $0x794] ss:$8 sps:$4 sm:$0xff]  }
  0x1b   : > { %5386 = vmatpush1.bf16.msra.mxu1 %v18428_v14  ;;  %v18465_v39 = vld [vmem:[%s25331_s3 + $0x790] ss:$8 sps:$4 sm:$0xff]   ;;  %v18466_v40 = vld [vmem:[%s25331_s3 + $0xa4] ss:$8 sps:$4 sm:$0xff]   ;;  %s18396_s10 = smul.u32 108, %s25349_s29  ;;  %s25161_s28 = sshll.u32 %s25349_s29, 3 }
  0x1c   : > { %6177 = vmatpush1.bf16.msra.mxu0 %v18429_v15  ;;  %5387 = vmatprep.subr.bf16.mxu1 %v18430_v16  ;;  %v18468_v41 = vld [vmem:[%s25331_s3 + $0x7a4] ss:$8 sps:$4 sm:$0xff]   ;;  %v18470_v42 = vld [vmem:[%s25331_s3 + $0xa0] ss:$8 sps:$4 sm:$0xff]   ;;  %v18472_v44 = vld [vmem:[%s25331_s3 + $0xb4] ss:$8 sps:$4 sm:$0xff]   ;;  %s25172_s19 = scalar_lea.vmem %s25336_s8, %s25161_s28  ;;  %s25238_s25 = scalar_lea.vmem %s25330_s2, %s25161_s28 }
  0x1d   : > { %6178 = vmatprep.subr.bf16.mxu0 %v18432_v17  ;;  %v18471_v43 = vld [vmem:[%s25331_s3 + $0x7a0] ss:$8 sps:$4 sm:$0xff]   ;;  %s20894_s20 = scalar_lea.vmem %s25328_s0, %s18396_s10  ;;  %v18474_v45 = vld [vmem:[%s25331_s3 + $0x7b4] ss:$8 sps:$4 sm:$0xff]   ;;  %v18476_v46 = vld [vmem:[%s25331_s3 + $0xb0] ss:$8 sps:$4 sm:$0xff]   ;;  %s22342_s16 = scalar_lea.vmem %s25329_s1, %s18396_s10 }
  0x1e   : > { %v18477_v47 = vld [vmem:[%s25331_s3 + $0x7b0] ss:$8 sps:$4 sm:$0xff]   ;;  %v18478_v48 = vld [vmem:[%s25331_s3 + $0xc4] ss:$8 sps:$4 sm:$0xff]   ;;  %v18507_v51 = vld [vmem:[%s20894_s20 + $0x3c] ss:$108 sps:$4 sm:$0xff]   ;;  %s25232_s10 = scalar_lea.vmem %s25334_s6, %s25161_s28 }
  0x1f   : > { %5388 = vmatpush1.bf16.msra.mxu1 %v18434_v18  ;;  %v18504_v49 = vld [vmem:[%s20894_s20 + $0x4] ss:$108 sps:$4 sm:$0xff]   ;;  %v18482_v52 = vld [vmem:[%s25331_s3 + $0xc0] ss:$8 sps:$4 sm:$0xff]   ;;  %6202 = vmatprep.mubr.bf16.mxu0 %v18507_v51  ;;  %v18484_v54 = vld [vmem:[%s25331_s3 + $0xd4] ss:$8 sps:$4 sm:$0xff]  }
  0x20   : > { %6179 = vmatpush1.bf16.msra.mxu0 %v18435_v19  ;;  %5389 = vmatprep.subr.bf16.mxu1 %v18436_v20  ;;  %v18480_v50 = vld [vmem:[%s25331_s3 + $0x7c4] ss:$8 sps:$4 sm:$0xff]   ;;  %v18483_v53 = vld [vmem:[%s25331_s3 + $0x7c0] ss:$8 sps:$4 sm:$0xff]   ;;  %v18486_v55 = vld [vmem:[%s25331_s3 + $0x7d4] ss:$8 sps:$4 sm:$0xff]  }
  0x21   : > { %6180 = vmatprep.subr.bf16.mxu0 %v18438_v21  ;;  %5411 = vmatprep.mubr.bf16.mxu1 %v18504_v49  ;;  %v18488_v56 = vld [vmem:[%s25331_s3 + $0xd0] ss:$8 sps:$4 sm:$0xff]   ;;  %v18490_v58 = vld [vmem:[%s25331_s3 + $0xe4] ss:$8 sps:$4 sm:$0xff]   ;;  %v18494_v60 = vld [vmem:[%s25331_s3 + $0xe0] ss:$8 sps:$4 sm:$0xff]  }
  0x22   : > { %v18489_v57 = vld [vmem:[%s25331_s3 + $0x7d0] ss:$8 sps:$4 sm:$0xff]   ;;  %v18492_v59 = vld [vmem:[%s25331_s3 + $0x7e4] ss:$8 sps:$4 sm:$0xff]   ;;  %v18495_v61 = vld [vmem:[%s25331_s3 + $0x7e0] ss:$8 sps:$4 sm:$0xff]  }
  0x23   : > { %5390 = vmatpush1.bf16.msra.mxu1 %v18440_v22  ;;  %v18496_v62 = vld [vmem:[%s25331_s3 + $0xf4] ss:$8 sps:$4 sm:$0xff]   ;;  %v18500_v0 = vld [vmem:[%s25331_s3 + $0xf0] ss:$8 sps:$4 sm:$0xff]   ;;  %v18510_v2 = vld [vmem:[%s25331_s3 + $0x104] ss:$8 sps:$4 sm:$0xff]  }
  0x24   : > { %6181 = vmatpush1.bf16.msra.mxu0 %v18441_v23  ;;  %5391 = vmatprep.subr.bf16.mxu1 %v18442_v24  ;;  %v18498_v63 = vld [vmem:[%s25331_s3 + $0x7f4] ss:$8 sps:$4 sm:$0xff]   ;;  %v18501_v1 = vld [vmem:[%s25331_s3 + $0x7f0] ss:$8 sps:$4 sm:$0xff]   ;;  %v18513_v3 = vld [vmem:[%s25331_s3 + $0x804] ss:$8 sps:$4 sm:$0xff]  }
  0x25   : > { %6182 = vmatprep.subr.bf16.mxu0 %v18444_v25  ;;  %v18502_v4 = vld [vmem:[%s20894_s20] ss:$108 sps:$4 sm:$0xff]   ;;  %v18505_v5 = vld [vmem:[%s20894_s20 + $0x38] ss:$108 sps:$4 sm:$0xff]   ;;  %v18516_v8 = vld [vmem:[%s25331_s3 + $0x114] ss:$8 sps:$4 sm:$0xff]  }
  0x26   : > { %v18508_v6 = vld [vmem:[%s25331_s3 + $0x100] ss:$8 sps:$4 sm:$0xff]   ;;  %v18519_v9 = vld [vmem:[%s25331_s3 + $0x814] ss:$8 sps:$4 sm:$0xff]   ;;  %v18514_v12 = vld [vmem:[%s25331_s3 + $0x110] ss:$8 sps:$4 sm:$0xff]  }
  0x27   : > { %5392 = vmatpush1.bf16.msra.mxu1 %v18446_v26  ;;  %v18511_v7 = vld [vmem:[%s25331_s3 + $0x800] ss:$8 sps:$4 sm:$0xff]   ;;  %v18517_v13 = vld [vmem:[%s25331_s3 + $0x810] ss:$8 sps:$4 sm:$0xff]   ;;  %v18527_v14 = vld [vmem:[%s25331_s3 + $0x124] ss:$8 sps:$4 sm:$0xff]  }
  0x28   : > { %6183 = vmatpush1.bf16.msra.mxu0 %v18447_v27  ;;  %5393 = vmatprep.subr.bf16.mxu1 %v18448_v28  ;;  %v18520_v10 = vld [vmem:[%s20894_s20 + $0xdc] ss:$108 sps:$4 sm:$0xff]   ;;  %v18522_v11 = vld [vmem:[%s20894_s20 + $0x114] ss:$108 sps:$4 sm:$0xff]   ;;  %v18531_v15 = vld [vmem:[%s25331_s3 + $0x824] ss:$8 sps:$4 sm:$0xff]  }
  0x29   : > { %6184 = vmatprep.subr.bf16.mxu0 %v18450_v29  ;;  %v18524_v16 = vld [vmem:[%s20894_s20 + $0xd8] ss:$108 sps:$4 sm:$0xff]   ;;  %v18525_v17 = vld [vmem:[%s25331_s3 + $0x120] ss:$8 sps:$4 sm:$0xff]   ;;  %v18528_v18 = vld [vmem:[%s20894_s20 + $0x110] ss:$108 sps:$4 sm:$0xff]  }
  0x2a   : > { %v18529_v19 = vld [vmem:[%s25331_s3 + $0x820] ss:$8 sps:$4 sm:$0xff]   ;;  %v18534_v20 = vld [vmem:[%s25331_s3 + $0x134] ss:$8 sps:$4 sm:$0xff]   ;;  %v18540_v23 = vld [vmem:[%s20894_s20 + $0x1ec] ss:$108 sps:$4 sm:$0xff]  }
  0x2b   : > { %5394 = vmatpush1.bf16.msra.mxu1 %v18452_v30  ;;  %v18537_v21 = vld [vmem:[%s25331_s3 + $0x834] ss:$8 sps:$4 sm:$0xff]   ;;  %v18532_v24 = vld [vmem:[%s25331_s3 + $0x130] ss:$8 sps:$4 sm:$0xff]   ;;  %v18545_v26 = vld [vmem:[%s25331_s3 + $0x144] ss:$8 sps:$4 sm:$0xff]  }
  0x2c   : > { %6185 = vmatpush1.bf16.msra.mxu0 %v18453_v31  ;;  %5395 = vmatprep.subr.bf16.mxu1 %v18454_v32  ;;  %v18538_v22 = vld [vmem:[%s20894_s20 + $0x1b4] ss:$108 sps:$4 sm:$0xff]   ;;  %v18535_v25 = vld [vmem:[%s25331_s3 + $0x830] ss:$8 sps:$4 sm:$0xff]   ;;  %v18549_v27 = vld [vmem:[%s25331_s3 + $0x844] ss:$8 sps:$4 sm:$0xff]  }
  0x2d   : > { %6186 = vmatprep.subr.bf16.mxu0 %v18456_v33  ;;  %v18542_v28 = vld [vmem:[%s20894_s20 + $0x1b0] ss:$108 sps:$4 sm:$0xff]   ;;  %v18543_v29 = vld [vmem:[%s25331_s3 + $0x140] ss:$8 sps:$4 sm:$0xff]   ;;  %v18585_v51 = vld [vmem:[%s25331_s3 + $0x884] ss:$8 sps:$4 sm:$0xff]  }
  0x2e   : > { %v18546_v30 = vld [vmem:[%s20894_s20 + $0x1e8] ss:$108 sps:$4 sm:$0xff]   ;;  %v18571_v49 = vld [vmem:[%s25331_s3 + $0x870] ss:$8 sps:$4 sm:$0xff]   ;;  %s14992_s26 = sshll.u32 %s25349_s29, 2 }
  0x2f   : > { %5396 = vmatpush1.bf16.msra.mxu1 %v18458_v34  ;;  %v18547_v31 = vld [vmem:[%s25331_s3 + $0x840] ss:$8 sps:$4 sm:$0xff]   ;;  %v18552_v32 = vld [vmem:[%s25331_s3 + $0x154] ss:$8 sps:$4 sm:$0xff]   ;;  %v18556_v34 = vld [vmem:[%s20894_s20 + $0x28c] ss:$108 sps:$4 sm:$0xff]   ;;  %s25259_s9 = scalar_lea.vmem %s25335_s7, %s14992_s26 }
  0x30   : > { %6187 = vmatpush1.bf16.msra.mxu0 %v18459_v35  ;;  %5397 = vmatprep.subr.bf16.mxu1 %v18460_v36  ;;  %v18555_v33 = vld [vmem:[%s25331_s3 + $0x854] ss:$8 sps:$4 sm:$0xff]   ;;  %v18558_v35 = vld [vmem:[%s20894_s20 + $0x2c4] ss:$108 sps:$4 sm:$0xff]  }
  0x31   : > { %6188 = vmatprep.subr.bf16.mxu0 %v18462_v37  ;;  %v18550_v36 = vld [vmem:[%s25331_s3 + $0x150] ss:$8 sps:$4 sm:$0xff]  }
  0x32   : > { %v18553_v37 = vld [vmem:[%s25331_s3 + $0x850] ss:$8 sps:$4 sm:$0xff]  }
  0x33   : > { %5398 = vmatpush1.bf16.msra.mxu1 %v18464_v38  ;;  %v18563_v38 = vld [vmem:[%s25331_s3 + $0x164] ss:$8 sps:$4 sm:$0xff]  }
  0x34   : > { %6189 = vmatpush1.bf16.msra.mxu0 %v18465_v39  ;;  %5399 = vmatprep.subr.bf16.mxu1 %v18466_v40  ;;  %v18567_v39 = vld [vmem:[%s25331_s3 + $0x864] ss:$8 sps:$4 sm:$0xff]   ;;  %v18560_v40 = vld [vmem:[%s20894_s20 + $0x288] ss:$108 sps:$4 sm:$0xff]  }
  0x35   : > { %6190 = vmatprep.subr.bf16.mxu0 %v18468_v41  ;;  %v18561_v41 = vld [vmem:[%s25331_s3 + $0x160] ss:$8 sps:$4 sm:$0xff]  }
  0x37   : > { %5400 = vmatpush1.bf16.msra.mxu1 %v18470_v42  ;;  %v18564_v42 = vld [vmem:[%s20894_s20 + $0x2c0] ss:$108 sps:$4 sm:$0xff]  }
  0x38   : > { %6191 = vmatpush1.bf16.msra.mxu0 %v18471_v43  ;;  %5401 = vmatprep.subr.bf16.mxu1 %v18472_v44  ;;  %v18565_v43 = vld [vmem:[%s25331_s3 + $0x860] ss:$8 sps:$4 sm:$0xff]   ;;  %v18570_v44 = vld [vmem:[%s25331_s3 + $0x174] ss:$8 sps:$4 sm:$0xff]  }
  0x39   : > { %6192 = vmatprep.subr.bf16.mxu0 %v18474_v45  ;;  %v18573_v45 = vld [vmem:[%s25331_s3 + $0x874] ss:$8 sps:$4 sm:$0xff]  }
  0x3b   : > { %5402 = vmatpush1.bf16.msra.mxu1 %v18476_v46  ;;  %v18574_v46 = vld [vmem:[%s20894_s20 + $0x364] ss:$108 sps:$4 sm:$0xff]  }
  0x3c   : > { %6193 = vmatpush1.bf16.msra.mxu0 %v18477_v47  ;;  %5403 = vmatprep.subr.bf16.mxu1 %v18478_v48  ;;  %v18576_v47 = vld [vmem:[%s20894_s20 + $0x39c] ss:$108 sps:$4 sm:$0xff]   ;;  %v18568_v48 = vld [vmem:[%s25331_s3 + $0x170] ss:$8 sps:$4 sm:$0xff]  }
  0x3d   : > { %6194 = vmatprep.subr.bf16.mxu0 %v18480_v50  ;;  %v18581_v50 = vld [vmem:[%s25331_s3 + $0x184] ss:$8 sps:$4 sm:$0xff]  }
  0x3f   : > { %5404 = vmatpush1.bf16.msra.mxu1 %v18482_v52  ;;  %v18578_v52 = vld [vmem:[%s20894_s20 + $0x360] ss:$108 sps:$4 sm:$0xff]  }
  0x40   : > { %6195 = vmatpush1.bf16.msra.mxu0 %v18483_v53  ;;  %5405 = vmatprep.subr.bf16.mxu1 %v18484_v54  ;;  %v18579_v53 = vld [vmem:[%s25331_s3 + $0x180] ss:$8 sps:$4 sm:$0xff]   ;;  %v18582_v54 = vld [vmem:[%s20894_s20 + $0x398] ss:$108 sps:$4 sm:$0xff]  }
  0x41   : > { %6196 = vmatprep.subr.bf16.mxu0 %v18486_v55  ;;  %v18583_v55 = vld [vmem:[%s25331_s3 + $0x880] ss:$8 sps:$4 sm:$0xff]  }
  0x43   : > { %5406 = vmatpush1.bf16.msra.mxu1 %v18488_v56  ;;  %v18588_v56 = vld [vmem:[%s25331_s3 + $0x194] ss:$8 sps:$4 sm:$0xff]  }
  0x44   : > { %6197 = vmatpush1.bf16.msra.mxu0 %v18489_v57  ;;  %5407 = vmatprep.subr.bf16.mxu1 %v18490_v58  ;;  %v18591_v57 = vld [vmem:[%s25331_s3 + $0x894] ss:$8 sps:$4 sm:$0xff]  }
  0x45   : > { %6198 = vmatprep.subr.bf16.mxu0 %v18492_v59  ;;  %v18592_v58 = vld [vmem:[%s20894_s20 + $0x43c] ss:$108 sps:$4 sm:$0xff]   ;;  %v18594_v59 = vld [vmem:[%s20894_s20 + $0x474] ss:$108 sps:$4 sm:$0xff]  }
  0x47   : > { %5408 = vmatpush1.bf16.msra.mxu1 %v18494_v60  ;;  %v18586_v60 = vld [vmem:[%s25331_s3 + $0x190] ss:$8 sps:$4 sm:$0xff]  }
  0x48   : > { %6199 = vmatpush1.bf16.msra.mxu0 %v18495_v61  ;;  %5409 = vmatprep.subr.bf16.mxu1 %v18496_v62  ;;  %v18589_v61 = vld [vmem:[%s25331_s3 + $0x890] ss:$8 sps:$4 sm:$0xff]   ;;  %v18599_v62 = vld [vmem:[%s25331_s3 + $0x1a4] ss:$8 sps:$4 sm:$0xff]  }
  0x49   : > { %6200 = vmatprep.subr.bf16.mxu0 %v18498_v63  ;;  %v18603_v63 = vld [vmem:[%s25331_s3 + $0x8a4] ss:$8 sps:$4 sm:$0xff]  }
  0x4b   : > { %5410 = vmatpush1.bf16.msra.mxu1 %v18500_v0  ;;  %v18596_v0 = vld [vmem:[%s20894_s20 + $0x438] ss:$108 sps:$4 sm:$0xff]  }
  0x4c   : > { %6201 = vmatpush1.bf16.msra.mxu0 %v18501_v1  ;;  %5492 = vmatprep.subr.bf16.mxu1 %v18510_v2  ;;  %v18597_v1 = vld [vmem:[%s25331_s3 + $0x1a0] ss:$8 sps:$4 sm:$0xff]   ;;  %v18600_v2 = vld [vmem:[%s20894_s20 + $0x470] ss:$108 sps:$4 sm:$0xff]  }
  0x4d   : > { %6283 = vmatprep.subr.bf16.mxu0 %v18513_v3  ;;  %v18601_v3 = vld [vmem:[%s25331_s3 + $0x8a0] ss:$8 sps:$4 sm:$0xff]  }
  0x4e   : > { %5412 = vmatmul.mubr.bf16.vlgmr.msra.gmra.mrb[0].mxu1 %v18502_v4  ;;  %v18606_v4 = vld [vmem:[%s25331_s3 + $0x1b4] ss:$8 sps:$4 sm:$0xff]  }
  0x4f   : > { %6203 = vmatmul.mubr.bf16.vlgmr.msra.gmra.mrb[0].mxu0 %v18505_v5  ;;  %5493 = vmatpush1.bf16.msra.mxu1 %v18508_v6  ;;  %v18609_v5 = vld [vmem:[%s25331_s3 + $0x8b4] ss:$8 sps:$4 sm:$0xff]  }
  0x50   : > { %6284 = vmatpush1.bf16.msra.mxu0 %v18511_v7  ;;  %5494 = vmatprep.subr.bf16.mxu1 %v18516_v8  ;;  %v18610_v6 = vld [vmem:[%s20894_s20 + $0x514] ss:$108 sps:$4 sm:$0xff]   ;;  %v18612_v7 = vld [vmem:[%s20894_s20 + $0x54c] ss:$108 sps:$4 sm:$0xff]  }
  0x51   : > { %6285 = vmatprep.subr.bf16.mxu0 %v18519_v9  ;;  %5421 = vmatprep.mubr.bf16.mxu1 %v18520_v10  ;;  %v18604_v8 = vld [vmem:[%s25331_s3 + $0x1b0] ss:$8 sps:$4 sm:$0xff]   ;;  %v18617_v10 = vld [vmem:[%s25331_s3 + $0x1c4] ss:$8 sps:$4 sm:$0xff]  }
  0x52   : > { %6212 = vmatprep.mubr.bf16.mxu0 %v18522_v11  ;;  %v18607_v9 = vld [vmem:[%s25331_s3 + $0x8b0] ss:$8 sps:$4 sm:$0xff]   ;;  %v18621_v11 = vld [vmem:[%s25331_s3 + $0x8c4] ss:$8 sps:$4 sm:$0xff]  }
  0x53   : > { %5495 = vmatpush1.bf16.msra.mxu1 %v18514_v12  ;;  %v18614_v12 = vld [vmem:[%s20894_s20 + $0x510] ss:$108 sps:$4 sm:$0xff]  }
  0x54   : > { %6286 = vmatpush1.bf16.msra.mxu0 %v18517_v13  ;;  %5496 = vmatprep.subr.bf16.mxu1 %v18527_v14  ;;  %v18615_v13 = vld [vmem:[%s25331_s3 + $0x1c0] ss:$8 sps:$4 sm:$0xff]  }
  0x55   : > { %6287 = vmatprep.subr.bf16.mxu0 %v18531_v15  ;;  %v18618_v14 = vld [vmem:[%s20894_s20 + $0x548] ss:$108 sps:$4 sm:$0xff]  }
  0x56   : > { %5422 = vmatmul.mubr.bf16.gmra.mrb[4].mxu1 %v18524_v16  ;;  %v18619_v15 = vld [vmem:[%s25331_s3 + $0x8c0] ss:$8 sps:$4 sm:$0xff]   ;;  %v18624_v16 = vld [vmem:[%s25331_s3 + $0x1d4] ss:$8 sps:$4 sm:$0xff]  }
  0x57   : > { %6213 = vmatmul.mubr.bf16.gmra.mrb[4].mxu0 %v18528_v18  ;;  %5497 = vmatpush1.bf16.msra.mxu1 %v18525_v17  ;;  %v18627_v17 = vld [vmem:[%s25331_s3 + $0x8d4] ss:$8 sps:$4 sm:$0xff]   ;;  %v18628_v18 = vld [vmem:[%s20894_s20 + $0x5ec] ss:$108 sps:$4 sm:$0xff]  }
  0x58   : > { %6288 = vmatpush1.bf16.msra.mxu0 %v18529_v19  ;;  %5498 = vmatprep.subr.bf16.mxu1 %v18534_v20  ;;  %v18630_v19 = vld [vmem:[%s20894_s20 + $0x624] ss:$108 sps:$4 sm:$0xff]  }
  0x59   : > { %6289 = vmatprep.subr.bf16.mxu0 %v18537_v21  ;;  %5431 = vmatprep.mubr.bf16.mxu1 %v18538_v22  ;;  %v18622_v20 = vld [vmem:[%s25331_s3 + $0x1d0] ss:$8 sps:$4 sm:$0xff]   ;;  %v18635_v22 = vld [vmem:[%s25331_s3 + $0x1e4] ss:$8 sps:$4 sm:$0xff]  }
  0x5a   : > { %6222 = vmatprep.mubr.bf16.mxu0 %v18540_v23  ;;  %v18625_v21 = vld [vmem:[%s25331_s3 + $0x8d0] ss:$8 sps:$4 sm:$0xff]   ;;  %v18639_v23 = vld [vmem:[%s25331_s3 + $0x8e4] ss:$8 sps:$4 sm:$0xff]  }
  0x5b   : > { %5499 = vmatpush1.bf16.msra.mxu1 %v18532_v24  ;;  %v18632_v24 = vld [vmem:[%s20894_s20 + $0x5e8] ss:$108 sps:$4 sm:$0xff]  }
  0x5c   : > { %6290 = vmatpush1.bf16.msra.mxu0 %v18535_v25  ;;  %5500 = vmatprep.subr.bf16.mxu1 %v18545_v26  ;;  %v18633_v25 = vld [vmem:[%s25331_s3 + $0x1e0] ss:$8 sps:$4 sm:$0xff]  }
  0x5d   : > { %6291 = vmatprep.subr.bf16.mxu0 %v18549_v27  ;;  %v18636_v26 = vld [vmem:[%s20894_s20 + $0x620] ss:$108 sps:$4 sm:$0xff]  }
  0x5e   : > { %5432 = vmatmul.mubr.bf16.gmra.mrb[8].mxu1 %v18542_v28  ;;  %v18637_v27 = vld [vmem:[%s25331_s3 + $0x8e0] ss:$8 sps:$4 sm:$0xff]   ;;  %v18642_v28 = vld [vmem:[%s25331_s3 + $0x1f4] ss:$8 sps:$4 sm:$0xff]  }
  0x5f   : > { %6223 = vmatmul.mubr.bf16.gmra.mrb[8].mxu0 %v18546_v30  ;;  %5501 = vmatpush1.bf16.msra.mxu1 %v18543_v29  ;;  %v18645_v29 = vld [vmem:[%s25331_s3 + $0x8f4] ss:$8 sps:$4 sm:$0xff]   ;;  %v18648_v30 = vld [vmem:[%s20894_s20 + $0xc] ss:$108 sps:$4 sm:$0xff]  }
  0x60   : > { %6292 = vmatpush1.bf16.msra.mxu0 %v18547_v31  ;;  %5502 = vmatprep.subr.bf16.mxu1 %v18552_v32  ;;  %v18651_v31 = vld [vmem:[%s20894_s20 + $0x44] ss:$108 sps:$4 sm:$0xff]  }
  0x61   : > { %6293 = vmatprep.subr.bf16.mxu0 %v18555_v33  ;;  %5441 = vmatprep.mubr.bf16.mxu1 %v18556_v34  ;;  %v18640_v32 = vld [vmem:[%s25331_s3 + $0x1f0] ss:$8 sps:$4 sm:$0xff]   ;;  %v18654_v34 = vld [vmem:[%s25331_s3 + $0x204] ss:$8 sps:$4 sm:$0xff]  }
  0x62   : > { %6232 = vmatprep.mubr.bf16.mxu0 %v18558_v35  ;;  %v18643_v33 = vld [vmem:[%s25331_s3 + $0x8f0] ss:$8 sps:$4 sm:$0xff]   ;;  %v18657_v35 = vld [vmem:[%s25331_s3 + $0x904] ss:$8 sps:$4 sm:$0xff]  }
  0x63   : > { %5503 = vmatpush1.bf16.msra.mxu1 %v18550_v36  ;;  %v18646_v36 = vld [vmem:[%s20894_s20 + $0x8] ss:$108 sps:$4 sm:$0xff]  }
  0x64   : > { %6294 = vmatpush1.bf16.msra.mxu0 %v18553_v37  ;;  %5504 = vmatprep.subr.bf16.mxu1 %v18563_v38  ;;  %v18649_v37 = vld [vmem:[%s20894_s20 + $0x40] ss:$108 sps:$4 sm:$0xff]  }
  0x65   : > { %6295 = vmatprep.subr.bf16.mxu0 %v18567_v39  ;;  %v18652_v38 = vld [vmem:[%s25331_s3 + $0x200] ss:$8 sps:$4 sm:$0xff]  }
  0x66   : > { %5442 = vmatmul.mubr.bf16.gmra.mrb[12].mxu1 %v18560_v40  ;;  %v18655_v39 = vld [vmem:[%s25331_s3 + $0x900] ss:$8 sps:$4 sm:$0xff]   ;;  %v18660_v40 = vld [vmem:[%s25331_s3 + $0x214] ss:$8 sps:$4 sm:$0xff]  }
  0x67   : > { %6233 = vmatmul.mubr.bf16.gmra.mrb[12].mxu0 %v18564_v42  ;;  %5505 = vmatpush1.bf16.msra.mxu1 %v18561_v41  ;;  %v18663_v41 = vld [vmem:[%s25331_s3 + $0x914] ss:$8 sps:$4 sm:$0xff]   ;;  %v18664_v42 = vld [vmem:[%s20894_s20 + $0xe4] ss:$108 sps:$4 sm:$0xff]  }
  0x68   : > { %6296 = vmatpush1.bf16.msra.mxu0 %v18565_v43  ;;  %5506 = vmatprep.subr.bf16.mxu1 %v18570_v44  ;;  %v18666_v43 = vld [vmem:[%s20894_s20 + $0x11c] ss:$108 sps:$4 sm:$0xff]   ;;  %v18658_v44 = vld [vmem:[%s25331_s3 + $0x210] ss:$8 sps:$4 sm:$0xff]  }
  0x69   : > { %6297 = vmatprep.subr.bf16.mxu0 %v18573_v45  ;;  %5451 = vmatprep.mubr.bf16.mxu1 %v18574_v46  ;;  %v18661_v45 = vld [vmem:[%s25331_s3 + $0x910] ss:$8 sps:$4 sm:$0xff]   ;;  %v18671_v46 = vld [vmem:[%s25331_s3 + $0x224] ss:$8 sps:$4 sm:$0xff]  }
  0x6a   : > { %6242 = vmatprep.mubr.bf16.mxu0 %v18576_v47  ;;  %v18675_v47 = vld [vmem:[%s25331_s3 + $0x924] ss:$8 sps:$4 sm:$0xff]  }
  0x6b   : > { %5507 = vmatpush1.bf16.msra.mxu1 %v18568_v48  ;;  %v18668_v48 = vld [vmem:[%s20894_s20 + $0xe0] ss:$108 sps:$4 sm:$0xff]  }
  0x6c   : > { %6298 = vmatpush1.bf16.msra.mxu0 %v18571_v49  ;;  %5508 = vmatprep.subr.bf16.mxu1 %v18581_v50  ;;  %v18669_v49 = vld [vmem:[%s25331_s3 + $0x220] ss:$8 sps:$4 sm:$0xff]   ;;  %v18672_v50 = vld [vmem:[%s20894_s20 + $0x118] ss:$108 sps:$4 sm:$0xff]  }
  0x6d   : > { %6299 = vmatprep.subr.bf16.mxu0 %v18585_v51  ;;  %v18673_v51 = vld [vmem:[%s25331_s3 + $0x920] ss:$8 sps:$4 sm:$0xff]  }
  0x6e   : > { %5452 = vmatmul.mubr.bf16.gmra.mrb[16].mxu1 %v18578_v52  ;;  %v18678_v52 = vld [vmem:[%s25331_s3 + $0x234] ss:$8 sps:$4 sm:$0xff]  }
  0x6f   : > { %6243 = vmatmul.mubr.bf16.gmra.mrb[16].mxu0 %v18582_v54  ;;  %5509 = vmatpush1.bf16.msra.mxu1 %v18579_v53  ;;  %v18681_v53 = vld [vmem:[%s25331_s3 + $0x934] ss:$8 sps:$4 sm:$0xff]  }
  0x70   : > { %6300 = vmatpush1.bf16.msra.mxu0 %v18583_v55  ;;  %5510 = vmatprep.subr.bf16.mxu1 %v18588_v56  ;;  %v18682_v54 = vld [vmem:[%s20894_s20 + $0x1bc] ss:$108 sps:$4 sm:$0xff]   ;;  %v18684_v55 = vld [vmem:[%s20894_s20 + $0x1f4] ss:$108 sps:$4 sm:$0xff]   ;;  %v18676_v56 = vld [vmem:[%s25331_s3 + $0x230] ss:$8 sps:$4 sm:$0xff]  }
  0x71   : > { %6301 = vmatprep.subr.bf16.mxu0 %v18591_v57  ;;  %5461 = vmatprep.mubr.bf16.mxu1 %v18592_v58  ;;  %v18679_v57 = vld [vmem:[%s25331_s3 + $0x930] ss:$8 sps:$4 sm:$0xff]   ;;  %v18689_v58 = vld [vmem:[%s25331_s3 + $0x244] ss:$8 sps:$4 sm:$0xff]  }
  0x72   : > { %6252 = vmatprep.mubr.bf16.mxu0 %v18594_v59  ;;  %v18693_v59 = vld [vmem:[%s25331_s3 + $0x944] ss:$8 sps:$4 sm:$0xff]  }
  0x73   : > { %5511 = vmatpush1.bf16.msra.mxu1 %v18586_v60  ;;  %v18686_v60 = vld [vmem:[%s20894_s20 + $0x1b8] ss:$108 sps:$4 sm:$0xff]  }
  0x74   : > { %6302 = vmatpush1.bf16.msra.mxu0 %v18589_v61  ;;  %5512 = vmatprep.subr.bf16.mxu1 %v18599_v62  ;;  %v18687_v61 = vld [vmem:[%s25331_s3 + $0x240] ss:$8 sps:$4 sm:$0xff]   ;;  %v18690_v62 = vld [vmem:[%s20894_s20 + $0x1f0] ss:$108 sps:$4 sm:$0xff]  }
  0x75   : > { %6303 = vmatprep.subr.bf16.mxu0 %v18603_v63  ;;  %v18691_v63 = vld [vmem:[%s25331_s3 + $0x940] ss:$8 sps:$4 sm:$0xff]  }
  0x76   : > { %5462 = vmatmul.mubr.bf16.gmra.mrb[20].mxu1 %v18596_v0  ;;  %v18696_v0 = vld [vmem:[%s25331_s3 + $0x254] ss:$8 sps:$4 sm:$0xff]  }
  0x77   : > { %6253 = vmatmul.mubr.bf16.gmra.mrb[20].mxu0 %v18600_v2  ;;  %5513 = vmatpush1.bf16.msra.mxu1 %v18597_v1  ;;  %v18699_v1 = vld [vmem:[%s25331_s3 + $0x954] ss:$8 sps:$4 sm:$0xff]  }
  0x78   : > { %6304 = vmatpush1.bf16.msra.mxu0 %v18601_v3  ;;  %5514 = vmatprep.subr.bf16.mxu1 %v18606_v4  ;;  %v18700_v2 = vld [vmem:[%s20894_s20 + $0x294] ss:$108 sps:$4 sm:$0xff]   ;;  %v18702_v3 = vld [vmem:[%s20894_s20 + $0x2cc] ss:$108 sps:$4 sm:$0xff]  }
  0x79   : > { %6305 = vmatprep.subr.bf16.mxu0 %v18609_v5  ;;  %5471 = vmatprep.mubr.bf16.mxu1 %v18610_v6  ;;  %v18694_v4 = vld [vmem:[%s25331_s3 + $0x250] ss:$8 sps:$4 sm:$0xff]   ;;  %v18707_v6 = vld [vmem:[%s25331_s3 + $0x264] ss:$8 sps:$4 sm:$0xff]  }
  0x7a   : > { %6262 = vmatprep.mubr.bf16.mxu0 %v18612_v7  ;;  %v18697_v5 = vld [vmem:[%s25331_s3 + $0x950] ss:$8 sps:$4 sm:$0xff]   ;;  %v18711_v7 = vld [vmem:[%s25331_s3 + $0x964] ss:$8 sps:$4 sm:$0xff]  }
  0x7b   : > { %5515 = vmatpush1.bf16.msra.mxu1 %v18604_v8  ;;  %v18704_v8 = vld [vmem:[%s20894_s20 + $0x290] ss:$108 sps:$4 sm:$0xff]  }
  0x7c   : > { %6306 = vmatpush1.bf16.msra.mxu0 %v18607_v9  ;;  %5516 = vmatprep.subr.bf16.mxu1 %v18617_v10  ;;  %v18705_v9 = vld [vmem:[%s25331_s3 + $0x260] ss:$8 sps:$4 sm:$0xff]  }
  0x7d   : > { %6307 = vmatprep.subr.bf16.mxu0 %v18621_v11  ;;  %v18708_v10 = vld [vmem:[%s20894_s20 + $0x2c8] ss:$108 sps:$4 sm:$0xff]  }
  0x7e   : > { %5472 = vmatmul.mubr.bf16.gmra.mrb[24].mxu1 %v18614_v12  ;;  %v18709_v11 = vld [vmem:[%s25331_s3 + $0x960] ss:$8 sps:$4 sm:$0xff]   ;;  %v18714_v12 = vld [vmem:[%s25331_s3 + $0x274] ss:$8 sps:$4 sm:$0xff]  }
  0x7f   : > { %6263 = vmatmul.mubr.bf16.gmra.mrb[24].mxu0 %v18618_v14  ;;  %5517 = vmatpush1.bf16.msra.mxu1 %v18615_v13  ;;  %v18717_v13 = vld [vmem:[%s25331_s3 + $0x974] ss:$8 sps:$4 sm:$0xff]   ;;  %v18718_v14 = vld [vmem:[%s20894_s20 + $0x36c] ss:$108 sps:$4 sm:$0xff]  }
  0x80   : > { %6308 = vmatpush1.bf16.msra.mxu0 %v18619_v15  ;;  %5518 = vmatprep.subr.bf16.mxu1 %v18624_v16  ;;  %v18720_v15 = vld [vmem:[%s20894_s20 + $0x3a4] ss:$108 sps:$4 sm:$0xff]  }
  0x81   : > { %6309 = vmatprep.subr.bf16.mxu0 %v18627_v17  ;;  %5481 = vmatprep.mubr.bf16.mxu1 %v18628_v18  ;;  %v18712_v16 = vld [vmem:[%s25331_s3 + $0x270] ss:$8 sps:$4 sm:$0xff]   ;;  %v18725_v18 = vld [vmem:[%s25331_s3 + $0x284] ss:$8 sps:$4 sm:$0xff]  }
  0x82   : > { %6272 = vmatprep.mubr.bf16.mxu0 %v18630_v19  ;;  %v18715_v17 = vld [vmem:[%s25331_s3 + $0x970] ss:$8 sps:$4 sm:$0xff]   ;;  %v18729_v19 = vld [vmem:[%s25331_s3 + $0x984] ss:$8 sps:$4 sm:$0xff]  }
  0x83   : > { %5519 = vmatpush1.bf16.msra.mxu1 %v18622_v20  ;;  %v18722_v20 = vld [vmem:[%s20894_s20 + $0x368] ss:$108 sps:$4 sm:$0xff]  }
  0x84   : > { %6310 = vmatpush1.bf16.msra.mxu0 %v18625_v21  ;;  %5520 = vmatprep.subr.bf16.mxu1 %v18635_v22  ;;  %v18723_v21 = vld [vmem:[%s25331_s3 + $0x280] ss:$8 sps:$4 sm:$0xff]  }
  0x85   : > { %6311 = vmatprep.subr.bf16.mxu0 %v18639_v23  ;;  %v18726_v22 = vld [vmem:[%s20894_s20 + $0x3a0] ss:$108 sps:$4 sm:$0xff]  }
  0x86   : > { %5482 = vmatmul.mubr.bf16.gmra.mrb[28].mxu1 %v18632_v24  ;;  %v18727_v23 = vld [vmem:[%s25331_s3 + $0x980] ss:$8 sps:$4 sm:$0xff]   ;;  %v18732_v24 = vld [vmem:[%s25331_s3 + $0x294] ss:$8 sps:$4 sm:$0xff]  }
  0x87   : > { %6273 = vmatmul.mubr.bf16.gmra.mrb[28].mxu0 %v18636_v26  ;;  %5521 = vmatpush1.bf16.msra.mxu1 %v18633_v25  ;;  %v18735_v25 = vld [vmem:[%s25331_s3 + $0x994] ss:$8 sps:$4 sm:$0xff]   ;;  %v18736_v26 = vld [vmem:[%s20894_s20 + $0x444] ss:$108 sps:$4 sm:$0xff]  }
  0x88   : > { %6312 = vmatpush1.bf16.msra.mxu0 %v18637_v27  ;;  %5522 = vmatprep.subr.bf16.mxu1 %v18642_v28  ;;  %v18738_v27 = vld [vmem:[%s20894_s20 + $0x47c] ss:$108 sps:$4 sm:$0xff]   ;;  %v18730_v28 = vld [vmem:[%s25331_s3 + $0x290] ss:$8 sps:$4 sm:$0xff]  }
  0x89   : > { %6313 = vmatprep.subr.bf16.mxu0 %v18645_v29  ;;  %5524 = vmatprep.mubr.bf16.mxu1 %v18648_v30  ;;  %v18733_v29 = vld [vmem:[%s25331_s3 + $0x990] ss:$8 sps:$4 sm:$0xff]   ;;  %v18743_v30 = vld [vmem:[%s25331_s3 + $0x2a4] ss:$8 sps:$4 sm:$0xff]  }
  0x8a   : > { %6315 = vmatprep.mubr.bf16.mxu0 %v18651_v31  ;;  %v18747_v31 = vld [vmem:[%s25331_s3 + $0x9a4] ss:$8 sps:$4 sm:$0xff]  }
  0x8b   : > { %5523 = vmatpush1.bf16.msra.mxu1 %v18640_v32  ;;  %v18740_v32 = vld [vmem:[%s20894_s20 + $0x440] ss:$108 sps:$4 sm:$0xff]  }
  0x8c   : > { %6314 = vmatpush1.bf16.msra.mxu0 %v18643_v33  ;;  %5605 = vmatprep.subr.bf16.mxu1 %v18654_v34  ;;  %v18741_v33 = vld [vmem:[%s25331_s3 + $0x2a0] ss:$8 sps:$4 sm:$0xff]   ;;  %v18744_v34 = vld [vmem:[%s20894_s20 + $0x478] ss:$108 sps:$4 sm:$0xff]  }
  0x8d   : > { %6396 = vmatprep.subr.bf16.mxu0 %v18657_v35  ;;  %v18745_v35 = vld [vmem:[%s25331_s3 + $0x9a0] ss:$8 sps:$4 sm:$0xff]  }
  0x8e   : > { %5525 = vmatmul.mubr.bf16.vlgmr.msra.gmra.mrb[0].mxu1 %v18646_v36  ;;  %v18750_v36 = vld [vmem:[%s25331_s3 + $0x2b4] ss:$8 sps:$4 sm:$0xff]  }
  0x8f   : > { %6316 = vmatmul.mubr.bf16.vlgmr.msra.gmra.mrb[0].mxu0 %v18649_v37  ;;  %5606 = vmatpush1.bf16.msra.mxu1 %v18652_v38  ;;  %v18753_v37 = vld [vmem:[%s25331_s3 + $0x9b4] ss:$8 sps:$4 sm:$0xff]  }
  0x90   : > { %6397 = vmatpush1.bf16.msra.mxu0 %v18655_v39  ;;  %5607 = vmatprep.subr.bf16.mxu1 %v18660_v40  ;;  %v18754_v38 = vld [vmem:[%s20894_s20 + $0x51c] ss:$108 sps:$4 sm:$0xff]   ;;  %v18756_v39 = vld [vmem:[%s20894_s20 + $0x554] ss:$108 sps:$4 sm:$0xff]   ;;  %v18748_v40 = vld [vmem:[%s25331_s3 + $0x2b0] ss:$8 sps:$4 sm:$0xff]  }
  0x91   : > { %6398 = vmatprep.subr.bf16.mxu0 %v18663_v41  ;;  %5534 = vmatprep.mubr.bf16.mxu1 %v18664_v42  ;;  %v18751_v41 = vld [vmem:[%s25331_s3 + $0x9b0] ss:$8 sps:$4 sm:$0xff]   ;;  %v18761_v42 = vld [vmem:[%s25331_s3 + $0x2c4] ss:$8 sps:$4 sm:$0xff]  }
  0x92   : > { %6325 = vmatprep.mubr.bf16.mxu0 %v18666_v43  ;;  %v18765_v43 = vld [vmem:[%s25331_s3 + $0x9c4] ss:$8 sps:$4 sm:$0xff]  }
  0x93   : > { %5608 = vmatpush1.bf16.msra.mxu1 %v18658_v44  ;;  %v18758_v44 = vld [vmem:[%s20894_s20 + $0x518] ss:$108 sps:$4 sm:$0xff]  }
  0x94   : > { %6399 = vmatpush1.bf16.msra.mxu0 %v18661_v45  ;;  %5609 = vmatprep.subr.bf16.mxu1 %v18671_v46  ;;  %v18759_v45 = vld [vmem:[%s25331_s3 + $0x2c0] ss:$8 sps:$4 sm:$0xff]   ;;  %v18762_v46 = vld [vmem:[%s20894_s20 + $0x550] ss:$108 sps:$4 sm:$0xff]  }
  0x95   : > { %6400 = vmatprep.subr.bf16.mxu0 %v18675_v47  ;;  %v18763_v47 = vld [vmem:[%s25331_s3 + $0x9c0] ss:$8 sps:$4 sm:$0xff]  }
  0x96   : > { %5535 = vmatmul.mubr.bf16.gmra.mrb[4].mxu1 %v18668_v48  ;;  %v18768_v48 = vld [vmem:[%s25331_s3 + $0x2d4] ss:$8 sps:$4 sm:$0xff]  }
  0x97   : > { %6326 = vmatmul.mubr.bf16.gmra.mrb[4].mxu0 %v18672_v50  ;;  %5610 = vmatpush1.bf16.msra.mxu1 %v18669_v49  ;;  %v18771_v49 = vld [vmem:[%s25331_s3 + $0x9d4] ss:$8 sps:$4 sm:$0xff]  }
  0x98   : > { %6401 = vmatpush1.bf16.msra.mxu0 %v18673_v51  ;;  %5611 = vmatprep.subr.bf16.mxu1 %v18678_v52  ;;  %v18772_v50 = vld [vmem:[%s20894_s20 + $0x5f4] ss:$108 sps:$4 sm:$0xff]   ;;  %v18774_v51 = vld [vmem:[%s20894_s20 + $0x62c] ss:$108 sps:$4 sm:$0xff]  }
  0x99   : > { %6402 = vmatprep.subr.bf16.mxu0 %v18681_v53  ;;  %5544 = vmatprep.mubr.bf16.mxu1 %v18682_v54  ;;  %v18766_v52 = vld [vmem:[%s25331_s3 + $0x2d0] ss:$8 sps:$4 sm:$0xff]   ;;  %v18779_v54 = vld [vmem:[%s25331_s3 + $0x2e4] ss:$8 sps:$4 sm:$0xff]  }
  0x9a   : > { %6335 = vmatprep.mubr.bf16.mxu0 %v18684_v55  ;;  %v18769_v53 = vld [vmem:[%s25331_s3 + $0x9d0] ss:$8 sps:$4 sm:$0xff]   ;;  %v18783_v55 = vld [vmem:[%s25331_s3 + $0x9e4] ss:$8 sps:$4 sm:$0xff]  }
  0x9b   : > { %5612 = vmatpush1.bf16.msra.mxu1 %v18676_v56  ;;  %v18776_v56 = vld [vmem:[%s20894_s20 + $0x5f0] ss:$108 sps:$4 sm:$0xff]  }
  0x9c   : > { %6403 = vmatpush1.bf16.msra.mxu0 %v18679_v57  ;;  %5613 = vmatprep.subr.bf16.mxu1 %v18689_v58  ;;  %v18777_v57 = vld [vmem:[%s25331_s3 + $0x2e0] ss:$8 sps:$4 sm:$0xff]  }
  0x9d   : > { %6404 = vmatprep.subr.bf16.mxu0 %v18693_v59  ;;  %v18780_v58 = vld [vmem:[%s20894_s20 + $0x628] ss:$108 sps:$4 sm:$0xff]  }
  0x9e   : > { %5545 = vmatmul.mubr.bf16.gmra.mrb[8].mxu1 %v18686_v60  ;;  %v18781_v59 = vld [vmem:[%s25331_s3 + $0x9e0] ss:$8 sps:$4 sm:$0xff]   ;;  %v18786_v60 = vld [vmem:[%s25331_s3 + $0x2f4] ss:$8 sps:$4 sm:$0xff]  }
  0x9f   : > { %6336 = vmatmul.mubr.bf16.gmra.mrb[8].mxu0 %v18690_v62  ;;  %5614 = vmatpush1.bf16.msra.mxu1 %v18687_v61  ;;  %v18789_v61 = vld [vmem:[%s25331_s3 + $0x9f4] ss:$8 sps:$4 sm:$0xff]  }
  0xa0   : > { %6405 = vmatpush1.bf16.msra.mxu0 %v18691_v63  ;;  %5615 = vmatprep.subr.bf16.mxu1 %v18696_v0  ;;  %v18792_v62 = vld [vmem:[%s20894_s20 + $0x14] ss:$108 sps:$4 sm:$0xff]   ;;  %v18795_v63 = vld [vmem:[%s20894_s20 + $0x4c] ss:$108 sps:$4 sm:$0xff]  }
  0xa1   : > { %6406 = vmatprep.subr.bf16.mxu0 %v18699_v1  ;;  %5554 = vmatprep.mubr.bf16.mxu1 %v18700_v2  ;;  %v18784_v0 = vld [vmem:[%s25331_s3 + $0x2f0] ss:$8 sps:$4 sm:$0xff]   ;;  %v18798_v2 = vld [vmem:[%s25331_s3 + $0x304] ss:$8 sps:$4 sm:$0xff]  }
  0xa2   : > { %6345 = vmatprep.mubr.bf16.mxu0 %v18702_v3  ;;  %v18787_v1 = vld [vmem:[%s25331_s3 + $0x9f0] ss:$8 sps:$4 sm:$0xff]   ;;  %v18801_v3 = vld [vmem:[%s25331_s3 + $0xa04] ss:$8 sps:$4 sm:$0xff]  }
  0xa3   : > { %5616 = vmatpush1.bf16.msra.mxu1 %v18694_v4  ;;  %v18790_v4 = vld [vmem:[%s20894_s20 + $0x10] ss:$108 sps:$4 sm:$0xff]  }
  0xa4   : > { %6407 = vmatpush1.bf16.msra.mxu0 %v18697_v5  ;;  %5617 = vmatprep.subr.bf16.mxu1 %v18707_v6  ;;  %v18793_v5 = vld [vmem:[%s20894_s20 + $0x48] ss:$108 sps:$4 sm:$0xff]  }
  0xa5   : > { %6408 = vmatprep.subr.bf16.mxu0 %v18711_v7  ;;  %v18796_v6 = vld [vmem:[%s25331_s3 + $0x300] ss:$8 sps:$4 sm:$0xff]  }
  0xa6   : > { %5555 = vmatmul.mubr.bf16.gmra.mrb[12].mxu1 %v18704_v8  ;;  %v18799_v7 = vld [vmem:[%s25331_s3 + $0xa00] ss:$8 sps:$4 sm:$0xff]   ;;  %v18804_v8 = vld [vmem:[%s25331_s3 + $0x314] ss:$8 sps:$4 sm:$0xff]  }
  0xa7   : > { %6346 = vmatmul.mubr.bf16.gmra.mrb[12].mxu0 %v18708_v10  ;;  %5618 = vmatpush1.bf16.msra.mxu1 %v18705_v9  ;;  %v18807_v9 = vld [vmem:[%s25331_s3 + $0xa14] ss:$8 sps:$4 sm:$0xff]   ;;  %v18808_v10 = vld [vmem:[%s20894_s20 + $0xec] ss:$108 sps:$4 sm:$0xff]  }
  0xa8   : > { %6409 = vmatpush1.bf16.msra.mxu0 %v18709_v11  ;;  %5619 = vmatprep.subr.bf16.mxu1 %v18714_v12  ;;  %v18810_v11 = vld [vmem:[%s20894_s20 + $0x124] ss:$108 sps:$4 sm:$0xff]  }
  0xa9   : > { %6410 = vmatprep.subr.bf16.mxu0 %v18717_v13  ;;  %5564 = vmatprep.mubr.bf16.mxu1 %v18718_v14  ;;  %v18802_v12 = vld [vmem:[%s25331_s3 + $0x310] ss:$8 sps:$4 sm:$0xff]   ;;  %v18815_v14 = vld [vmem:[%s25331_s3 + $0x324] ss:$8 sps:$4 sm:$0xff]  }
  0xaa   : > { %6355 = vmatprep.mubr.bf16.mxu0 %v18720_v15  ;;  %v18805_v13 = vld [vmem:[%s25331_s3 + $0xa10] ss:$8 sps:$4 sm:$0xff]   ;;  %v18819_v15 = vld [vmem:[%s25331_s3 + $0xa24] ss:$8 sps:$4 sm:$0xff]  }
  0xab   : > { %5620 = vmatpush1.bf16.msra.mxu1 %v18712_v16  ;;  %v18812_v16 = vld [vmem:[%s20894_s20 + $0xe8] ss:$108 sps:$4 sm:$0xff]  }
  0xac   : > { %6411 = vmatpush1.bf16.msra.mxu0 %v18715_v17  ;;  %5621 = vmatprep.subr.bf16.mxu1 %v18725_v18  ;;  %v18813_v17 = vld [vmem:[%s25331_s3 + $0x320] ss:$8 sps:$4 sm:$0xff]  }
  0xad   : > { %6412 = vmatprep.subr.bf16.mxu0 %v18729_v19  ;;  %v18816_v18 = vld [vmem:[%s20894_s20 + $0x120] ss:$108 sps:$4 sm:$0xff]  }
  0xae   : > { %5565 = vmatmul.mubr.bf16.gmra.mrb[16].mxu1 %v18722_v20  ;;  %v18817_v19 = vld [vmem:[%s25331_s3 + $0xa20] ss:$8 sps:$4 sm:$0xff]   ;;  %v18822_v20 = vld [vmem:[%s25331_s3 + $0x334] ss:$8 sps:$4 sm:$0xff]  }
  0xaf   : > { %6356 = vmatmul.mubr.bf16.gmra.mrb[16].mxu0 %v18726_v22  ;;  %5622 = vmatpush1.bf16.msra.mxu1 %v18723_v21  ;;  %v18825_v21 = vld [vmem:[%s25331_s3 + $0xa34] ss:$8 sps:$4 sm:$0xff]   ;;  %v18826_v22 = vld [vmem:[%s20894_s20 + $0x1c4] ss:$108 sps:$4 sm:$0xff]  }
  0xb0   : > { %6413 = vmatpush1.bf16.msra.mxu0 %v18727_v23  ;;  %5623 = vmatprep.subr.bf16.mxu1 %v18732_v24  ;;  %v18828_v23 = vld [vmem:[%s20894_s20 + $0x1fc] ss:$108 sps:$4 sm:$0xff]   ;;  %v18820_v24 = vld [vmem:[%s25331_s3 + $0x330] ss:$8 sps:$4 sm:$0xff]  }
  0xb1   : > { %6414 = vmatprep.subr.bf16.mxu0 %v18735_v25  ;;  %5574 = vmatprep.mubr.bf16.mxu1 %v18736_v26  ;;  %v18823_v25 = vld [vmem:[%s25331_s3 + $0xa30] ss:$8 sps:$4 sm:$0xff]   ;;  %v18833_v26 = vld [vmem:[%s25331_s3 + $0x344] ss:$8 sps:$4 sm:$0xff]  }
  0xb2   : > { %6365 = vmatprep.mubr.bf16.mxu0 %v18738_v27  ;;  %v18837_v27 = vld [vmem:[%s25331_s3 + $0xa44] ss:$8 sps:$4 sm:$0xff]  }
  0xb3   : > { %5624 = vmatpush1.bf16.msra.mxu1 %v18730_v28  ;;  %v18830_v28 = vld [vmem:[%s20894_s20 + $0x1c0] ss:$108 sps:$4 sm:$0xff]  }
  0xb4   : > { %6415 = vmatpush1.bf16.msra.mxu0 %v18733_v29  ;;  %5625 = vmatprep.subr.bf16.mxu1 %v18743_v30  ;;  %v18831_v29 = vld [vmem:[%s25331_s3 + $0x340] ss:$8 sps:$4 sm:$0xff]   ;;  %v18834_v30 = vld [vmem:[%s20894_s20 + $0x1f8] ss:$108 sps:$4 sm:$0xff]  }
  0xb5   : > { %6416 = vmatprep.subr.bf16.mxu0 %v18747_v31  ;;  %v18835_v31 = vld [vmem:[%s25331_s3 + $0xa40] ss:$8 sps:$4 sm:$0xff]  }
  0xb6   : > { %5575 = vmatmul.mubr.bf16.gmra.mrb[20].mxu1 %v18740_v32  ;;  %v18840_v32 = vld [vmem:[%s25331_s3 + $0x354] ss:$8 sps:$4 sm:$0xff]  }
  0xb7   : > { %6366 = vmatmul.mubr.bf16.gmra.mrb[20].mxu0 %v18744_v34  ;;  %5626 = vmatpush1.bf16.msra.mxu1 %v18741_v33  ;;  %v18843_v33 = vld [vmem:[%s25331_s3 + $0xa54] ss:$8 sps:$4 sm:$0xff]  }
  0xb8   : > { %6417 = vmatpush1.bf16.msra.mxu0 %v18745_v35  ;;  %5627 = vmatprep.subr.bf16.mxu1 %v18750_v36  ;;  %v18844_v34 = vld [vmem:[%s20894_s20 + $0x29c] ss:$108 sps:$4 sm:$0xff]   ;;  %v18846_v35 = vld [vmem:[%s20894_s20 + $0x2d4] ss:$108 sps:$4 sm:$0xff]   ;;  %v18838_v36 = vld [vmem:[%s25331_s3 + $0x350] ss:$8 sps:$4 sm:$0xff]  }
  0xb9   : > { %6418 = vmatprep.subr.bf16.mxu0 %v18753_v37  ;;  %5584 = vmatprep.mubr.bf16.mxu1 %v18754_v38  ;;  %v18841_v37 = vld [vmem:[%s25331_s3 + $0xa50] ss:$8 sps:$4 sm:$0xff]   ;;  %v18851_v38 = vld [vmem:[%s25331_s3 + $0x364] ss:$8 sps:$4 sm:$0xff]  }
  0xba   : > { %6375 = vmatprep.mubr.bf16.mxu0 %v18756_v39  ;;  %v18855_v39 = vld [vmem:[%s25331_s3 + $0xa64] ss:$8 sps:$4 sm:$0xff]  }
  0xbb   : > { %5628 = vmatpush1.bf16.msra.mxu1 %v18748_v40  ;;  %v18848_v40 = vld [vmem:[%s20894_s20 + $0x298] ss:$108 sps:$4 sm:$0xff]  }
  0xbc   : > { %6419 = vmatpush1.bf16.msra.mxu0 %v18751_v41  ;;  %5629 = vmatprep.subr.bf16.mxu1 %v18761_v42  ;;  %v18849_v41 = vld [vmem:[%s25331_s3 + $0x360] ss:$8 sps:$4 sm:$0xff]   ;;  %v18852_v42 = vld [vmem:[%s20894_s20 + $0x2d0] ss:$108 sps:$4 sm:$0xff]  }
  0xbd   : > { %6420 = vmatprep.subr.bf16.mxu0 %v18765_v43  ;;  %v18853_v43 = vld [vmem:[%s25331_s3 + $0xa60] ss:$8 sps:$4 sm:$0xff]  }
  0xbe   : > { %5585 = vmatmul.mubr.bf16.gmra.mrb[24].mxu1 %v18758_v44  ;;  %v18858_v44 = vld [vmem:[%s25331_s3 + $0x374] ss:$8 sps:$4 sm:$0xff]  }
  0xbf   : > { %6376 = vmatmul.mubr.bf16.gmra.mrb[24].mxu0 %v18762_v46  ;;  %5630 = vmatpush1.bf16.msra.mxu1 %v18759_v45  ;;  %v18861_v45 = vld [vmem:[%s25331_s3 + $0xa74] ss:$8 sps:$4 sm:$0xff]  }
  0xc0   : > { %6421 = vmatpush1.bf16.msra.mxu0 %v18763_v47  ;;  %5631 = vmatprep.subr.bf16.mxu1 %v18768_v48  ;;  %v18862_v46 = vld [vmem:[%s20894_s20 + $0x374] ss:$108 sps:$4 sm:$0xff]   ;;  %v18864_v47 = vld [vmem:[%s20894_s20 + $0x3ac] ss:$108 sps:$4 sm:$0xff]  }
  0xc1   : > { %6422 = vmatprep.subr.bf16.mxu0 %v18771_v49  ;;  %5594 = vmatprep.mubr.bf16.mxu1 %v18772_v50  ;;  %v18856_v48 = vld [vmem:[%s25331_s3 + $0x370] ss:$8 sps:$4 sm:$0xff]   ;;  %v18869_v50 = vld [vmem:[%s25331_s3 + $0x384] ss:$8 sps:$4 sm:$0xff]  }
  0xc2   : > { %6385 = vmatprep.mubr.bf16.mxu0 %v18774_v51  ;;  %v18859_v49 = vld [vmem:[%s25331_s3 + $0xa70] ss:$8 sps:$4 sm:$0xff]   ;;  %v18873_v51 = vld [vmem:[%s25331_s3 + $0xa84] ss:$8 sps:$4 sm:$0xff]  }
  0xc3   : > { %5632 = vmatpush1.bf16.msra.mxu1 %v18766_v52  ;;  %v18866_v52 = vld [vmem:[%s20894_s20 + $0x370] ss:$108 sps:$4 sm:$0xff]  }
  0xc4   : > { %6423 = vmatpush1.bf16.msra.mxu0 %v18769_v53  ;;  %5633 = vmatprep.subr.bf16.mxu1 %v18779_v54  ;;  %v18867_v53 = vld [vmem:[%s25331_s3 + $0x380] ss:$8 sps:$4 sm:$0xff]  }
  0xc5   : > { %6424 = vmatprep.subr.bf16.mxu0 %v18783_v55  ;;  %v18870_v54 = vld [vmem:[%s20894_s20 + $0x3a8] ss:$108 sps:$4 sm:$0xff]  }
  0xc6   : > { %5595 = vmatmul.mubr.bf16.gmra.mrb[28].mxu1 %v18776_v56  ;;  %v18871_v55 = vld [vmem:[%s25331_s3 + $0xa80] ss:$8 sps:$4 sm:$0xff]   ;;  %v18876_v56 = vld [vmem:[%s25331_s3 + $0x394] ss:$8 sps:$4 sm:$0xff]  }
  0xc7   : > { %6386 = vmatmul.mubr.bf16.gmra.mrb[28].mxu0 %v18780_v58  ;;  %5634 = vmatpush1.bf16.msra.mxu1 %v18777_v57  ;;  %v18879_v57 = vld [vmem:[%s25331_s3 + $0xa94] ss:$8 sps:$4 sm:$0xff]   ;;  %v18880_v58 = vld [vmem:[%s20894_s20 + $0x44c] ss:$108 sps:$4 sm:$0xff]  }
  0xc8   : > { %6425 = vmatpush1.bf16.msra.mxu0 %v18781_v59  ;;  %5635 = vmatprep.subr.bf16.mxu1 %v18786_v60  ;;  %v18882_v59 = vld [vmem:[%s20894_s20 + $0x484] ss:$108 sps:$4 sm:$0xff]  }
  0xc9   : > { %6426 = vmatprep.subr.bf16.mxu0 %v18789_v61  ;;  %5637 = vmatprep.mubr.bf16.mxu1 %v18792_v62  ;;  %v18874_v60 = vld [vmem:[%s25331_s3 + $0x390] ss:$8 sps:$4 sm:$0xff]   ;;  %v18887_v62 = vld [vmem:[%s25331_s3 + $0x3a4] ss:$8 sps:$4 sm:$0xff]  }
  0xca   : > { %6428 = vmatprep.mubr.bf16.mxu0 %v18795_v63  ;;  %v18877_v61 = vld [vmem:[%s25331_s3 + $0xa90] ss:$8 sps:$4 sm:$0xff]   ;;  %v18891_v63 = vld [vmem:[%s25331_s3 + $0xaa4] ss:$8 sps:$4 sm:$0xff]  }
  0xcb   : > { %5636 = vmatpush1.bf16.msra.mxu1 %v18784_v0  ;;  %v18884_v0 = vld [vmem:[%s20894_s20 + $0x448] ss:$108 sps:$4 sm:$0xff]  }
  0xcc   : > { %6427 = vmatpush1.bf16.msra.mxu0 %v18787_v1  ;;  %5718 = vmatprep.subr.bf16.mxu1 %v18798_v2  ;;  %v18885_v1 = vld [vmem:[%s25331_s3 + $0x3a0] ss:$8 sps:$4 sm:$0xff]  }
  0xcd   : > { %6509 = vmatprep.subr.bf16.mxu0 %v18801_v3  ;;  %v18888_v2 = vld [vmem:[%s20894_s20 + $0x480] ss:$108 sps:$4 sm:$0xff]  }
  0xce   : > { %5638 = vmatmul.mubr.bf16.vlgmr.msra.gmra.mrb[0].mxu1 %v18790_v4  ;;  %v18889_v3 = vld [vmem:[%s25331_s3 + $0xaa0] ss:$8 sps:$4 sm:$0xff]   ;;  %v18894_v4 = vld [vmem:[%s25331_s3 + $0x3b4] ss:$8 sps:$4 sm:$0xff]  }
  0xcf   : > { %6429 = vmatmul.mubr.bf16.vlgmr.msra.gmra.mrb[0].mxu0 %v18793_v5  ;;  %5719 = vmatpush1.bf16.msra.mxu1 %v18796_v6  ;;  %v18897_v5 = vld [vmem:[%s25331_s3 + $0xab4] ss:$8 sps:$4 sm:$0xff]   ;;  %v18898_v6 = vld [vmem:[%s20894_s20 + $0x524] ss:$108 sps:$4 sm:$0xff]  }
  0xd0   : > { %6510 = vmatpush1.bf16.msra.mxu0 %v18799_v7  ;;  %5720 = vmatprep.subr.bf16.mxu1 %v18804_v8  ;;  %v18900_v7 = vld [vmem:[%s20894_s20 + $0x55c] ss:$108 sps:$4 sm:$0xff]   ;;  %v18892_v8 = vld [vmem:[%s25331_s3 + $0x3b0] ss:$8 sps:$4 sm:$0xff]  }
  0xd1   : > { %6511 = vmatprep.subr.bf16.mxu0 %v18807_v9  ;;  %5647 = vmatprep.mubr.bf16.mxu1 %v18808_v10  ;;  %v18895_v9 = vld [vmem:[%s25331_s3 + $0xab0] ss:$8 sps:$4 sm:$0xff]   ;;  %v18905_v10 = vld [vmem:[%s25331_s3 + $0x3c4] ss:$8 sps:$4 sm:$0xff]  }
  0xd2   : > { %6438 = vmatprep.mubr.bf16.mxu0 %v18810_v11  ;;  %v18909_v11 = vld [vmem:[%s25331_s3 + $0xac4] ss:$8 sps:$4 sm:$0xff]  }
  0xd3   : > { %5721 = vmatpush1.bf16.msra.mxu1 %v18802_v12  ;;  %v18902_v12 = vld [vmem:[%s20894_s20 + $0x520] ss:$108 sps:$4 sm:$0xff]  }
  0xd4   : > { %6512 = vmatpush1.bf16.msra.mxu0 %v18805_v13  ;;  %5722 = vmatprep.subr.bf16.mxu1 %v18815_v14  ;;  %v18903_v13 = vld [vmem:[%s25331_s3 + $0x3c0] ss:$8 sps:$4 sm:$0xff]   ;;  %v18906_v14 = vld [vmem:[%s20894_s20 + $0x558] ss:$108 sps:$4 sm:$0xff]  }
  0xd5   : > { %6513 = vmatprep.subr.bf16.mxu0 %v18819_v15  ;;  %v18907_v15 = vld [vmem:[%s25331_s3 + $0xac0] ss:$8 sps:$4 sm:$0xff]  }
  0xd6   : > { %5648 = vmatmul.mubr.bf16.gmra.mrb[4].mxu1 %v18812_v16  ;;  %v18912_v16 = vld [vmem:[%s25331_s3 + $0x3d4] ss:$8 sps:$4 sm:$0xff]  }
  0xd7   : > { %6439 = vmatmul.mubr.bf16.gmra.mrb[4].mxu0 %v18816_v18  ;;  %5723 = vmatpush1.bf16.msra.mxu1 %v18813_v17  ;;  %v18915_v17 = vld [vmem:[%s25331_s3 + $0xad4] ss:$8 sps:$4 sm:$0xff]  }
  0xd8   : > { %6514 = vmatpush1.bf16.msra.mxu0 %v18817_v19  ;;  %5724 = vmatprep.subr.bf16.mxu1 %v18822_v20  ;;  %v18916_v18 = vld [vmem:[%s20894_s20 + $0x5fc] ss:$108 sps:$4 sm:$0xff]   ;;  %v18918_v19 = vld [vmem:[%s20894_s20 + $0x634] ss:$108 sps:$4 sm:$0xff]   ;;  %v18910_v20 = vld [vmem:[%s25331_s3 + $0x3d0] ss:$8 sps:$4 sm:$0xff]  }
  0xd9   : > { %6515 = vmatprep.subr.bf16.mxu0 %v18825_v21  ;;  %5657 = vmatprep.mubr.bf16.mxu1 %v18826_v22  ;;  %v18913_v21 = vld [vmem:[%s25331_s3 + $0xad0] ss:$8 sps:$4 sm:$0xff]   ;;  %v18923_v22 = vld [vmem:[%s25331_s3 + $0x3e4] ss:$8 sps:$4 sm:$0xff]  }
  0xda   : > { %6448 = vmatprep.mubr.bf16.mxu0 %v18828_v23  ;;  %v18927_v23 = vld [vmem:[%s25331_s3 + $0xae4] ss:$8 sps:$4 sm:$0xff]  }
  0xdb   : > { %5725 = vmatpush1.bf16.msra.mxu1 %v18820_v24  ;;  %v18920_v24 = vld [vmem:[%s20894_s20 + $0x5f8] ss:$108 sps:$4 sm:$0xff]  }
  0xdc   : > { %6516 = vmatpush1.bf16.msra.mxu0 %v18823_v25  ;;  %5726 = vmatprep.subr.bf16.mxu1 %v18833_v26  ;;  %v18921_v25 = vld [vmem:[%s25331_s3 + $0x3e0] ss:$8 sps:$4 sm:$0xff]   ;;  %v18924_v26 = vld [vmem:[%s20894_s20 + $0x630] ss:$108 sps:$4 sm:$0xff]  }
  0xdd   : > { %6517 = vmatprep.subr.bf16.mxu0 %v18837_v27  ;;  %v18925_v27 = vld [vmem:[%s25331_s3 + $0xae0] ss:$8 sps:$4 sm:$0xff]  }
  0xde   : > { %5658 = vmatmul.mubr.bf16.gmra.mrb[8].mxu1 %v18830_v28  ;;  %v18930_v28 = vld [vmem:[%s25331_s3 + $0x3f4] ss:$8 sps:$4 sm:$0xff]  }
  0xdf   : > { %6449 = vmatmul.mubr.bf16.gmra.mrb[8].mxu0 %v18834_v30  ;;  %5727 = vmatpush1.bf16.msra.mxu1 %v18831_v29  ;;  %v18933_v29 = vld [vmem:[%s25331_s3 + $0xaf4] ss:$8 sps:$4 sm:$0xff]  }
  0xe0   : > { %6518 = vmatpush1.bf16.msra.mxu0 %v18835_v31  ;;  %5728 = vmatprep.subr.bf16.mxu1 %v18840_v32  ;;  %v18936_v30 = vld [vmem:[%s20894_s20 + $0x1c] ss:$108 sps:$4 sm:$0xff]   ;;  %v18939_v31 = vld [vmem:[%s20894_s20 + $0x54] ss:$108 sps:$4 sm:$0xff]   ;;  %v18928_v32 = vld [vmem:[%s25331_s3 + $0x3f0] ss:$8 sps:$4 sm:$0xff]  }
  0xe1   : > { %6519 = vmatprep.subr.bf16.mxu0 %v18843_v33  ;;  %5667 = vmatprep.mubr.bf16.mxu1 %v18844_v34  ;;  %v18931_v33 = vld [vmem:[%s25331_s3 + $0xaf0] ss:$8 sps:$4 sm:$0xff]   ;;  %v18942_v34 = vld [vmem:[%s25331_s3 + $0x404] ss:$8 sps:$4 sm:$0xff]  }
  0xe2   : > { %6458 = vmatprep.mubr.bf16.mxu0 %v18846_v35  ;;  %v18945_v35 = vld [vmem:[%s25331_s3 + $0xb04] ss:$8 sps:$4 sm:$0xff]  }
  0xe3   : > { %5729 = vmatpush1.bf16.msra.mxu1 %v18838_v36  ;;  %v18934_v36 = vld [vmem:[%s20894_s20 + $0x18] ss:$108 sps:$4 sm:$0xff]  }
  0xe4   : > { %6520 = vmatpush1.bf16.msra.mxu0 %v18841_v37  ;;  %5730 = vmatprep.subr.bf16.mxu1 %v18851_v38  ;;  %v18937_v37 = vld [vmem:[%s20894_s20 + $0x50] ss:$108 sps:$4 sm:$0xff]   ;;  %v18940_v38 = vld [vmem:[%s25331_s3 + $0x400] ss:$8 sps:$4 sm:$0xff]  }
  0xe5   : > { %6521 = vmatprep.subr.bf16.mxu0 %v18855_v39  ;;  %v18943_v39 = vld [vmem:[%s25331_s3 + $0xb00] ss:$8 sps:$4 sm:$0xff]  }
  0xe6   : > { %5668 = vmatmul.mubr.bf16.gmra.mrb[12].mxu1 %v18848_v40  ;;  %v18948_v40 = vld [vmem:[%s25331_s3 + $0x414] ss:$8 sps:$4 sm:$0xff]  }
  0xe7   : > { %6459 = vmatmul.mubr.bf16.gmra.mrb[12].mxu0 %v18852_v42  ;;  %5731 = vmatpush1.bf16.msra.mxu1 %v18849_v41  ;;  %v18951_v41 = vld [vmem:[%s25331_s3 + $0xb14] ss:$8 sps:$4 sm:$0xff]  }
  0xe8   : > { %6522 = vmatpush1.bf16.msra.mxu0 %v18853_v43  ;;  %5732 = vmatprep.subr.bf16.mxu1 %v18858_v44  ;;  %v18952_v42 = vld [vmem:[%s20894_s20 + $0xf4] ss:$108 sps:$4 sm:$0xff]   ;;  %v18954_v43 = vld [vmem:[%s20894_s20 + $0x12c] ss:$108 sps:$4 sm:$0xff]  }
  0xe9   : > { %6523 = vmatprep.subr.bf16.mxu0 %v18861_v45  ;;  %5677 = vmatprep.mubr.bf16.mxu1 %v18862_v46  ;;  %v18946_v44 = vld [vmem:[%s25331_s3 + $0x410] ss:$8 sps:$4 sm:$0xff]   ;;  %v18959_v46 = vld [vmem:[%s25331_s3 + $0x424] ss:$8 sps:$4 sm:$0xff]  }
  0xea   : > { %6468 = vmatprep.mubr.bf16.mxu0 %v18864_v47  ;;  %v18949_v45 = vld [vmem:[%s25331_s3 + $0xb10] ss:$8 sps:$4 sm:$0xff]   ;;  %v18963_v47 = vld [vmem:[%s25331_s3 + $0xb24] ss:$8 sps:$4 sm:$0xff]  }
  0xeb   : > { %5733 = vmatpush1.bf16.msra.mxu1 %v18856_v48  ;;  %v18956_v48 = vld [vmem:[%s20894_s20 + $0xf0] ss:$108 sps:$4 sm:$0xff]  }
  0xec   : > { %6524 = vmatpush1.bf16.msra.mxu0 %v18859_v49  ;;  %5734 = vmatprep.subr.bf16.mxu1 %v18869_v50  ;;  %v18957_v49 = vld [vmem:[%s25331_s3 + $0x420] ss:$8 sps:$4 sm:$0xff]  }
  0xed   : > { %6525 = vmatprep.subr.bf16.mxu0 %v18873_v51  ;;  %v18960_v50 = vld [vmem:[%s20894_s20 + $0x128] ss:$108 sps:$4 sm:$0xff]  }
  0xee   : > { %5678 = vmatmul.mubr.bf16.gmra.mrb[16].mxu1 %v18866_v52  ;;  %v18961_v51 = vld [vmem:[%s25331_s3 + $0xb20] ss:$8 sps:$4 sm:$0xff]   ;;  %v18966_v52 = vld [vmem:[%s25331_s3 + $0x434] ss:$8 sps:$4 sm:$0xff]  }
  0xef   : > { %6469 = vmatmul.mubr.bf16.gmra.mrb[16].mxu0 %v18870_v54  ;;  %5735 = vmatpush1.bf16.msra.mxu1 %v18867_v53  ;;  %v18969_v53 = vld [vmem:[%s25331_s3 + $0xb34] ss:$8 sps:$4 sm:$0xff]   ;;  %v18970_v54 = vld [vmem:[%s20894_s20 + $0x1cc] ss:$108 sps:$4 sm:$0xff]  }
  0xf0   : > { %6526 = vmatpush1.bf16.msra.mxu0 %v18871_v55  ;;  %5736 = vmatprep.subr.bf16.mxu1 %v18876_v56  ;;  %v18972_v55 = vld [vmem:[%s20894_s20 + $0x204] ss:$108 sps:$4 sm:$0xff]  }
  0xf1   : > { %6527 = vmatprep.subr.bf16.mxu0 %v18879_v57  ;;  %5687 = vmatprep.mubr.bf16.mxu1 %v18880_v58  ;;  %v18964_v56 = vld [vmem:[%s25331_s3 + $0x430] ss:$8 sps:$4 sm:$0xff]   ;;  %v18977_v58 = vld [vmem:[%s25331_s3 + $0x444] ss:$8 sps:$4 sm:$0xff]  }
  0xf2   : > { %6478 = vmatprep.mubr.bf16.mxu0 %v18882_v59  ;;  %v18967_v57 = vld [vmem:[%s25331_s3 + $0xb30] ss:$8 sps:$4 sm:$0xff]   ;;  %v18981_v59 = vld [vmem:[%s25331_s3 + $0xb44] ss:$8 sps:$4 sm:$0xff]  }
  0xf3   : > { %5737 = vmatpush1.bf16.msra.mxu1 %v18874_v60  ;;  %v18974_v60 = vld [vmem:[%s20894_s20 + $0x1c8] ss:$108 sps:$4 sm:$0xff]  }
  0xf4   : > { %6528 = vmatpush1.bf16.msra.mxu0 %v18877_v61  ;;  %5738 = vmatprep.subr.bf16.mxu1 %v18887_v62  ;;  %v18975_v61 = vld [vmem:[%s25331_s3 + $0x440] ss:$8 sps:$4 sm:$0xff]  }
  0xf5   : > { %6529 = vmatprep.subr.bf16.mxu0 %v18891_v63  ;;  %v18978_v62 = vld [vmem:[%s20894_s20 + $0x200] ss:$108 sps:$4 sm:$0xff]  }
  0xf6   : > { %5688 = vmatmul.mubr.bf16.gmra.mrb[20].mxu1 %v18884_v0  ;;  %v18979_v63 = vld [vmem:[%s25331_s3 + $0xb40] ss:$8 sps:$4 sm:$0xff]   ;;  %v18984_v0 = vld [vmem:[%s25331_s3 + $0x454] ss:$8 sps:$4 sm:$0xff]  }
  0xf7   : > { %6479 = vmatmul.mubr.bf16.gmra.mrb[20].mxu0 %v18888_v2  ;;  %5739 = vmatpush1.bf16.msra.mxu1 %v18885_v1  ;;  %v18987_v1 = vld [vmem:[%s25331_s3 + $0xb54] ss:$8 sps:$4 sm:$0xff]   ;;  %v18988_v2 = vld [vmem:[%s20894_s20 + $0x2a4] ss:$108 sps:$4 sm:$0xff]  }
  0xf8   : > { %6530 = vmatpush1.bf16.msra.mxu0 %v18889_v3  ;;  %5740 = vmatprep.subr.bf16.mxu1 %v18894_v4  ;;  %v18990_v3 = vld [vmem:[%s20894_s20 + $0x2dc] ss:$108 sps:$4 sm:$0xff]   ;;  %v18982_v4 = vld [vmem:[%s25331_s3 + $0x450] ss:$8 sps:$4 sm:$0xff]  }
  0xf9   : > { %6531 = vmatprep.subr.bf16.mxu0 %v18897_v5  ;;  %5697 = vmatprep.mubr.bf16.mxu1 %v18898_v6  ;;  %v18985_v5 = vld [vmem:[%s25331_s3 + $0xb50] ss:$8 sps:$4 sm:$0xff]   ;;  %v18995_v6 = vld [vmem:[%s25331_s3 + $0x464] ss:$8 sps:$4 sm:$0xff]  }
  0xfa   : > { %6488 = vmatprep.mubr.bf16.mxu0 %v18900_v7  ;;  %v18999_v7 = vld [vmem:[%s25331_s3 + $0xb64] ss:$8 sps:$4 sm:$0xff]  }
  0xfb   : > { %5741 = vmatpush1.bf16.msra.mxu1 %v18892_v8  ;;  %v18992_v8 = vld [vmem:[%s20894_s20 + $0x2a0] ss:$108 sps:$4 sm:$0xff]  }
  0xfc   : > { %6532 = vmatpush1.bf16.msra.mxu0 %v18895_v9  ;;  %5742 = vmatprep.subr.bf16.mxu1 %v18905_v10  ;;  %v18993_v9 = vld [vmem:[%s25331_s3 + $0x460] ss:$8 sps:$4 sm:$0xff]   ;;  %v18996_v10 = vld [vmem:[%s20894_s20 + $0x2d8] ss:$108 sps:$4 sm:$0xff]  }
  0xfd   : > { %6533 = vmatprep.subr.bf16.mxu0 %v18909_v11  ;;  %v18997_v11 = vld [vmem:[%s25331_s3 + $0xb60] ss:$8 sps:$4 sm:$0xff]  }
  0xfe   : > { %5698 = vmatmul.mubr.bf16.gmra.mrb[24].mxu1 %v18902_v12  ;;  %v19002_v12 = vld [vmem:[%s25331_s3 + $0x474] ss:$8 sps:$4 sm:$0xff]  }
  0xff   : > { %6489 = vmatmul.mubr.bf16.gmra.mrb[24].mxu0 %v18906_v14  ;;  %5743 = vmatpush1.bf16.msra.mxu1 %v18903_v13  ;;  %v19005_v13 = vld [vmem:[%s25331_s3 + $0xb74] ss:$8 sps:$4 sm:$0xff]  }
 0x100   : > { %6534 = vmatpush1.bf16.msra.mxu0 %v18907_v15  ;;  %5744 = vmatprep.subr.bf16.mxu1 %v18912_v16  ;;  %v19006_v14 = vld [vmem:[%s20894_s20 + $0x37c] ss:$108 sps:$4 sm:$0xff]   ;;  %v19008_v15 = vld [vmem:[%s20894_s20 + $0x3b4] ss:$108 sps:$4 sm:$0xff]   ;;  %v19000_v16 = vld [vmem:[%s25331_s3 + $0x470] ss:$8 sps:$4 sm:$0xff]  }
 0x101   : > { %6535 = vmatprep.subr.bf16.mxu0 %v18915_v17  ;;  %5707 = vmatprep.mubr.bf16.mxu1 %v18916_v18  ;;  %v19003_v17 = vld [vmem:[%s25331_s3 + $0xb70] ss:$8 sps:$4 sm:$0xff]   ;;  %v19013_v18 = vld [vmem:[%s25331_s3 + $0x484] ss:$8 sps:$4 sm:$0xff]  }
 0x102   : > { %6498 = vmatprep.mubr.bf16.mxu0 %v18918_v19  ;;  %v19017_v19 = vld [vmem:[%s25331_s3 + $0xb84] ss:$8 sps:$4 sm:$0xff]  }
 0x103   : > { %5745 = vmatpush1.bf16.msra.mxu1 %v18910_v20  ;;  %v19010_v20 = vld [vmem:[%s20894_s20 + $0x378] ss:$108 sps:$4 sm:$0xff]  }
 0x104   : > { %6536 = vmatpush1.bf16.msra.mxu0 %v18913_v21  ;;  %5746 = vmatprep.subr.bf16.mxu1 %v18923_v22  ;;  %v19011_v21 = vld [vmem:[%s25331_s3 + $0x480] ss:$8 sps:$4 sm:$0xff]   ;;  %v19014_v22 = vld [vmem:[%s20894_s20 + $0x3b0] ss:$108 sps:$4 sm:$0xff]  }
 0x105   : > { %6537 = vmatprep.subr.bf16.mxu0 %v18927_v23  ;;  %v19015_v23 = vld [vmem:[%s25331_s3 + $0xb80] ss:$8 sps:$4 sm:$0xff]  }
 0x106   : > { %5708 = vmatmul.mubr.bf16.gmra.mrb[28].mxu1 %v18920_v24  ;;  %v19020_v24 = vld [vmem:[%s25331_s3 + $0x494] ss:$8 sps:$4 sm:$0xff]  }
 0x107   : > { %6499 = vmatmul.mubr.bf16.gmra.mrb[28].mxu0 %v18924_v26  ;;  %5747 = vmatpush1.bf16.msra.mxu1 %v18921_v25  ;;  %v19023_v25 = vld [vmem:[%s25331_s3 + $0xb94] ss:$8 sps:$4 sm:$0xff]  }
 0x108   : > { %6538 = vmatpush1.bf16.msra.mxu0 %v18925_v27  ;;  %5748 = vmatprep.subr.bf16.mxu1 %v18930_v28  ;;  %v19024_v26 = vld [vmem:[%s20894_s20 + $0x454] ss:$108 sps:$4 sm:$0xff]   ;;  %v19026_v27 = vld [vmem:[%s20894_s20 + $0x48c] ss:$108 sps:$4 sm:$0xff]  }
 0x109   : > { %6539 = vmatprep.subr.bf16.mxu0 %v18933_v29  ;;  %5750 = vmatprep.mubr.bf16.mxu1 %v18936_v30  ;;  %v19018_v28 = vld [vmem:[%s25331_s3 + $0x490] ss:$8 sps:$4 sm:$0xff]   ;;  %v19031_v30 = vld [vmem:[%s25331_s3 + $0x4a4] ss:$8 sps:$4 sm:$0xff]  }
 0x10a   : > { %6541 = vmatprep.mubr.bf16.mxu0 %v18939_v31  ;;  %v19021_v29 = vld [vmem:[%s25331_s3 + $0xb90] ss:$8 sps:$4 sm:$0xff]   ;;  %v19035_v31 = vld [vmem:[%s25331_s3 + $0xba4] ss:$8 sps:$4 sm:$0xff]  }
 0x10b   : > { %5749 = vmatpush1.bf16.msra.mxu1 %v18928_v32  ;;  %v19028_v32 = vld [vmem:[%s20894_s20 + $0x450] ss:$108 sps:$4 sm:$0xff]  }
 0x10c   : > { %6540 = vmatpush1.bf16.msra.mxu0 %v18931_v33  ;;  %5831 = vmatprep.subr.bf16.mxu1 %v18942_v34  ;;  %v19029_v33 = vld [vmem:[%s25331_s3 + $0x4a0] ss:$8 sps:$4 sm:$0xff]  }
 0x10d   : > { %6622 = vmatprep.subr.bf16.mxu0 %v18945_v35  ;;  %v19032_v34 = vld [vmem:[%s20894_s20 + $0x488] ss:$108 sps:$4 sm:$0xff]  }
 0x10e   : > { %5751 = vmatmul.mubr.bf16.vlgmr.msra.gmra.mrb[0].mxu1 %v18934_v36  ;;  %v19033_v35 = vld [vmem:[%s25331_s3 + $0xba0] ss:$8 sps:$4 sm:$0xff]   ;;  %v19038_v36 = vld [vmem:[%s25331_s3 + $0x4b4] ss:$8 sps:$4 sm:$0xff]  }
 0x10f   : > { %6542 = vmatmul.mubr.bf16.vlgmr.msra.gmra.mrb[0].mxu0 %v18937_v37  ;;  %5832 = vmatpush1.bf16.msra.mxu1 %v18940_v38  ;;  %v19041_v37 = vld [vmem:[%s25331_s3 + $0xbb4] ss:$8 sps:$4 sm:$0xff]   ;;  %v19042_v38 = vld [vmem:[%s20894_s20 + $0x52c] ss:$108 sps:$4 sm:$0xff]  }
 0x110   : > { %6623 = vmatpush1.bf16.msra.mxu0 %v18943_v39  ;;  %5833 = vmatprep.subr.bf16.mxu1 %v18948_v40  ;;  %v19044_v39 = vld [vmem:[%s20894_s20 + $0x564] ss:$108 sps:$4 sm:$0xff]  }
 0x111   : > { %6624 = vmatprep.subr.bf16.mxu0 %v18951_v41  ;;  %5760 = vmatprep.mubr.bf16.mxu1 %v18952_v42  ;;  %v19036_v40 = vld [vmem:[%s25331_s3 + $0x4b0] ss:$8 sps:$4 sm:$0xff]   ;;  %v19049_v42 = vld [vmem:[%s25331_s3 + $0x4c4] ss:$8 sps:$4 sm:$0xff]  }
 0x112   : > { %6551 = vmatprep.mubr.bf16.mxu0 %v18954_v43  ;;  %v19039_v41 = vld [vmem:[%s25331_s3 + $0xbb0] ss:$8 sps:$4 sm:$0xff]   ;;  %v19053_v43 = vld [vmem:[%s25331_s3 + $0xbc4] ss:$8 sps:$4 sm:$0xff]  }
 0x113   : > { %5834 = vmatpush1.bf16.msra.mxu1 %v18946_v44  ;;  %v19046_v44 = vld [vmem:[%s20894_s20 + $0x528] ss:$108 sps:$4 sm:$0xff]  }
 0x114   : > { %6625 = vmatpush1.bf16.msra.mxu0 %v18949_v45  ;;  %5835 = vmatprep.subr.bf16.mxu1 %v18959_v46  ;;  %v19047_v45 = vld [vmem:[%s25331_s3 + $0x4c0] ss:$8 sps:$4 sm:$0xff]  }
 0x115   : > { %6626 = vmatprep.subr.bf16.mxu0 %v18963_v47  ;;  %v19050_v46 = vld [vmem:[%s20894_s20 + $0x560] ss:$108 sps:$4 sm:$0xff]  }
 0x116   : > { %5761 = vmatmul.mubr.bf16.gmra.mrb[4].mxu1 %v18956_v48  ;;  %v19051_v47 = vld [vmem:[%s25331_s3 + $0xbc0] ss:$8 sps:$4 sm:$0xff]   ;;  %v19056_v48 = vld [vmem:[%s25331_s3 + $0x4d4] ss:$8 sps:$4 sm:$0xff]  }
 0x117   : > { %6552 = vmatmul.mubr.bf16.gmra.mrb[4].mxu0 %v18960_v50  ;;  %5836 = vmatpush1.bf16.msra.mxu1 %v18957_v49  ;;  %v19059_v49 = vld [vmem:[%s25331_s3 + $0xbd4] ss:$8 sps:$4 sm:$0xff]   ;;  %v19060_v50 = vld [vmem:[%s20894_s20 + $0x604] ss:$108 sps:$4 sm:$0xff]  }
 0x118   : > { %6627 = vmatpush1.bf16.msra.mxu0 %v18961_v51  ;;  %5837 = vmatprep.subr.bf16.mxu1 %v18966_v52  ;;  %v19062_v51 = vld [vmem:[%s20894_s20 + $0x63c] ss:$108 sps:$4 sm:$0xff]   ;;  %v19054_v52 = vld [vmem:[%s25331_s3 + $0x4d0] ss:$8 sps:$4 sm:$0xff]  }
 0x119   : > { %6628 = vmatprep.subr.bf16.mxu0 %v18969_v53  ;;  %5770 = vmatprep.mubr.bf16.mxu1 %v18970_v54  ;;  %v19057_v53 = vld [vmem:[%s25331_s3 + $0xbd0] ss:$8 sps:$4 sm:$0xff]   ;;  %v19067_v54 = vld [vmem:[%s25331_s3 + $0x4e4] ss:$8 sps:$4 sm:$0xff]  }
 0x11a   : > { %6561 = vmatprep.mubr.bf16.mxu0 %v18972_v55  ;;  %v19071_v55 = vld [vmem:[%s25331_s3 + $0xbe4] ss:$8 sps:$4 sm:$0xff]  }
 0x11b   : > { %5838 = vmatpush1.bf16.msra.mxu1 %v18964_v56  ;;  %v19064_v56 = vld [vmem:[%s20894_s20 + $0x600] ss:$108 sps:$4 sm:$0xff]  }
 0x11c   : > { %6629 = vmatpush1.bf16.msra.mxu0 %v18967_v57  ;;  %5839 = vmatprep.subr.bf16.mxu1 %v18977_v58  ;;  %v19065_v57 = vld [vmem:[%s25331_s3 + $0x4e0] ss:$8 sps:$4 sm:$0xff]   ;;  %v19068_v58 = vld [vmem:[%s20894_s20 + $0x638] ss:$108 sps:$4 sm:$0xff]  }
 0x11d   : > { %6630 = vmatprep.subr.bf16.mxu0 %v18981_v59  ;;  %v19069_v59 = vld [vmem:[%s25331_s3 + $0xbe0] ss:$8 sps:$4 sm:$0xff]  }
 0x11e   : > { %5771 = vmatmul.mubr.bf16.gmra.mrb[8].mxu1 %v18974_v60  ;;  %v19074_v60 = vld [vmem:[%s25331_s3 + $0x4f4] ss:$8 sps:$4 sm:$0xff]  }
 0x11f   : > { %6562 = vmatmul.mubr.bf16.gmra.mrb[8].mxu0 %v18978_v62  ;;  %5840 = vmatpush1.bf16.msra.mxu1 %v18975_v61  ;;  %v19077_v61 = vld [vmem:[%s25331_s3 + $0xbf4] ss:$8 sps:$4 sm:$0xff]   ;;  %v19080_v62 = vld [vmem:[%s20894_s20 + $0x24] ss:$108 sps:$4 sm:$0xff]  }
 0x120   : > { %6631 = vmatpush1.bf16.msra.mxu0 %v18979_v63  ;;  %5841 = vmatprep.subr.bf16.mxu1 %v18984_v0  ;;  %v19083_v63 = vld [vmem:[%s20894_s20 + $0x5c] ss:$108 sps:$4 sm:$0xff]   ;;  %v19072_v0 = vld [vmem:[%s25331_s3 + $0x4f0] ss:$8 sps:$4 sm:$0xff]  }
 0x121   : > { %6632 = vmatprep.subr.bf16.mxu0 %v18987_v1  ;;  %5780 = vmatprep.mubr.bf16.mxu1 %v18988_v2  ;;  %v19075_v1 = vld [vmem:[%s25331_s3 + $0xbf0] ss:$8 sps:$4 sm:$0xff]   ;;  %v19086_v2 = vld [vmem:[%s25331_s3 + $0x504] ss:$8 sps:$4 sm:$0xff]  }
 0x122   : > { %6571 = vmatprep.mubr.bf16.mxu0 %v18990_v3  ;;  %v19089_v3 = vld [vmem:[%s25331_s3 + $0xc04] ss:$8 sps:$4 sm:$0xff]  }
 0x123   : > { %5842 = vmatpush1.bf16.msra.mxu1 %v18982_v4  ;;  %v19078_v4 = vld [vmem:[%s20894_s20 + $0x20] ss:$108 sps:$4 sm:$0xff]  }
 0x124   : > { %6633 = vmatpush1.bf16.msra.mxu0 %v18985_v5  ;;  %5843 = vmatprep.subr.bf16.mxu1 %v18995_v6  ;;  %v19081_v5 = vld [vmem:[%s20894_s20 + $0x58] ss:$108 sps:$4 sm:$0xff]   ;;  %v19084_v6 = vld [vmem:[%s25331_s3 + $0x500] ss:$8 sps:$4 sm:$0xff]  }
 0x125   : > { %6634 = vmatprep.subr.bf16.mxu0 %v18999_v7  ;;  %v19087_v7 = vld [vmem:[%s25331_s3 + $0xc00] ss:$8 sps:$4 sm:$0xff]  }
 0x126   : > { %5781 = vmatmul.mubr.bf16.gmra.mrb[12].mxu1 %v18992_v8  ;;  %v19092_v8 = vld [vmem:[%s25331_s3 + $0x514] ss:$8 sps:$4 sm:$0xff]  }
 0x127   : > { %6572 = vmatmul.mubr.bf16.gmra.mrb[12].mxu0 %v18996_v10  ;;  %5844 = vmatpush1.bf16.msra.mxu1 %v18993_v9  ;;  %v19095_v9 = vld [vmem:[%s25331_s3 + $0xc14] ss:$8 sps:$4 sm:$0xff]  }
 0x128   : > { %6635 = vmatpush1.bf16.msra.mxu0 %v18997_v11  ;;  %5845 = vmatprep.subr.bf16.mxu1 %v19002_v12  ;;  %v19096_v10 = vld [vmem:[%s20894_s20 + $0xfc] ss:$108 sps:$4 sm:$0xff]   ;;  %v19098_v11 = vld [vmem:[%s20894_s20 + $0x134] ss:$108 sps:$4 sm:$0xff]   ;;  %v19090_v12 = vld [vmem:[%s25331_s3 + $0x510] ss:$8 sps:$4 sm:$0xff]  }
 0x129   : > { %6636 = vmatprep.subr.bf16.mxu0 %v19005_v13  ;;  %5790 = vmatprep.mubr.bf16.mxu1 %v19006_v14  ;;  %v19093_v13 = vld [vmem:[%s25331_s3 + $0xc10] ss:$8 sps:$4 sm:$0xff]   ;;  %v19103_v14 = vld [vmem:[%s25331_s3 + $0x524] ss:$8 sps:$4 sm:$0xff]  }
 0x12a   : > { %6581 = vmatprep.mubr.bf16.mxu0 %v19008_v15  ;;  %v19107_v15 = vld [vmem:[%s25331_s3 + $0xc24] ss:$8 sps:$4 sm:$0xff]  }
 0x12b   : > { %5846 = vmatpush1.bf16.msra.mxu1 %v19000_v16  ;;  %v19100_v16 = vld [vmem:[%s20894_s20 + $0xf8] ss:$108 sps:$4 sm:$0xff]  }
 0x12c   : > { %6637 = vmatpush1.bf16.msra.mxu0 %v19003_v17  ;;  %5847 = vmatprep.subr.bf16.mxu1 %v19013_v18  ;;  %v19101_v17 = vld [vmem:[%s25331_s3 + $0x520] ss:$8 sps:$4 sm:$0xff]   ;;  %v19104_v18 = vld [vmem:[%s20894_s20 + $0x130] ss:$108 sps:$4 sm:$0xff]  }
 0x12d   : > { %6638 = vmatprep.subr.bf16.mxu0 %v19017_v19  ;;  %v19105_v19 = vld [vmem:[%s25331_s3 + $0xc20] ss:$8 sps:$4 sm:$0xff]  }
 0x12e   : > { %5791 = vmatmul.mubr.bf16.gmra.mrb[16].mxu1 %v19010_v20  ;;  %v19110_v20 = vld [vmem:[%s25331_s3 + $0x534] ss:$8 sps:$4 sm:$0xff]  }
 0x12f   : > { %6582 = vmatmul.mubr.bf16.gmra.mrb[16].mxu0 %v19014_v22  ;;  %5848 = vmatpush1.bf16.msra.mxu1 %v19011_v21  ;;  %v19113_v21 = vld [vmem:[%s25331_s3 + $0xc34] ss:$8 sps:$4 sm:$0xff]  }
 0x130   : > { %6639 = vmatpush1.bf16.msra.mxu0 %v19015_v23  ;;  %5849 = vmatprep.subr.bf16.mxu1 %v19020_v24  ;;  %v19114_v22 = vld [vmem:[%s20894_s20 + $0x1d4] ss:$108 sps:$4 sm:$0xff]   ;;  %v19116_v23 = vld [vmem:[%s20894_s20 + $0x20c] ss:$108 sps:$4 sm:$0xff]  }
 0x131   : > { %6640 = vmatprep.subr.bf16.mxu0 %v19023_v25  ;;  %5800 = vmatprep.mubr.bf16.mxu1 %v19024_v26  ;;  %v19108_v24 = vld [vmem:[%s25331_s3 + $0x530] ss:$8 sps:$4 sm:$0xff]   ;;  %v19121_v26 = vld [vmem:[%s25331_s3 + $0x544] ss:$8 sps:$4 sm:$0xff]  }
 0x132   : > { %6591 = vmatprep.mubr.bf16.mxu0 %v19026_v27  ;;  %v19111_v25 = vld [vmem:[%s25331_s3 + $0xc30] ss:$8 sps:$4 sm:$0xff]   ;;  %v19125_v27 = vld [vmem:[%s25331_s3 + $0xc44] ss:$8 sps:$4 sm:$0xff]  }
 0x133   : > { %5850 = vmatpush1.bf16.msra.mxu1 %v19018_v28  ;;  %v19118_v28 = vld [vmem:[%s20894_s20 + $0x1d0] ss:$108 sps:$4 sm:$0xff]  }
 0x134   : > { %6641 = vmatpush1.bf16.msra.mxu0 %v19021_v29  ;;  %5851 = vmatprep.subr.bf16.mxu1 %v19031_v30  ;;  %v19119_v29 = vld [vmem:[%s25331_s3 + $0x540] ss:$8 sps:$4 sm:$0xff]  }
 0x135   : > { %6642 = vmatprep.subr.bf16.mxu0 %v19035_v31  ;;  %v19122_v30 = vld [vmem:[%s20894_s20 + $0x208] ss:$108 sps:$4 sm:$0xff]  }
 0x136   : > { %5801 = vmatmul.mubr.bf16.gmra.mrb[20].mxu1 %v19028_v32  ;;  %v19123_v31 = vld [vmem:[%s25331_s3 + $0xc40] ss:$8 sps:$4 sm:$0xff]   ;;  %v19128_v32 = vld [vmem:[%s25331_s3 + $0x554] ss:$8 sps:$4 sm:$0xff]  }
 0x137   : > { %6592 = vmatmul.mubr.bf16.gmra.mrb[20].mxu0 %v19032_v34  ;;  %5852 = vmatpush1.bf16.msra.mxu1 %v19029_v33  ;;  %v19131_v33 = vld [vmem:[%s25331_s3 + $0xc54] ss:$8 sps:$4 sm:$0xff]   ;;  %v19132_v34 = vld [vmem:[%s20894_s20 + $0x2ac] ss:$108 sps:$4 sm:$0xff]  }
 0x138   : > { %6643 = vmatpush1.bf16.msra.mxu0 %v19033_v35  ;;  %5853 = vmatprep.subr.bf16.mxu1 %v19038_v36  ;;  %v19134_v35 = vld [vmem:[%s20894_s20 + $0x2e4] ss:$108 sps:$4 sm:$0xff]  }
 0x139   : > { %6644 = vmatprep.subr.bf16.mxu0 %v19041_v37  ;;  %5810 = vmatprep.mubr.bf16.mxu1 %v19042_v38  ;;  %v19126_v36 = vld [vmem:[%s25331_s3 + $0x550] ss:$8 sps:$4 sm:$0xff]   ;;  %v19139_v38 = vld [vmem:[%s25331_s3 + $0x564] ss:$8 sps:$4 sm:$0xff]  }
 0x13a   : > { %6601 = vmatprep.mubr.bf16.mxu0 %v19044_v39  ;;  %v19129_v37 = vld [vmem:[%s25331_s3 + $0xc50] ss:$8 sps:$4 sm:$0xff]   ;;  %v19143_v39 = vld [vmem:[%s25331_s3 + $0xc64] ss:$8 sps:$4 sm:$0xff]  }
 0x13b   : > { %5854 = vmatpush1.bf16.msra.mxu1 %v19036_v40  ;;  %v19136_v40 = vld [vmem:[%s20894_s20 + $0x2a8] ss:$108 sps:$4 sm:$0xff]  }
 0x13c   : > { %6645 = vmatpush1.bf16.msra.mxu0 %v19039_v41  ;;  %5855 = vmatprep.subr.bf16.mxu1 %v19049_v42  ;;  %v19137_v41 = vld [vmem:[%s25331_s3 + $0x560] ss:$8 sps:$4 sm:$0xff]  }
 0x13d   : > { %6646 = vmatprep.subr.bf16.mxu0 %v19053_v43  ;;  %v19140_v42 = vld [vmem:[%s20894_s20 + $0x2e0] ss:$108 sps:$4 sm:$0xff]  }
 0x13e   : > { %5811 = vmatmul.mubr.bf16.gmra.mrb[24].mxu1 %v19046_v44  ;;  %v19141_v43 = vld [vmem:[%s25331_s3 + $0xc60] ss:$8 sps:$4 sm:$0xff]   ;;  %v19146_v44 = vld [vmem:[%s25331_s3 + $0x574] ss:$8 sps:$4 sm:$0xff]  }
 0x13f   : > { %6602 = vmatmul.mubr.bf16.gmra.mrb[24].mxu0 %v19050_v46  ;;  %5856 = vmatpush1.bf16.msra.mxu1 %v19047_v45  ;;  %v19149_v45 = vld [vmem:[%s25331_s3 + $0xc74] ss:$8 sps:$4 sm:$0xff]   ;;  %v19150_v46 = vld [vmem:[%s20894_s20 + $0x384] ss:$108 sps:$4 sm:$0xff]  }
 0x140   : > { %6647 = vmatpush1.bf16.msra.mxu0 %v19051_v47  ;;  %5857 = vmatprep.subr.bf16.mxu1 %v19056_v48  ;;  %v19152_v47 = vld [vmem:[%s20894_s20 + $0x3bc] ss:$108 sps:$4 sm:$0xff]   ;;  %v19144_v48 = vld [vmem:[%s25331_s3 + $0x570] ss:$8 sps:$4 sm:$0xff]  }
 0x141   : > { %6648 = vmatprep.subr.bf16.mxu0 %v19059_v49  ;;  %5820 = vmatprep.mubr.bf16.mxu1 %v19060_v50  ;;  %v19147_v49 = vld [vmem:[%s25331_s3 + $0xc70] ss:$8 sps:$4 sm:$0xff]   ;;  %v19157_v50 = vld [vmem:[%s25331_s3 + $0x584] ss:$8 sps:$4 sm:$0xff]  }
 0x142   : > { %6611 = vmatprep.mubr.bf16.mxu0 %v19062_v51  ;;  %v19161_v51 = vld [vmem:[%s25331_s3 + $0xc84] ss:$8 sps:$4 sm:$0xff]  }
 0x143   : > { %5858 = vmatpush1.bf16.msra.mxu1 %v19054_v52  ;;  %v19154_v52 = vld [vmem:[%s20894_s20 + $0x380] ss:$108 sps:$4 sm:$0xff]  }
 0x144   : > { %6649 = vmatpush1.bf16.msra.mxu0 %v19057_v53  ;;  %5859 = vmatprep.subr.bf16.mxu1 %v19067_v54  ;;  %v19155_v53 = vld [vmem:[%s25331_s3 + $0x580] ss:$8 sps:$4 sm:$0xff]   ;;  %v19158_v54 = vld [vmem:[%s20894_s20 + $0x3b8] ss:$108 sps:$4 sm:$0xff]  }
 0x145   : > { %6650 = vmatprep.subr.bf16.mxu0 %v19071_v55  ;;  %v19159_v55 = vld [vmem:[%s25331_s3 + $0xc80] ss:$8 sps:$4 sm:$0xff]  }
 0x146   : > { %5821 = vmatmul.mubr.bf16.gmra.mrb[28].mxu1 %v19064_v56  ;;  %v19164_v56 = vld [vmem:[%s25331_s3 + $0x594] ss:$8 sps:$4 sm:$0xff]  }
 0x147   : > { %6612 = vmatmul.mubr.bf16.gmra.mrb[28].mxu0 %v19068_v58  ;;  %5860 = vmatpush1.bf16.msra.mxu1 %v19065_v57  ;;  %v19167_v57 = vld [vmem:[%s25331_s3 + $0xc94] ss:$8 sps:$4 sm:$0xff]  }
 0x148   : > { %6651 = vmatpush1.bf16.msra.mxu0 %v19069_v59  ;;  %5861 = vmatprep.subr.bf16.mxu1 %v19074_v60  ;;  %v19168_v58 = vld [vmem:[%s20894_s20 + $0x45c] ss:$108 sps:$4 sm:$0xff]   ;;  %v19170_v59 = vld [vmem:[%s20894_s20 + $0x494] ss:$108 sps:$4 sm:$0xff]   ;;  %v19162_v60 = vld [vmem:[%s25331_s3 + $0x590] ss:$8 sps:$4 sm:$0xff]  }
 0x149   : > { %6652 = vmatprep.subr.bf16.mxu0 %v19077_v61  ;;  %5863 = vmatprep.mubr.bf16.mxu1 %v19080_v62  ;;  %v19165_v61 = vld [vmem:[%s25331_s3 + $0xc90] ss:$8 sps:$4 sm:$0xff]   ;;  %v19175_v62 = vld [vmem:[%s25331_s3 + $0x5a4] ss:$8 sps:$4 sm:$0xff]  }
 0x14a   : > { %6654 = vmatprep.mubr.bf16.mxu0 %v19083_v63  ;;  %v19179_v63 = vld [vmem:[%s25331_s3 + $0xca4] ss:$8 sps:$4 sm:$0xff]  }
 0x14b   : > { %5862 = vmatpush1.bf16.msra.mxu1 %v19072_v0  ;;  %v19172_v0 = vld [vmem:[%s20894_s20 + $0x458] ss:$108 sps:$4 sm:$0xff]  }
 0x14c   : > { %6653 = vmatpush1.bf16.msra.mxu0 %v19075_v1  ;;  %5944 = vmatprep.subr.bf16.mxu1 %v19086_v2  ;;  %v19173_v1 = vld [vmem:[%s25331_s3 + $0x5a0] ss:$8 sps:$4 sm:$0xff]   ;;  %v19176_v2 = vld [vmem:[%s20894_s20 + $0x490] ss:$108 sps:$4 sm:$0xff]  }
 0x14d   : > { %6735 = vmatprep.subr.bf16.mxu0 %v19089_v3  ;;  %v19177_v3 = vld [vmem:[%s25331_s3 + $0xca0] ss:$8 sps:$4 sm:$0xff]  }
 0x14e   : > { %5864 = vmatmul.mubr.bf16.vlgmr.msra.gmra.mrb[0].mxu1 %v19078_v4  ;;  %v19182_v4 = vld [vmem:[%s25331_s3 + $0x5b4] ss:$8 sps:$4 sm:$0xff]  }
 0x14f   : > { %6655 = vmatmul.mubr.bf16.vlgmr.msra.gmra.mrb[0].mxu0 %v19081_v5  ;;  %5945 = vmatpush1.bf16.msra.mxu1 %v19084_v6  ;;  %v19185_v5 = vld [vmem:[%s25331_s3 + $0xcb4] ss:$8 sps:$4 sm:$0xff]  }
 0x150   : > { %6736 = vmatpush1.bf16.msra.mxu0 %v19087_v7  ;;  %5946 = vmatprep.subr.bf16.mxu1 %v19092_v8  ;;  %v19186_v6 = vld [vmem:[%s20894_s20 + $0x534] ss:$108 sps:$4 sm:$0xff]   ;;  %v19188_v7 = vld [vmem:[%s20894_s20 + $0x56c] ss:$108 sps:$4 sm:$0xff]  }
 0x151   : > { %6737 = vmatprep.subr.bf16.mxu0 %v19095_v9  ;;  %5873 = vmatprep.mubr.bf16.mxu1 %v19096_v10  ;;  %v19180_v8 = vld [vmem:[%s25331_s3 + $0x5b0] ss:$8 sps:$4 sm:$0xff]   ;;  %v19193_v10 = vld [vmem:[%s25331_s3 + $0x5c4] ss:$8 sps:$4 sm:$0xff]  }
 0x152   : > { %6664 = vmatprep.mubr.bf16.mxu0 %v19098_v11  ;;  %v19183_v9 = vld [vmem:[%s25331_s3 + $0xcb0] ss:$8 sps:$4 sm:$0xff]  }
 0x153   : > { %5947 = vmatpush1.bf16.msra.mxu1 %v19090_v12  ;;  %v19190_v11 = vld [vmem:[%s20894_s20 + $0x530] ss:$108 sps:$4 sm:$0xff]   ;;  %v19197_v12 = vld [vmem:[%s25331_s3 + $0xcc4] ss:$8 sps:$4 sm:$0xff]  }
 0x154   : > { %6738 = vmatpush1.bf16.msra.mxu0 %v19093_v13  ;;  %5948 = vmatprep.subr.bf16.mxu1 %v19103_v14  ;;  %v19191_v13 = vld [vmem:[%s25331_s3 + $0x5c0] ss:$8 sps:$4 sm:$0xff]  }
 0x155   : > { %6739 = vmatprep.subr.bf16.mxu0 %v19107_v15  ;;  %v19194_v14 = vld [vmem:[%s20894_s20 + $0x568] ss:$108 sps:$4 sm:$0xff]  }
 0x156   : > { %5874 = vmatmul.mubr.bf16.gmra.mrb[4].mxu1 %v19100_v16  ;;  %v19195_v15 = vld [vmem:[%s25331_s3 + $0xcc0] ss:$8 sps:$4 sm:$0xff]   ;;  %v19200_v16 = vld [vmem:[%s25331_s3 + $0x5d4] ss:$8 sps:$4 sm:$0xff]  }
 0x157   : > { %6665 = vmatmul.mubr.bf16.gmra.mrb[4].mxu0 %v19104_v18  ;;  %5949 = vmatpush1.bf16.msra.mxu1 %v19101_v17  ;;  %v19203_v17 = vld [vmem:[%s25331_s3 + $0xcd4] ss:$8 sps:$4 sm:$0xff]   ;;  %v19204_v18 = vld [vmem:[%s20894_s20 + $0x60c] ss:$108 sps:$4 sm:$0xff]  }
 0x158   : > { %6740 = vmatpush1.bf16.msra.mxu0 %v19105_v19  ;;  %5950 = vmatprep.subr.bf16.mxu1 %v19110_v20  ;;  %v19206_v19 = vld [vmem:[%s20894_s20 + $0x644] ss:$108 sps:$4 sm:$0xff]  }
 0x159   : > { %6741 = vmatprep.subr.bf16.mxu0 %v19113_v21  ;;  %5883 = vmatprep.mubr.bf16.mxu1 %v19114_v22  ;;  %v19198_v20 = vld [vmem:[%s25331_s3 + $0x5d0] ss:$8 sps:$4 sm:$0xff]   ;;  %v19211_v22 = vld [vmem:[%s25331_s3 + $0x5e4] ss:$8 sps:$4 sm:$0xff]  }
 0x15a   : > { %6674 = vmatprep.mubr.bf16.mxu0 %v19116_v23  ;;  %v19201_v21 = vld [vmem:[%s25331_s3 + $0xcd0] ss:$8 sps:$4 sm:$0xff]   ;;  %v19208_v23 = vld [vmem:[%s20894_s20 + $0x608] ss:$108 sps:$4 sm:$0xff]  }
 0x15b   : > { %5951 = vmatpush1.bf16.msra.mxu1 %v19108_v24  ;;  %v19215_v24 = vld [vmem:[%s25331_s3 + $0xce4] ss:$8 sps:$4 sm:$0xff]  }
 0x15c   : > { %6742 = vmatpush1.bf16.msra.mxu0 %v19111_v25  ;;  %5952 = vmatprep.subr.bf16.mxu1 %v19121_v26  ;;  %v19209_v25 = vld [vmem:[%s25331_s3 + $0x5e0] ss:$8 sps:$4 sm:$0xff]  }
 0x15d   : > { %6743 = vmatprep.subr.bf16.mxu0 %v19125_v27  ;;  %v19212_v26 = vld [vmem:[%s20894_s20 + $0x640] ss:$108 sps:$4 sm:$0xff]  }
 0x15e   : > { %5884 = vmatmul.mubr.bf16.gmra.mrb[8].mxu1 %v19118_v28  ;;  %v19213_v27 = vld [vmem:[%s25331_s3 + $0xce0] ss:$8 sps:$4 sm:$0xff]   ;;  %v19218_v28 = vld [vmem:[%s25331_s3 + $0x5f4] ss:$8 sps:$4 sm:$0xff]  }
 0x15f   : > { %6675 = vmatmul.mubr.bf16.gmra.mrb[8].mxu0 %v19122_v30  ;;  %5953 = vmatpush1.bf16.msra.mxu1 %v19119_v29  ;;  %v19221_v29 = vld [vmem:[%s25331_s3 + $0xcf4] ss:$8 sps:$4 sm:$0xff]   ;;  %v19224_v30 = vld [vmem:[%s20894_s20 + $0x2c] ss:$108 sps:$4 sm:$0xff]  }
 0x160   : > { %6744 = vmatpush1.bf16.msra.mxu0 %v19123_v31  ;;  %5954 = vmatprep.subr.bf16.mxu1 %v19128_v32  ;;  %v19227_v31 = vld [vmem:[%s20894_s20 + $0x64] ss:$108 sps:$4 sm:$0xff]  }
 0x161   : > { %6745 = vmatprep.subr.bf16.mxu0 %v19131_v33  ;;  %5893 = vmatprep.mubr.bf16.mxu1 %v19132_v34  ;;  %v19216_v32 = vld [vmem:[%s25331_s3 + $0x5f0] ss:$8 sps:$4 sm:$0xff]   ;;  %v19230_v34 = vld [vmem:[%s25331_s3 + $0x604] ss:$8 sps:$4 sm:$0xff]  }
 0x162   : > { %6684 = vmatprep.mubr.bf16.mxu0 %v19134_v35  ;;  %v19219_v33 = vld [vmem:[%s25331_s3 + $0xcf0] ss:$8 sps:$4 sm:$0xff]   ;;  %v19233_v35 = vld [vmem:[%s25331_s3 + $0xd04] ss:$8 sps:$4 sm:$0xff]  }
 0x163   : > { %5955 = vmatpush1.bf16.msra.mxu1 %v19126_v36  ;;  %v19222_v36 = vld [vmem:[%s20894_s20 + $0x28] ss:$108 sps:$4 sm:$0xff]  }
 0x164   : > { %6746 = vmatpush1.bf16.msra.mxu0 %v19129_v37  ;;  %5956 = vmatprep.subr.bf16.mxu1 %v19139_v38  ;;  %v19225_v37 = vld [vmem:[%s20894_s20 + $0x60] ss:$108 sps:$4 sm:$0xff]  }
 0x165   : > { %6747 = vmatprep.subr.bf16.mxu0 %v19143_v39  ;;  %v19228_v38 = vld [vmem:[%s25331_s3 + $0x600] ss:$8 sps:$4 sm:$0xff]  }
 0x166   : > { %5894 = vmatmul.mubr.bf16.gmra.mrb[12].mxu1 %v19136_v40  ;;  %v19231_v39 = vld [vmem:[%s25331_s3 + $0xd00] ss:$8 sps:$4 sm:$0xff]   ;;  %v19236_v40 = vld [vmem:[%s25331_s3 + $0x614] ss:$8 sps:$4 sm:$0xff]  }
 0x167   : > { %6685 = vmatmul.mubr.bf16.gmra.mrb[12].mxu0 %v19140_v42  ;;  %5957 = vmatpush1.bf16.msra.mxu1 %v19137_v41  ;;  %v19237_v41 = vld [vmem:[%s20894_s20 + $0x104] ss:$108 sps:$4 sm:$0xff]   ;;  %v19239_v42 = vld [vmem:[%s20894_s20 + $0x13c] ss:$108 sps:$4 sm:$0xff]  }
 0x168   : > { %6748 = vmatpush1.bf16.msra.mxu0 %v19141_v43  ;;  %5958 = vmatprep.subr.bf16.mxu1 %v19146_v44  ;;  %v19248_v43 = vld [vmem:[%s25331_s3 + $0xd14] ss:$8 sps:$4 sm:$0xff]   ;;  %v19234_v44 = vld [vmem:[%s25331_s3 + $0x610] ss:$8 sps:$4 sm:$0xff]  }
 0x169   : > { %6749 = vmatprep.subr.bf16.mxu0 %v19149_v45  ;;  %5903 = vmatprep.mubr.bf16.mxu1 %v19150_v46  ;;  %v19244_v45 = vld [vmem:[%s25331_s3 + $0x624] ss:$8 sps:$4 sm:$0xff]   ;;  %v19246_v46 = vld [vmem:[%s25331_s3 + $0xd10] ss:$8 sps:$4 sm:$0xff]  }
 0x16a   : > { %6694 = vmatprep.mubr.bf16.mxu0 %v19152_v47  ;;  %v19263_v47 = vld [vmem:[%s25331_s3 + $0xd24] ss:$8 sps:$4 sm:$0xff]  }
 0x16b   : > { %5959 = vmatpush1.bf16.msra.mxu1 %v19144_v48  ;;  %v19241_v48 = vld [vmem:[%s20894_s20 + $0x100] ss:$108 sps:$4 sm:$0xff]  }
 0x16c   : > { %6750 = vmatpush1.bf16.msra.mxu0 %v19147_v49  ;;  %5960 = vmatprep.subr.bf16.mxu1 %v19157_v50  ;;  %v19242_v49 = vld [vmem:[%s25331_s3 + $0x620] ss:$8 sps:$4 sm:$0xff]   ;;  %v19245_v50 = vld [vmem:[%s20894_s20 + $0x138] ss:$108 sps:$4 sm:$0xff]  }
 0x16d   : > { %6751 = vmatprep.subr.bf16.mxu0 %v19161_v51  ;;  %v19251_v51 = vld [vmem:[%s25331_s3 + $0x634] ss:$8 sps:$4 sm:$0xff]  }
 0x16e   : > { %5904 = vmatmul.mubr.bf16.gmra.mrb[16].mxu1 %v19154_v52  ;;  %v19252_v52 = vld [vmem:[%s20894_s20 + $0x1dc] ss:$108 sps:$4 sm:$0xff]  }
 0x16f   : > { %6695 = vmatmul.mubr.bf16.gmra.mrb[16].mxu0 %v19158_v54  ;;  %5961 = vmatpush1.bf16.msra.mxu1 %v19155_v53  ;;  %v19254_v53 = vld [vmem:[%s20894_s20 + $0x214] ss:$108 sps:$4 sm:$0xff]  }
 0x170   : > { %6752 = vmatpush1.bf16.msra.mxu0 %v19159_v55  ;;  %5962 = vmatprep.subr.bf16.mxu1 %v19164_v56  ;;  %v19261_v54 = vld [vmem:[%s25331_s3 + $0xd20] ss:$8 sps:$4 sm:$0xff]   ;;  %v19278_v55 = vld [vmem:[%s25331_s3 + $0xd34] ss:$8 sps:$4 sm:$0xff]   ;;  %v19249_v56 = vld [vmem:[%s25331_s3 + $0x630] ss:$8 sps:$4 sm:$0xff]  }
 0x171   : > { %6753 = vmatprep.subr.bf16.mxu0 %v19167_v57  ;;  %5913 = vmatprep.mubr.bf16.mxu1 %v19168_v58  ;;  %v19256_v57 = vld [vmem:[%s20894_s20 + $0x1d8] ss:$108 sps:$4 sm:$0xff]  }
 0x172   : > { %6704 = vmatprep.mubr.bf16.mxu0 %v19170_v59  ;;  %v19259_v58 = vld [vmem:[%s25331_s3 + $0x644] ss:$8 sps:$4 sm:$0xff]   ;;  %v19276_v59 = vld [vmem:[%s25331_s3 + $0xd30] ss:$8 sps:$4 sm:$0xff]  }
 0x173   : > { %5963 = vmatpush1.bf16.msra.mxu1 %v19162_v60  ;;  %v19257_v60 = vld [vmem:[%s25331_s3 + $0x640] ss:$8 sps:$4 sm:$0xff]  }
 0x174   : > { %6754 = vmatpush1.bf16.msra.mxu0 %v19165_v61  ;;  %5964 = vmatprep.subr.bf16.mxu1 %v19175_v62  ;;  %v19260_v61 = vld [vmem:[%s20894_s20 + $0x210] ss:$108 sps:$4 sm:$0xff]  }
 0x175   : > { %6755 = vmatprep.subr.bf16.mxu0 %v19179_v63  ;;  %v19266_v62 = vld [vmem:[%s25331_s3 + $0x654] ss:$8 sps:$4 sm:$0xff]  }
 0x176   : > { %5914 = vmatmul.mubr.bf16.gmra.mrb[20].mxu1 %v19172_v0  ;;  %v19267_v63 = vld [vmem:[%s20894_s20 + $0x2b4] ss:$108 sps:$4 sm:$0xff]   ;;  %v19269_v0 = vld [vmem:[%s20894_s20 + $0x2ec] ss:$108 sps:$4 sm:$0xff]  }
 0x177   : > { %6705 = vmatmul.mubr.bf16.gmra.mrb[20].mxu0 %v19176_v2  ;;  %5965 = vmatpush1.bf16.msra.mxu1 %v19173_v1  ;;  %v19293_v1 = vld [vmem:[%s25331_s3 + $0xd44] ss:$8 sps:$4 sm:$0xff]   ;;  %v19291_v2 = vld [vmem:[%s25331_s3 + $0xd40] ss:$8 sps:$4 sm:$0xff]  }
 0x178   : > { %6756 = vmatpush1.bf16.msra.mxu0 %v19177_v3  ;;  %5966 = vmatprep.subr.bf16.mxu1 %v19182_v4  ;;  %v19264_v3 = vld [vmem:[%s25331_s3 + $0x650] ss:$8 sps:$4 sm:$0xff]   ;;  %v19308_v4 = vld [vmem:[%s25331_s3 + $0xd54] ss:$8 sps:$4 sm:$0xff]  }
 0x179   : > { %6757 = vmatprep.subr.bf16.mxu0 %v19185_v5  ;;  %5923 = vmatprep.mubr.bf16.mxu1 %v19186_v6  ;;  %v19274_v5 = vld [vmem:[%s25331_s3 + $0x664] ss:$8 sps:$4 sm:$0xff]   ;;  %v19271_v6 = vld [vmem:[%s20894_s20 + $0x2b0] ss:$108 sps:$4 sm:$0xff]  }
 0x17a   : > { %6714 = vmatprep.mubr.bf16.mxu0 %v19188_v7  ;;  %v19272_v7 = vld [vmem:[%s25331_s3 + $0x660] ss:$8 sps:$4 sm:$0xff]  }
 0x17b   : > { %5967 = vmatpush1.bf16.msra.mxu1 %v19180_v8  ;;  %v19275_v8 = vld [vmem:[%s20894_s20 + $0x2e8] ss:$108 sps:$4 sm:$0xff]  }
 0x17c   : > { %6758 = vmatpush1.bf16.msra.mxu0 %v19183_v9  ;;  %5968 = vmatprep.subr.bf16.mxu1 %v19193_v10  ;;  %v19281_v9 = vld [vmem:[%s25331_s3 + $0x674] ss:$8 sps:$4 sm:$0xff]   ;;  %v19282_v10 = vld [vmem:[%s20894_s20 + $0x38c] ss:$108 sps:$4 sm:$0xff]  }
 0x17d   : > { %6759 = vmatprep.subr.bf16.mxu0 %v19197_v12  ;;  %v19306_v12 = vld [vmem:[%s25331_s3 + $0xd50] ss:$8 sps:$4 sm:$0xff]  }
 0x17e   : > { %5924 = vmatmul.mubr.bf16.gmra.mrb[24].mxu1 %v19190_v11  ;;  %v19284_v11 = vld [vmem:[%s20894_s20 + $0x3c4] ss:$108 sps:$4 sm:$0xff]  }
 0x17f   : > { %6715 = vmatmul.mubr.bf16.gmra.mrb[24].mxu0 %v19194_v14  ;;  %5969 = vmatpush1.bf16.msra.mxu1 %v19191_v13  ;;  %v19323_v13 = vld [vmem:[%s25331_s3 + $0xd64] ss:$8 sps:$4 sm:$0xff]   ;;  %v19279_v14 = vld [vmem:[%s25331_s3 + $0x670] ss:$8 sps:$4 sm:$0xff]  }
 0x180   : > { %6760 = vmatpush1.bf16.msra.mxu0 %v19195_v15  ;;  %5970 = vmatprep.subr.bf16.mxu1 %v19200_v16  ;;  %v19286_v15 = vld [vmem:[%s20894_s20 + $0x388] ss:$108 sps:$4 sm:$0xff]   ;;  %v19289_v16 = vld [vmem:[%s25331_s3 + $0x684] ss:$8 sps:$4 sm:$0xff]  }
 0x181   : > { %6761 = vmatprep.subr.bf16.mxu0 %v19203_v17  ;;  %5933 = vmatprep.mubr.bf16.mxu1 %v19204_v18  ;;  %v19287_v17 = vld [vmem:[%s25331_s3 + $0x680] ss:$8 sps:$4 sm:$0xff]  }
 0x182   : > { %6724 = vmatprep.mubr.bf16.mxu0 %v19206_v19  ;;  %v19321_v18 = vld [vmem:[%s25331_s3 + $0xd60] ss:$8 sps:$4 sm:$0xff]  }
 0x183   : > { %5971 = vmatpush1.bf16.msra.mxu1 %v19198_v20  ;;  %v19290_v19 = vld [vmem:[%s20894_s20 + $0x3c0] ss:$108 sps:$4 sm:$0xff]   ;;  %v19296_v20 = vld [vmem:[%s25331_s3 + $0x694] ss:$8 sps:$4 sm:$0xff]  }
 0x184   : > { %6762 = vmatpush1.bf16.msra.mxu0 %v19201_v21  ;;  %5972 = vmatprep.subr.bf16.mxu1 %v19211_v22  ;;  %v19297_v21 = vld [vmem:[%s20894_s20 + $0x464] ss:$108 sps:$4 sm:$0xff]   ;;  %v19299_v22 = vld [vmem:[%s20894_s20 + $0x49c] ss:$108 sps:$4 sm:$0xff]  }
 0x185   : > { %6763 = vmatprep.subr.bf16.mxu0 %v19215_v24  ;;  %v19336_v24 = vld [vmem:[%s25331_s3 + $0xd70] ss:$8 sps:$4 sm:$0xff]  }
 0x186   : > { %5934 = vmatmul.mubr.bf16.gmra.mrb[28].mxu1 %v19208_v23  ;;  %v19338_v23 = vld [vmem:[%s25331_s3 + $0xd74] ss:$8 sps:$4 sm:$0xff]  }
 0x187   : > { %6725 = vmatmul.mubr.bf16.gmra.mrb[28].mxu0 %v19212_v26  ;;  %5973 = vmatpush1.bf16.msra.mxu1 %v19209_v25  ;;  %v19294_v25 = vld [vmem:[%s25331_s3 + $0x690] ss:$8 sps:$4 sm:$0xff]  }
 0x188   : > { %6764 = vmatpush1.bf16.msra.mxu0 %v19213_v27  ;;  %5974 = vmatprep.subr.bf16.mxu1 %v19218_v28  ;;  %v19348_v26 = vld [vmem:[%s25332_s4 + $0x4] ss:$12 sps:$4 sm:$0xff]   ;;  %v19301_v28 = vld [vmem:[%s20894_s20 + $0x460] ss:$108 sps:$4 sm:$0xff]  }
 0x189   : > { %6765 = vmatprep.subr.bf16.mxu0 %v19221_v29  ;;  %5976 = vmatprep.mubr.bf16.mxu1 %v19224_v30  ;;  %v19304_v27 = vld [vmem:[%s25331_s3 + $0x6a4] ss:$8 sps:$4 sm:$0xff]   ;;  %v19302_v30 = vld [vmem:[%s25331_s3 + $0x6a0] ss:$8 sps:$4 sm:$0xff]  }
 0x18a   : > { %6767 = vmatprep.mubr.bf16.mxu0 %v19227_v31  ;;  %v19305_v29 = vld [vmem:[%s20894_s20 + $0x498] ss:$108 sps:$4 sm:$0xff]   ;;  %v19312_v31 = vld [vmem:[%s20894_s20 + $0x53c] ss:$108 sps:$4 sm:$0xff]  }
 0x18b   : > { %5975 = vmatpush1.bf16.msra.mxu1 %v19216_v32  ;;  %v19311_v32 = vld [vmem:[%s25331_s3 + $0x6b4] ss:$8 sps:$4 sm:$0xff]  }
 0x18c   : > { %6766 = vmatpush1.bf16.msra.mxu0 %v19219_v33  ;;  %6057 = vmatprep.subr.bf16.mxu1 %v19230_v34  ;;  %v19314_v33 = vld [vmem:[%s20894_s20 + $0x574] ss:$108 sps:$4 sm:$0xff]   ;;  %v19309_v34 = vld [vmem:[%s25331_s3 + $0x6b0] ss:$8 sps:$4 sm:$0xff]  }
 0x18d   : > { %6848 = vmatprep.subr.bf16.mxu0 %v19233_v35  ;;  %v19316_v35 = vld [vmem:[%s20894_s20 + $0x538] ss:$108 sps:$4 sm:$0xff]  }
 0x18e   : > { %5977 = vmatmul.mubr.bf16.vlgmr.msra.gmra.mrb[0].mxu1 %v19222_v36  ;;  %v19319_v36 = vld [vmem:[%s25331_s3 + $0x6c4] ss:$8 sps:$4 sm:$0xff]  }
 0x18f   : > { %6768 = vmatmul.mubr.bf16.vlgmr.msra.gmra.mrb[0].mxu0 %v19225_v37  ;;  %6058 = vmatpush1.bf16.msra.mxu1 %v19228_v38  ;;  %v19317_v37 = vld [vmem:[%s25331_s3 + $0x6c0] ss:$8 sps:$4 sm:$0xff]   ;;  %v19320_v38 = vld [vmem:[%s20894_s20 + $0x570] ss:$108 sps:$4 sm:$0xff]  }
 0x190   : > { %6849 = vmatpush1.bf16.msra.mxu0 %v19231_v39  ;;  %6059 = vmatprep.subr.bf16.mxu1 %v19236_v40  ;;  %v19326_v39 = vld [vmem:[%s25331_s3 + $0x6d4] ss:$8 sps:$4 sm:$0xff]  }
 0x191   : > { %5986 = vmatprep.mubr.bf16.mxu1 %v19237_v41  ;;  %6777 = vmatprep.mubr.bf16.mxu0 %v19239_v42  ;;  %v19327_v40 = vld [vmem:[%s20894_s20 + $0x614] ss:$108 sps:$4 sm:$0xff]   ;;  %v19329_v41 = vld [vmem:[%s20894_s20 + $0x64c] ss:$108 sps:$4 sm:$0xff]  }
 0x192   : > { %6850 = vmatprep.subr.bf16.mxu0 %v19248_v43  ;;  %v19324_v42 = vld [vmem:[%s25331_s3 + $0x6d0] ss:$8 sps:$4 sm:$0xff]   ;;  %v19334_v43 = vld [vmem:[%s25331_s3 + $0x6e4] ss:$8 sps:$4 sm:$0xff]  }
 0x193   : > { %6060 = vmatpush1.bf16.msra.mxu1 %v19234_v44  ;;  %v19331_v44 = vld [vmem:[%s20894_s20 + $0x610] ss:$108 sps:$4 sm:$0xff]  }
 0x194   : > { %6851 = vmatpush1.bf16.msra.mxu0 %v19246_v46  ;;  %6061 = vmatprep.subr.bf16.mxu1 %v19244_v45  ;;  %v19332_v45 = vld [vmem:[%s25331_s3 + $0x6e0] ss:$8 sps:$4 sm:$0xff]  }
 0x195   : > { %6852 = vmatprep.subr.bf16.mxu0 %v19263_v47  ;;  %v19335_v46 = vld [vmem:[%s20894_s20 + $0x648] ss:$108 sps:$4 sm:$0xff]  }
 0x196   : > { %5987 = vmatmul.mubr.bf16.gmra.mrb[4].mxu1 %v19241_v48  ;;  %v19344_v47 = vld [vmem:[%s20894_s20 + $0x34] ss:$108 sps:$4 sm:$0xff]  }
 0x197   : > { %6778 = vmatmul.mubr.bf16.gmra.mrb[4].mxu0 %v19245_v50  ;;  %6062 = vmatpush1.bf16.msra.mxu1 %v19242_v49  ;;  %v19341_v48 = vld [vmem:[%s25331_s3 + $0x6f4] ss:$8 sps:$4 sm:$0xff]   ;;  %v19339_v49 = vld [vmem:[%s25331_s3 + $0x6f0] ss:$8 sps:$4 sm:$0xff]   ;;  %v25337_v50 = vmov 0  }
 0x198   : > { %5996 = vmatprep.mubr.bf16.mxu1 %v19252_v52  ;;  %6063 = vmatprep.subr.bf16.mxu1 %v19251_v51  ;;  %v19389_v51 = vld [vmem:[%s25332_s4 + $0xc8] ss:$12 sps:$4 sm:$0xff]   ;;  %v19342_v52 = vld [vmem:[%s20894_s20 + $0x30] ss:$108 sps:$4 sm:$0xff]  }
 0x199   : > { %6787 = vmatprep.mubr.bf16.mxu0 %v19254_v53  ;;  %6853 = vmatpush1.bf16.msra.mxu0 %v19261_v54  ;;  %v19345_v53 = vld [vmem:[%s20894_s20 + $0x68] ss:$108 sps:$4 sm:$0xff]   ;;  %v19346_v54 = vld [vmem:[%s25332_s4] ss:$12 sps:$4 sm:$0xff]  }
 0x19a   : > { %6854 = vmatprep.subr.bf16.mxu0 %v19278_v55  ;;  %v19352_v55 = vld [vmem:[%s20894_s20 + $0x10c] ss:$108 sps:$4 sm:$0xff]  }
 0x19b   : > { %6064 = vmatpush1.bf16.msra.mxu1 %v19249_v56  ;;  %v19351_v56 = vld [vmem:[%s25332_s4 + $0x1c] ss:$12 sps:$4 sm:$0xff]  }
 0x19c   : > { %6065 = vmatprep.subr.bf16.mxu1 %v19259_v58  ;;  %v19394_v58 = vld [vmem:[%s25332_s4 + $0xe0] ss:$12 sps:$4 sm:$0xff]  }
 0x19d   : > { %6855 = vmatpush1.bf16.msra.mxu0 %v19276_v59  ;;  %v19349_v59 = vld [vmem:[%s25332_s4 + $0x18] ss:$12 sps:$4 sm:$0xff]  }
 0x19e   : > { %5997 = vmatmul.mubr.bf16.gmra.mrb[8].mxu1 %v19256_v57  ;;  %6856 = vmatprep.subr.bf16.mxu0 %v19293_v1  ;;  %v19390_v57 = vld [vmem:[%s25332_s4 + $0x8] ss:$12 sps:$4 sm:$0xff]   ;;  %v19362_v1 = vld [vmem:[%s20894_s20 + $0x1e4] ss:$108 sps:$4 sm:$0xff]  }
 0x19f   : > { %6788 = vmatmul.mubr.bf16.gmra.mrb[8].mxu0 %v19260_v61  ;;  %6066 = vmatpush1.bf16.msra.mxu1 %v19257_v60  ;;  %v19354_v60 = vld [vmem:[%s20894_s20 + $0x108] ss:$108 sps:$4 sm:$0xff]   ;;  %v19355_v61 = vld [vmem:[%s20894_s20 + $0x140] ss:$108 sps:$4 sm:$0xff]  }
 0x1a0   : > { %6006 = vmatprep.mubr.bf16.mxu1 %v19267_v63  ;;  %6067 = vmatprep.subr.bf16.mxu1 %v19266_v62  ;;  %v19358_v62 = vld [vmem:[%s25332_s4 + $0x34] ss:$12 sps:$4 sm:$0xff]  }
 0x1a1   : > { %6797 = vmatprep.mubr.bf16.mxu0 %v19269_v0  ;;  %6857 = vmatpush1.bf16.msra.mxu0 %v19291_v2  ;;  %v19395_v63 = vld [vmem:[%s25332_s4 + $0x20] ss:$12 sps:$4 sm:$0xff]   ;;  %v19356_v0 = vld [vmem:[%s25332_s4 + $0x30] ss:$12 sps:$4 sm:$0xff]  }
 0x1a2   : > { %6858 = vmatprep.subr.bf16.mxu0 %v19308_v4  ;;  %v19361_v2 = vld [vmem:[%s25332_s4 + $0x4c] ss:$12 sps:$4 sm:$0xff]  }
 0x1a3   : > { %6068 = vmatpush1.bf16.msra.mxu1 %v19264_v3  ;;  %v19403_v3 = vld [vmem:[%s25332_s4 + $0xf8] ss:$12 sps:$4 sm:$0xff]  }
 0x1a4   : > { %6069 = vmatprep.subr.bf16.mxu1 %v19274_v5  ;;  %v19404_v4 = vld [vmem:[%s25332_s4 + $0x38] ss:$12 sps:$4 sm:$0xff]   ;;  %v19359_v5 = vld [vmem:[%s25332_s4 + $0x48] ss:$12 sps:$4 sm:$0xff]  }
 0x1a5   : > { %6859 = vmatpush1.bf16.msra.mxu0 %v19306_v12  ;;  %v19371_v12 = vld [vmem:[%s25332_s4 + $0x7c] ss:$12 sps:$4 sm:$0xff]  }
 0x1a6   : > { %6007 = vmatmul.mubr.bf16.gmra.mrb[12].mxu1 %v19271_v6  ;;  %6860 = vmatprep.subr.bf16.mxu0 %v19323_v13  ;;  %v19408_v6 = vld [vmem:[%s25332_s4 + $0x110] ss:$12 sps:$4 sm:$0xff]  }
 0x1a7   : > { %6798 = vmatmul.mubr.bf16.gmra.mrb[12].mxu0 %v19275_v8  ;;  %6070 = vmatpush1.bf16.msra.mxu1 %v19272_v7  ;;  %v19364_v7 = vld [vmem:[%s20894_s20 + $0x1e0] ss:$108 sps:$4 sm:$0xff]   ;;  %v19368_v8 = vld [vmem:[%s25332_s4 + $0x64] ss:$12 sps:$4 sm:$0xff]  }
 0x1a8   : > { %6016 = vmatprep.mubr.bf16.mxu1 %v19282_v10  ;;  %6071 = vmatprep.subr.bf16.mxu1 %v19281_v9  ;;  %v19365_v9 = vld [vmem:[%s20894_s20 + $0x218] ss:$108 sps:$4 sm:$0xff]   ;;  %v19366_v10 = vld [vmem:[%s25332_s4 + $0x60] ss:$12 sps:$4 sm:$0xff]   ;;  %v19409_v13 = vld [vmem:[%s25332_s4 + $0x50] ss:$12 sps:$4 sm:$0xff]  }
 0x1a9   : > { %6807 = vmatprep.mubr.bf16.mxu0 %v19284_v11  ;;  %6861 = vmatpush1.bf16.msra.mxu0 %v19321_v18  ;;  %v19372_v11 = vld [vmem:[%s20894_s20 + $0x2bc] ss:$108 sps:$4 sm:$0xff]   ;;  %v19378_v18 = vld [vmem:[%s25332_s4 + $0x94] ss:$12 sps:$4 sm:$0xff]  }
 0x1aa   : > { %6862 = vmatprep.subr.bf16.mxu0 %v19338_v23  ;;  %v19422_v23 = vld [vmem:[%s25332_s4 + $0x140] ss:$12 sps:$4 sm:$0xff]  }
 0x1ab   : > { %6072 = vmatpush1.bf16.msra.mxu1 %v19279_v14  ;;  %v19417_v14 = vld [vmem:[%s25332_s4 + $0x128] ss:$12 sps:$4 sm:$0xff]  }
 0x1ac   : > { %6073 = vmatprep.subr.bf16.mxu1 %v19289_v16  ;;  %v19374_v16 = vld [vmem:[%s20894_s20 + $0x2b8] ss:$108 sps:$4 sm:$0xff]  }
 0x1ad   : > { %6863 = vmatpush1.bf16.msra.mxu0 %v19336_v24  ;;  %v19379_v24 = vld [vmem:[%s25332_s4 + $0xa8] ss:$12 sps:$4 sm:$0xff]  }
 0x1ae   : > { %6017 = vmatmul.mubr.bf16.gmra.mrb[16].mxu1 %v19286_v15  ;;  %11522 = vmatprep.subr.bf16.mxu0 %v19348_v26  ;;  %v19369_v15 = vld [vmem:[%s25332_s4 + $0x78] ss:$12 sps:$4 sm:$0xff]  }
 0x1af   : > { %6808 = vmatmul.mubr.bf16.gmra.mrb[16].mxu0 %v19290_v19  ;;  %6074 = vmatpush1.bf16.msra.mxu1 %v19287_v17  ;;  %v19375_v17 = vld [vmem:[%s20894_s20 + $0x2f0] ss:$108 sps:$4 sm:$0xff]   ;;  %v19418_v19 = vld [vmem:[%s25332_s4 + $0x68] ss:$12 sps:$4 sm:$0xff]   ;;  %v19431_v26 = vld [vmem:[%s25332_s4 + $0x158] ss:$12 sps:$4 sm:$0xff]  }
 0x1b0   : > { %6026 = vmatprep.mubr.bf16.mxu1 %v19297_v21  ;;  %6075 = vmatprep.subr.bf16.mxu1 %v19296_v20  ;;  %v19376_v20 = vld [vmem:[%s25332_s4 + $0x90] ss:$12 sps:$4 sm:$0xff]   ;;  %v19382_v21 = vld [vmem:[%s20894_s20 + $0x394] ss:$108 sps:$4 sm:$0xff]  }
 0x1b1   : > { %6817 = vmatprep.mubr.bf16.mxu0 %v19299_v22  ;;  %v19381_v22 = vld [vmem:[%s25332_s4 + $0xac] ss:$12 sps:$4 sm:$0xff]  }
 0x1b3   : > { %6076 = vmatpush1.bf16.msra.mxu1 %v19294_v25  ;;  %v19423_v25 = vld [vmem:[%s25332_s4 + $0x80] ss:$12 sps:$4 sm:$0xff]  }
 0x1b4   : > { %6077 = vmatprep.subr.bf16.mxu1 %v19304_v27  ;;  %v19388_v27 = vld [vmem:[%s25332_s4 + $0xc4] ss:$12 sps:$4 sm:$0xff]  }
 0x1b6   : > { %6027 = vmatmul.mubr.bf16.gmra.mrb[20].mxu1 %v19301_v28  ;;  %v19384_v28 = vld [vmem:[%s20894_s20 + $0x390] ss:$108 sps:$4 sm:$0xff]  }
 0x1b7   : > { %6818 = vmatmul.mubr.bf16.gmra.mrb[20].mxu0 %v19305_v29  ;;  %6078 = vmatpush1.bf16.msra.mxu1 %v19302_v30  ;;  %v19385_v29 = vld [vmem:[%s20894_s20 + $0x3c8] ss:$108 sps:$4 sm:$0xff]   ;;  %v19386_v30 = vld [vmem:[%s25332_s4 + $0xc0] ss:$12 sps:$4 sm:$0xff]  }
 0x1b8   : > { %6036 = vmatprep.mubr.bf16.mxu1 %v19312_v31  ;;  %6079 = vmatprep.subr.bf16.mxu1 %v19311_v32  ;;  %v19396_v31 = vld [vmem:[%s20894_s20 + $0x46c] ss:$108 sps:$4 sm:$0xff]   ;;  %v19393_v32 = vld [vmem:[%s25332_s4 + $0xdc] ss:$12 sps:$4 sm:$0xff]  }
 0x1b9   : > { %6827 = vmatprep.mubr.bf16.mxu0 %v19314_v33  ;;  %v19432_v33 = vld [vmem:[%s25332_s4 + $0x98] ss:$12 sps:$4 sm:$0xff]  }
 0x1bb   : > { %6080 = vmatpush1.bf16.msra.mxu1 %v19309_v34  ;;  %v19436_v34 = vld [vmem:[%s25332_s4 + $0x170] ss:$12 sps:$4 sm:$0xff]  }
 0x1bc   : > { %6081 = vmatprep.subr.bf16.mxu1 %v19319_v36  ;;  %v19402_v36 = vld [vmem:[%s25332_s4 + $0xf4] ss:$12 sps:$4 sm:$0xff]  }
 0x1be   : > { %6037 = vmatmul.mubr.bf16.gmra.mrb[24].mxu1 %v19316_v35  ;;  %v19391_v35 = vld [vmem:[%s25332_s4 + $0xd8] ss:$12 sps:$4 sm:$0xff]  }
 0x1bf   : > { %6828 = vmatmul.mubr.bf16.gmra.mrb[24].mxu0 %v19320_v38  ;;  %6082 = vmatpush1.bf16.msra.mxu1 %v19317_v37  ;;  %v19398_v37 = vld [vmem:[%s20894_s20 + $0x468] ss:$108 sps:$4 sm:$0xff]   ;;  %v19437_v38 = vld [vmem:[%s25332_s4 + $0xb0] ss:$12 sps:$4 sm:$0xff]  }
 0x1c0   : > { %6046 = vmatprep.mubr.bf16.mxu1 %v19327_v40  ;;  %6083 = vmatprep.subr.bf16.mxu1 %v19326_v39  ;;  %v19399_v39 = vld [vmem:[%s20894_s20 + $0x4a0] ss:$108 sps:$4 sm:$0xff]   ;;  %v19400_v40 = vld [vmem:[%s25332_s4 + $0xf0] ss:$12 sps:$4 sm:$0xff]  }
 0x1c1   : > { %6837 = vmatprep.mubr.bf16.mxu0 %v19329_v41  ;;  %v19410_v41 = vld [vmem:[%s20894_s20 + $0x544] ss:$108 sps:$4 sm:$0xff]  }
 0x1c3   : > { %6084 = vmatpush1.bf16.msra.mxu1 %v19324_v42  ;;  %v19407_v42 = vld [vmem:[%s25332_s4 + $0x10c] ss:$12 sps:$4 sm:$0xff]  }
 0x1c4   : > { %6085 = vmatprep.subr.bf16.mxu1 %v19334_v43  ;;  %v19480_v43 = vld [vmem:[%s25332_s4 + $0x248] ss:$12 sps:$4 sm:$0xff]  }
 0x1c6   : > { %6047 = vmatmul.mubr.bf16.gmra.mrb[28].mxu1 %v19331_v44  ;;  %v19405_v44 = vld [vmem:[%s25332_s4 + $0x108] ss:$12 sps:$4 sm:$0xff]  }
 0x1c7   : > { %6838 = vmatmul.mubr.bf16.gmra.mrb[28].mxu0 %v19335_v46  ;;  %6086 = vmatpush1.bf16.msra.mxu1 %v19332_v45  ;;  %v19412_v45 = vld [vmem:[%s20894_s20 + $0x540] ss:$108 sps:$4 sm:$0xff]   ;;  %v19416_v46 = vld [vmem:[%s25332_s4 + $0x124] ss:$12 sps:$4 sm:$0xff]  }
 0x1c8   : > { %6089 = vmatprep.mubr.bf16.mxu1 %v19344_v47  ;;  %6087 = vmatprep.subr.bf16.mxu1 %v19341_v48  ;;  %v19413_v47 = vld [vmem:[%s20894_s20 + $0x578] ss:$108 sps:$4 sm:$0xff]   ;;  %v19414_v48 = vld [vmem:[%s25332_s4 + $0x120] ss:$12 sps:$4 sm:$0xff]  }
 0x1c9   : > { %6880 = vmatprep.mubr.bf16.mxu0 %v25337_v50 }
 0x1cb   : > { %6088 = vmatpush1.bf16.msra.mxu1 %v19339_v49  ;;  %v19424_v49 = vld [vmem:[%s20894_s20 + $0x61c] ss:$108 sps:$4 sm:$0xff]  }
 0x1cc   : > { %16620 = vmatprep.subr.bf16.mxu1 %v19389_v51  ;;  %v19421_v51 = vld [vmem:[%s25332_s4 + $0x13c] ss:$12 sps:$4 sm:$0xff]  }
 0x1ce   : > { %6090 = vmatmul.mubr.bf16.vlgmr.msra.gmra.mrb[0].mxu1 %v19342_v52  ;;  %v19419_v52 = vld [vmem:[%s25332_s4 + $0x138] ss:$12 sps:$4 sm:$0xff]  }
 0x1cf   : > { %6881 = vmatmul.mubr.bf16.vlgmr.msra.gmra.mrb[0].mxu0 %v19345_v53  ;;  %6099 = vmatprep.mubr.bf16.mxu1 %v19352_v55  ;;  %v19426_v53 = vld [vmem:[%s20894_s20 + $0x618] ss:$108 sps:$4 sm:$0xff]   ;;  %v19427_v55 = vld [vmem:[%s20894_s20 + $0x650] ss:$108 sps:$4 sm:$0xff]  }
 0x1d0   : > { %11523 = vmatpush1.bf16.msra.mxu0 %v19346_v54  ;;  %6890 = vmatprep.mubr.bf16.mxu0 %v25337_v50  ;;  %v19430_v54 = vld [vmem:[%s25332_s4 + $0x154] ss:$12 sps:$4 sm:$0xff]  }
 0x1d1   : > { %11524 = vmatprep.subr.bf16.mxu0 %v19351_v56  ;;  %16621 = vmatpush3.bf16.msra.mxu1 %v19390_v57  ;;  %v19428_v56 = vld [vmem:[%s25332_s4 + $0x150] ss:$12 sps:$4 sm:$0xff]  }
 0x1d2   : > { %16622 = vmatprep.subr.bf16.mxu1 %v19394_v58  ;;  %v19440_v57 = vld [vmem:[%s22342_s16 + $0x4] ss:$108 sps:$4 sm:$0xff]   ;;  %v19435_v58 = vld [vmem:[%s25332_s4 + $0x16c] ss:$12 sps:$4 sm:$0xff]  }
 0x1d4   : > { %11525 = vmatpush1.bf16.msra.mxu0 %v19349_v59  ;;  %v19433_v59 = vld [vmem:[%s25332_s4 + $0x168] ss:$12 sps:$4 sm:$0xff]  }
 0x1d5   : > { %11526 = vmatprep.subr.bf16.mxu0 %v19358_v62  ;;  %16623 = vmatpush3.bf16.msra.mxu1 %v19395_v63  ;;  %v19441_v62 = vld [vmem:[%s25332_s4 + $0x180] ss:$12 sps:$4 sm:$0xff]   ;;  %v19447_v63 = vld [vmem:[%s22342_s16 + $0xdc] ss:$108 sps:$4 sm:$0xff]  }
 0x1d6   : > { %6100 = vmatmul.mubr.bf16.gmra.mrb[4].mxu1 %v19354_v60  ;;  %16624 = vmatprep.subr.bf16.mxu1 %v19403_v3  ;;  %v19443_v60 = vld [vmem:[%s25332_s4 + $0x184] ss:$12 sps:$4 sm:$0xff]  }
 0x1d7   : > { %6891 = vmatmul.mubr.bf16.gmra.mrb[4].mxu0 %v19355_v61  ;;  %6109 = vmatprep.mubr.bf16.mxu1 %v19362_v1  ;;  %v19438_v61 = vld [vmem:[%s22342_s16] ss:$108 sps:$4 sm:$0xff]   ;;  %v19481_v1 = vld [vmem:[%s25332_s4 + $0x188] ss:$12 sps:$4 sm:$0xff]   ;;  %v19444_v3 = vld [vmem:[%s25332_s4 + $0x198] ss:$12 sps:$4 sm:$0xff]  }
 0x1d8   : > { %11527 = vmatpush1.bf16.msra.mxu0 %v19356_v0  ;;  %6900 = vmatprep.mubr.bf16.mxu0 %v25337_v50  ;;  %v19446_v0 = vld [vmem:[%s25332_s4 + $0x19c] ss:$12 sps:$4 sm:$0xff]  }
 0x1d9   : > { %11528 = vmatprep.subr.bf16.mxu0 %v19361_v2  ;;  %16625 = vmatpush3.bf16.msra.mxu1 %v19404_v4  ;;  %v19485_v2 = vld [vmem:[%s25332_s4 + $0x260] ss:$12 sps:$4 sm:$0xff]   ;;  %v19449_v4 = vld [vmem:[%s22342_s16 + $0xd8] ss:$108 sps:$4 sm:$0xff]  }
 0x1da   : > { %16626 = vmatprep.subr.bf16.mxu1 %v19408_v6  ;;  %v19486_v6 = vld [vmem:[%s25332_s4 + $0x1a0] ss:$12 sps:$4 sm:$0xff]  }
 0x1dc   : > { %11529 = vmatpush1.bf16.msra.mxu0 %v19359_v5  ;;  %v19452_v5 = vld [vmem:[%s25332_s4 + $0x1b4] ss:$12 sps:$4 sm:$0xff]  }
 0x1dd   : > { %11530 = vmatprep.subr.bf16.mxu0 %v19368_v8  ;;  %16627 = vmatpush3.bf16.msra.mxu1 %v19409_v13  ;;  %v19456_v8 = vld [vmem:[%s22342_s16 + $0x1b4] ss:$108 sps:$4 sm:$0xff]   ;;  %v19498_v13 = vld [vmem:[%s25332_s4 + $0x290] ss:$12 sps:$4 sm:$0xff]  }
 0x1de   : > { %6110 = vmatmul.mubr.bf16.gmra.mrb[8].mxu1 %v19364_v7  ;;  %16628 = vmatprep.subr.bf16.mxu1 %v19417_v14  ;;  %v19450_v7 = vld [vmem:[%s25332_s4 + $0x1b0] ss:$12 sps:$4 sm:$0xff]  }
 0x1df   : > { %6901 = vmatmul.mubr.bf16.gmra.mrb[8].mxu0 %v19365_v9  ;;  %6119 = vmatprep.mubr.bf16.mxu1 %v19372_v11  ;;  %v19455_v9 = vld [vmem:[%s25332_s4 + $0x1cc] ss:$12 sps:$4 sm:$0xff]   ;;  %v19453_v11 = vld [vmem:[%s25332_s4 + $0x1c8] ss:$12 sps:$4 sm:$0xff]   ;;  %v19461_v14 = vld [vmem:[%s25332_s4 + $0x1e4] ss:$12 sps:$4 sm:$0xff]  }
 0x1e0   : > { %11531 = vmatpush1.bf16.msra.mxu0 %v19366_v10  ;;  %6910 = vmatprep.mubr.bf16.mxu0 %v25337_v50  ;;  %v19493_v10 = vld [vmem:[%s25332_s4 + $0x278] ss:$12 sps:$4 sm:$0xff]  }
 0x1e1   : > { %11532 = vmatprep.subr.bf16.mxu0 %v19371_v12  ;;  %16629 = vmatpush3.bf16.msra.mxu1 %v19418_v19  ;;  %v19494_v12 = vld [vmem:[%s25332_s4 + $0x1b8] ss:$12 sps:$4 sm:$0xff]   ;;  %v19499_v19 = vld [vmem:[%s25332_s4 + $0x1d0] ss:$12 sps:$4 sm:$0xff]  }
 0x1e2   : > { %16630 = vmatprep.subr.bf16.mxu1 %v19422_v23  ;;  %v19507_v23 = vld [vmem:[%s25332_s4 + $0x1e8] ss:$12 sps:$4 sm:$0xff]  }
 0x1e4   : > { %11533 = vmatpush1.bf16.msra.mxu0 %v19369_v15  ;;  %v19458_v15 = vld [vmem:[%s22342_s16 + $0x1b0] ss:$108 sps:$4 sm:$0xff]  }
 0x1e5   : > { %11534 = vmatprep.subr.bf16.mxu0 %v19378_v18  ;;  %16631 = vmatpush3.bf16.msra.mxu1 %v19423_v25  ;;  %v19464_v18 = vld [vmem:[%s25332_s4 + $0x1fc] ss:$12 sps:$4 sm:$0xff]  }
 0x1e6   : > { %6120 = vmatmul.mubr.bf16.gmra.mrb[12].mxu1 %v19374_v16  ;;  %16632 = vmatprep.subr.bf16.mxu1 %v19431_v26  ;;  %v19459_v16 = vld [vmem:[%s25332_s4 + $0x1e0] ss:$12 sps:$4 sm:$0xff]   ;;  %v19468_v25 = vld [vmem:[%s25332_s4 + $0x210] ss:$12 sps:$4 sm:$0xff]  }
 0x1e7   : > { %6911 = vmatmul.mubr.bf16.gmra.mrb[12].mxu0 %v19375_v17  ;;  %6129 = vmatprep.mubr.bf16.mxu1 %v19382_v21  ;;  %v19465_v17 = vld [vmem:[%s22342_s16 + $0x28c] ss:$108 sps:$4 sm:$0xff]   ;;  %v19474_v26 = vld [vmem:[%s22342_s16 + $0x364] ss:$108 sps:$4 sm:$0xff]  }
 0x1e8   : > { %11535 = vmatpush1.bf16.msra.mxu0 %v19376_v20  ;;  %6920 = vmatprep.mubr.bf16.mxu0 %v25337_v50  ;;  %v19506_v20 = vld [vmem:[%s25332_s4 + $0x2a8] ss:$12 sps:$4 sm:$0xff]   ;;  %v19462_v21 = vld [vmem:[%s25332_s4 + $0x1f8] ss:$12 sps:$4 sm:$0xff]  }
 0x1e9   : > { %11536 = vmatprep.subr.bf16.mxu0 %v19381_v22  ;;  %16633 = vmatpush3.bf16.msra.mxu1 %v19432_v33  ;;  %v19470_v22 = vld [vmem:[%s25332_s4 + $0x214] ss:$12 sps:$4 sm:$0xff]  }
 0x1ea   : > { %16634 = vmatprep.subr.bf16.mxu1 %v19436_v34  ;;  %v19476_v33 = vld [vmem:[%s22342_s16 + $0x360] ss:$108 sps:$4 sm:$0xff]  }
 0x1eb   : > { %v19477_v34 = vld [vmem:[%s25332_s4 + $0x240] ss:$12 sps:$4 sm:$0xff]  }
 0x1ec   : > { %11537 = vmatpush1.bf16.msra.mxu0 %v19379_v24  ;;  %v19467_v24 = vld [vmem:[%s22342_s16 + $0x288] ss:$108 sps:$4 sm:$0xff]  }
 0x1ed   : > { %11538 = vmatprep.subr.bf16.mxu0 %v19388_v27  ;;  %16635 = vmatpush3.bf16.msra.mxu1 %v19437_v38  ;;  %v19473_v27 = vld [vmem:[%s25332_s4 + $0x22c] ss:$12 sps:$4 sm:$0xff]   ;;  %v19524_v38 = vld [vmem:[%s25332_s4 + $0x2f0] ss:$12 sps:$4 sm:$0xff]  }
 0x1ee   : > { %6130 = vmatmul.mubr.bf16.gmra.mrb[16].mxu1 %v19384_v28  ;;  %16684 = vmatprep.subr.bf16.mxu1 %v19480_v43  ;;  %v19471_v28 = vld [vmem:[%s25332_s4 + $0x228] ss:$12 sps:$4 sm:$0xff]   ;;  %v19490_v43 = vld [vmem:[%s25332_s4 + $0x270] ss:$12 sps:$4 sm:$0xff]  }
 0x1ef   : > { %6921 = vmatmul.mubr.bf16.gmra.mrb[16].mxu0 %v19385_v29  ;;  %6139 = vmatprep.mubr.bf16.mxu1 %v19396_v31  ;;  %v19511_v29 = vld [vmem:[%s25332_s4 + $0x2c0] ss:$12 sps:$4 sm:$0xff]   ;;  %v19519_v31 = vld [vmem:[%s25332_s4 + $0x2d8] ss:$12 sps:$4 sm:$0xff]  }
 0x1f0   : > { %11539 = vmatpush1.bf16.msra.mxu0 %v19386_v30  ;;  %6930 = vmatprep.mubr.bf16.mxu0 %v25337_v50  ;;  %v19512_v30 = vld [vmem:[%s25332_s4 + $0x200] ss:$12 sps:$4 sm:$0xff]  }
 0x1f1   : > { %11540 = vmatprep.subr.bf16.mxu0 %v19393_v32  ;;  %v19479_v32 = vld [vmem:[%s25332_s4 + $0x244] ss:$12 sps:$4 sm:$0xff]  }
 0x1f4   : > { %11541 = vmatpush1.bf16.msra.mxu0 %v19391_v35  ;;  %v19487_v35 = vld [vmem:[%s22342_s16 + $0x43c] ss:$108 sps:$4 sm:$0xff]  }
 0x1f5   : > { %11542 = vmatprep.subr.bf16.mxu0 %v19402_v36  ;;  %v19484_v36 = vld [vmem:[%s25332_s4 + $0x25c] ss:$12 sps:$4 sm:$0xff]  }
 0x1f6   : > { %6140 = vmatmul.mubr.bf16.gmra.mrb[20].mxu1 %v19398_v37  ;;  %v19520_v37 = vld [vmem:[%s25332_s4 + $0x218] ss:$12 sps:$4 sm:$0xff]  }
 0x1f7   : > { %6931 = vmatmul.mubr.bf16.gmra.mrb[20].mxu0 %v19399_v39  ;;  %6149 = vmatprep.mubr.bf16.mxu1 %v19410_v41  ;;  %v19482_v39 = vld [vmem:[%s25332_s4 + $0x258] ss:$12 sps:$4 sm:$0xff]   ;;  %v19492_v41 = vld [vmem:[%s25332_s4 + $0x274] ss:$12 sps:$4 sm:$0xff]  }
 0x1f8   : > { %11543 = vmatpush1.bf16.msra.mxu0 %v19400_v40  ;;  %6940 = vmatprep.mubr.bf16.mxu0 %v25337_v50  ;;  %v19489_v40 = vld [vmem:[%s22342_s16 + $0x438] ss:$108 sps:$4 sm:$0xff]  }
 0x1f9   : > { %11544 = vmatprep.subr.bf16.mxu0 %v19407_v42  ;;  %v19525_v42 = vld [vmem:[%s25332_s4 + $0x230] ss:$12 sps:$4 sm:$0xff]  }
 0x1fc   : > { %11545 = vmatpush1.bf16.msra.mxu0 %v19405_v44  ;;  %v19500_v44 = vld [vmem:[%s22342_s16 + $0x514] ss:$108 sps:$4 sm:$0xff]  }
 0x1fd   : > { %11546 = vmatprep.subr.bf16.mxu0 %v19416_v46  ;;  %v19568_v46 = vld [vmem:[%s25332_s4 + $0x3c8] ss:$12 sps:$4 sm:$0xff]  }
 0x1fe   : > { %6150 = vmatmul.mubr.bf16.gmra.mrb[24].mxu1 %v19412_v45  ;;  %v19497_v45 = vld [vmem:[%s25332_s4 + $0x28c] ss:$12 sps:$4 sm:$0xff]  }
 0x1ff   : > { %6941 = vmatmul.mubr.bf16.gmra.mrb[24].mxu0 %v19413_v47  ;;  %6159 = vmatprep.mubr.bf16.mxu1 %v19424_v49  ;;  %v19495_v47 = vld [vmem:[%s25332_s4 + $0x288] ss:$12 sps:$4 sm:$0xff]   ;;  %v19502_v49 = vld [vmem:[%s22342_s16 + $0x510] ss:$108 sps:$4 sm:$0xff]  }
 0x200   : > { %11547 = vmatpush1.bf16.msra.mxu0 %v19414_v48  ;;  %6950 = vmatprep.mubr.bf16.mxu0 %v25337_v50  ;;  %v19505_v48 = vld [vmem:[%s25332_s4 + $0x2a4] ss:$12 sps:$4 sm:$0xff]  }
 0x201   : > { %11548 = vmatprep.subr.bf16.mxu0 %v19421_v51  ;;  %v19503_v51 = vld [vmem:[%s25332_s4 + $0x2a0] ss:$12 sps:$4 sm:$0xff]  }
 0x204   : > { %11549 = vmatpush1.bf16.msra.mxu0 %v19419_v52  ;;  %v19513_v52 = vld [vmem:[%s22342_s16 + $0x5ec] ss:$108 sps:$4 sm:$0xff]  }
 0x205   : > { %11550 = vmatprep.subr.bf16.mxu0 %v19430_v54  ;;  %v19508_v54 = vld [vmem:[%s25332_s4 + $0x2b8] ss:$12 sps:$4 sm:$0xff]  }
 0x206   : > { %6160 = vmatmul.mubr.bf16.gmra.mrb[28].mxu1 %v19426_v53  ;;  %v19510_v53 = vld [vmem:[%s25332_s4 + $0x2bc] ss:$12 sps:$4 sm:$0xff]  }
 0x207   : > { %6951 = vmatmul.mubr.bf16.gmra.mrb[28].mxu0 %v19427_v55  ;;  %13136 = vmatprep.mubr.bf16.mxu1 %v19440_v57  ;;  %v19518_v55 = vld [vmem:[%s25332_s4 + $0x2d4] ss:$12 sps:$4 sm:$0xff]  }
 0x208   : > { %11551 = vmatpush1.bf16.msra.mxu0 %v19428_v56  ;;  %11554 = vmatprep.mubr.bf16.mxu0 %v19440_v57  ;;  %v19515_v56 = vld [vmem:[%s22342_s16 + $0x5e8] ss:$108 sps:$4 sm:$0xff]   ;;  %v19516_v57 = vld [vmem:[%s25332_s4 + $0x2d0] ss:$12 sps:$4 sm:$0xff]  }
 0x209   : > { %11552 = vmatprep.subr.bf16.mxu0 %v19435_v58  ;;  %v19528_v58 = vld [vmem:[%s22342_s16 + $0xc] ss:$108 sps:$4 sm:$0xff]  }
 0x20c   : > { %11553 = vmatpush1.bf16.msra.mxu0 %v19433_v59  ;;  %v19523_v59 = vld [vmem:[%s25332_s4 + $0x2ec] ss:$12 sps:$4 sm:$0xff]  }
 0x20d   : > { %11635 = vmatprep.subr.bf16.mxu0 %v19443_v60  ;;  %v19521_v60 = vld [vmem:[%s25332_s4 + $0x2e8] ss:$12 sps:$4 sm:$0xff]  }
 0x20e   : > { %13137 = vmatmul.mubr.bf16.vlgmr.msra.gmra.mrb[32].mxu1 %v19438_v61 }
 0x20f   : > { %11555 = vmatmul.mubr.bf16.vlgmr.msra.gmra.mrb[0].mxu0 %v19438_v61  ;;  %13144 = vmatprep.mubr.bf16.mxu1 %v19447_v63  ;;  %v19531_v61 = vld [vmem:[%s25332_s4 + $0x304] ss:$12 sps:$4 sm:$0xff]  }
 0x210   : > { %11636 = vmatpush1.bf16.msra.mxu0 %v19441_v62  ;;  %11564 = vmatprep.mubr.bf16.mxu0 %v19447_v63  ;;  %v19526_v62 = vld [vmem:[%s22342_s16 + $0x8] ss:$108 sps:$4 sm:$0xff]   ;;  %v19529_v63 = vld [vmem:[%s25332_s4 + $0x300] ss:$12 sps:$4 sm:$0xff]  }
 0x211   : > { %11637 = vmatprep.subr.bf16.mxu0 %v19446_v0  ;;  %16685 = vmatpush3.bf16.msra.mxu1 %v19481_v1  ;;  %v19535_v0 = vld [vmem:[%s22342_s16 + $0xe4] ss:$108 sps:$4 sm:$0xff]   ;;  %v19534_v1 = vld [vmem:[%s25332_s4 + $0x31c] ss:$12 sps:$4 sm:$0xff]  }
 0x212   : > { %16686 = vmatprep.subr.bf16.mxu1 %v19485_v2  ;;  %v19569_v2 = vld [vmem:[%s25332_s4 + $0x308] ss:$12 sps:$4 sm:$0xff]  }
 0x214   : > { %11638 = vmatpush1.bf16.msra.mxu0 %v19444_v3  ;;  %v19573_v3 = vld [vmem:[%s25332_s4 + $0x3e0] ss:$12 sps:$4 sm:$0xff]  }
 0x215   : > { %11639 = vmatprep.subr.bf16.mxu0 %v19452_v5  ;;  %16687 = vmatpush3.bf16.msra.mxu1 %v19486_v6  ;;  %v19540_v5 = vld [vmem:[%s25332_s4 + $0x334] ss:$12 sps:$4 sm:$0xff]  }
 0x216   : > { %13145 = vmatmul.mubr.bf16.gmra.mrb[36].mxu1 %v19449_v4  ;;  %16688 = vmatprep.subr.bf16.mxu1 %v19493_v10  ;;  %v19574_v6 = vld [vmem:[%s25332_s4 + $0x320] ss:$12 sps:$4 sm:$0xff]  }
 0x217   : > { %11565 = vmatmul.mubr.bf16.gmra.mrb[4].mxu0 %v19449_v4  ;;  %13152 = vmatprep.mubr.bf16.mxu1 %v19456_v8  ;;  %v19532_v4 = vld [vmem:[%s25332_s4 + $0x318] ss:$12 sps:$4 sm:$0xff]  }
 0x218   : > { %11640 = vmatpush1.bf16.msra.mxu0 %v19450_v7  ;;  %11574 = vmatprep.mubr.bf16.mxu0 %v19456_v8  ;;  %v19537_v7 = vld [vmem:[%s22342_s16 + $0xe0] ss:$108 sps:$4 sm:$0xff]   ;;  %v19538_v8 = vld [vmem:[%s25332_s4 + $0x330] ss:$12 sps:$4 sm:$0xff]  }
 0x219   : > { %11641 = vmatprep.subr.bf16.mxu0 %v19455_v9  ;;  %16689 = vmatpush3.bf16.msra.mxu1 %v19494_v12  ;;  %v19544_v9 = vld [vmem:[%s22342_s16 + $0x1bc] ss:$108 sps:$4 sm:$0xff]   ;;  %v19543_v10 = vld [vmem:[%s25332_s4 + $0x34c] ss:$12 sps:$4 sm:$0xff]  }
 0x21a   : > { %16690 = vmatprep.subr.bf16.mxu1 %v19498_v13  ;;  %v19581_v12 = vld [vmem:[%s25332_s4 + $0x3f8] ss:$12 sps:$4 sm:$0xff]  }
 0x21b   : > { %v19582_v13 = vld [vmem:[%s25332_s4 + $0x338] ss:$12 sps:$4 sm:$0xff]  }
 0x21c   : > { %11642 = vmatpush1.bf16.msra.mxu0 %v19453_v11  ;;  %v19541_v11 = vld [vmem:[%s25332_s4 + $0x348] ss:$12 sps:$4 sm:$0xff]  }
 0x21d   : > { %11643 = vmatprep.subr.bf16.mxu0 %v19461_v14  ;;  %16691 = vmatpush3.bf16.msra.mxu1 %v19499_v19  ;;  %v19586_v14 = vld [vmem:[%s25332_s4 + $0x410] ss:$12 sps:$4 sm:$0xff]  }
 0x21e   : > { %13153 = vmatmul.mubr.bf16.gmra.mrb[40].mxu1 %v19458_v15  ;;  %16692 = vmatprep.subr.bf16.mxu1 %v19506_v20  ;;  %v19552_v19 = vld [vmem:[%s25332_s4 + $0x37c] ss:$12 sps:$4 sm:$0xff]  }
 0x21f   : > { %11575 = vmatmul.mubr.bf16.gmra.mrb[8].mxu0 %v19458_v15  ;;  %13160 = vmatprep.mubr.bf16.mxu1 %v19465_v17  ;;  %v19549_v15 = vld [vmem:[%s25332_s4 + $0x364] ss:$12 sps:$4 sm:$0xff]  }
 0x220   : > { %11644 = vmatpush1.bf16.msra.mxu0 %v19459_v16  ;;  %11584 = vmatprep.mubr.bf16.mxu0 %v19465_v17  ;;  %v19546_v16 = vld [vmem:[%s22342_s16 + $0x1b8] ss:$108 sps:$4 sm:$0xff]   ;;  %v19547_v17 = vld [vmem:[%s25332_s4 + $0x360] ss:$12 sps:$4 sm:$0xff]   ;;  %v19587_v20 = vld [vmem:[%s25332_s4 + $0x350] ss:$12 sps:$4 sm:$0xff]  }
 0x221   : > { %11645 = vmatprep.subr.bf16.mxu0 %v19464_v18  ;;  %16693 = vmatpush3.bf16.msra.mxu1 %v19507_v23  ;;  %v19553_v18 = vld [vmem:[%s22342_s16 + $0x294] ss:$108 sps:$4 sm:$0xff]   ;;  %v19555_v23 = vld [vmem:[%s22342_s16 + $0x290] ss:$108 sps:$4 sm:$0xff]  }
 0x222   : > { %16694 = vmatprep.subr.bf16.mxu1 %v19511_v29  ;;  %v19559_v29 = vld [vmem:[%s25332_s4 + $0x3a8] ss:$12 sps:$4 sm:$0xff]  }
 0x224   : > { %11646 = vmatpush1.bf16.msra.mxu0 %v19462_v21  ;;  %v19594_v21 = vld [vmem:[%s25332_s4 + $0x428] ss:$12 sps:$4 sm:$0xff]  }
 0x225   : > { %11647 = vmatprep.subr.bf16.mxu0 %v19470_v22  ;;  %16695 = vmatpush3.bf16.msra.mxu1 %v19512_v30  ;;  %v19550_v22 = vld [vmem:[%s25332_s4 + $0x378] ss:$12 sps:$4 sm:$0xff]   ;;  %v19599_v30 = vld [vmem:[%s25332_s4 + $0x440] ss:$12 sps:$4 sm:$0xff]  }
 0x226   : > { %13161 = vmatmul.mubr.bf16.gmra.mrb[44].mxu1 %v19467_v24  ;;  %16696 = vmatprep.subr.bf16.mxu1 %v19519_v31  ;;  %v19600_v31 = vld [vmem:[%s25332_s4 + $0x380] ss:$12 sps:$4 sm:$0xff]  }
 0x227   : > { %11585 = vmatmul.mubr.bf16.gmra.mrb[12].mxu0 %v19467_v24  ;;  %13168 = vmatprep.mubr.bf16.mxu1 %v19474_v26  ;;  %v19558_v24 = vld [vmem:[%s25332_s4 + $0x394] ss:$12 sps:$4 sm:$0xff]  }
 0x228   : > { %11648 = vmatpush1.bf16.msra.mxu0 %v19468_v25  ;;  %11594 = vmatprep.mubr.bf16.mxu0 %v19474_v26  ;;  %v19595_v25 = vld [vmem:[%s25332_s4 + $0x368] ss:$12 sps:$4 sm:$0xff]   ;;  %v19556_v26 = vld [vmem:[%s25332_s4 + $0x390] ss:$12 sps:$4 sm:$0xff]  }
 0x229   : > { %11649 = vmatprep.subr.bf16.mxu0 %v19473_v27  ;;  %16697 = vmatpush3.bf16.msra.mxu1 %v19520_v37  ;;  %v19562_v27 = vld [vmem:[%s22342_s16 + $0x36c] ss:$108 sps:$4 sm:$0xff]   ;;  %v19572_v37 = vld [vmem:[%s25332_s4 + $0x3dc] ss:$12 sps:$4 sm:$0xff]  }
 0x22a   : > { %16698 = vmatprep.subr.bf16.mxu1 %v19524_v38  ;;  %v19608_v38 = vld [vmem:[%s25332_s4 + $0x398] ss:$12 sps:$4 sm:$0xff]  }
 0x22c   : > { %11650 = vmatpush1.bf16.msra.mxu0 %v19471_v28  ;;  %v19561_v28 = vld [vmem:[%s25332_s4 + $0x3ac] ss:$12 sps:$4 sm:$0xff]  }
 0x22d   : > { %11651 = vmatprep.subr.bf16.mxu0 %v19479_v32  ;;  %16699 = vmatpush3.bf16.msra.mxu1 %v19525_v42  ;;  %v19607_v32 = vld [vmem:[%s25332_s4 + $0x458] ss:$12 sps:$4 sm:$0xff]   ;;  %v19580_v42 = vld [vmem:[%s25332_s4 + $0x3f4] ss:$12 sps:$4 sm:$0xff]  }
 0x22e   : > { %13169 = vmatmul.mubr.bf16.gmra.mrb[48].mxu1 %v19476_v33  ;;  %16748 = vmatprep.subr.bf16.mxu1 %v19568_v46  ;;  %v19585_v46 = vld [vmem:[%s25332_s4 + $0x40c] ss:$12 sps:$4 sm:$0xff]  }
 0x22f   : > { %11595 = vmatmul.mubr.bf16.gmra.mrb[16].mxu0 %v19476_v33  ;;  %13176 = vmatprep.mubr.bf16.mxu1 %v19487_v35  ;;  %v19567_v33 = vld [vmem:[%s25332_s4 + $0x3c4] ss:$12 sps:$4 sm:$0xff]  }
 0x230   : > { %11652 = vmatpush1.bf16.msra.mxu0 %v19477_v34  ;;  %11604 = vmatprep.mubr.bf16.mxu0 %v19487_v35  ;;  %v19564_v34 = vld [vmem:[%s22342_s16 + $0x368] ss:$108 sps:$4 sm:$0xff]   ;;  %v19565_v35 = vld [vmem:[%s25332_s4 + $0x3c0] ss:$12 sps:$4 sm:$0xff]  }
 0x231   : > { %11653 = vmatprep.subr.bf16.mxu0 %v19484_v36  ;;  %v19575_v36 = vld [vmem:[%s22342_s16 + $0x444] ss:$108 sps:$4 sm:$0xff]  }
 0x234   : > { %11654 = vmatpush1.bf16.msra.mxu0 %v19482_v39  ;;  %v19612_v39 = vld [vmem:[%s25332_s4 + $0x470] ss:$12 sps:$4 sm:$0xff]  }
 0x235   : > { %11655 = vmatprep.subr.bf16.mxu0 %v19492_v41  ;;  %v19577_v41 = vld [vmem:[%s22342_s16 + $0x440] ss:$108 sps:$4 sm:$0xff]  }
 0x236   : > { %13177 = vmatmul.mubr.bf16.gmra.mrb[52].mxu1 %v19489_v40 }
 0x237   : > { %11605 = vmatmul.mubr.bf16.gmra.mrb[20].mxu0 %v19489_v40  ;;  %13184 = vmatprep.mubr.bf16.mxu1 %v19500_v44  ;;  %v19570_v40 = vld [vmem:[%s25332_s4 + $0x3d8] ss:$12 sps:$4 sm:$0xff]  }
 0x238   : > { %11656 = vmatpush1.bf16.msra.mxu0 %v19490_v43  ;;  %11614 = vmatprep.mubr.bf16.mxu0 %v19500_v44  ;;  %v19613_v43 = vld [vmem:[%s25332_s4 + $0x3b0] ss:$12 sps:$4 sm:$0xff]  }
 0x239   : > { %11657 = vmatprep.subr.bf16.mxu0 %v19497_v45  ;;  %v19578_v44 = vld [vmem:[%s25332_s4 + $0x3f0] ss:$12 sps:$4 sm:$0xff]  }
 0x23a   : > { %v19588_v45 = vld [vmem:[%s22342_s16 + $0x51c] ss:$108 sps:$4 sm:$0xff]  }
 0x23c   : > { %11658 = vmatpush1.bf16.msra.mxu0 %v19495_v47  ;;  %v19656_v47 = vld [vmem:[%s25332_s4 + $0x548] ss:$12 sps:$4 sm:$0xff]  }
 0x23d   : > { %11659 = vmatprep.subr.bf16.mxu0 %v19505_v48  ;;  %v19583_v48 = vld [vmem:[%s25332_s4 + $0x408] ss:$12 sps:$4 sm:$0xff]  }
 0x23e   : > { %13185 = vmatmul.mubr.bf16.gmra.mrb[56].mxu1 %v19502_v49 }
 0x23f   : > { %11615 = vmatmul.mubr.bf16.gmra.mrb[24].mxu0 %v19502_v49  ;;  %13192 = vmatprep.mubr.bf16.mxu1 %v19513_v52  ;;  %v19593_v49 = vld [vmem:[%s25332_s4 + $0x424] ss:$12 sps:$4 sm:$0xff]  }
 0x240   : > { %11660 = vmatpush1.bf16.msra.mxu0 %v19503_v51  ;;  %11624 = vmatprep.mubr.bf16.mxu0 %v19513_v52  ;;  %v19590_v51 = vld [vmem:[%s22342_s16 + $0x518] ss:$108 sps:$4 sm:$0xff]   ;;  %v19591_v52 = vld [vmem:[%s25332_s4 + $0x420] ss:$12 sps:$4 sm:$0xff]  }
 0x241   : > { %11661 = vmatprep.subr.bf16.mxu0 %v19510_v53  ;;  %v19601_v53 = vld [vmem:[%s22342_s16 + $0x5f4] ss:$108 sps:$4 sm:$0xff]  }
 0x244   : > { %11662 = vmatpush1.bf16.msra.mxu0 %v19508_v54  ;;  %v19598_v54 = vld [vmem:[%s25332_s4 + $0x43c] ss:$12 sps:$4 sm:$0xff]  }
 0x245   : > { %11663 = vmatprep.subr.bf16.mxu0 %v19518_v55  ;;  %v19596_v55 = vld [vmem:[%s25332_s4 + $0x438] ss:$12 sps:$4 sm:$0xff]  }
 0x246   : > { %13193 = vmatmul.mubr.bf16.gmra.mrb[60].mxu1 %v19515_v56 }
 0x247   : > { %11625 = vmatmul.mubr.bf16.gmra.mrb[28].mxu0 %v19515_v56  ;;  %13233 = vmatprep.mubr.bf16.mxu1 %v19528_v58  ;;  %v19606_v56 = vld [vmem:[%s25332_s4 + $0x454] ss:$12 sps:$4 sm:$0xff]  }
 0x248   : > { %11664 = vmatpush1.bf16.msra.mxu0 %v19516_v57  ;;  %11667 = vmatprep.mubr.bf16.mxu0 %v19528_v58  ;;  %v19603_v57 = vld [vmem:[%s22342_s16 + $0x5f0] ss:$108 sps:$4 sm:$0xff]  }
 0x249   : > { %11665 = vmatprep.subr.bf16.mxu0 %v19523_v59  ;;  %v19604_v58 = vld [vmem:[%s25332_s4 + $0x450] ss:$12 sps:$4 sm:$0xff]   ;;  %v19616_v59 = vld [vmem:[%s22342_s16 + $0x14] ss:$108 sps:$4 sm:$0xff]  }
 0x24c   : > { %11666 = vmatpush1.bf16.msra.mxu0 %v19521_v60  ;;  %v19611_v60 = vld [vmem:[%s25332_s4 + $0x46c] ss:$12 sps:$4 sm:$0xff]  }
 0x24d   : > { %11748 = vmatprep.subr.bf16.mxu0 %v19531_v61  ;;  %v19609_v61 = vld [vmem:[%s25332_s4 + $0x468] ss:$12 sps:$4 sm:$0xff]  }
 0x24e   : > { %13234 = vmatmul.mubr.bf16.vlgmr.msra.gmra.mrb[64].mxu1 %v19526_v62 }
 0x24f   : > { %11668 = vmatmul.mubr.bf16.vlgmr.msra.gmra.mrb[0].mxu0 %v19526_v62  ;;  %13241 = vmatprep.mubr.bf16.mxu1 %v19535_v0  ;;  %v19619_v62 = vld [vmem:[%s25332_s4 + $0x484] ss:$12 sps:$4 sm:$0xff]  }
 0x250   : > { %11749 = vmatpush1.bf16.msra.mxu0 %v19529_v63  ;;  %11677 = vmatprep.mubr.bf16.mxu0 %v19535_v0  ;;  %v19614_v63 = vld [vmem:[%s22342_s16 + $0x10] ss:$108 sps:$4 sm:$0xff]   ;;  %v19617_v0 = vld [vmem:[%s25332_s4 + $0x480] ss:$12 sps:$4 sm:$0xff]  }
 0x251   : > { %11750 = vmatprep.subr.bf16.mxu0 %v19534_v1  ;;  %16749 = vmatpush3.bf16.msra.mxu1 %v19569_v2  ;;  %v19623_v1 = vld [vmem:[%s22342_s16 + $0xec] ss:$108 sps:$4 sm:$0xff]   ;;  %v19622_v2 = vld [vmem:[%s25332_s4 + $0x49c] ss:$12 sps:$4 sm:$0xff]  }
 0x252   : > { %16750 = vmatprep.subr.bf16.mxu1 %v19573_v3  ;;  %v19657_v3 = vld [vmem:[%s25332_s4 + $0x488] ss:$12 sps:$4 sm:$0xff]  }
 0x254   : > { %11751 = vmatpush1.bf16.msra.mxu0 %v19532_v4  ;;  %v19661_v4 = vld [vmem:[%s25332_s4 + $0x560] ss:$12 sps:$4 sm:$0xff]  }
 0x255   : > { %11752 = vmatprep.subr.bf16.mxu0 %v19540_v5  ;;  %16751 = vmatpush3.bf16.msra.mxu1 %v19574_v6  ;;  %v19620_v5 = vld [vmem:[%s25332_s4 + $0x498] ss:$12 sps:$4 sm:$0xff]   ;;  %v19625_v6 = vld [vmem:[%s22342_s16 + $0xe8] ss:$108 sps:$4 sm:$0xff]  }
 0x256   : > { %13242 = vmatmul.mubr.bf16.gmra.mrb[68].mxu1 %v19537_v7  ;;  %16752 = vmatprep.subr.bf16.mxu1 %v19581_v12  ;;  %v19629_v12 = vld [vmem:[%s25332_s4 + $0x4c8] ss:$12 sps:$4 sm:$0xff]  }
 0x257   : > { %11678 = vmatmul.mubr.bf16.gmra.mrb[4].mxu0 %v19537_v7  ;;  %13249 = vmatprep.mubr.bf16.mxu1 %v19544_v9  ;;  %v19628_v7 = vld [vmem:[%s25332_s4 + $0x4b4] ss:$12 sps:$4 sm:$0xff]  }
 0x258   : > { %11753 = vmatpush1.bf16.msra.mxu0 %v19538_v8  ;;  %11687 = vmatprep.mubr.bf16.mxu0 %v19544_v9  ;;  %v19662_v8 = vld [vmem:[%s25332_s4 + $0x4a0] ss:$12 sps:$4 sm:$0xff]   ;;  %v19626_v9 = vld [vmem:[%s25332_s4 + $0x4b0] ss:$12 sps:$4 sm:$0xff]  }
 0x259   : > { %11754 = vmatprep.subr.bf16.mxu0 %v19543_v10  ;;  %16753 = vmatpush3.bf16.msra.mxu1 %v19582_v13  ;;  %v19632_v10 = vld [vmem:[%s22342_s16 + $0x1c4] ss:$108 sps:$4 sm:$0xff]  }
 0x25a   : > { %16754 = vmatprep.subr.bf16.mxu1 %v19586_v14  ;;  %v19669_v13 = vld [vmem:[%s25332_s4 + $0x578] ss:$12 sps:$4 sm:$0xff]  }
 0x25b   : > { %v19670_v14 = vld [vmem:[%s25332_s4 + $0x4b8] ss:$12 sps:$4 sm:$0xff]  }
 0x25c   : > { %11755 = vmatpush1.bf16.msra.mxu0 %v19541_v11  ;;  %v19631_v11 = vld [vmem:[%s25332_s4 + $0x4cc] ss:$12 sps:$4 sm:$0xff]  }
 0x25d   : > { %11756 = vmatprep.subr.bf16.mxu0 %v19549_v15  ;;  %16755 = vmatpush3.bf16.msra.mxu1 %v19587_v20  ;;  %v19674_v15 = vld [vmem:[%s25332_s4 + $0x590] ss:$12 sps:$4 sm:$0xff]  }
 0x25e   : > { %13250 = vmatmul.mubr.bf16.gmra.mrb[72].mxu1 %v19546_v16  ;;  %16756 = vmatprep.subr.bf16.mxu1 %v19594_v21  ;;  %v19640_v20 = vld [vmem:[%s25332_s4 + $0x4fc] ss:$12 sps:$4 sm:$0xff]  }
 0x25f   : > { %11688 = vmatmul.mubr.bf16.gmra.mrb[8].mxu0 %v19546_v16  ;;  %13257 = vmatprep.mubr.bf16.mxu1 %v19553_v18  ;;  %v19637_v16 = vld [vmem:[%s25332_s4 + $0x4e4] ss:$12 sps:$4 sm:$0xff]  }
 0x260   : > { %11757 = vmatpush1.bf16.msra.mxu0 %v19547_v17  ;;  %11697 = vmatprep.mubr.bf16.mxu0 %v19553_v18  ;;  %v19634_v17 = vld [vmem:[%s22342_s16 + $0x1c0] ss:$108 sps:$4 sm:$0xff]   ;;  %v19675_v21 = vld [vmem:[%s25332_s4 + $0x4d0] ss:$12 sps:$4 sm:$0xff]  }
 0x261   : > { %11758 = vmatprep.subr.bf16.mxu0 %v19552_v19  ;;  %16757 = vmatpush3.bf16.msra.mxu1 %v19595_v25  ;;  %v19635_v18 = vld [vmem:[%s25332_s4 + $0x4e0] ss:$12 sps:$4 sm:$0xff]   ;;  %v19641_v19 = vld [vmem:[%s22342_s16 + $0x29c] ss:$108 sps:$4 sm:$0xff]  }
 0x262   : > { %16758 = vmatprep.subr.bf16.mxu1 %v19599_v30  ;;  %v19646_v25 = vld [vmem:[%s25332_s4 + $0x514] ss:$12 sps:$4 sm:$0xff]  }
 0x263   : > { %v19650_v30 = vld [vmem:[%s22342_s16 + $0x374] ss:$108 sps:$4 sm:$0xff]  }
 0x264   : > { %11759 = vmatpush1.bf16.msra.mxu0 %v19550_v22  ;;  %v19682_v22 = vld [vmem:[%s25332_s4 + $0x5a8] ss:$12 sps:$4 sm:$0xff]  }
 0x265   : > { %11760 = vmatprep.subr.bf16.mxu0 %v19558_v24  ;;  %16759 = vmatpush3.bf16.msra.mxu1 %v19600_v31  ;;  %v19643_v24 = vld [vmem:[%s22342_s16 + $0x298] ss:$108 sps:$4 sm:$0xff]  }
 0x266   : > { %13258 = vmatmul.mubr.bf16.gmra.mrb[76].mxu1 %v19555_v23  ;;  %16760 = vmatprep.subr.bf16.mxu1 %v19607_v32 }
 0x267   : > { %11698 = vmatmul.mubr.bf16.gmra.mrb[12].mxu0 %v19555_v23  ;;  %13265 = vmatprep.mubr.bf16.mxu1 %v19562_v27  ;;  %v19638_v23 = vld [vmem:[%s25332_s4 + $0x4f8] ss:$12 sps:$4 sm:$0xff]  }
 0x268   : > { %11761 = vmatpush1.bf16.msra.mxu0 %v19556_v26  ;;  %11707 = vmatprep.mubr.bf16.mxu0 %v19562_v27  ;;  %v19644_v27 = vld [vmem:[%s25332_s4 + $0x510] ss:$12 sps:$4 sm:$0xff]  }
 0x269   : > { %11762 = vmatprep.subr.bf16.mxu0 %v19561_v28  ;;  %16761 = vmatpush3.bf16.msra.mxu1 %v19608_v38  ;;  %v19683_v28 = vld [vmem:[%s25332_s4 + $0x4e8] ss:$12 sps:$4 sm:$0xff]   ;;  %v19655_v38 = vld [vmem:[%s25332_s4 + $0x544] ss:$12 sps:$4 sm:$0xff]  }
 0x26a   : > { %16762 = vmatprep.subr.bf16.mxu1 %v19612_v39 }
 0x26c   : > { %11763 = vmatpush1.bf16.msra.mxu0 %v19559_v29 }
 0x26d   : > { %11764 = vmatprep.subr.bf16.mxu0 %v19567_v33  ;;  %16763 = vmatpush3.bf16.msra.mxu1 %v19613_v43  ;;  %v19649_v33 = vld [vmem:[%s25332_s4 + $0x52c] ss:$12 sps:$4 sm:$0xff]  }
 0x26e   : > { %13266 = vmatmul.mubr.bf16.gmra.mrb[80].mxu1 %v19564_v34  ;;  %16812 = vmatprep.subr.bf16.mxu1 %v19656_v47  ;;  %v19696_v47 = vld [vmem:[%s25332_s4 + $0x518] ss:$12 sps:$4 sm:$0xff]  }
 0x26f   : > { %11708 = vmatmul.mubr.bf16.gmra.mrb[16].mxu0 %v19564_v34  ;;  %13273 = vmatprep.mubr.bf16.mxu1 %v19575_v36  ;;  %v19647_v34 = vld [vmem:[%s25332_s4 + $0x528] ss:$12 sps:$4 sm:$0xff]  }
 0x270   : > { %11765 = vmatpush1.bf16.msra.mxu0 %v19565_v35  ;;  %11717 = vmatprep.mubr.bf16.mxu0 %v19575_v36  ;;  %v19687_v35 = vld [vmem:[%s25332_s4 + $0x5c0] ss:$12 sps:$4 sm:$0xff]  }
 0x271   : > { %11766 = vmatprep.subr.bf16.mxu0 %v19572_v37  ;;  %v19688_v36 = vld [vmem:[%s25332_s4 + $0x500] ss:$12 sps:$4 sm:$0xff]   ;;  %v19695_v37 = vld [vmem:[%s25332_s4 + $0x5d8] ss:$12 sps:$4 sm:$0xff]  }
 0x274   : > { %11767 = vmatpush1.bf16.msra.mxu0 %v19570_v40  ;;  %v19652_v40 = vld [vmem:[%s22342_s16 + $0x370] ss:$108 sps:$4 sm:$0xff]  }
 0x275   : > { %11768 = vmatprep.subr.bf16.mxu0 %v19580_v42  ;;  %v19653_v42 = vld [vmem:[%s25332_s4 + $0x540] ss:$12 sps:$4 sm:$0xff]  }
 0x276   : > { %13274 = vmatmul.mubr.bf16.gmra.mrb[84].mxu1 %v19577_v41 }
 0x277   : > { %11718 = vmatmul.mubr.bf16.gmra.mrb[20].mxu0 %v19577_v41  ;;  %13281 = vmatprep.mubr.bf16.mxu1 %v19588_v45 }
 0x278   : > { %11769 = vmatpush1.bf16.msra.mxu0 %v19578_v44  ;;  %11727 = vmatprep.mubr.bf16.mxu0 %v19588_v45  ;;  %v19663_v44 = vld [vmem:[%s22342_s16 + $0x44c] ss:$108 sps:$4 sm:$0xff]  }
 0x279   : > { %11770 = vmatprep.subr.bf16.mxu0 %v19585_v46  ;;  %v19660_v46 = vld [vmem:[%s25332_s4 + $0x55c] ss:$12 sps:$4 sm:$0xff]  }
 0x27c   : > { %11771 = vmatpush1.bf16.msra.mxu0 %v19583_v48  ;;  %v19700_v48 = vld [vmem:[%s25332_s4 + $0x5f0] ss:$12 sps:$4 sm:$0xff]  }
 0x27d   : > { %11772 = vmatprep.subr.bf16.mxu0 %v19593_v49  ;;  %v19658_v49 = vld [vmem:[%s25332_s4 + $0x558] ss:$12 sps:$4 sm:$0xff]  }
 0x27e   : > { %13282 = vmatmul.mubr.bf16.gmra.mrb[88].mxu1 %v19590_v51 }
 0x27f   : > { %11728 = vmatmul.mubr.bf16.gmra.mrb[24].mxu0 %v19590_v51  ;;  %13289 = vmatprep.mubr.bf16.mxu1 %v19601_v53  ;;  %v19668_v51 = vld [vmem:[%s25332_s4 + $0x574] ss:$12 sps:$4 sm:$0xff]  }
 0x280   : > { %11773 = vmatpush1.bf16.msra.mxu0 %v19591_v52  ;;  %11737 = vmatprep.mubr.bf16.mxu0 %v19601_v53  ;;  %v19665_v53 = vld [vmem:[%s22342_s16 + $0x448] ss:$108 sps:$4 sm:$0xff]  }
 0x281   : > { %11774 = vmatprep.subr.bf16.mxu0 %v19598_v54  ;;  %v19701_v54 = vld [vmem:[%s25332_s4 + $0x530] ss:$12 sps:$4 sm:$0xff]  }
 0x284   : > { %11775 = vmatpush1.bf16.msra.mxu0 %v19596_v55 }
 0x285   : > { %11776 = vmatprep.subr.bf16.mxu0 %v19606_v56  ;;  %v19666_v56 = vld [vmem:[%s25332_s4 + $0x570] ss:$12 sps:$4 sm:$0xff]  }
 0x286   : > { %13290 = vmatmul.mubr.bf16.gmra.mrb[92].mxu1 %v19603_v57 }
 0x287   : > { %11738 = vmatmul.mubr.bf16.gmra.mrb[28].mxu0 %v19603_v57  ;;  %13330 = vmatprep.mubr.bf16.mxu1 %v19616_v59 }
 0x288   : > { %11777 = vmatpush1.bf16.msra.mxu0 %v19604_v58  ;;  %11780 = vmatprep.mubr.bf16.mxu0 %v19616_v59  ;;  %v19676_v58 = vld [vmem:[%s22342_s16 + $0x524] ss:$108 sps:$4 sm:$0xff]  }
 0x289   : > { %11778 = vmatprep.subr.bf16.mxu0 %v19611_v60  ;;  %v19673_v60 = vld [vmem:[%s25332_s4 + $0x58c] ss:$12 sps:$4 sm:$0xff]  }
 0x28c   : > { %11779 = vmatpush1.bf16.msra.mxu0 %v19609_v61  ;;  %v19744_v61 = vld [vmem:[%s25332_s4 + $0x6c8] ss:$12 sps:$4 sm:$0xff]  }
 0x28d   : > { %11861 = vmatprep.subr.bf16.mxu0 %v19619_v62  ;;  %v19671_v62 = vld [vmem:[%s25332_s4 + $0x588] ss:$12 sps:$4 sm:$0xff]  }
 0x28e   : > { %13331 = vmatmul.mubr.bf16.vlgmr.msra.gmra.mrb[96].mxu1 %v19614_v63 }
 0x28f   : > { %11781 = vmatmul.mubr.bf16.vlgmr.msra.gmra.mrb[0].mxu0 %v19614_v63  ;;  %13338 = vmatprep.mubr.bf16.mxu1 %v19623_v1  ;;  %v19678_v63 = vld [vmem:[%s22342_s16 + $0x520] ss:$108 sps:$4 sm:$0xff]  }
 0x290   : > { %11862 = vmatpush1.bf16.msra.mxu0 %v19617_v0  ;;  %11790 = vmatprep.mubr.bf16.mxu0 %v19623_v1  ;;  %v19681_v0 = vld [vmem:[%s25332_s4 + $0x5a4] ss:$12 sps:$4 sm:$0xff]  }
 0x291   : > { %11863 = vmatprep.subr.bf16.mxu0 %v19622_v2  ;;  %16813 = vmatpush3.bf16.msra.mxu1 %v19657_v3  ;;  %v19679_v2 = vld [vmem:[%s25332_s4 + $0x5a0] ss:$12 sps:$4 sm:$0xff]  }
 0x292   : > { %16814 = vmatprep.subr.bf16.mxu1 %v19661_v4  ;;  %v19689_v4 = vld [vmem:[%s22342_s16 + $0x5fc] ss:$108 sps:$4 sm:$0xff]  }
 0x294   : > { %11864 = vmatpush1.bf16.msra.mxu0 %v19620_v5 }
 0x295   : > { %11865 = vmatprep.subr.bf16.mxu0 %v19628_v7  ;;  %16815 = vmatpush3.bf16.msra.mxu1 %v19662_v8  ;;  %v19686_v7 = vld [vmem:[%s25332_s4 + $0x5bc] ss:$12 sps:$4 sm:$0xff]   ;;  %v19684_v8 = vld [vmem:[%s25332_s4 + $0x5b8] ss:$12 sps:$4 sm:$0xff]  }
 0x296   : > { %13339 = vmatmul.mubr.bf16.gmra.mrb[100].mxu1 %v19625_v6  ;;  %16816 = vmatprep.subr.bf16.mxu1 %v19669_v13 }
 0x297   : > { %11791 = vmatmul.mubr.bf16.gmra.mrb[4].mxu0 %v19625_v6  ;;  %13346 = vmatprep.mubr.bf16.mxu1 %v19632_v10 }
 0x298   : > { %11866 = vmatpush1.bf16.msra.mxu0 %v19626_v9  ;;  %11800 = vmatprep.mubr.bf16.mxu0 %v19632_v10  ;;  %v19691_v9 = vld [vmem:[%s22342_s16 + $0x5f8] ss:$108 sps:$4 sm:$0xff]   ;;  %v19694_v10 = vld [vmem:[%s25332_s4 + $0x5d4] ss:$12 sps:$4 sm:$0xff]  }
 0x299   : > { %11867 = vmatprep.subr.bf16.mxu0 %v19631_v11  ;;  %16817 = vmatpush3.bf16.msra.mxu1 %v19670_v14  ;;  %v19704_v14 = vld [vmem:[%s22342_s16 + $0x1c] ss:$108 sps:$4 sm:$0xff]  }
 0x29a   : > { %16818 = vmatprep.subr.bf16.mxu1 %v19674_v15 }
 0x29c   : > { %11868 = vmatpush1.bf16.msra.mxu0 %v19629_v12  ;;  %v19692_v12 = vld [vmem:[%s25332_s4 + $0x5d0] ss:$12 sps:$4 sm:$0xff]  }
 0x29d   : > { %11869 = vmatprep.subr.bf16.mxu0 %v19637_v16  ;;  %16819 = vmatpush3.bf16.msra.mxu1 %v19675_v21 }
 0x29e   : > { %13347 = vmatmul.mubr.bf16.gmra.mrb[104].mxu1 %v19634_v17  ;;  %16820 = vmatprep.subr.bf16.mxu1 %v19682_v22  ;;  %v19705_v22 = vld [vmem:[%s25332_s4 + $0x600] ss:$12 sps:$4 sm:$0xff]  }
 0x29f   : > { %11801 = vmatmul.mubr.bf16.gmra.mrb[8].mxu0 %v19634_v17  ;;  %13354 = vmatprep.mubr.bf16.mxu1 %v19641_v19  ;;  %v19699_v17 = vld [vmem:[%s25332_s4 + $0x5ec] ss:$12 sps:$4 sm:$0xff]  }
 0x2a0   : > { %11870 = vmatpush1.bf16.msra.mxu0 %v19635_v18  ;;  %11810 = vmatprep.mubr.bf16.mxu0 %v19641_v19  ;;  %v19697_v18 = vld [vmem:[%s25332_s4 + $0x5e8] ss:$12 sps:$4 sm:$0xff]   ;;  %v19702_v19 = vld [vmem:[%s22342_s16 + $0x18] ss:$108 sps:$4 sm:$0xff]  }
 0x2a1   : > { %11871 = vmatprep.subr.bf16.mxu0 %v19640_v20  ;;  %v22826_v26 = vpop.f32.mrb[0].mxu1  ;;  %16821 = vmatpush3.bf16.msra.mxu1 %v19683_v28  ;;  %v19707_v20 = vld [vmem:[%s25332_s4 + $0x604] ss:$12 sps:$4 sm:$0xff]   ;;  %v19710_v28 = vld [vmem:[%s25332_s4 + $0x61c] ss:$12 sps:$4 sm:$0xff]  }
 0x2a2   : > { %v22834_v29 = vpop.f32.mrb[1].mxu1  ;;  %16822 = vmatprep.subr.bf16.mxu1 %v19687_v35  ;;  %v19713_v35 = vld [vmem:[%s22342_s16 + $0xf0] ss:$108 sps:$4 sm:$0xff]  }
 0x2a3   : > { %v22837_v31 = vpop.f32.mrb[2].mxu1 }
 0x2a4   : > { %11872 = vmatpush1.bf16.msra.mxu0 %v19638_v23  ;;  %v22839_v32 = vpop.f32.mrb[3].mxu1 }
 0x2a5   : > { %11873 = vmatprep.subr.bf16.mxu0 %v19646_v25  ;;  %16823 = vmatpush3.bf16.msra.mxu1 %v19688_v36  ;;  %v19716_v36 = vld [vmem:[%s25332_s4 + $0x634] ss:$12 sps:$4 sm:$0xff]  }
 0x2a6   : > { %13355 = vmatmul.mubr.bf16.gmra.mrb[108].mxu1 %v19643_v24  ;;  %16824 = vmatprep.subr.bf16.mxu1 %v19695_v37 }
 0x2a7   : > { %11811 = vmatmul.mubr.bf16.gmra.mrb[12].mxu0 %v19643_v24  ;;  %13362 = vmatprep.mubr.bf16.mxu1 %v19650_v30  ;;  %v19711_v24 = vld [vmem:[%s22342_s16 + $0xf4] ss:$108 sps:$4 sm:$0xff]  }
 0x2a8   : > { %11874 = vmatpush1.bf16.msra.mxu0 %v19644_v27  ;;  %11820 = vmatprep.mubr.bf16.mxu0 %v19650_v30  ;;  %v19745_v30 = vld [vmem:[%s25332_s4 + $0x608] ss:$12 sps:$4 sm:$0xff]  }
 0x2a9   : > { %11875 = vmatprep.subr.bf16.mxu0 %v19649_v33  ;;  %v22859_v39 = vpop.f32.mrb[4].mxu1  ;;  %16825 = vmatpush3.bf16.msra.mxu1 %v19696_v47  ;;  %v19749_v33 = vld [vmem:[%s25332_s4 + $0x6e0] ss:$12 sps:$4 sm:$0xff]  }
 0x2aa   : > { %v22862_v41 = vpop.f32.mrb[5].mxu1  ;;  %16826 = vmatprep.subr.bf16.mxu1 %v19700_v48  ;;  %v19719_v48 = vld [vmem:[%s25332_s4 + $0x64c] ss:$12 sps:$4 sm:$0xff]  }
 0x2ab   : > { %v22867_v43 = vpop.f32.mrb[6].mxu1 }
 0x2ac   : > { %11876 = vmatpush1.bf16.msra.mxu0 %v19647_v34  ;;  %v22870_v45 = vpop.f32.mrb[7].mxu1  ;;  %v19708_v34 = vld [vmem:[%s25332_s4 + $0x618] ss:$12 sps:$4 sm:$0xff]  }
 0x2ad   : > { %11877 = vmatprep.subr.bf16.mxu0 %v19655_v38  ;;  %16827 = vmatpush3.bf16.msra.mxu1 %v19701_v54  ;;  %v19714_v38 = vld [vmem:[%s25332_s4 + $0x630] ss:$12 sps:$4 sm:$0xff]  }
 0x2ae   : > { %13363 = vmatmul.mubr.bf16.gmra.mrb[112].mxu1 %v19652_v40  ;;  %16876 = vmatprep.subr.bf16.mxu1 %v19744_v61  ;;  %v19762_v54 = vld [vmem:[%s25332_s4 + $0x710] ss:$12 sps:$4 sm:$0xff]  }
 0x2af   : > { %11821 = vmatmul.mubr.bf16.gmra.mrb[16].mxu0 %v19652_v40  ;;  %13370 = vmatprep.mubr.bf16.mxu1 %v19663_v44  ;;  %v19750_v40 = vld [vmem:[%s25332_s4 + $0x620] ss:$12 sps:$4 sm:$0xff]  }
 0x2b0   : > { %11878 = vmatpush1.bf16.msra.mxu0 %v19653_v42  ;;  %11830 = vmatprep.mubr.bf16.mxu0 %v19663_v44  ;;  %v19720_v44 = vld [vmem:[%s22342_s16 + $0x1cc] ss:$108 sps:$4 sm:$0xff]  }
 0x2b1   : > { %11879 = vmatprep.subr.bf16.mxu0 %v19660_v46  ;;  %v22887_v52 = vpop.f32.mrb[8].mxu1 }
 0x2b2   : > { %v22893_v55 = vpop.f32.mrb[9].mxu1 }
 0x2b3   : > { %v22898_v57 = vpop.f32.mrb[10].mxu1 }
 0x2b4   : > { %11880 = vmatpush1.bf16.msra.mxu0 %v19658_v49  ;;  %v22901_v59 = vpop.f32.mrb[11].mxu1  ;;  %v19717_v49 = vld [vmem:[%s25332_s4 + $0x648] ss:$12 sps:$4 sm:$0xff]  }
 0x2b5   : > { %11881 = vmatprep.subr.bf16.mxu0 %v19668_v51  ;;  %v19757_v51 = vld [vmem:[%s25332_s4 + $0x6f8] ss:$12 sps:$4 sm:$0xff]  }
 0x2b6   : > { %13371 = vmatmul.mubr.bf16.gmra.mrb[116].mxu1 %v19665_v53 }
 0x2b7   : > { %11831 = vmatmul.mubr.bf16.gmra.mrb[20].mxu0 %v19665_v53  ;;  %13378 = vmatprep.mubr.bf16.mxu1 %v19676_v58  ;;  %v19758_v53 = vld [vmem:[%s25332_s4 + $0x638] ss:$12 sps:$4 sm:$0xff]  }
 0x2b8   : > { %11882 = vmatpush1.bf16.msra.mxu0 %v19666_v56  ;;  %11840 = vmatprep.mubr.bf16.mxu0 %v19676_v58  ;;  %v19725_v56 = vld [vmem:[%s25332_s4 + $0x664] ss:$12 sps:$4 sm:$0xff]  }
 0x2b9   : > { %11883 = vmatprep.subr.bf16.mxu0 %v19673_v60  ;;  %v22916_v1 = vpop.f32.mrb[12].mxu1  ;;  %v19722_v60 = vld [vmem:[%s22342_s16 + $0x1c8] ss:$108 sps:$4 sm:$0xff]  }
 0x2ba   : > { %v22921_v3 = vpop.f32.mrb[13].mxu1 }
 0x2bb   : > { %v22924_v5 = vpop.f32.mrb[14].mxu1 }
 0x2bc   : > { %11884 = vmatpush1.bf16.msra.mxu0 %v19671_v62  ;;  %v22926_v6 = vpop.f32.mrb[15].mxu1  ;;  %v19723_v62 = vld [vmem:[%s25332_s4 + $0x660] ss:$12 sps:$4 sm:$0xff]  }
 0x2bd   : > { %11885 = vmatprep.subr.bf16.mxu0 %v19681_v0  ;;  %v19729_v0 = vld [vmem:[%s22342_s16 + $0x2a4] ss:$108 sps:$4 sm:$0xff]  }
 0x2be   : > { %13379 = vmatmul.mubr.bf16.gmra.mrb[120].mxu1 %v19678_v63 }
 0x2bf   : > { %11841 = vmatmul.mubr.bf16.gmra.mrb[24].mxu0 %v19678_v63  ;;  %13386 = vmatprep.mubr.bf16.mxu1 %v19689_v4 }
 0x2c0   : > { %11886 = vmatpush1.bf16.msra.mxu0 %v19679_v2  ;;  %11850 = vmatprep.mubr.bf16.mxu0 %v19689_v4  ;;  %v19728_v4 = vld [vmem:[%s25332_s4 + $0x67c] ss:$12 sps:$4 sm:$0xff]  }
 0x2c1   : > { %11887 = vmatprep.subr.bf16.mxu0 %v19686_v7  ;;  %v22938_v11 = vpop.f32.mrb[16].mxu1  ;;  %v19726_v7 = vld [vmem:[%s25332_s4 + $0x678] ss:$12 sps:$4 sm:$0xff]  }
 0x2c2   : > { %v22943_v13 = vpop.f32.mrb[17].mxu1 }
 0x2c3   : > { %v22946_v15 = vpop.f32.mrb[18].mxu1 }
 0x2c4   : > { %11888 = vmatpush1.bf16.msra.mxu0 %v19684_v8  ;;  %v22948_v16 = vpop.f32.mrb[19].mxu1  ;;  %v19763_v8 = vld [vmem:[%s25332_s4 + $0x650] ss:$12 sps:$4 sm:$0xff]  }
 0x2c5   : > { %11889 = vmatprep.subr.bf16.mxu0 %v19694_v10  ;;  %v19731_v10 = vld [vmem:[%s22342_s16 + $0x2a0] ss:$108 sps:$4 sm:$0xff]  }
 0x2c6   : > { %13387 = vmatmul.mubr.bf16.gmra.mrb[124].mxu1 %v19691_v9 }
 0x2c7   : > { %11851 = vmatmul.mubr.bf16.gmra.mrb[28].mxu0 %v19691_v9  ;;  %13427 = vmatprep.mubr.bf16.mxu1 %v19704_v14  ;;  %v19770_v9 = vld [vmem:[%s25332_s4 + $0x728] ss:$12 sps:$4 sm:$0xff]  }
 0x2c8   : > { %11890 = vmatpush1.bf16.msra.mxu0 %v19692_v12  ;;  %11893 = vmatprep.mubr.bf16.mxu0 %v19704_v14  ;;  %v19734_v12 = vld [vmem:[%s25332_s4 + $0x694] ss:$12 sps:$4 sm:$0xff]   ;;  %v19732_v14 = vld [vmem:[%s25332_s4 + $0x690] ss:$12 sps:$4 sm:$0xff]  }
 0x2c9   : > { %11891 = vmatprep.subr.bf16.mxu0 %v19699_v17  ;;  %v22960_v21 = vpop.f32.mrb[20].mxu1  ;;  %v19771_v17 = vld [vmem:[%s25332_s4 + $0x668] ss:$12 sps:$4 sm:$0xff]  }
 0x2ca   : > { %v22965_v23 = vpop.f32.mrb[21].mxu1 }
 0x2cb   : > { %v22968_v25 = vpop.f32.mrb[22].mxu1 }
 0x2cc   : > { %11892 = vmatpush1.bf16.msra.mxu0 %v19697_v18  ;;  %v22970_v27 = vpop.f32.mrb[23].mxu1 }
 0x2cd   : > { %11974 = vmatprep.subr.bf16.mxu0 %v19707_v20 }
 0x2ce   : > { %13428 = vmatmul.mubr.bf16.vlgmr.msra.gmra.mrb[128].mxu1 %v19702_v19 }
 0x2cf   : > { %11894 = vmatmul.mubr.bf16.vlgmr.msra.gmra.mrb[0].mxu0 %v19702_v19  ;;  %13435 = vmatprep.mubr.bf16.mxu1 %v19711_v24  ;;  %v19737_v19 = vld [vmem:[%s25332_s4 + $0x6ac] ss:$12 sps:$4 sm:$0xff]  }
 0x2d0   : > { %11975 = vmatpush1.bf16.msra.mxu0 %v19705_v22  ;;  %11903 = vmatprep.mubr.bf16.mxu0 %v19711_v24  ;;  %v19738_v22 = vld [vmem:[%s22342_s16 + $0x37c] ss:$108 sps:$4 sm:$0xff]  }
 0x2d1   : > { %11976 = vmatprep.subr.bf16.mxu0 %v19710_v28  ;;  %v22988_v37 = vpop.f32.mrb[24].mxu1  ;;  %16877 = vmatpush3.bf16.msra.mxu1 %v19745_v30  ;;  %v19775_v30 = vld [vmem:[%s25332_s4 + $0x740] ss:$12 sps:$4 sm:$0xff]  }
 0x2d2   : > { %v22996_v42 = vpop.f32.mrb[25].mxu1  ;;  %16878 = vmatprep.subr.bf16.mxu1 %v19749_v33  ;;  %v19776_v33 = vld [vmem:[%s25332_s4 + $0x680] ss:$12 sps:$4 sm:$0xff]  }
 0x2d3   : > { %v22999_v46 = vpop.f32.mrb[26].mxu1 }
 0x2d4   : > { %11977 = vmatpush1.bf16.msra.mxu0 %v19708_v34  ;;  %v23001_v47 = vpop.f32.mrb[27].mxu1 }
 0x2d5   : > { %11978 = vmatprep.subr.bf16.mxu0 %v19716_v36  ;;  %16879 = vmatpush3.bf16.msra.mxu1 %v19750_v40  ;;  %v19740_v40 = vld [vmem:[%s22342_s16 + $0x378] ss:$108 sps:$4 sm:$0xff]  }
 0x2d6   : > { %13436 = vmatmul.mubr.bf16.gmra.mrb[132].mxu1 %v19713_v35  ;;  %16880 = vmatprep.subr.bf16.mxu1 %v19757_v51 }
 0x2d7   : > { %11904 = vmatmul.mubr.bf16.gmra.mrb[4].mxu0 %v19713_v35  ;;  %13443 = vmatprep.mubr.bf16.mxu1 %v19720_v44  ;;  %v19735_v35 = vld [vmem:[%s25332_s4 + $0x6a8] ss:$12 sps:$4 sm:$0xff]  }
 0x2d8   : > { %11979 = vmatpush1.bf16.msra.mxu0 %v19714_v38  ;;  %11913 = vmatprep.mubr.bf16.mxu0 %v19720_v44  ;;  %v19783_v38 = vld [vmem:[%s25332_s4 + $0x758] ss:$12 sps:$4 sm:$0xff]  }
 0x2d9   : > { %11980 = vmatprep.subr.bf16.mxu0 %v19719_v48  ;;  %v23021_v58 = vpop.f32.mrb[28].mxu1  ;;  %16881 = vmatpush3.bf16.msra.mxu1 %v19758_v53  ;;  %v19743_v44 = vld [vmem:[%s25332_s4 + $0x6c4] ss:$12 sps:$4 sm:$0xff]   ;;  %v19741_v48 = vld [vmem:[%s25332_s4 + $0x6c0] ss:$12 sps:$4 sm:$0xff]  }
 0x2da   : > { %25339 = vst [vmem:[#allocation2_spill] sm:$0xff] %v23021_v58  ;;  %v23024_v61 = vpop.f32.mrb[29].mxu1  ;;  %16882 = vmatprep.subr.bf16.mxu1 %v19762_v54  ;;  %v19751_v53 = vld [vmem:[%s22342_s16 + $0x454] ss:$108 sps:$4 sm:$0xff]  }
 0x2db   : > { %25340 = vst [vmem:[#allocation3_spill] sm:$0xff] %v23024_v61  ;;  %v23029_v63 = vpop.f32.mrb[30].mxu1 }
 0x2dc   : > { %25341 = vst [vmem:[#allocation4_spill] sm:$0xff] %v23029_v63  ;;  %11981 = vmatpush1.bf16.msra.mxu0 %v19717_v49  ;;  %v23032_v2 = vpop.f32.mrb[31].mxu1 }
 0x2dd   : > { %25342 = vst [vmem:[#allocation5_spill] sm:$0xff] %v23032_v2  ;;  %11982 = vmatprep.subr.bf16.mxu0 %v19725_v56  ;;  %16883 = vmatpush3.bf16.msra.mxu1 %v19763_v8  ;;  %v19788_v8 = vld [vmem:[%s25332_s4 + $0x770] ss:$12 sps:$4 sm:$0xff]   ;;  %v19864_v2 = vld [vmem:[%s25332_s4 + $0x800] ss:$12 sps:$4 sm:$0xff]  }
 0x2de   : > { %13444 = vmatmul.mubr.bf16.gmra.mrb[136].mxu1 %v19722_v60  ;;  %16884 = vmatprep.subr.bf16.mxu1 %v19770_v9  ;;  %v19753_v9 = vld [vmem:[%s22342_s16 + $0x450] ss:$108 sps:$4 sm:$0xff]  }
 0x2df   : > { %11914 = vmatmul.mubr.bf16.gmra.mrb[8].mxu0 %v19722_v60  ;;  %13451 = vmatprep.mubr.bf16.mxu1 %v19729_v0  ;;  %v19748_v60 = vld [vmem:[%s25332_s4 + $0x6dc] ss:$12 sps:$4 sm:$0xff]  }
 0x2e0   : > { %11983 = vmatpush1.bf16.msra.mxu0 %v19723_v62  ;;  %11923 = vmatprep.mubr.bf16.mxu0 %v19729_v0  ;;  %v19746_v0 = vld [vmem:[%s25332_s4 + $0x6d8] ss:$12 sps:$4 sm:$0xff]  }
 0x2e1   : > { %11984 = vmatprep.subr.bf16.mxu0 %v19728_v4  ;;  %v16636_v18 = vpop.f32.mrb[32].mxu1  ;;  %16885 = vmatpush3.bf16.msra.mxu1 %v19771_v17  ;;  %v19784_v4 = vld [vmem:[%s25332_s4 + $0x698] ss:$12 sps:$4 sm:$0xff]   ;;  %v19789_v17 = vld [vmem:[%s25332_s4 + $0x6b0] ss:$12 sps:$4 sm:$0xff]  }
 0x2e2   : > { %v16637_v20 = vpop.f32.mrb[33].mxu1  ;;  %16886 = vmatprep.subr.bf16.mxu1 %v19775_v30 }
 0x2e3   : > { %v23060_v24 = vadd.f32 %v16637_v20, %v16636_v18  ;;  %v16639_v28 = vpop.f32.mrb[34].mxu1 }
 0x2e4   : > { %11985 = vmatpush1.bf16.msra.mxu0 %v19726_v7  ;;  %v16640_v34 = vpop.f32.mrb[35].mxu1 }
 0x2e5   : > { %11986 = vmatprep.subr.bf16.mxu0 %v19734_v12  ;;  %v23071_v36 = vadd.f32 %v16640_v34, %v16639_v28  ;;  %16887 = vmatpush3.bf16.msra.mxu1 %v19776_v33  ;;  %v19754_v12 = vld [vmem:[%s25332_s4 + $0x6f0] ss:$12 sps:$4 sm:$0xff]   ;;  %v19761_v28 = vld [vmem:[%s25332_s4 + $0x70c] ss:$12 sps:$4 sm:$0xff]   ;;  %v19759_v33 = vld [vmem:[%s25332_s4 + $0x708] ss:$12 sps:$4 sm:$0xff]  }
 0x2e6   : > { %13452 = vmatmul.mubr.bf16.gmra.mrb[140].mxu1 %v19731_v10  ;;  %16888 = vmatprep.subr.bf16.mxu1 %v19783_v38  ;;  %v19769_v38 = vld [vmem:[%s25332_s4 + $0x724] ss:$12 sps:$4 sm:$0xff]  }
 0x2e7   : > { %11924 = vmatmul.mubr.bf16.gmra.mrb[12].mxu0 %v19731_v10  ;;  %13459 = vmatprep.mubr.bf16.mxu1 %v19738_v22  ;;  %v19756_v10 = vld [vmem:[%s25332_s4 + $0x6f4] ss:$12 sps:$4 sm:$0xff]  }
 0x2e8   : > { %11987 = vmatpush1.bf16.msra.mxu0 %v19732_v14  ;;  %11933 = vmatprep.mubr.bf16.mxu0 %v19738_v22 }
 0x2e9   : > { %11988 = vmatprep.subr.bf16.mxu0 %v19737_v19  ;;  %v16642_v49 = vpop.f32.mrb[36].mxu1  ;;  %16889 = vmatpush3.bf16.msra.mxu1 %v19784_v4  ;;  %v19764_v19 = vld [vmem:[%s22342_s16 + $0x52c] ss:$108 sps:$4 sm:$0xff]  }
 0x2ea   : > { %v16643_v51 = vpop.f32.mrb[37].mxu1  ;;  %16890 = vmatprep.subr.bf16.mxu1 %v19788_v8  ;;  %v19782_v8 = vld [vmem:[%s25332_s4 + $0x754] ss:$12 sps:$4 sm:$0xff]  }
 0x2eb   : > { %v23084_v54 = vadd.f32 %v16643_v51, %v16642_v49  ;;  %v16645_v56 = vpop.f32.mrb[38].mxu1  ;;  %v19777_v51 = vld [vmem:[%s22342_s16 + $0x604] ss:$108 sps:$4 sm:$0xff]  }
 0x2ec   : > { %11989 = vmatpush1.bf16.msra.mxu0 %v19735_v35  ;;  %v16646_v62 = vpop.f32.mrb[39].mxu1  ;;  %v19832_v35 = vld [vmem:[%s25332_s4 + $0x848] ss:$12 sps:$4 sm:$0xff]  }
 0x2ed   : > { %11990 = vmatprep.subr.bf16.mxu0 %v19743_v44  ;;  %v23095_v7 = vadd.f32 %v16646_v62, %v16645_v56  ;;  %16891 = vmatpush3.bf16.msra.mxu1 %v19789_v17  ;;  %v19767_v44 = vld [vmem:[%s25332_s4 + $0x720] ss:$12 sps:$4 sm:$0xff]   ;;  %v19792_v17 = vld [vmem:[%s22342_s16 + $0x24] ss:$108 sps:$4 sm:$0xff]  }
 0x2ee   : > { %13460 = vmatmul.mubr.bf16.gmra.mrb[144].mxu1 %v19740_v40  ;;  %16940 = vmatprep.subr.bf16.mxu1 %v19832_v35  ;;  %v19795_v35 = vld [vmem:[%s25332_s4 + $0x784] ss:$12 sps:$4 sm:$0xff]  }
 0x2ef   : > { %11934 = vmatmul.mubr.bf16.gmra.mrb[16].mxu0 %v19740_v40  ;;  %13467 = vmatprep.mubr.bf16.mxu1 %v19751_v53  ;;  %v19766_v40 = vld [vmem:[%s22342_s16 + $0x528] ss:$108 sps:$4 sm:$0xff]  }
 0x2f0   : > { %11991 = vmatpush1.bf16.msra.mxu0 %v19741_v48  ;;  %11943 = vmatprep.mubr.bf16.mxu0 %v19751_v53 }
 0x2f1   : > { %11992 = vmatprep.subr.bf16.mxu0 %v19748_v60  ;;  %v16648_v14 = vpop.f32.mrb[40].mxu1  ;;  %v19774_v60 = vld [vmem:[%s25332_s4 + $0x73c] ss:$12 sps:$4 sm:$0xff]  }
 0x2f2   : > { %v16649_v18 = vpop.f32.mrb[41].mxu1 }
 0x2f3   : > { %v23111_v20 = vadd.f32 %v16649_v18, %v16648_v14  ;;  %v16651_v22 = vpop.f32.mrb[42].mxu1 }
 0x2f4   : > { %11993 = vmatpush1.bf16.msra.mxu0 %v19746_v0  ;;  %v16652_v30 = vpop.f32.mrb[43].mxu1  ;;  %v19772_v0 = vld [vmem:[%s25332_s4 + $0x738] ss:$12 sps:$4 sm:$0xff]  }
 0x2f5   : > { %11994 = vmatprep.subr.bf16.mxu0 %v19756_v10  ;;  %v23119_v34 = vadd.f32 %v16652_v30, %v16651_v22  ;;  %v19780_v10 = vld [vmem:[%s25332_s4 + $0x750] ss:$12 sps:$4 sm:$0xff]   ;;  %v19787_v22 = vld [vmem:[%s25332_s4 + $0x76c] ss:$12 sps:$4 sm:$0xff]   ;;  %v19785_v30 = vld [vmem:[%s25332_s4 + $0x768] ss:$12 sps:$4 sm:$0xff]  }
 0x2f6   : > { %13468 = vmatmul.mubr.bf16.gmra.mrb[148].mxu1 %v19753_v9 }
 0x2f7   : > { %11944 = vmatmul.mubr.bf16.gmra.mrb[20].mxu0 %v19753_v9  ;;  %13475 = vmatprep.mubr.bf16.mxu1 %v19764_v19  ;;  %v19779_v9 = vld [vmem:[%s22342_s16 + $0x600] ss:$108 sps:$4 sm:$0xff]  }
 0x2f8   : > { %11995 = vmatpush1.bf16.msra.mxu0 %v19754_v12  ;;  %11953 = vmatprep.mubr.bf16.mxu0 %v19764_v19 }
 0x2f9   : > { %11996 = vmatprep.subr.bf16.mxu0 %v19761_v28  ;;  %v16654_v48 = vpop.f32.mrb[44].mxu1 }
 0x2fa   : > { %v16655_v49 = vpop.f32.mrb[45].mxu1 }
 0x2fb   : > { %v23132_v53 = vadd.f32 %v16655_v49, %v16654_v48  ;;  %v16657_v56 = vpop.f32.mrb[46].mxu1  ;;  %v19799_v49 = vld [vmem:[%s22342_s16 + $0xfc] ss:$108 sps:$4 sm:$0xff]  }
 0x2fc   : > { %11997 = vmatpush1.bf16.msra.mxu0 %v19759_v33  ;;  %v16658_v62 = vpop.f32.mrb[47].mxu1 }
 0x2fd   : > { %11998 = vmatprep.subr.bf16.mxu0 %v19769_v38  ;;  %v23140_v4 = vadd.f32 %v16658_v62, %v16657_v56  ;;  %v19790_v38 = vld [vmem:[%s22342_s16 + $0x20] ss:$108 sps:$4 sm:$0xff]  }
 0x2fe   : > { %13476 = vmatmul.mubr.bf16.gmra.mrb[152].mxu1 %v19766_v40 }
 0x2ff   : > { %11954 = vmatmul.mubr.bf16.gmra.mrb[24].mxu0 %v19766_v40  ;;  %13483 = vmatprep.mubr.bf16.mxu1 %v19777_v51  ;;  %v19793_v40 = vld [vmem:[%s25332_s4 + $0x780] ss:$12 sps:$4 sm:$0xff]  }
 0x300   : > { %11999 = vmatpush1.bf16.msra.mxu0 %v19767_v44  ;;  %11963 = vmatprep.mubr.bf16.mxu0 %v19777_v51 }
 0x301   : > { %12000 = vmatprep.subr.bf16.mxu0 %v19774_v60  ;;  %v16660_v12 = vpop.f32.mrb[48].mxu1  ;;  %v19798_v60 = vld [vmem:[%s25332_s4 + $0x79c] ss:$12 sps:$4 sm:$0xff]  }
 0x302   : > { %v16661_v14 = vpop.f32.mrb[49].mxu1 }
 0x303   : > { %v23150_v18 = vadd.f32 %v16661_v14, %v16660_v12  ;;  %v16663_v19 = vpop.f32.mrb[50].mxu1  ;;  %v19801_v12 = vld [vmem:[%s22342_s16 + $0xf8] ss:$108 sps:$4 sm:$0xff]   ;;  %v19804_v14 = vld [vmem:[%s25332_s4 + $0x7b4] ss:$12 sps:$4 sm:$0xff]  }
 0x304   : > { %12001 = vmatpush1.bf16.msra.mxu0 %v19772_v0  ;;  %v16664_v28 = vpop.f32.mrb[51].mxu1  ;;  %v19833_v0 = vld [vmem:[%s25332_s4 + $0x788] ss:$12 sps:$4 sm:$0xff]  }
 0x305   : > { %12002 = vmatprep.subr.bf16.mxu0 %v19782_v8  ;;  %v23158_v33 = vadd.f32 %v16664_v28, %v16663_v19  ;;  %v19796_v8 = vld [vmem:[%s25332_s4 + $0x798] ss:$12 sps:$4 sm:$0xff]   ;;  %v6963_v28 = vlaneseq }
 0x306   : > { %13484 = vmatmul.mubr.bf16.gmra.mrb[156].mxu1 %v19779_v9 }
 0x307   : > { %11964 = vmatmul.mubr.bf16.gmra.mrb[28].mxu0 %v19779_v9  ;;  %13524 = vmatprep.mubr.bf16.mxu1 %v19792_v17 }
 0x308   : > { %12003 = vmatpush1.bf16.msra.mxu0 %v19780_v10  ;;  %12006 = vmatprep.mubr.bf16.mxu0 %v19792_v17  ;;  %v19837_v10 = vld [vmem:[%s25332_s4 + $0x860] ss:$12 sps:$4 sm:$0xff]   ;;  %v19802_v17 = vld [vmem:[%s25332_s4 + $0x7b0] ss:$12 sps:$4 sm:$0xff]  }
 0x309   : > { %12004 = vmatprep.subr.bf16.mxu0 %v19787_v22  ;;  %v16666_v44 = vpop.f32.mrb[52].mxu1  ;;  %v19838_v22 = vld [vmem:[%s25332_s4 + $0x7a0] ss:$12 sps:$4 sm:$0xff]  }
 0x30a   : > { %v16667_v48 = vpop.f32.mrb[53].mxu1 }
 0x30b   : > { %v23168_v51 = vadd.f32 %v16667_v48, %v16666_v44  ;;  %v16669_v56 = vpop.f32.mrb[54].mxu1  ;;  %v19808_v44 = vld [vmem:[%s22342_s16 + $0x1d4] ss:$108 sps:$4 sm:$0xff]  }
 0x30c   : > { %12005 = vmatpush1.bf16.msra.mxu0 %v19785_v30  ;;  %v16670_v62 = vpop.f32.mrb[55].mxu1  ;;  %v19807_v30 = vld [vmem:[%s25332_s4 + $0x7cc] ss:$12 sps:$4 sm:$0xff]  }
 0x30d   : > { %12087 = vmatprep.subr.bf16.mxu0 %v19795_v35  ;;  %v23179_v9 = vadd.f32 %v16670_v62, %v16669_v56  ;;  %v19846_v56 = vld [vmem:[%s25332_s4 + $0x7b8] ss:$12 sps:$4 sm:$0xff]  }
 0x30e   : > { %13525 = vmatmul.mubr.bf16.vlgmr.msra.gmra.mrb[160].mxu1 %v19790_v38 }
 0x30f   : > { %12007 = vmatmul.mubr.bf16.vlgmr.msra.gmra.mrb[0].mxu0 %v19790_v38  ;;  %13532 = vmatprep.mubr.bf16.mxu1 %v19799_v49 }
 0x310   : > { %12088 = vmatpush1.bf16.msra.mxu0 %v19793_v40  ;;  %12016 = vmatprep.mubr.bf16.mxu0 %v19799_v49  ;;  %v19845_v49 = vld [vmem:[%s25332_s4 + $0x878] ss:$12 sps:$4 sm:$0xff]  }
 0x311   : > { %12089 = vmatprep.subr.bf16.mxu0 %v19798_v60  ;;  %v16672_v19 = vpop.f32.mrb[56].mxu1  ;;  %16941 = vmatpush3.bf16.msra.mxu1 %v19833_v0  ;;  %v19805_v60 = vld [vmem:[%s25332_s4 + $0x7c8] ss:$12 sps:$4 sm:$0xff]   ;;  %v19850_v0 = vld [vmem:[%s25332_s4 + $0x890] ss:$12 sps:$4 sm:$0xff]  }
 0x312   : > { %v16673_v35 = vpop.f32.mrb[57].mxu1  ;;  %16942 = vmatprep.subr.bf16.mxu1 %v19837_v10  ;;  %v19810_v10 = vld [vmem:[%s22342_s16 + $0x1d0] ss:$108 sps:$4 sm:$0xff]  }
 0x313   : > { %v23197_v38 = vadd.f32 %v16673_v35, %v16672_v19  ;;  %v16675_v40 = vpop.f32.mrb[58].mxu1 }
 0x314   : > { %12090 = vmatpush1.bf16.msra.mxu0 %v19796_v8  ;;  %v16676_v48 = vpop.f32.mrb[59].mxu1  ;;  %v23214_v8 = vshrl.u32 %v6963_v28, 7  ;;  %v19811_v28 = vld [vmem:[%s25332_s4 + $0x7e0] ss:$12 sps:$4 sm:$0xff]  }
 0x315   : > { %12091 = vmatprep.subr.bf16.mxu0 %v19804_v14  ;;  %v23209_v62 = vadd.f32 %v16676_v48, %v16675_v40  ;;  %16943 = vmatpush3.bf16.msra.mxu1 %v19838_v22  ;;  %v19813_v14 = vld [vmem:[%s25332_s4 + $0x7e4] ss:$12 sps:$4 sm:$0xff]   ;;  %v19817_v40 = vld [vmem:[%s22342_s16 + $0x2ac] ss:$108 sps:$4 sm:$0xff]   ;;  %v19816_v48 = vld [vmem:[%s25332_s4 + $0x7fc] ss:$12 sps:$4 sm:$0xff]  }
 0x316   : > { %13533 = vmatmul.mubr.bf16.gmra.mrb[164].mxu1 %v19801_v12  ;;  %v6973_v19 = vsub.s32 2, %v23214_v8  ;;  %16944 = vmatprep.subr.bf16.mxu1 %v19845_v49  ;;  %v19851_v49 = vld [vmem:[%s25332_s4 + $0x7d0] ss:$12 sps:$4 sm:$0xff]  }
 0x317   : > { %12017 = vmatmul.mubr.bf16.gmra.mrb[4].mxu0 %v19801_v12  ;;  %13540 = vmatprep.mubr.bf16.mxu1 %v19808_v44  ;;  %v6961_v12 = vld [vmem:[%s25333_s5] sm:$0x7] }
 0x318   : > { %12092 = vmatpush1.bf16.msra.mxu0 %v19802_v17  ;;  %12026 = vmatprep.mubr.bf16.mxu0 %v19808_v44  ;;  %v23236_v50 = vrot.slane %v6961_v12, %v6973_v19  ;;  %v19822_v19 = vld [vmem:[%s25332_s4 + $0x814] ss:$12 sps:$4 sm:$0xff]  }
 0x319   : > { %12093 = vmatprep.subr.bf16.mxu0 %v19807_v30  ;;  %v16678_v22 = vpop.f32.mrb[60].mxu1  ;;  %16945 = vmatpush3.bf16.msra.mxu1 %v19846_v56 }
 0x31a   : > { %v16679_v17 = vpop.f32.mrb[61].mxu1  ;;  %16946 = vmatprep.subr.bf16.mxu1 %v19850_v0  ;;  %v19858_v0 = vld [vmem:[%s25332_s4 + $0x8a8] ss:$12 sps:$4 sm:$0xff]   ;;  %v13142_v63 = vadd.f32 %v23071_v36, %v23236_v50  ;;  %v19828_v36 = vld [vmem:[%s22342_s16 + $0x380] ss:$108 sps:$4 sm:$0xff]  }
 0x31b   : > { %v23227_v30 = vadd.f32 %v16679_v17, %v16678_v22  ;;  %v16681_v35 = vpop.f32.mrb[62].mxu1  ;;  %v13139_v22 = vadd.f32 %v23060_v24, %v23236_v50  ;;  %v19820_v17 = vld [vmem:[%s25332_s4 + $0x810] ss:$12 sps:$4 sm:$0xff]  }
 0x31c   : > { %12094 = vmatpush1.bf16.msra.mxu0 %v19805_v60  ;;  %v16682_v44 = vpop.f32.mrb[63].mxu1  ;;  %v19814_v60 = vld [vmem:[%s25332_s4 + $0x7f8] ss:$12 sps:$4 sm:$0xff]  }
 0x31d   : > { %12095 = vmatprep.subr.bf16.mxu0 %v19813_v14  ;;  %v23238_v56 = vadd.f32 %v16682_v44, %v16681_v35  ;;  %v19819_v14 = vld [vmem:[%s22342_s16 + $0x2a8] ss:$108 sps:$4 sm:$0xff]   ;;  %16947 = vmatpush3.bf16.msra.mxu1 %v19851_v49  ;;  %v19825_v35 = vld [vmem:[%s25332_s4 + $0x82c] ss:$12 sps:$4 sm:$0xff]   ;;  %v19826_v24 = vld [vmem:[%s22342_s16 + $0x384] ss:$108 sps:$4 sm:$0xff]  }
 0x31e   : > { %13541 = vmatmul.mubr.bf16.gmra.mrb[168].mxu1 %v19810_v10  ;;  %16948 = vmatprep.subr.bf16.mxu1 %v19858_v0  ;;  %v19863_v49 = vld [vmem:[%s25332_s4 + $0x8c0] ss:$12 sps:$4 sm:$0xff]  }
 0x31f   : > { %12027 = vmatmul.mubr.bf16.gmra.mrb[8].mxu0 %v19810_v10  ;;  %13548 = vmatprep.mubr.bf16.mxu1 %v19817_v40  ;;  %v19859_v10 = vld [vmem:[%s25332_s4 + $0x7e8] ss:$12 sps:$4 sm:$0xff]  }
 0x320   : > { %12096 = vmatpush1.bf16.msra.mxu0 %v19811_v28  ;;  %12036 = vmatprep.mubr.bf16.mxu0 %v19817_v40 }
 0x321   : > { %12097 = vmatprep.subr.bf16.mxu0 %v19816_v48  ;;  %v16700_v12 = vpop.f32.mrb[64].mxu1  ;;  %16949 = vmatpush3.bf16.msra.mxu1 %v19859_v10  ;;  %v13147_v10 = vadd.f32 %v23084_v54, %v23236_v50  ;;  %v19836_v54 = vld [vmem:[%s25332_s4 + $0x85c] ss:$12 sps:$4 sm:$0xff]  }
 0x322   : > { %v16701_v28 = vpop.f32.mrb[65].mxu1  ;;  %16950 = vmatprep.subr.bf16.mxu1 %v19863_v49 }
 0x323   : > { %v16702_v40 = vadd.f32 %v16701_v28, %v16700_v12  ;;  %v16703_v44 = vpop.f32.mrb[66].mxu1 }
 0x324   : > { %12098 = vmatpush1.bf16.msra.mxu0 %v19814_v60  ;;  %v16704_v48 = vpop.f32.mrb[67].mxu1  ;;  %v19823_v60 = vld [vmem:[%s25332_s4 + $0x828] ss:$12 sps:$4 sm:$0xff]  }
 0x325   : > { %12099 = vmatprep.subr.bf16.mxu0 %v19822_v19  ;;  %v23270_v61 = vadd.f32 %v16702_v40, %v13139_v22  ;;  %v16705_v0 = vadd.f32 %v16704_v48, %v16703_v44  ;;  %v19871_v19 = vld [vmem:[%s25332_s4 + $0x8d8] ss:$12 sps:$4 sm:$0xff]   ;;  %16951 = vmatpush3.bf16.msra.mxu1 %v19864_v2  ;;  %v19839_v40 = vld [vmem:[%s22342_s16 + $0x45c] ss:$108 sps:$4 sm:$0xff]  }
 0x326   : > { %13549 = vmatmul.mubr.bf16.gmra.mrb[172].mxu1 %v19819_v14  ;;  %v19831_v22 = vld [vmem:[%s25332_s4 + $0x844] ss:$12 sps:$4 sm:$0xff]   ;;  %16952 = vmatprep.subr.bf16.mxu1 %v19871_v19 }
 0x327   : > { %12037 = vmatmul.mubr.bf16.gmra.mrb[12].mxu0 %v19819_v14  ;;  %v23278_v12 = vadd.f32 %v16705_v0, %v13142_v63  ;;  %13556 = vmatprep.mubr.bf16.mxu1 %v19826_v24  ;;  %v19829_v14 = vld [vmem:[%s25332_s4 + $0x840] ss:$12 sps:$4 sm:$0xff]   ;;  %v19834_v2 = vld [vmem:[%s25332_s4 + $0x858] ss:$12 sps:$4 sm:$0xff]  }
 0x328   : > { %12100 = vmatpush1.bf16.msra.mxu0 %v19820_v17  ;;  %12046 = vmatprep.mubr.bf16.mxu0 %v19826_v24  ;;  %v13150_v24 = vadd.f32 %v23095_v7, %v23236_v50  ;;  %v19872_v0 = vld [vmem:[%s25332_s4 + $0x818] ss:$12 sps:$4 sm:$0xff]  }
 0x329   : > { %12101 = vmatprep.subr.bf16.mxu0 %v19825_v35  ;;  %v16706_v28 = vpop.f32.mrb[68].mxu1  ;;  %v19841_v7 = vld [vmem:[%s22342_s16 + $0x458] ss:$108 sps:$4 sm:$0xff]   ;;  %16953 = vmatpush3.bf16.msra.mxu1 %v19872_v0  ;;  %v19847_v0 = vld [vmem:[%s25332_s4 + $0x888] ss:$12 sps:$4 sm:$0xff]  }
 0x32a   : > { %v16707_v63 = vpop.f32.mrb[69].mxu1 }
 0x32b   : > { %v16708_v17 = vadd.f32 %v16707_v63, %v16706_v28  ;;  %v16709_v35 = vpop.f32.mrb[70].mxu1 }
 0x32c   : > { %12102 = vmatpush1.bf16.msra.mxu0 %v19823_v60  ;;  %v16710_v44 = vpop.f32.mrb[71].mxu1  ;;  %v19876_v60 = vld [vmem:[%s25332_s4 + $0x8f0] ss:$12 sps:$4 sm:$0xff]  }
 0x32d   : > { %12103 = vmatprep.subr.bf16.mxu0 %v19831_v22  ;;  %v23295_v48 = vadd.f32 %v16708_v17, %v13147_v10  ;;  %v16711_v49 = vadd.f32 %v16710_v44, %v16709_v35  ;;  %v19844_v22 = vld [vmem:[%s25332_s4 + $0x874] ss:$12 sps:$4 sm:$0xff]   ;;  %v13155_v10 = vadd.f32 %v23111_v20, %v23236_v50  ;;  %16954 = vmatprep.subr.bf16.mxu1 %v19876_v60  ;;  %v19849_v20 = vld [vmem:[%s25332_s4 + $0x88c] ss:$12 sps:$4 sm:$0xff]  }
 0x32e   : > { %13557 = vmatmul.mubr.bf16.gmra.mrb[176].mxu1 %v19828_v36 }
 0x32f   : > { %12047 = vmatmul.mubr.bf16.gmra.mrb[16].mxu0 %v19828_v36  ;;  %v23306_v19 = vadd.f32 %v16711_v49, %v13150_v24  ;;  %13564 = vmatprep.mubr.bf16.mxu1 %v19839_v40  ;;  %v19842_v36 = vld [vmem:[%s25332_s4 + $0x870] ss:$12 sps:$4 sm:$0xff]  }
 0x330   : > { %12104 = vmatpush1.bf16.msra.mxu0 %v19829_v14  ;;  %12056 = vmatprep.mubr.bf16.mxu0 %v19839_v40  ;;  %v19877_v14 = vld [vmem:[%s25332_s4 + $0x830] ss:$12 sps:$4 sm:$0xff]   ;;  %v19852_v40 = vld [vmem:[%s22342_s16 + $0x534] ss:$108 sps:$4 sm:$0xff]  }
 0x331   : > { %12105 = vmatprep.subr.bf16.mxu0 %v19836_v54  ;;  %v16712_v28 = vpop.f32.mrb[72].mxu1  ;;  %v13158_v54 = vadd.f32 %v23119_v34, %v23236_v50  ;;  %16955 = vmatpush3.bf16.msra.mxu1 %v19877_v14  ;;  %v19857_v34 = vld [vmem:[%s25332_s4 + $0x8a4] ss:$12 sps:$4 sm:$0xff]  }
 0x332   : > { %v16713_v63 = vpop.f32.mrb[73].mxu1 }
 0x333   : > { %v16714_v17 = vadd.f32 %v16713_v63, %v16712_v28  ;;  %v16715_v35 = vpop.f32.mrb[74].mxu1  ;;  %v19854_v28 = vld [vmem:[%s22342_s16 + $0x530] ss:$108 sps:$4 sm:$0xff]  }
 0x334   : > { %12106 = vmatpush1.bf16.msra.mxu0 %v19834_v2  ;;  %v16716_v44 = vpop.f32.mrb[75].mxu1  ;;  %v19920_v2 = vld [vmem:[%s25332_s4 + $0x9c8] ss:$12 sps:$4 sm:$0xff]  }
 0x335   : > { %12107 = vmatprep.subr.bf16.mxu0 %v19844_v22  ;;  %v23326_v24 = vadd.f32 %v16714_v17, %v13155_v10  ;;  %v16717_v49 = vadd.f32 %v16716_v44, %v16715_v35  ;;  %v13163_v22 = vadd.f32 %v23132_v53, %v23236_v50  ;;  %17004 = vmatprep.subr.bf16.mxu1 %v19920_v2  ;;  %v19865_v17 = vld [vmem:[%s22342_s16 + $0x60c] ss:$108 sps:$4 sm:$0xff]  }
 0x336   : > { %13565 = vmatmul.mubr.bf16.gmra.mrb[180].mxu1 %v19841_v7  ;;  %v13166_v53 = vadd.f32 %v23140_v4, %v23236_v50  ;;  %v19870_v4 = vld [vmem:[%s25332_s4 + $0x8d4] ss:$12 sps:$4 sm:$0xff]  }
 0x337   : > { %12057 = vmatmul.mubr.bf16.gmra.mrb[20].mxu0 %v19841_v7  ;;  %v23334_v60 = vadd.f32 %v16717_v49, %v13158_v54  ;;  %13572 = vmatprep.mubr.bf16.mxu1 %v19852_v40  ;;  %v19855_v7 = vld [vmem:[%s25332_s4 + $0x8a0] ss:$12 sps:$4 sm:$0xff]   ;;  %v19860_v54 = vld [vmem:[%s25332_s4 + $0x8b8] ss:$12 sps:$4 sm:$0xff]  }
 0x338   : > { %12108 = vmatpush1.bf16.msra.mxu0 %v19842_v36  ;;  %12066 = vmatprep.mubr.bf16.mxu0 %v19852_v40  ;;  %v19862_v40 = vld [vmem:[%s25332_s4 + $0x8bc] ss:$12 sps:$4 sm:$0xff]  }
 0x339   : > { %12109 = vmatprep.subr.bf16.mxu0 %v19849_v20  ;;  %v16718_v10 = vpop.f32.mrb[76].mxu1 }
 0x33a   : > { %v16719_v14 = vpop.f32.mrb[77].mxu1 }
 0x33b   : > { %v16720_v63 = vadd.f32 %v16719_v14, %v16718_v10  ;;  %v16721_v36 = vpop.f32.mrb[78].mxu1  ;;  %v19880_v14 = vld [vmem:[%s22342_s16 + $0x2c] ss:$108 sps:$4 sm:$0xff]  }
 0x33c   : > { %12110 = vmatpush1.bf16.msra.mxu0 %v19847_v0  ;;  %v16722_v35 = vpop.f32.mrb[79].mxu1  ;;  %v13171_v0 = vadd.f32 %v23150_v18, %v23236_v50  ;;  %v13174_v18 = vadd.f32 %v23158_v33, %v23236_v50  ;;  %v19883_v33 = vld [vmem:[%s25332_s4 + $0x904] ss:$12 sps:$4 sm:$0xff]  }
 0x33d   : > { %12111 = vmatprep.subr.bf16.mxu0 %v19857_v34  ;;  %v23351_v44 = vadd.f32 %v16720_v63, %v13163_v22  ;;  %v16723_v20 = vadd.f32 %v16722_v35, %v16721_v36  ;;  %v19867_v34 = vld [vmem:[%s22342_s16 + $0x608] ss:$108 sps:$4 sm:$0xff]   ;;  %v19868_v22 = vld [vmem:[%s25332_s4 + $0x8d0] ss:$12 sps:$4 sm:$0xff]   ;;  %v19875_v36 = vld [vmem:[%s25332_s4 + $0x8ec] ss:$12 sps:$4 sm:$0xff]  }
 0x33e   : > { %13573 = vmatmul.mubr.bf16.gmra.mrb[184].mxu1 %v19854_v28 }
 0x33f   : > { %12067 = vmatmul.mubr.bf16.gmra.mrb[24].mxu0 %v19854_v28  ;;  %v23356_v49 = vadd.f32 %v16723_v20, %v13166_v53  ;;  %13580 = vmatprep.mubr.bf16.mxu1 %v19865_v17  ;;  %v13179_v20 = vadd.f32 %v23168_v51, %v23236_v50  ;;  %v19921_v51 = vld [vmem:[%s25332_s4 + $0x908] ss:$12 sps:$4 sm:$0xff]  }
 0x340   : > { %12112 = vmatpush1.bf16.msra.mxu0 %v19855_v7  ;;  %12076 = vmatprep.mubr.bf16.mxu0 %v19865_v17 }
 0x341   : > { %12113 = vmatprep.subr.bf16.mxu0 %v19862_v40  ;;  %v16724_v2 = vpop.f32.mrb[80].mxu1  ;;  %v19873_v40 = vld [vmem:[%s25332_s4 + $0x8e8] ss:$12 sps:$4 sm:$0xff]  }
 0x342   : > { %v16725_v10 = vpop.f32.mrb[81].mxu1 }
 0x343   : > { %v16726_v28 = vadd.f32 %v16725_v10, %v16724_v2  ;;  %v16727_v7 = vpop.f32.mrb[82].mxu1  ;;  %v19887_v10 = vld [vmem:[%s22342_s16 + $0x104] ss:$108 sps:$4 sm:$0xff]  }
 0x344   : > { %12114 = vmatpush1.bf16.msra.mxu0 %v19860_v54  ;;  %v16728_v63 = vpop.f32.mrb[83].mxu1 }
 0x345   : > { %12115 = vmatprep.subr.bf16.mxu0 %v19870_v4  ;;  %v23373_v17 = vadd.f32 %v16726_v28, %v13171_v0  ;;  %v16729_v35 = vadd.f32 %v16728_v63, %v16727_v7  ;;  %v19878_v4 = vld [vmem:[%s22342_s16 + $0x28] ss:$108 sps:$4 sm:$0xff]   ;;  %v19881_v0 = vld [vmem:[%s25332_s4 + $0x900] ss:$12 sps:$4 sm:$0xff]  }
 0x346   : > { %13581 = vmatmul.mubr.bf16.gmra.mrb[188].mxu1 %v19867_v34  ;;  %v19886_v7 = vld [vmem:[%s25332_s4 + $0x91c] ss:$12 sps:$4 sm:$0xff]  }
 0x347   : > { %12077 = vmatmul.mubr.bf16.gmra.mrb[28].mxu0 %v19867_v34  ;;  %v23378_v53 = vadd.f32 %v16729_v35, %v13174_v18  ;;  %13621 = vmatprep.mubr.bf16.mxu1 %v19880_v14  ;;  %v19884_v18 = vld [vmem:[%s25332_s4 + $0x918] ss:$12 sps:$4 sm:$0xff]   ;;  %v19925_v35 = vld [vmem:[%s25332_s4 + $0x9e0] ss:$12 sps:$4 sm:$0xff]  }
 0x348   : > { %12116 = vmatpush1.bf16.msra.mxu0 %v19868_v22  ;;  %12119 = vmatprep.mubr.bf16.mxu0 %v19880_v14  ;;  %v13182_v14 = vadd.f32 %v23179_v9, %v23236_v50  ;;  %v19889_v9 = vld [vmem:[%s22342_s16 + $0x100] ss:$108 sps:$4 sm:$0xff]  }
 0x349   : > { %12117 = vmatprep.subr.bf16.mxu0 %v19875_v36  ;;  %v16730_v54 = vpop.f32.mrb[84].mxu1 }
 0x34a   : > { %v16731_v2 = vpop.f32.mrb[85].mxu1 }
 0x34b   : > { %v16732_v34 = vadd.f32 %v16731_v2, %v16730_v54  ;;  %v16733_v22 = vpop.f32.mrb[86].mxu1 }
 0x34c   : > { %12118 = vmatpush1.bf16.msra.mxu0 %v19873_v40  ;;  %v16734_v28 = vpop.f32.mrb[87].mxu1 }
 0x34d   : > { %12200 = vmatprep.subr.bf16.mxu0 %v19883_v33  ;;  %v23398_v63 = vadd.f32 %v16732_v34, %v13179_v20  ;;  %v16735_v36 = vadd.f32 %v16734_v28, %v16733_v22  ;;  %v19892_v33 = vld [vmem:[%s25332_s4 + $0x934] ss:$12 sps:$4 sm:$0xff]   ;;  %v13187_v20 = vadd.f32 %v23197_v38, %v23236_v50  ;;  %v19895_v34 = vld [vmem:[%s25332_s4 + $0x94c] ss:$12 sps:$4 sm:$0xff]   ;;  %v19896_v38 = vld [vmem:[%s22342_s16 + $0x1dc] ss:$108 sps:$4 sm:$0xff]  }
 0x34e   : > { %13622 = vmatmul.mubr.bf16.vlgmr.msra.gmra.mrb[192].mxu1 %v19878_v4 }
 0x34f   : > { %12120 = vmatmul.mubr.bf16.vlgmr.msra.gmra.mrb[0].mxu0 %v19878_v4  ;;  %v23406_v40 = vadd.f32 %v16735_v36, %v13182_v14  ;;  %13629 = vmatprep.mubr.bf16.mxu1 %v19887_v10  ;;  %v19890_v4 = vld [vmem:[%s25332_s4 + $0x930] ss:$12 sps:$4 sm:$0xff]   ;;  %v13190_v14 = vadd.f32 %v23209_v62, %v23236_v50  ;;  %v19898_v62 = vld [vmem:[%s22342_s16 + $0x1d8] ss:$108 sps:$4 sm:$0xff]  }
 0x350   : > { %12201 = vmatpush1.bf16.msra.mxu0 %v19881_v0  ;;  %12129 = vmatprep.mubr.bf16.mxu0 %v19887_v10  ;;  %v19926_v0 = vld [vmem:[%s25332_s4 + $0x920] ss:$12 sps:$4 sm:$0xff]  }
 0x351   : > { %12202 = vmatprep.subr.bf16.mxu0 %v19886_v7  ;;  %v16736_v54 = vpop.f32.mrb[88].mxu1  ;;  %17005 = vmatpush3.bf16.msra.mxu1 %v19921_v51  ;;  %v19933_v7 = vld [vmem:[%s25332_s4 + $0x9f8] ss:$12 sps:$4 sm:$0xff]  }
 0x352   : > { %v16737_v2 = vpop.f32.mrb[89].mxu1  ;;  %17006 = vmatprep.subr.bf16.mxu1 %v19925_v35  ;;  %v19934_v51 = vld [vmem:[%s25332_s4 + $0x938] ss:$12 sps:$4 sm:$0xff]  }
 0x353   : > { %v16738_v22 = vadd.f32 %v16737_v2, %v16736_v54  ;;  %v16739_v10 = vpop.f32.mrb[90].mxu1 }
 0x354   : > { %12203 = vmatpush1.bf16.msra.mxu0 %v19884_v18  ;;  %v16740_v28 = vpop.f32.mrb[91].mxu1  ;;  %v19893_v18 = vld [vmem:[%s25332_s4 + $0x948] ss:$12 sps:$4 sm:$0xff]  }
 0x355   : > { %12204 = vmatprep.subr.bf16.mxu0 %v19892_v33  ;;  %v23432_v36 = vadd.f32 %v16738_v22, %v13187_v20  ;;  %v16741_v35 = vadd.f32 %v16740_v28, %v16739_v10  ;;  %17007 = vmatpush3.bf16.msra.mxu1 %v19926_v0  ;;  %v19938_v33 = vld [vmem:[%s25332_s4 + $0xa10] ss:$12 sps:$4 sm:$0xff]   ;;  %v13195_v0 = vadd.f32 %v23227_v30, %v23236_v50  ;;  %v19905_v10 = vld [vmem:[%s22342_s16 + $0x2b4] ss:$108 sps:$4 sm:$0xff]  }
 0x356   : > { %13630 = vmatmul.mubr.bf16.gmra.mrb[196].mxu1 %v19889_v9  ;;  %v19901_v20 = vld [vmem:[%s25332_s4 + $0x964] ss:$12 sps:$4 sm:$0xff]   ;;  %17008 = vmatprep.subr.bf16.mxu1 %v19933_v7  ;;  %v19904_v30 = vld [vmem:[%s25332_s4 + $0x97c] ss:$12 sps:$4 sm:$0xff]   ;;  %v13198_v7 = vadd.f32 %v23238_v56, %v23236_v50  ;;  %v19910_v56 = vld [vmem:[%s25332_s4 + $0x994] ss:$12 sps:$4 sm:$0xff]  }
 0x357   : > { %12130 = vmatmul.mubr.bf16.gmra.mrb[4].mxu0 %v19889_v9  ;;  %v23440_v54 = vadd.f32 %v16741_v35, %v13190_v14  ;;  %13637 = vmatprep.mubr.bf16.mxu1 %v19896_v38  ;;  %v19899_v9 = vld [vmem:[%s25332_s4 + $0x960] ss:$12 sps:$4 sm:$0xff]   ;;  %v19939_v28 = vld [vmem:[%s25332_s4 + $0x950] ss:$12 sps:$4 sm:$0xff]   ;;  %v19902_v35 = vld [vmem:[%s25332_s4 + $0x978] ss:$12 sps:$4 sm:$0xff]  }
 0x358   : > { %12205 = vmatpush1.bf16.msra.mxu0 %v19890_v4  ;;  %12139 = vmatprep.mubr.bf16.mxu0 %v19896_v38  ;;  %v19907_v50 = vld [vmem:[%s22342_s16 + $0x2b0] ss:$108 sps:$4 sm:$0xff]  }
 0x359   : > { %12206 = vmatprep.subr.bf16.mxu0 %v19895_v34  ;;  %v16742_v2 = vpop.f32.mrb[92].mxu1  ;;  %17009 = vmatpush3.bf16.msra.mxu1 %v19934_v51 }
 0x35a   : > { %v16743_v22 = vpop.f32.mrb[93].mxu1  ;;  %17010 = vmatprep.subr.bf16.mxu1 %v19938_v33 }
 0x35b   : > { %v16744_v4 = vadd.f32 %v16743_v22, %v16742_v2  ;;  %v16745_v34 = vpop.f32.mrb[94].mxu1 }
 0x35c   : > { %12207 = vmatpush1.bf16.msra.mxu0 %v19893_v18  ;;  %v16746_v38 = vpop.f32.mrb[95].mxu1  ;;  %v19946_v18 = vld [vmem:[%s25332_s4 + $0xa28] ss:$12 sps:$4 sm:$0xff]  }
 0x35d   : > { %12208 = vmatprep.subr.bf16.mxu0 %v19901_v20  ;;  %v23460_v51 = vadd.f32 %v16744_v4, %v13195_v0  ;;  %v16747_v14 = vadd.f32 %v16746_v38, %v16745_v34  ;;  %v19908_v0 = vld [vmem:[%s25332_s4 + $0x990] ss:$12 sps:$4 sm:$0xff]   ;;  %17011 = vmatpush3.bf16.msra.mxu1 %v19939_v28  ;;  %v19914_v34 = vld [vmem:[%s22342_s16 + $0x38c] ss:$108 sps:$4 sm:$0xff]  }
 0x35e   : > { %13638 = vmatmul.mubr.bf16.gmra.mrb[200].mxu1 %v19898_v62  ;;  %17012 = vmatprep.subr.bf16.mxu1 %v19946_v18  ;;  %v19951_v38 = vld [vmem:[%s25332_s4 + $0xa40] ss:$12 sps:$4 sm:$0xff]  }
 0x35f   : > { %12140 = vmatmul.mubr.bf16.gmra.mrb[8].mxu0 %v19898_v62  ;;  %v23468_v33 = vadd.f32 %v16747_v14, %v13198_v7  ;;  %13645 = vmatprep.mubr.bf16.mxu1 %v19905_v10  ;;  %v19947_v62 = vld [vmem:[%s25332_s4 + $0x968] ss:$12 sps:$4 sm:$0xff]  }
 0x360   : > { %12209 = vmatpush1.bf16.msra.mxu0 %v19899_v9  ;;  %12149 = vmatprep.mubr.bf16.mxu0 %v19905_v10  ;;  %v19913_v9 = vld [vmem:[%s25332_s4 + $0x9ac] ss:$12 sps:$4 sm:$0xff]   ;;  %v19911_v14 = vld [vmem:[%s25332_s4 + $0x9a8] ss:$12 sps:$4 sm:$0xff]  }
 0x361   : > { %12210 = vmatprep.subr.bf16.mxu0 %v19904_v30  ;;  %v16764_v20 = vpop.f32.mrb[96].mxu1  ;;  %v19952_v30 = vld [vmem:[%s25332_s4 + $0x980] ss:$12 sps:$4 sm:$0xff]   ;;  %17013 = vmatpush3.bf16.msra.mxu1 %v19947_v62 }
 0x362   : > { %v16765_v2 = vpop.f32.mrb[97].mxu1  ;;  %v19917_v62 = vld [vmem:[%s25332_s4 + $0x9c0] ss:$12 sps:$4 sm:$0xff]   ;;  %17014 = vmatprep.subr.bf16.mxu1 %v19951_v38  ;;  %v19960_v38 = vld [vmem:[%s25332_s4 + $0x998] ss:$12 sps:$4 sm:$0xff]  }
 0x363   : > { %v16766_v22 = vadd.f32 %v16765_v2, %v16764_v20  ;;  %v16767_v4 = vpop.f32.mrb[98].mxu1 }
 0x364   : > { %12211 = vmatpush1.bf16.msra.mxu0 %v19902_v35  ;;  %v16768_v10 = vpop.f32.mrb[99].mxu1  ;;  %v19959_v35 = vld [vmem:[%s25332_s4 + $0xa58] ss:$12 sps:$4 sm:$0xff]  }
 0x365   : > { %12212 = vmatprep.subr.bf16.mxu0 %v19910_v56  ;;  %v23491_v28 = vadd.f32 %v16766_v22, %v23270_v61  ;;  %v16769_v7 = vadd.f32 %v16768_v10, %v16767_v4  ;;  %v19916_v61 = vld [vmem:[%s22342_s16 + $0x388] ss:$108 sps:$4 sm:$0xff]   ;;  %v19919_v56 = vld [vmem:[%s25332_s4 + $0x9c4] ss:$12 sps:$4 sm:$0xff]   ;;  %17015 = vmatpush3.bf16.msra.mxu1 %v19952_v30 }
 0x366   : > { %13646 = vmatmul.mubr.bf16.gmra.mrb[204].mxu1 %v19907_v50  ;;  %17016 = vmatprep.subr.bf16.mxu1 %v19959_v35  ;;  %v19924_v22 = vld [vmem:[%s25332_s4 + $0x9dc] ss:$12 sps:$4 sm:$0xff]   ;;  %v19922_v10 = vld [vmem:[%s25332_s4 + $0x9d8] ss:$12 sps:$4 sm:$0xff]  }
 0x367   : > { %12150 = vmatmul.mubr.bf16.gmra.mrb[12].mxu0 %v19907_v50  ;;  %v23500_v18 = vadd.f32 %v16769_v7, %v23278_v12  ;;  %13653 = vmatprep.mubr.bf16.mxu1 %v19914_v34  ;;  %v19964_v30 = vld [vmem:[%s25332_s4 + $0xa70] ss:$12 sps:$4 sm:$0xff]  }
 0x368   : > { %12213 = vmatpush1.bf16.msra.mxu0 %v19908_v0  ;;  %12159 = vmatprep.mubr.bf16.mxu0 %v19914_v34  ;;  %v19927_v0 = vld [vmem:[%s22342_s16 + $0x464] ss:$108 sps:$4 sm:$0xff]  }
 0x369   : > { %12214 = vmatprep.subr.bf16.mxu0 %v19913_v9  ;;  %v16770_v20 = vpop.f32.mrb[100].mxu1  ;;  %17017 = vmatpush3.bf16.msra.mxu1 %v19960_v38 }
 0x36a   : > { %v16771_v50 = vpop.f32.mrb[101].mxu1  ;;  %17018 = vmatprep.subr.bf16.mxu1 %v19964_v30  ;;  %v19942_v30 = vld [vmem:[%s22342_s16 + $0x538] ss:$108 sps:$4 sm:$0xff]  }
 0x36b   : > { %v16772_v2 = vadd.f32 %v16771_v50, %v16770_v20  ;;  %v16773_v12 = vpop.f32.mrb[102].mxu1  ;;  %v19940_v50 = vld [vmem:[%s22342_s16 + $0x53c] ss:$108 sps:$4 sm:$0xff]  }
 0x36c   : > { %12215 = vmatpush1.bf16.msra.mxu0 %v19911_v14  ;;  %v16774_v9 = vpop.f32.mrb[103].mxu1  ;;  %v19932_v14 = vld [vmem:[%s25332_s4 + $0x9f4] ss:$12 sps:$4 sm:$0xff]  }
 0x36d   : > { %12216 = vmatprep.subr.bf16.mxu0 %v19919_v56  ;;  %v23514_v4 = vadd.f32 %v16772_v2, %v23295_v48  ;;  %v16775_v34 = vadd.f32 %v16774_v9, %v16773_v12  ;;  %v19929_v48 = vld [vmem:[%s22342_s16 + $0x460] ss:$108 sps:$4 sm:$0xff]   ;;  %v19930_v56 = vld [vmem:[%s25332_s4 + $0x9f0] ss:$12 sps:$4 sm:$0xff]  }
 0x36e   : > { %13654 = vmatmul.mubr.bf16.gmra.mrb[208].mxu1 %v19916_v61  ;;  %v19937_v12 = vld [vmem:[%s25332_s4 + $0xa0c] ss:$12 sps:$4 sm:$0xff]  }
 0x36f   : > { %12160 = vmatmul.mubr.bf16.gmra.mrb[16].mxu0 %v19916_v61  ;;  %v23526_v7 = vadd.f32 %v16775_v34, %v23306_v19  ;;  %13661 = vmatprep.mubr.bf16.mxu1 %v19927_v0  ;;  %v19965_v19 = vld [vmem:[%s25332_s4 + $0x9b0] ss:$12 sps:$4 sm:$0xff]   ;;  %v20008_v34 = vld [vmem:[%s25332_s4 + $0xb48] ss:$12 sps:$4 sm:$0xff]  }
 0x370   : > { %12217 = vmatpush1.bf16.msra.mxu0 %v19917_v62  ;;  %12169 = vmatprep.mubr.bf16.mxu0 %v19927_v0 }
 0x371   : > { %12218 = vmatprep.subr.bf16.mxu0 %v19924_v22  ;;  %v16776_v35 = vpop.f32.mrb[104].mxu1  ;;  %v19935_v22 = vld [vmem:[%s25332_s4 + $0xa08] ss:$12 sps:$4 sm:$0xff]   ;;  %17019 = vmatpush3.bf16.msra.mxu1 %v19965_v19 }
 0x372   : > { %v16777_v61 = vpop.f32.mrb[105].mxu1  ;;  %17068 = vmatprep.subr.bf16.mxu1 %v20008_v34  ;;  %v19953_v19 = vld [vmem:[%s22342_s16 + $0x614] ss:$108 sps:$4 sm:$0xff]  }
 0x373   : > { %v16778_v20 = vadd.f32 %v16777_v61, %v16776_v35  ;;  %v16779_v62 = vpop.f32.mrb[106].mxu1  ;;  %v19950_v61 = vld [vmem:[%s25332_s4 + $0xa3c] ss:$12 sps:$4 sm:$0xff]  }
 0x374   : > { %12219 = vmatpush1.bf16.msra.mxu0 %v19922_v10  ;;  %v16780_v2 = vpop.f32.mrb[107].mxu1 }
 0x375   : > { %12220 = vmatprep.subr.bf16.mxu0 %v19932_v14  ;;  %v23543_v0 = vadd.f32 %v16778_v20, %v23326_v24  ;;  %v16781_v9 = vadd.f32 %v16780_v2, %v16779_v62  ;;  %v19945_v24 = vld [vmem:[%s25332_s4 + $0xa24] ss:$12 sps:$4 sm:$0xff]   ;;  %v19943_v14 = vld [vmem:[%s25332_s4 + $0xa20] ss:$12 sps:$4 sm:$0xff]  }
 0x376   : > { %13662 = vmatmul.mubr.bf16.gmra.mrb[212].mxu1 %v19929_v48 }
 0x377   : > { %12170 = vmatmul.mubr.bf16.gmra.mrb[20].mxu0 %v19929_v48  ;;  %v23552_v10 = vadd.f32 %v16781_v9, %v23334_v60  ;;  %13669 = vmatprep.mubr.bf16.mxu1 %v19940_v50  ;;  %v19955_v9 = vld [vmem:[%s22342_s16 + $0x610] ss:$108 sps:$4 sm:$0xff]  }
 0x378   : > { %12221 = vmatpush1.bf16.msra.mxu0 %v19930_v56  ;;  %12179 = vmatprep.mubr.bf16.mxu0 %v19940_v50  ;;  %v19948_v50 = vld [vmem:[%s25332_s4 + $0xa38] ss:$12 sps:$4 sm:$0xff]  }
 0x379   : > { %12222 = vmatprep.subr.bf16.mxu0 %v19937_v12  ;;  %v16782_v38 = vpop.f32.mrb[108].mxu1 }
 0x37a   : > { %v16783_v35 = vpop.f32.mrb[109].mxu1 }
 0x37b   : > { %v16784_v48 = vadd.f32 %v16783_v35, %v16782_v38  ;;  %v16785_v60 = vpop.f32.mrb[110].mxu1 }
 0x37c   : > { %12223 = vmatpush1.bf16.msra.mxu0 %v19935_v22  ;;  %v16786_v56 = vpop.f32.mrb[111].mxu1  ;;  %v19956_v22 = vld [vmem:[%s25332_s4 + $0xa50] ss:$12 sps:$4 sm:$0xff]  }
 0x37d   : > { %12224 = vmatprep.subr.bf16.mxu0 %v19945_v24  ;;  %v23566_v20 = vadd.f32 %v16784_v48, %v23351_v44  ;;  %v16787_v62 = vadd.f32 %v16786_v56, %v16785_v60  ;;  %v19958_v44 = vld [vmem:[%s25332_s4 + $0xa54] ss:$12 sps:$4 sm:$0xff]  }
 0x37e   : > { %13670 = vmatmul.mubr.bf16.gmra.mrb[216].mxu1 %v19942_v30  ;;  %v19961_v60 = vld [vmem:[%s25332_s4 + $0xa68] ss:$12 sps:$4 sm:$0xff]  }
 0x37f   : > { %12180 = vmatmul.mubr.bf16.gmra.mrb[24].mxu0 %v19942_v30  ;;  %v23572_v2 = vadd.f32 %v16787_v62, %v23356_v49  ;;  %13677 = vmatprep.mubr.bf16.mxu1 %v19953_v19  ;;  %v19968_v49 = vld [vmem:[%s22342_s16 + $0x34] ss:$108 sps:$4 sm:$0xff]  }
 0x380   : > { %12225 = vmatpush1.bf16.msra.mxu0 %v19943_v14  ;;  %12189 = vmatprep.mubr.bf16.mxu0 %v19953_v19  ;;  %v19963_v14 = vld [vmem:[%s25332_s4 + $0xa6c] ss:$12 sps:$4 sm:$0xff]  }
 0x381   : > { %12226 = vmatprep.subr.bf16.mxu0 %v19950_v61  ;;  %v16788_v12 = vpop.f32.mrb[112].mxu1  ;;  %v19966_v61 = vld [vmem:[%s22342_s16 + $0x30] ss:$108 sps:$4 sm:$0xff]   ;;  %v19969_v62 = vld [vmem:[%s25332_s4 + $0xa80] ss:$12 sps:$4 sm:$0xff]  }
 0x382   : > { %v16789_v34 = vpop.f32.mrb[113].mxu1 }
 0x383   : > { %v16790_v24 = vadd.f32 %v16789_v34, %v16788_v12  ;;  %v16791_v38 = vpop.f32.mrb[114].mxu1  ;;  %v20009_v34 = vld [vmem:[%s25332_s4 + $0xa88] ss:$12 sps:$4 sm:$0xff]  }
 0x384   : > { %12227 = vmatpush1.bf16.msra.mxu0 %v19948_v50  ;;  %v16792_v30 = vpop.f32.mrb[115].mxu1 }
 0x385   : > { %12228 = vmatprep.subr.bf16.mxu0 %v19958_v44  ;;  %v23586_v35 = vadd.f32 %v16790_v24, %v23373_v17  ;;  %v16793_v48 = vadd.f32 %v16792_v30, %v16791_v38  ;;  %v19971_v17 = vld [vmem:[%s25332_s4 + $0xa84] ss:$12 sps:$4 sm:$0xff]   ;;  %v20013_v30 = vld [vmem:[%s25332_s4 + $0xb60] ss:$12 sps:$4 sm:$0xff]  }
 0x386   : > { %13678 = vmatmul.mubr.bf16.gmra.mrb[220].mxu1 %v19955_v9 }
 0x387   : > { %12190 = vmatmul.mubr.bf16.gmra.mrb[28].mxu0 %v19955_v9  ;;  %v23592_v19 = vadd.f32 %v16793_v48, %v23378_v53  ;;  %13718 = vmatprep.mubr.bf16.mxu1 %v19968_v49  ;;  %v19975_v53 = vld [vmem:[%s22342_s16 + $0x10c] ss:$108 sps:$4 sm:$0xff]   ;;  %v19980_v48 = vld [vmem:[%s25332_s4 + $0xab4] ss:$12 sps:$4 sm:$0xff]  }
 0x388   : > { %12229 = vmatpush1.bf16.msra.mxu0 %v19956_v22  ;;  %12232 = vmatprep.mubr.bf16.mxu0 %v19968_v49  ;;  %v19974_v22 = vld [vmem:[%s25332_s4 + $0xa9c] ss:$12 sps:$4 sm:$0xff]   ;;  %v19972_v49 = vld [vmem:[%s25332_s4 + $0xa98] ss:$12 sps:$4 sm:$0xff]  }
 0x389   : > { %12230 = vmatprep.subr.bf16.mxu0 %v19963_v14  ;;  %v16794_v56 = vpop.f32.mrb[116].mxu1 }
 0x38a   : > { %v16795_v50 = vpop.f32.mrb[117].mxu1 }
 0x38b   : > { %v16796_v44 = vadd.f32 %v16795_v50, %v16794_v56  ;;  %v16797_v12 = vpop.f32.mrb[118].mxu1 }
 0x38c   : > { %12231 = vmatpush1.bf16.msra.mxu0 %v19961_v60  ;;  %v16798_v9 = vpop.f32.mrb[119].mxu1 }
 0x38d   : > { %12313 = vmatprep.subr.bf16.mxu0 %v19971_v17  ;;  %v23609_v24 = vadd.f32 %v16796_v44, %v23398_v63  ;;  %v16799_v38 = vadd.f32 %v16798_v9, %v16797_v12  ;;  %v19977_v63 = vld [vmem:[%s22342_s16 + $0x108] ss:$108 sps:$4 sm:$0xff]   ;;  %v19978_v17 = vld [vmem:[%s25332_s4 + $0xab0] ss:$12 sps:$4 sm:$0xff]   ;;  %v20022_v9 = vld [vmem:[%s25332_s4 + $0xab8] ss:$12 sps:$4 sm:$0xff]  }
 0x38e   : > { %13719 = vmatmul.mubr.bf16.vlgmr.msra.gmra.mrb[224].mxu1 %v19966_v61  ;;  %v19984_v44 = vld [vmem:[%s22342_s16 + $0x1e4] ss:$108 sps:$4 sm:$0xff]  }
 0x38f   : > { %12233 = vmatmul.mubr.bf16.vlgmr.msra.gmra.mrb[0].mxu0 %v19966_v61  ;;  %v23618_v14 = vadd.f32 %v16799_v38, %v23406_v40  ;;  %13726 = vmatprep.mubr.bf16.mxu1 %v19975_v53  ;;  %v20014_v40 = vld [vmem:[%s25332_s4 + $0xaa0] ss:$12 sps:$4 sm:$0xff]   ;;  %v19981_v38 = vld [vmem:[%s25332_s4 + $0xac8] ss:$12 sps:$4 sm:$0xff]  }
 0x390   : > { %12314 = vmatpush1.bf16.msra.mxu0 %v19969_v62  ;;  %12242 = vmatprep.mubr.bf16.mxu0 %v19975_v53  ;;  %v19983_v61 = vld [vmem:[%s25332_s4 + $0xacc] ss:$12 sps:$4 sm:$0xff]  }
 0x391   : > { %12315 = vmatprep.subr.bf16.mxu0 %v19974_v22  ;;  %v16800_v60 = vpop.f32.mrb[120].mxu1  ;;  %17069 = vmatpush3.bf16.msra.mxu1 %v20009_v34  ;;  %v20021_v53 = vld [vmem:[%s25332_s4 + $0xb78] ss:$12 sps:$4 sm:$0xff]  }
 0x392   : > { %v16801_v56 = vpop.f32.mrb[121].mxu1  ;;  %17070 = vmatprep.subr.bf16.mxu1 %v20013_v30 }
 0x393   : > { %v16802_v62 = vadd.f32 %v16801_v56, %v16800_v60  ;;  %v16803_v50 = vpop.f32.mrb[122].mxu1 }
 0x394   : > { %12316 = vmatpush1.bf16.msra.mxu0 %v19972_v49  ;;  %v16804_v12 = vpop.f32.mrb[123].mxu1  ;;  %v20026_v49 = vld [vmem:[%s25332_s4 + $0xb90] ss:$12 sps:$4 sm:$0xff]  }
 0x395   : > { %12317 = vmatprep.subr.bf16.mxu0 %v19980_v48  ;;  %v23641_v22 = vadd.f32 %v16802_v62, %v23432_v36  ;;  %v16805_v34 = vadd.f32 %v16804_v12, %v16803_v50  ;;  %17071 = vmatpush3.bf16.msra.mxu1 %v20014_v40  ;;  %v19986_v36 = vld [vmem:[%s22342_s16 + $0x1e0] ss:$108 sps:$4 sm:$0xff]   ;;  %v19989_v48 = vld [vmem:[%s25332_s4 + $0xae4] ss:$12 sps:$4 sm:$0xff]   ;;  %v19992_v62 = vld [vmem:[%s25332_s4 + $0xafc] ss:$12 sps:$4 sm:$0xff]  }
 0x396   : > { %13727 = vmatmul.mubr.bf16.gmra.mrb[228].mxu1 %v19977_v63  ;;  %v19987_v40 = vld [vmem:[%s25332_s4 + $0xae0] ss:$12 sps:$4 sm:$0xff]   ;;  %17072 = vmatprep.subr.bf16.mxu1 %v20021_v53  ;;  %v20027_v50 = vld [vmem:[%s25332_s4 + $0xad0] ss:$12 sps:$4 sm:$0xff]   ;;  %v19990_v53 = vld [vmem:[%s25332_s4 + $0xaf8] ss:$12 sps:$4 sm:$0xff]  }
 0x397   : > { %12243 = vmatmul.mubr.bf16.gmra.mrb[4].mxu0 %v19977_v63  ;;  %v23650_v30 = vadd.f32 %v16805_v34, %v23440_v54  ;;  %13734 = vmatprep.mubr.bf16.mxu1 %v19984_v44 }
 0x398   : > { %12318 = vmatpush1.bf16.msra.mxu0 %v19978_v17  ;;  %12252 = vmatprep.mubr.bf16.mxu0 %v19984_v44  ;;  %v19993_v17 = vld [vmem:[%s22342_s16 + $0x2bc] ss:$108 sps:$4 sm:$0xff]  }
 0x399   : > { %12319 = vmatprep.subr.bf16.mxu0 %v19983_v61  ;;  %v16806_v60 = vpop.f32.mrb[124].mxu1  ;;  %17073 = vmatpush3.bf16.msra.mxu1 %v20022_v9  ;;  %v20034_v9 = vld [vmem:[%s25332_s4 + $0xba8] ss:$12 sps:$4 sm:$0xff]  }
 0x39a   : > { %v16807_v63 = vpop.f32.mrb[125].mxu1  ;;  %17074 = vmatprep.subr.bf16.mxu1 %v20026_v49 }
 0x39b   : > { %v16808_v56 = vadd.f32 %v16807_v63, %v16806_v60  ;;  %v16809_v54 = vpop.f32.mrb[126].mxu1  ;;  %v20001_v60 = vld [vmem:[%s25332_s4 + $0xb2c] ss:$12 sps:$4 sm:$0xff]  }
 0x39c   : > { %12320 = vmatpush1.bf16.msra.mxu0 %v19981_v38  ;;  %v16810_v61 = vpop.f32.mrb[127].mxu1  ;;  %v19998_v38 = vld [vmem:[%s25332_s4 + $0xb14] ss:$12 sps:$4 sm:$0xff]  }
 0x39d   : > { %12321 = vmatprep.subr.bf16.mxu0 %v19989_v48  ;;  %v23667_v44 = vadd.f32 %v16808_v56, %v23460_v51  ;;  %v16811_v12 = vadd.f32 %v16810_v61, %v16809_v54  ;;  %v19995_v51 = vld [vmem:[%s22342_s16 + $0x2b8] ss:$108 sps:$4 sm:$0xff]   ;;  %v19996_v48 = vld [vmem:[%s25332_s4 + $0xb10] ss:$12 sps:$4 sm:$0xff]   ;;  %17075 = vmatpush3.bf16.msra.mxu1 %v20027_v50  ;;  %v20002_v56 = vld [vmem:[%s22342_s16 + $0x394] ss:$108 sps:$4 sm:$0xff]  }
 0x39e   : > { %13735 = vmatmul.mubr.bf16.gmra.mrb[232].mxu1 %v19986_v36  ;;  %17076 = vmatprep.subr.bf16.mxu1 %v20034_v9  ;;  %v20040_v61 = vld [vmem:[%s25332_s4 + $0xb00] ss:$12 sps:$4 sm:$0xff]  }
 0x39f   : > { %12253 = vmatmul.mubr.bf16.gmra.mrb[8].mxu0 %v19986_v36  ;;  %v23676_v34 = vadd.f32 %v16811_v12, %v23468_v33  ;;  %13742 = vmatprep.mubr.bf16.mxu1 %v19993_v17  ;;  %v20035_v33 = vld [vmem:[%s25332_s4 + $0xae8] ss:$12 sps:$4 sm:$0xff]  }
 0x3a0   : > { %12322 = vmatpush1.bf16.msra.mxu0 %v19987_v40  ;;  %12262 = vmatprep.mubr.bf16.mxu0 %v19993_v17  ;;  %v20039_v17 = vld [vmem:[%s25332_s4 + $0xbc0] ss:$12 sps:$4 sm:$0xff]   ;;  %v19999_v12 = vld [vmem:[%s25332_s4 + $0xb28] ss:$12 sps:$4 sm:$0xff]  }
 0x3a1   : > { %12323 = vmatprep.subr.bf16.mxu0 %v19992_v62  ;;  %v16828_v49 = vpop.f32.mrb[128].mxu1  ;;  %17077 = vmatpush3.bf16.msra.mxu1 %v20035_v33  ;;  %v20005_v33 = vld [vmem:[%s25332_s4 + $0xb40] ss:$12 sps:$4 sm:$0xff]  }
 0x3a2   : > { %v16829_v36 = vpop.f32.mrb[129].mxu1  ;;  %17078 = vmatprep.subr.bf16.mxu1 %v20039_v17  ;;  %v20048_v17 = vld [vmem:[%s25332_s4 + $0xb18] ss:$12 sps:$4 sm:$0xff]  }
 0x3a3   : > { %v16830_v40 = vadd.f32 %v16829_v36, %v16828_v49  ;;  %v16831_v63 = vpop.f32.mrb[130].mxu1 }
 0x3a4   : > { %12324 = vmatpush1.bf16.msra.mxu0 %v19990_v53  ;;  %v16832_v54 = vpop.f32.mrb[131].mxu1  ;;  %v20047_v53 = vld [vmem:[%s25332_s4 + $0xbd8] ss:$12 sps:$4 sm:$0xff]  }
 0x3a5   : > { %12325 = vmatprep.subr.bf16.mxu0 %v19998_v38  ;;  %v23699_v62 = vadd.f32 %v16830_v40, %v23491_v28  ;;  %v16833_v50 = vadd.f32 %v16832_v54, %v16831_v63  ;;  %v20004_v28 = vld [vmem:[%s22342_s16 + $0x390] ss:$108 sps:$4 sm:$0xff]   ;;  %17079 = vmatpush3.bf16.msra.mxu1 %v20040_v61  ;;  %v20010_v54 = vld [vmem:[%s25332_s4 + $0xb58] ss:$12 sps:$4 sm:$0xff]  }
 0x3a6   : > { %13743 = vmatmul.mubr.bf16.gmra.mrb[236].mxu1 %v19995_v51  ;;  %v20007_v38 = vld [vmem:[%s25332_s4 + $0xb44] ss:$12 sps:$4 sm:$0xff]   ;;  %17080 = vmatprep.subr.bf16.mxu1 %v20047_v53  ;;  %v20012_v40 = vld [vmem:[%s25332_s4 + $0xb5c] ss:$12 sps:$4 sm:$0xff]  }
 0x3a7   : > { %12263 = vmatmul.mubr.bf16.gmra.mrb[12].mxu0 %v19995_v51  ;;  %v23708_v9 = vadd.f32 %v16833_v50, %v23500_v18  ;;  %13750 = vmatprep.mubr.bf16.mxu1 %v20002_v56  ;;  %v20052_v61 = vld [vmem:[%s25332_s4 + $0xbf0] ss:$12 sps:$4 sm:$0xff]  }
 0x3a8   : > { %12326 = vmatpush1.bf16.msra.mxu0 %v19996_v48  ;;  %12272 = vmatprep.mubr.bf16.mxu0 %v20002_v56  ;;  %v20015_v48 = vld [vmem:[%s22342_s16 + $0x46c] ss:$108 sps:$4 sm:$0xff]  }
 0x3a9   : > { %12327 = vmatprep.subr.bf16.mxu0 %v20001_v60  ;;  %v16834_v49 = vpop.f32.mrb[132].mxu1  ;;  %17081 = vmatpush3.bf16.msra.mxu1 %v20048_v17 }
 0x3aa   : > { %v16835_v51 = vpop.f32.mrb[133].mxu1  ;;  %17082 = vmatprep.subr.bf16.mxu1 %v20052_v61  ;;  %v20030_v61 = vld [vmem:[%s22342_s16 + $0x540] ss:$108 sps:$4 sm:$0xff]  }
 0x3ab   : > { %v16836_v36 = vadd.f32 %v16835_v51, %v16834_v49  ;;  %v16837_v18 = vpop.f32.mrb[134].mxu1  ;;  %v20028_v51 = vld [vmem:[%s22342_s16 + $0x544] ss:$108 sps:$4 sm:$0xff]  }
 0x3ac   : > { %12328 = vmatpush1.bf16.msra.mxu0 %v19999_v12  ;;  %v16838_v60 = vpop.f32.mrb[135].mxu1  ;;  %v20020_v12 = vld [vmem:[%s25332_s4 + $0xb74] ss:$12 sps:$4 sm:$0xff]  }
 0x3ad   : > { %12329 = vmatprep.subr.bf16.mxu0 %v20007_v38  ;;  %v23722_v63 = vadd.f32 %v16836_v36, %v23514_v4  ;;  %v16839_v56 = vadd.f32 %v16838_v60, %v16837_v18  ;;  %v20017_v4 = vld [vmem:[%s22342_s16 + $0x468] ss:$108 sps:$4 sm:$0xff]   ;;  %v20018_v38 = vld [vmem:[%s25332_s4 + $0xb70] ss:$12 sps:$4 sm:$0xff]   ;;  %v20025_v18 = vld [vmem:[%s25332_s4 + $0xb8c] ss:$12 sps:$4 sm:$0xff]  }
 0x3ae   : > { %13751 = vmatmul.mubr.bf16.gmra.mrb[240].mxu1 %v20004_v28 }
 0x3af   : > { %12273 = vmatmul.mubr.bf16.gmra.mrb[16].mxu0 %v20004_v28  ;;  %v23734_v50 = vadd.f32 %v16839_v56, %v23526_v7  ;;  %13758 = vmatprep.mubr.bf16.mxu1 %v20015_v48  ;;  %v20053_v7 = vld [vmem:[%s25332_s4 + $0xb30] ss:$12 sps:$4 sm:$0xff]   ;;  %v20096_v56 = vld [vmem:[%s25332_s4 + $0xcc8] ss:$12 sps:$4 sm:$0xff]  }
 0x3b0   : > { %12330 = vmatpush1.bf16.msra.mxu0 %v20005_v33  ;;  %12282 = vmatprep.mubr.bf16.mxu0 %v20015_v48 }
 0x3b1   : > { %12331 = vmatprep.subr.bf16.mxu0 %v20012_v40  ;;  %v16840_v53 = vpop.f32.mrb[136].mxu1  ;;  %v20023_v40 = vld [vmem:[%s25332_s4 + $0xb88] ss:$12 sps:$4 sm:$0xff]   ;;  %17083 = vmatpush3.bf16.msra.mxu1 %v20053_v7 }
 0x3b2   : > { %v16841_v28 = vpop.f32.mrb[137].mxu1  ;;  %17132 = vmatprep.subr.bf16.mxu1 %v20096_v56  ;;  %v20041_v7 = vld [vmem:[%s22342_s16 + $0x61c] ss:$108 sps:$4 sm:$0xff]  }
 0x3b3   : > { %v16842_v49 = vadd.f32 %v16841_v28, %v16840_v53  ;;  %v16843_v33 = vpop.f32.mrb[138].mxu1  ;;  %v20038_v28 = vld [vmem:[%s25332_s4 + $0xbbc] ss:$12 sps:$4 sm:$0xff]  }
 0x3b4   : > { %12332 = vmatpush1.bf16.msra.mxu0 %v20010_v54  ;;  %v16844_v36 = vpop.f32.mrb[139].mxu1 }
 0x3b5   : > { %12333 = vmatprep.subr.bf16.mxu0 %v20020_v12  ;;  %v23751_v48 = vadd.f32 %v16842_v49, %v23543_v0  ;;  %v16845_v60 = vadd.f32 %v16844_v36, %v16843_v33  ;;  %v20033_v0 = vld [vmem:[%s25332_s4 + $0xba4] ss:$12 sps:$4 sm:$0xff]   ;;  %v20031_v12 = vld [vmem:[%s25332_s4 + $0xba0] ss:$12 sps:$4 sm:$0xff]  }
 0x3b6   : > { %13759 = vmatmul.mubr.bf16.gmra.mrb[244].mxu1 %v20017_v4 }
 0x3b7   : > { %12283 = vmatmul.mubr.bf16.gmra.mrb[20].mxu0 %v20017_v4  ;;  %v23760_v54 = vadd.f32 %v16845_v60, %v23552_v10  ;;  %13766 = vmatprep.mubr.bf16.mxu1 %v20028_v51  ;;  %v20043_v60 = vld [vmem:[%s22342_s16 + $0x618] ss:$108 sps:$4 sm:$0xff]  }
 0x3b8   : > { %12334 = vmatpush1.bf16.msra.mxu0 %v20018_v38  ;;  %12292 = vmatprep.mubr.bf16.mxu0 %v20028_v51  ;;  %v20036_v51 = vld [vmem:[%s25332_s4 + $0xbb8] ss:$12 sps:$4 sm:$0xff]  }
 0x3b9   : > { %12335 = vmatprep.subr.bf16.mxu0 %v20025_v18  ;;  %v16846_v17 = vpop.f32.mrb[140].mxu1 }
 0x3ba   : > { %v16847_v53 = vpop.f32.mrb[141].mxu1 }
 0x3bb   : > { %v16848_v4 = vadd.f32 %v16847_v53, %v16846_v17  ;;  %v16849_v10 = vpop.f32.mrb[142].mxu1 }
 0x3bc   : > { %12336 = vmatpush1.bf16.msra.mxu0 %v20023_v40  ;;  %v16850_v38 = vpop.f32.mrb[143].mxu1  ;;  %v20044_v40 = vld [vmem:[%s25332_s4 + $0xbd0] ss:$12 sps:$4 sm:$0xff]  }
 0x3bd   : > { %12337 = vmatprep.subr.bf16.mxu0 %v20033_v0  ;;  %v23774_v49 = vadd.f32 %v16848_v4, %v23566_v20  ;;  %v16851_v33 = vadd.f32 %v16850_v38, %v16849_v10  ;;  %v20046_v20 = vld [vmem:[%s25332_s4 + $0xbd4] ss:$12 sps:$4 sm:$0xff]  }
 0x3be   : > { %13767 = vmatmul.mubr.bf16.gmra.mrb[248].mxu1 %v20030_v61  ;;  %v20049_v10 = vld [vmem:[%s25332_s4 + $0xbe8] ss:$12 sps:$4 sm:$0xff]  }
 0x3bf   : > { %12293 = vmatmul.mubr.bf16.gmra.mrb[24].mxu0 %v20030_v61  ;;  %v23780_v36 = vadd.f32 %v16851_v33, %v23572_v2  ;;  %13774 = vmatprep.mubr.bf16.mxu1 %v20041_v7  ;;  %v20056_v2 = vld [vmem:[%s22342_s16 + $0x3c] ss:$108 sps:$4 sm:$0xff]   ;;  %v20057_v33 = vld [vmem:[%s25332_s4 + $0xc00] ss:$12 sps:$4 sm:$0xff]  }
 0x3c0   : > { %12338 = vmatpush1.bf16.msra.mxu0 %v20031_v12  ;;  %12302 = vmatprep.mubr.bf16.mxu0 %v20041_v7  ;;  %v20051_v12 = vld [vmem:[%s25332_s4 + $0xbec] ss:$12 sps:$4 sm:$0xff]  }
 0x3c1   : > { %12339 = vmatprep.subr.bf16.mxu0 %v20038_v28  ;;  %v16852_v18 = vpop.f32.mrb[144].mxu1  ;;  %v20054_v28 = vld [vmem:[%s22342_s16 + $0x38] ss:$108 sps:$4 sm:$0xff]  }
 0x3c2   : > { %v16853_v56 = vpop.f32.mrb[145].mxu1 }
 0x3c3   : > { %v16854_v0 = vadd.f32 %v16853_v56, %v16852_v18  ;;  %v16855_v17 = vpop.f32.mrb[146].mxu1  ;;  %v20097_v56 = vld [vmem:[%s25332_s4 + $0xc08] ss:$12 sps:$4 sm:$0xff]  }
 0x3c4   : > { %12340 = vmatpush1.bf16.msra.mxu0 %v20036_v51  ;;  %v16856_v61 = vpop.f32.mrb[147].mxu1 }
 0x3c5   : > { %12341 = vmatprep.subr.bf16.mxu0 %v20046_v20  ;;  %v23794_v53 = vadd.f32 %v16854_v0, %v23586_v35  ;;  %v16857_v4 = vadd.f32 %v16856_v61, %v16855_v17  ;;  %v20059_v35 = vld [vmem:[%s25332_s4 + $0xc04] ss:$12 sps:$4 sm:$0xff]   ;;  %v20101_v61 = vld [vmem:[%s25332_s4 + $0xce0] ss:$12 sps:$4 sm:$0xff]  }
 0x3c6   : > { %13775 = vmatmul.mubr.bf16.gmra.mrb[252].mxu1 %v20043_v60 }
 0x3c7   : > { %12303 = vmatmul.mubr.bf16.gmra.mrb[28].mxu0 %v20043_v60  ;;  %v23800_v7 = vadd.f32 %v16857_v4, %v23592_v19  ;;  %13815 = vmatprep.mubr.bf16.mxu1 %v20056_v2  ;;  %v20063_v19 = vld [vmem:[%s22342_s16 + $0x114] ss:$108 sps:$4 sm:$0xff]  }
 0x3c8   : > { %12342 = vmatpush1.bf16.msra.mxu0 %v20044_v40  ;;  %12345 = vmatprep.mubr.bf16.mxu0 %v20056_v2  ;;  %v20062_v40 = vld [vmem:[%s25332_s4 + $0xc1c] ss:$12 sps:$4 sm:$0xff]   ;;  %v20060_v2 = vld [vmem:[%s25332_s4 + $0xc18] ss:$12 sps:$4 sm:$0xff]   ;;  %v20068_v4 = vld [vmem:[%s25332_s4 + $0xc34] ss:$12 sps:$4 sm:$0xff]  }
 0x3c9   : > { %12343 = vmatprep.subr.bf16.mxu0 %v20051_v12  ;;  %v16858_v38 = vpop.f32.mrb[148].mxu1 }
 0x3ca   : > { %v16859_v51 = vpop.f32.mrb[149].mxu1 }
 0x3cb   : > { %v16860_v20 = vadd.f32 %v16859_v51, %v16858_v38  ;;  %v16861_v18 = vpop.f32.mrb[150].mxu1 }
 0x3cc   : > { %12344 = vmatpush1.bf16.msra.mxu0 %v20049_v10  ;;  %v16862_v60 = vpop.f32.mrb[151].mxu1 }
 0x3cd   : > { %12426 = vmatprep.subr.bf16.mxu0 %v20059_v35  ;;  %v23817_v0 = vadd.f32 %v16860_v20, %v23609_v24  ;;  %v16863_v17 = vadd.f32 %v16862_v60, %v16861_v18  ;;  %v20065_v24 = vld [vmem:[%s22342_s16 + $0x110] ss:$108 sps:$4 sm:$0xff]   ;;  %v20072_v20 = vld [vmem:[%s22342_s16 + $0x1ec] ss:$108 sps:$4 sm:$0xff]  }
 0x3ce   : > { %13816 = vmatmul.mubr.bf16.vlgmr.msra.gmra.mrb[0].mxu1 %v20054_v28  ;;  %v20066_v35 = vld [vmem:[%s25332_s4 + $0xc30] ss:$12 sps:$4 sm:$0xff]   ;;  %v20110_v60 = vld [vmem:[%s25332_s4 + $0xc38] ss:$12 sps:$4 sm:$0xff]  }
 0x3cf   : > { %12346 = vmatmul.mubr.bf16.vlgmr.msra.gmra.mrb[0].mxu0 %v20054_v28  ;;  %v23826_v12 = vadd.f32 %v16863_v17, %v23618_v14  ;;  %13823 = vmatprep.mubr.bf16.mxu1 %v20063_v19  ;;  %v20102_v14 = vld [vmem:[%s25332_s4 + $0xc20] ss:$12 sps:$4 sm:$0xff]   ;;  %v20069_v17 = vld [vmem:[%s25332_s4 + $0xc48] ss:$12 sps:$4 sm:$0xff]  }
 0x3d0   : > { %12427 = vmatpush1.bf16.msra.mxu0 %v20057_v33  ;;  %12355 = vmatprep.mubr.bf16.mxu0 %v20063_v19  ;;  %v20071_v28 = vld [vmem:[%s25332_s4 + $0xc4c] ss:$12 sps:$4 sm:$0xff]  }
 0x3d1   : > { %12428 = vmatprep.subr.bf16.mxu0 %v20062_v40  ;;  %v16864_v10 = vpop.f32.mrb[152].mxu1  ;;  %17133 = vmatpush3.bf16.msra.mxu1 %v20097_v56  ;;  %v20109_v19 = vld [vmem:[%s25332_s4 + $0xcf8] ss:$12 sps:$4 sm:$0xff]  }
 0x3d2   : > { %v16865_v38 = vpop.f32.mrb[153].mxu1  ;;  %17134 = vmatprep.subr.bf16.mxu1 %v20101_v61 }
 0x3d3   : > { %v16866_v33 = vadd.f32 %v16865_v38, %v16864_v10  ;;  %v16867_v51 = vpop.f32.mrb[154].mxu1 }
 0x3d4   : > { %12429 = vmatpush1.bf16.msra.mxu0 %v20060_v2  ;;  %v16868_v18 = vpop.f32.mrb[155].mxu1  ;;  %v20114_v2 = vld [vmem:[%s25332_s4 + $0xd10] ss:$12 sps:$4 sm:$0xff]  }
 0x3d5   : > { %12430 = vmatprep.subr.bf16.mxu0 %v20068_v4  ;;  %v23849_v40 = vadd.f32 %v16866_v33, %v23641_v22  ;;  %v16869_v56 = vadd.f32 %v16868_v18, %v16867_v51  ;;  %17135 = vmatpush3.bf16.msra.mxu1 %v20102_v14  ;;  %v20074_v22 = vld [vmem:[%s22342_s16 + $0x1e8] ss:$108 sps:$4 sm:$0xff]   ;;  %v20077_v4 = vld [vmem:[%s25332_s4 + $0xc64] ss:$12 sps:$4 sm:$0xff]   ;;  %v20075_v14 = vld [vmem:[%s25332_s4 + $0xc60] ss:$12 sps:$4 sm:$0xff]  }
 0x3d6   : > { %13824 = vmatmul.mubr.bf16.gmra.mrb[4].mxu1 %v20065_v24  ;;  %17136 = vmatprep.subr.bf16.mxu1 %v20109_v19  ;;  %v20080_v33 = vld [vmem:[%s25332_s4 + $0xc7c] ss:$12 sps:$4 sm:$0xff]   ;;  %v20078_v19 = vld [vmem:[%s25332_s4 + $0xc78] ss:$12 sps:$4 sm:$0xff]  }
 0x3d7   : > { %12356 = vmatmul.mubr.bf16.gmra.mrb[4].mxu0 %v20065_v24  ;;  %v23858_v61 = vadd.f32 %v16869_v56, %v23650_v30  ;;  %13831 = vmatprep.mubr.bf16.mxu1 %v20072_v20  ;;  %v20115_v51 = vld [vmem:[%s25332_s4 + $0xc50] ss:$12 sps:$4 sm:$0xff]  }
 0x3d8   : > { %12431 = vmatpush1.bf16.msra.mxu0 %v20066_v35  ;;  %12365 = vmatprep.mubr.bf16.mxu0 %v20072_v20  ;;  %v20081_v35 = vld [vmem:[%s22342_s16 + $0x2c4] ss:$108 sps:$4 sm:$0xff]  }
 0x3d9   : > { %12432 = vmatprep.subr.bf16.mxu0 %v20071_v28  ;;  %v16870_v10 = vpop.f32.mrb[156].mxu1  ;;  %17137 = vmatpush3.bf16.msra.mxu1 %v20110_v60  ;;  %v20122_v60 = vld [vmem:[%s25332_s4 + $0xd28] ss:$12 sps:$4 sm:$0xff]  }
 0x3da   : > { %v16871_v24 = vpop.f32.mrb[157].mxu1  ;;  %17138 = vmatprep.subr.bf16.mxu1 %v20114_v2 }
 0x3db   : > { %v16872_v38 = vadd.f32 %v16871_v24, %v16870_v10  ;;  %v16873_v30 = vpop.f32.mrb[158].mxu1  ;;  %v20089_v10 = vld [vmem:[%s25332_s4 + $0xcac] ss:$12 sps:$4 sm:$0xff]  }
 0x3dc   : > { %12433 = vmatpush1.bf16.msra.mxu0 %v20069_v17  ;;  %v16874_v28 = vpop.f32.mrb[159].mxu1  ;;  %v20086_v17 = vld [vmem:[%s25332_s4 + $0xc94] ss:$12 sps:$4 sm:$0xff]  }
 0x3dd   : > { %12434 = vmatprep.subr.bf16.mxu0 %v20077_v4  ;;  %v23875_v20 = vadd.f32 %v16872_v38, %v23667_v44  ;;  %v16875_v18 = vadd.f32 %v16874_v28, %v16873_v30  ;;  %v20083_v44 = vld [vmem:[%s22342_s16 + $0x2c0] ss:$108 sps:$4 sm:$0xff]   ;;  %v20084_v4 = vld [vmem:[%s25332_s4 + $0xc90] ss:$12 sps:$4 sm:$0xff]   ;;  %17139 = vmatpush3.bf16.msra.mxu1 %v20115_v51 }
 0x3de   : > { %13832 = vmatmul.mubr.bf16.gmra.mrb[8].mxu1 %v20074_v22  ;;  %17140 = vmatprep.subr.bf16.mxu1 %v20122_v60  ;;  %v20090_v38 = vld [vmem:[%s22342_s16 + $0x39c] ss:$108 sps:$4 sm:$0xff]   ;;  %v20128_v28 = vld [vmem:[%s25332_s4 + $0xc80] ss:$12 sps:$4 sm:$0xff]  }
 0x3df   : > { %12366 = vmatmul.mubr.bf16.gmra.mrb[8].mxu0 %v20074_v22  ;;  %v23884_v56 = vadd.f32 %v16875_v18, %v23676_v34  ;;  %13839 = vmatprep.mubr.bf16.mxu1 %v20081_v35  ;;  %v20123_v34 = vld [vmem:[%s25332_s4 + $0xc68] ss:$12 sps:$4 sm:$0xff]  }
 0x3e0   : > { %12435 = vmatpush1.bf16.msra.mxu0 %v20075_v14  ;;  %12375 = vmatprep.mubr.bf16.mxu0 %v20081_v35  ;;  %v20127_v35 = vld [vmem:[%s25332_s4 + $0xd40] ss:$12 sps:$4 sm:$0xff]   ;;  %v20087_v18 = vld [vmem:[%s25332_s4 + $0xca8] ss:$12 sps:$4 sm:$0xff]  }
 0x3e1   : > { %12436 = vmatprep.subr.bf16.mxu0 %v20080_v33  ;;  %v16892_v2 = vpop.f32.mrb[160].mxu1  ;;  %17141 = vmatpush3.bf16.msra.mxu1 %v20123_v34  ;;  %v20093_v34 = vld [vmem:[%s25332_s4 + $0xcc0] ss:$12 sps:$4 sm:$0xff]  }
 0x3e2   : > { %v16893_v22 = vpop.f32.mrb[161].mxu1  ;;  %17142 = vmatprep.subr.bf16.mxu1 %v20127_v35  ;;  %v20136_v35 = vld [vmem:[%s25332_s4 + $0xc98] ss:$12 sps:$4 sm:$0xff]  }
 0x3e3   : > { %v16894_v14 = vadd.f32 %v16893_v22, %v16892_v2  ;;  %v16895_v24 = vpop.f32.mrb[162].mxu1 }
 0x3e4   : > { %12437 = vmatpush1.bf16.msra.mxu0 %v20078_v19  ;;  %v16896_v30 = vpop.f32.mrb[163].mxu1  ;;  %v20135_v19 = vld [vmem:[%s25332_s4 + $0xd58] ss:$12 sps:$4 sm:$0xff]  }
 0x3e5   : > { %12438 = vmatprep.subr.bf16.mxu0 %v20086_v17  ;;  %v23907_v33 = vadd.f32 %v16894_v14, %v23699_v62  ;;  %v16897_v51 = vadd.f32 %v16896_v30, %v16895_v24  ;;  %v20092_v62 = vld [vmem:[%s22342_s16 + $0x398] ss:$108 sps:$4 sm:$0xff]   ;;  %17143 = vmatpush3.bf16.msra.mxu1 %v20128_v28  ;;  %v20100_v14 = vld [vmem:[%s25332_s4 + $0xcdc] ss:$12 sps:$4 sm:$0xff]  }
 0x3e6   : > { %13840 = vmatmul.mubr.bf16.gmra.mrb[12].mxu1 %v20083_v44  ;;  %v20095_v17 = vld [vmem:[%s25332_s4 + $0xcc4] ss:$12 sps:$4 sm:$0xff]   ;;  %17144 = vmatprep.subr.bf16.mxu1 %v20135_v19 }
 0x3e7   : > { %12376 = vmatmul.mubr.bf16.gmra.mrb[12].mxu0 %v20083_v44  ;;  %v23916_v60 = vadd.f32 %v16897_v51, %v23708_v9  ;;  %13847 = vmatprep.mubr.bf16.mxu1 %v20090_v38  ;;  %v20098_v30 = vld [vmem:[%s25332_s4 + $0xcd8] ss:$12 sps:$4 sm:$0xff]   ;;  %v20140_v28 = vld [vmem:[%s25332_s4 + $0xd70] ss:$12 sps:$4 sm:$0xff]  }
 0x3e8   : > { %12439 = vmatpush1.bf16.msra.mxu0 %v20084_v4  ;;  %12385 = vmatprep.mubr.bf16.mxu0 %v20090_v38  ;;  %v20103_v4 = vld [vmem:[%s22342_s16 + $0x474] ss:$108 sps:$4 sm:$0xff]  }
 0x3e9   : > { %12440 = vmatprep.subr.bf16.mxu0 %v20089_v10  ;;  %v16898_v2 = vpop.f32.mrb[164].mxu1  ;;  %17145 = vmatpush3.bf16.msra.mxu1 %v20136_v35 }
 0x3ea   : > { %v16899_v44 = vpop.f32.mrb[165].mxu1  ;;  %17146 = vmatprep.subr.bf16.mxu1 %v20140_v28  ;;  %v20118_v28 = vld [vmem:[%s22342_s16 + $0x548] ss:$108 sps:$4 sm:$0xff]  }
 0x3eb   : > { %v16900_v22 = vadd.f32 %v16899_v44, %v16898_v2  ;;  %v16901_v9 = vpop.f32.mrb[166].mxu1  ;;  %v20116_v44 = vld [vmem:[%s22342_s16 + $0x54c] ss:$108 sps:$4 sm:$0xff]  }
 0x3ec   : > { %12441 = vmatpush1.bf16.msra.mxu0 %v20087_v18  ;;  %v16902_v10 = vpop.f32.mrb[167].mxu1  ;;  %v20108_v18 = vld [vmem:[%s25332_s4 + $0xcf4] ss:$12 sps:$4 sm:$0xff]  }
 0x3ed   : > { %12442 = vmatprep.subr.bf16.mxu0 %v20095_v17  ;;  %v23930_v24 = vadd.f32 %v16900_v22, %v23722_v63  ;;  %v16903_v38 = vadd.f32 %v16902_v10, %v16901_v9  ;;  %v20105_v63 = vld [vmem:[%s22342_s16 + $0x470] ss:$108 sps:$4 sm:$0xff]   ;;  %v20113_v9 = vld [vmem:[%s25332_s4 + $0xd0c] ss:$12 sps:$4 sm:$0xff]  }
 0x3ee   : > { %13848 = vmatmul.mubr.bf16.gmra.mrb[16].mxu1 %v20092_v62  ;;  %v20106_v17 = vld [vmem:[%s25332_s4 + $0xcf0] ss:$12 sps:$4 sm:$0xff]  }
 0x3ef   : > { %12386 = vmatmul.mubr.bf16.gmra.mrb[16].mxu0 %v20092_v62  ;;  %v23942_v51 = vadd.f32 %v16903_v38, %v23734_v50  ;;  %13855 = vmatprep.mubr.bf16.mxu1 %v20103_v4  ;;  %v20141_v50 = vld [vmem:[%s25332_s4 + $0xcb0] ss:$12 sps:$4 sm:$0xff]   ;;  %v20184_v38 = vld [vmem:[%s25332_s4 + $0xe48] ss:$12 sps:$4 sm:$0xff]  }
 0x3f0   : > { %12443 = vmatpush1.bf16.msra.mxu0 %v20093_v34  ;;  %12395 = vmatprep.mubr.bf16.mxu0 %v20103_v4 }
 0x3f1   : > { %12444 = vmatprep.subr.bf16.mxu0 %v20100_v14  ;;  %v16904_v19 = vpop.f32.mrb[168].mxu1  ;;  %v20111_v14 = vld [vmem:[%s25332_s4 + $0xd08] ss:$12 sps:$4 sm:$0xff]   ;;  %17147 = vmatpush3.bf16.msra.mxu1 %v20141_v50  ;;  %v20129_v50 = vld [vmem:[%s22342_s16 + $0x624] ss:$108 sps:$4 sm:$0xff]  }
 0x3f2   : > { %v16905_v62 = vpop.f32.mrb[169].mxu1  ;;  %17196 = vmatprep.subr.bf16.mxu1 %v20184_v38 }
 0x3f3   : > { %v16906_v2 = vadd.f32 %v16905_v62, %v16904_v19  ;;  %v16907_v34 = vpop.f32.mrb[170].mxu1  ;;  %v20126_v62 = vld [vmem:[%s25332_s4 + $0xd3c] ss:$12 sps:$4 sm:$0xff]  }
 0x3f4   : > { %12445 = vmatpush1.bf16.msra.mxu0 %v20098_v30  ;;  %v16908_v22 = vpop.f32.mrb[171].mxu1 }
 0x3f5   : > { %12446 = vmatprep.subr.bf16.mxu0 %v20108_v18  ;;  %v23959_v4 = vadd.f32 %v16906_v2, %v23751_v48  ;;  %v16909_v10 = vadd.f32 %v16908_v22, %v16907_v34  ;;  %v20121_v48 = vld [vmem:[%s25332_s4 + $0xd24] ss:$12 sps:$4 sm:$0xff]   ;;  %v20119_v18 = vld [vmem:[%s25332_s4 + $0xd20] ss:$12 sps:$4 sm:$0xff]  }
 0x3f6   : > { %13856 = vmatmul.mubr.bf16.gmra.mrb[20].mxu1 %v20105_v63 }
 0x3f7   : > { %12396 = vmatmul.mubr.bf16.gmra.mrb[20].mxu0 %v20105_v63  ;;  %v23968_v30 = vadd.f32 %v16909_v10, %v23760_v54  ;;  %13863 = vmatprep.mubr.bf16.mxu1 %v20116_v44  ;;  %v20131_v10 = vld [vmem:[%s22342_s16 + $0x620] ss:$108 sps:$4 sm:$0xff]  }
 0x3f8   : > { %12447 = vmatpush1.bf16.msra.mxu0 %v20106_v17  ;;  %12405 = vmatprep.mubr.bf16.mxu0 %v20116_v44  ;;  %v20124_v44 = vld [vmem:[%s25332_s4 + $0xd38] ss:$12 sps:$4 sm:$0xff]  }
 0x3f9   : > { %12448 = vmatprep.subr.bf16.mxu0 %v20113_v9  ;;  %v16910_v35 = vpop.f32.mrb[172].mxu1 }
 0x3fa   : > { %v16911_v19 = vpop.f32.mrb[173].mxu1 }
 0x3fb   : > { %v16912_v63 = vadd.f32 %v16911_v19, %v16910_v35  ;;  %v16913_v54 = vpop.f32.mrb[174].mxu1 }
 0x3fc   : > { %12449 = vmatpush1.bf16.msra.mxu0 %v20111_v14  ;;  %v16914_v17 = vpop.f32.mrb[175].mxu1  ;;  %v20132_v14 = vld [vmem:[%s25332_s4 + $0xd50] ss:$12 sps:$4 sm:$0xff]  }
 0x3fd   : > { %12450 = vmatprep.subr.bf16.mxu0 %v20121_v48  ;;  %v23982_v2 = vadd.f32 %v16912_v63, %v23774_v49  ;;  %v16915_v34 = vadd.f32 %v16914_v17, %v16913_v54  ;;  %v20134_v49 = vld [vmem:[%s25332_s4 + $0xd54] ss:$12 sps:$4 sm:$0xff]   ;;  %v20147_v17 = vld [vmem:[%s25332_s4 + $0xd84] ss:$12 sps:$4 sm:$0xff]  }
 0x3fe   : > { %13864 = vmatmul.mubr.bf16.gmra.mrb[24].mxu1 %v20118_v28  ;;  %v20137_v63 = vld [vmem:[%s25332_s4 + $0xd68] ss:$12 sps:$4 sm:$0xff]  }
 0x3ff   : > { %12406 = vmatmul.mubr.bf16.gmra.mrb[24].mxu0 %v20118_v28  ;;  %v23988_v22 = vadd.f32 %v16915_v34, %v23780_v36  ;;  %13871 = vmatprep.mubr.bf16.mxu1 %v20129_v50  ;;  %v20144_v36 = vld [vmem:[%s22342_s16 + $0x44] ss:$108 sps:$4 sm:$0xff]   ;;  %v20142_v34 = vld [vmem:[%s22342_s16 + $0x40] ss:$108 sps:$4 sm:$0xff]  }
 0x400   : > { %12451 = vmatpush1.bf16.msra.mxu0 %v20119_v18  ;;  %12415 = vmatprep.mubr.bf16.mxu0 %v20129_v50  ;;  %v20139_v18 = vld [vmem:[%s25332_s4 + $0xd6c] ss:$12 sps:$4 sm:$0xff]  }
 0x401   : > { %12452 = vmatprep.subr.bf16.mxu0 %v20126_v62  ;;  %v16916_v9 = vpop.f32.mrb[176].mxu1 }
 0x402   : > { %v16917_v38 = vpop.f32.mrb[177].mxu1 }
 0x403   : > { %v16918_v48 = vadd.f32 %v16917_v38, %v16916_v9  ;;  %v16919_v35 = vpop.f32.mrb[178].mxu1  ;;  %v20185_v38 = vld [vmem:[%s25332_s4 + $0xd88] ss:$12 sps:$4 sm:$0xff]  }
 0x404   : > { %12453 = vmatpush1.bf16.msra.mxu0 %v20124_v44  ;;  %v16920_v28 = vpop.f32.mrb[179].mxu1 }
 0x405   : > { %12454 = vmatprep.subr.bf16.mxu0 %v20134_v49  ;;  %v16921_v19 = vadd.f32 %v16920_v28, %v16919_v35  ;;  %v24005_v54 = vadd.f32 %v16918_v48, %v23794_v53  ;;  %v20145_v53 = vld [vmem:[%s25332_s4 + $0xd80] ss:$12 sps:$4 sm:$0xff]   ;;  %v20148_v35 = vld [vmem:[%s25332_s4 + $0xd98] ss:$12 sps:$4 sm:$0xff]  }
 0x406   : > { %13872 = vmatmul.mubr.bf16.gmra.mrb[28].mxu1 %v20131_v10 }
 0x407   : > { %12416 = vmatmul.mubr.bf16.gmra.mrb[28].mxu0 %v20131_v10  ;;  %v24008_v50 = vadd.f32 %v16921_v19, %v23800_v7  ;;  %13912 = vmatprep.mubr.bf16.mxu1 %v20144_v36  ;;  %v20151_v10 = vld [vmem:[%s22342_s16 + $0x11c] ss:$108 sps:$4 sm:$0xff]   ;;  %v20156_v19 = vld [vmem:[%s25332_s4 + $0xdb4] ss:$12 sps:$4 sm:$0xff]  }
 0x408   : > { %12455 = vmatpush1.bf16.msra.mxu0 %v20132_v14  ;;  %12458 = vmatprep.mubr.bf16.mxu0 %v20144_v36  ;;  %v20150_v7 = vld [vmem:[%s25332_s4 + $0xd9c] ss:$12 sps:$4 sm:$0xff]   ;;  %v20189_v36 = vld [vmem:[%s25332_s4 + $0xe60] ss:$12 sps:$4 sm:$0xff]  }
 0x409   : > { %12456 = vmatprep.subr.bf16.mxu0 %v20139_v18  ;;  %v16922_v62 = vpop.f32.mrb[180].mxu1 }
 0x40a   : > { %v16923_v44 = vpop.f32.mrb[181].mxu1 }
 0x40b   : > { %v16924_v49 = vadd.f32 %v16923_v44, %v16922_v62  ;;  %v16925_v9 = vpop.f32.mrb[182].mxu1  ;;  %v20153_v62 = vld [vmem:[%s22342_s16 + $0x118] ss:$108 sps:$4 sm:$0xff]   ;;  %v20160_v44 = vld [vmem:[%s22342_s16 + $0x1f4] ss:$108 sps:$4 sm:$0xff]  }
 0x40c   : > { %12457 = vmatpush1.bf16.msra.mxu0 %v20137_v63  ;;  %v16926_v14 = vpop.f32.mrb[183].mxu1 }
 0x40d   : > { %12539 = vmatprep.subr.bf16.mxu0 %v20147_v17  ;;  %v16927_v48 = vadd.f32 %v16926_v14, %v16925_v9  ;;  %v24031_v28 = vadd.f32 %v16924_v49, %v23817_v0  ;;  %v20190_v0 = vld [vmem:[%s25332_s4 + $0xda0] ss:$12 sps:$4 sm:$0xff]   ;;  %v20197_v14 = vld [vmem:[%s25332_s4 + $0xe78] ss:$12 sps:$4 sm:$0xff]  }
 0x40e   : > { %13913 = vmatmul.mubr.bf16.vlgmr.msra.gmra.mrb[32].mxu1 %v20142_v34  ;;  %v20159_v9 = vld [vmem:[%s25332_s4 + $0xdcc] ss:$12 sps:$4 sm:$0xff]  }
 0x40f   : > { %12459 = vmatmul.mubr.bf16.vlgmr.msra.gmra.mrb[0].mxu0 %v20142_v34  ;;  %v24034_v18 = vadd.f32 %v16927_v48, %v23826_v12  ;;  %13920 = vmatprep.mubr.bf16.mxu1 %v20151_v10  ;;  %v20154_v12 = vld [vmem:[%s25332_s4 + $0xdb0] ss:$12 sps:$4 sm:$0xff]   ;;  %v20157_v48 = vld [vmem:[%s25332_s4 + $0xdc8] ss:$12 sps:$4 sm:$0xff]  }
 0x410   : > { %12540 = vmatpush1.bf16.msra.mxu0 %v20145_v53  ;;  %12468 = vmatprep.mubr.bf16.mxu0 %v20151_v10 }
 0x411   : > { %12541 = vmatprep.subr.bf16.mxu0 %v20150_v7  ;;  %v16928_v63 = vpop.f32.mrb[184].mxu1  ;;  %17197 = vmatpush3.bf16.msra.mxu1 %v20185_v38  ;;  %v20198_v38 = vld [vmem:[%s25332_s4 + $0xdb8] ss:$12 sps:$4 sm:$0xff]  }
 0x412   : > { %v16929_v17 = vpop.f32.mrb[185].mxu1  ;;  %17198 = vmatprep.subr.bf16.mxu1 %v20189_v36  ;;  %v20165_v36 = vld [vmem:[%s25332_s4 + $0xde4] ss:$12 sps:$4 sm:$0xff]  }
 0x413   : > { %v16930_v34 = vadd.f32 %v16929_v17, %v16928_v63  ;;  %v16931_v53 = vpop.f32.mrb[186].mxu1 }
 0x414   : > { %12542 = vmatpush1.bf16.msra.mxu0 %v20148_v35  ;;  %v16932_v49 = vpop.f32.mrb[187].mxu1  ;;  %v20202_v35 = vld [vmem:[%s25332_s4 + $0xe90] ss:$12 sps:$4 sm:$0xff]  }
 0x415   : > { %12543 = vmatprep.subr.bf16.mxu0 %v20156_v19  ;;  %v16933_v10 = vadd.f32 %v16932_v49, %v16931_v53  ;;  %17199 = vmatpush3.bf16.msra.mxu1 %v20190_v0  ;;  %v24054_v7 = vadd.f32 %v16930_v34, %v23849_v40  ;;  %v20162_v0 = vld [vmem:[%s22342_s16 + $0x1f0] ss:$108 sps:$4 sm:$0xff]   ;;  %v20163_v34 = vld [vmem:[%s25332_s4 + $0xde0] ss:$12 sps:$4 sm:$0xff]  }
 0x416   : > { %13921 = vmatmul.mubr.bf16.gmra.mrb[36].mxu1 %v20153_v62  ;;  %17200 = vmatprep.subr.bf16.mxu1 %v20197_v14  ;;  %v20203_v49 = vld [vmem:[%s25332_s4 + $0xdd0] ss:$12 sps:$4 sm:$0xff]   ;;  %v20166_v14 = vld [vmem:[%s25332_s4 + $0xdf8] ss:$12 sps:$4 sm:$0xff]  }
 0x417   : > { %12469 = vmatmul.mubr.bf16.gmra.mrb[4].mxu0 %v20153_v62  ;;  %v24066_v40 = vadd.f32 %v16933_v10, %v23858_v61  ;;  %13928 = vmatprep.mubr.bf16.mxu1 %v20160_v44  ;;  %v20169_v61 = vld [vmem:[%s22342_s16 + $0x2cc] ss:$108 sps:$4 sm:$0xff]   ;;  %v20210_v10 = vld [vmem:[%s25332_s4 + $0xea8] ss:$12 sps:$4 sm:$0xff]  }
 0x418   : > { %12544 = vmatpush1.bf16.msra.mxu0 %v20154_v12  ;;  %12478 = vmatprep.mubr.bf16.mxu0 %v20160_v44  ;;  %v20168_v12 = vld [vmem:[%s25332_s4 + $0xdfc] ss:$12 sps:$4 sm:$0xff]  }
 0x419   : > { %12545 = vmatprep.subr.bf16.mxu0 %v20159_v9  ;;  %v16934_v19 = vpop.f32.mrb[188].mxu1  ;;  %17201 = vmatpush3.bf16.msra.mxu1 %v20198_v38 }
 0x41a   : > { %v16935_v63 = vpop.f32.mrb[189].mxu1  ;;  %17202 = vmatprep.subr.bf16.mxu1 %v20202_v35  ;;  %v20211_v35 = vld [vmem:[%s25332_s4 + $0xde8] ss:$12 sps:$4 sm:$0xff]  }
 0x41b   : > { %v16936_v17 = vadd.f32 %v16935_v63, %v16934_v19  ;;  %v16937_v62 = vpop.f32.mrb[190].mxu1  ;;  %v20171_v19 = vld [vmem:[%s22342_s16 + $0x2c8] ss:$108 sps:$4 sm:$0xff]  }
 0x41c   : > { %12546 = vmatpush1.bf16.msra.mxu0 %v20157_v48  ;;  %v16938_v53 = vpop.f32.mrb[191].mxu1 }
 0x41d   : > { %12547 = vmatprep.subr.bf16.mxu0 %v20165_v36  ;;  %v16939_v44 = vadd.f32 %v16938_v53, %v16937_v62  ;;  %v24083_v9 = vadd.f32 %v16936_v17, %v23875_v20  ;;  %v20174_v20 = vld [vmem:[%s25332_s4 + $0xe14] ss:$12 sps:$4 sm:$0xff]   ;;  %17203 = vmatpush3.bf16.msra.mxu1 %v20203_v49  ;;  %v20178_v17 = vld [vmem:[%s22342_s16 + $0x3a4] ss:$108 sps:$4 sm:$0xff]  }
 0x41e   : > { %13929 = vmatmul.mubr.bf16.gmra.mrb[40].mxu1 %v20162_v0  ;;  %17204 = vmatprep.subr.bf16.mxu1 %v20210_v10  ;;  %v20215_v53 = vld [vmem:[%s25332_s4 + $0xec0] ss:$12 sps:$4 sm:$0xff]   ;;  %v20175_v49 = vld [vmem:[%s25332_s4 + $0xe28] ss:$12 sps:$4 sm:$0xff]   ;;  %v20223_v10 = vld [vmem:[%s25332_s4 + $0xed8] ss:$12 sps:$4 sm:$0xff]  }
 0x41f   : > { %12479 = vmatmul.mubr.bf16.gmra.mrb[8].mxu0 %v20162_v0  ;;  %v24092_v38 = vadd.f32 %v16939_v44, %v23884_v56  ;;  %13936 = vmatprep.mubr.bf16.mxu1 %v20169_v61  ;;  %v20172_v56 = vld [vmem:[%s25332_s4 + $0xe10] ss:$12 sps:$4 sm:$0xff]   ;;  %v20216_v44 = vld [vmem:[%s25332_s4 + $0xe00] ss:$12 sps:$4 sm:$0xff]  }
 0x420   : > { %12548 = vmatpush1.bf16.msra.mxu0 %v20163_v34  ;;  %12488 = vmatprep.mubr.bf16.mxu0 %v20169_v61  ;;  %v20177_v34 = vld [vmem:[%s25332_s4 + $0xe2c] ss:$12 sps:$4 sm:$0xff]  }
 0x421   : > { %12549 = vmatprep.subr.bf16.mxu0 %v20168_v12  ;;  %v16956_v48 = vpop.f32.mrb[192].mxu1  ;;  %17205 = vmatpush3.bf16.msra.mxu1 %v20211_v35  ;;  %v20180_v35 = vld [vmem:[%s22342_s16 + $0x3a0] ss:$108 sps:$4 sm:$0xff]  }
 0x422   : > { %v16957_v36 = vpop.f32.mrb[193].mxu1  ;;  %17206 = vmatprep.subr.bf16.mxu1 %v20215_v53  ;;  %v20186_v53 = vld [vmem:[%s25332_s4 + $0xe58] ss:$12 sps:$4 sm:$0xff]  }
 0x423   : > { %v16958_v63 = vadd.f32 %v16957_v36, %v16956_v48  ;;  %v16959_v0 = vpop.f32.mrb[194].mxu1 }
 0x424   : > { %12550 = vmatpush1.bf16.msra.mxu0 %v20166_v14  ;;  %v16960_v62 = vpop.f32.mrb[195].mxu1  ;;  %v20183_v14 = vld [vmem:[%s25332_s4 + $0xe44] ss:$12 sps:$4 sm:$0xff]  }
 0x425   : > { %12551 = vmatprep.subr.bf16.mxu0 %v20174_v20  ;;  %v16961_v61 = vadd.f32 %v16960_v62, %v16959_v0  ;;  %v24112_v12 = vadd.f32 %v16958_v63, %v23907_v33  ;;  %17207 = vmatpush3.bf16.msra.mxu1 %v20216_v44  ;;  %v20181_v63 = vld [vmem:[%s25332_s4 + $0xe40] ss:$12 sps:$4 sm:$0xff]   ;;  %v20224_v62 = vld [vmem:[%s25332_s4 + $0xe18] ss:$12 sps:$4 sm:$0xff]  }
 0x426   : > { %13937 = vmatmul.mubr.bf16.gmra.mrb[44].mxu1 %v20171_v19  ;;  %17208 = vmatprep.subr.bf16.mxu1 %v20223_v10  ;;  %v20229_v10 = vld [vmem:[%s25332_s4 + $0xe30] ss:$12 sps:$4 sm:$0xff]  }
 0x427   : > { %12489 = vmatmul.mubr.bf16.gmra.mrb[12].mxu0 %v20171_v19  ;;  %v24124_v33 = vadd.f32 %v16961_v61, %v23916_v60  ;;  %13944 = vmatprep.mubr.bf16.mxu1 %v20178_v17  ;;  %v20191_v60 = vld [vmem:[%s22342_s16 + $0x47c] ss:$108 sps:$4 sm:$0xff]  }
 0x428   : > { %12552 = vmatpush1.bf16.msra.mxu0 %v20172_v56  ;;  %12498 = vmatprep.mubr.bf16.mxu0 %v20178_v17  ;;  %v20188_v56 = vld [vmem:[%s25332_s4 + $0xe5c] ss:$12 sps:$4 sm:$0xff]  }
 0x429   : > { %12553 = vmatprep.subr.bf16.mxu0 %v20177_v34  ;;  %v16962_v20 = vpop.f32.mrb[196].mxu1  ;;  %v20228_v61 = vld [vmem:[%s25332_s4 + $0xef0] ss:$12 sps:$4 sm:$0xff]   ;;  %17209 = vmatpush3.bf16.msra.mxu1 %v20224_v62 }
 0x42a   : > { %v16963_v48 = vpop.f32.mrb[197].mxu1  ;;  %17210 = vmatprep.subr.bf16.mxu1 %v20228_v61  ;;  %v20209_v61 = vld [vmem:[%s25332_s4 + $0xea4] ss:$12 sps:$4 sm:$0xff]  }
 0x42b   : > { %v16964_v36 = vadd.f32 %v16963_v48, %v16962_v20  ;;  %v16965_v19 = vpop.f32.mrb[198].mxu1  ;;  %v20193_v20 = vld [vmem:[%s22342_s16 + $0x478] ss:$108 sps:$4 sm:$0xff]  }
 0x42c   : > { %12554 = vmatpush1.bf16.msra.mxu0 %v20175_v49  ;;  %v16966_v0 = vpop.f32.mrb[199].mxu1 }
 0x42d   : > { %12555 = vmatprep.subr.bf16.mxu0 %v20183_v14  ;;  %v16967_v17 = vadd.f32 %v16966_v0, %v16965_v19  ;;  %v24141_v34 = vadd.f32 %v16964_v36, %v23930_v24  ;;  %v20196_v24 = vld [vmem:[%s25332_s4 + $0xe74] ss:$12 sps:$4 sm:$0xff]   ;;  %17211 = vmatpush3.bf16.msra.mxu1 %v20229_v10 }
 0x42e   : > { %13945 = vmatmul.mubr.bf16.gmra.mrb[48].mxu1 %v20180_v35  ;;  %v20204_v36 = vld [vmem:[%s22342_s16 + $0x554] ss:$108 sps:$4 sm:$0xff]  }
 0x42f   : > { %12499 = vmatmul.mubr.bf16.gmra.mrb[16].mxu0 %v20180_v35  ;;  %v24150_v44 = vadd.f32 %v16967_v17, %v23942_v51  ;;  %13952 = vmatprep.mubr.bf16.mxu1 %v20191_v60  ;;  %v20194_v51 = vld [vmem:[%s25332_s4 + $0xe70] ss:$12 sps:$4 sm:$0xff]   ;;  %v20272_v0 = vld [vmem:[%s25332_s4 + $0xfc8] ss:$12 sps:$4 sm:$0xff]  }
 0x430   : > { %12556 = vmatpush1.bf16.msra.mxu0 %v20181_v63  ;;  %12508 = vmatprep.mubr.bf16.mxu0 %v20191_v60  ;;  %v20201_v63 = vld [vmem:[%s25332_s4 + $0xe8c] ss:$12 sps:$4 sm:$0xff]   ;;  %v20199_v17 = vld [vmem:[%s25332_s4 + $0xe88] ss:$12 sps:$4 sm:$0xff]  }
 0x431   : > { %12557 = vmatprep.subr.bf16.mxu0 %v20188_v56  ;;  %v16968_v49 = vpop.f32.mrb[200].mxu1  ;;  %17260 = vmatprep.subr.bf16.mxu1 %v20272_v0  ;;  %v20219_v0 = vld [vmem:[%s22342_s16 + $0x628] ss:$108 sps:$4 sm:$0xff]  }
 0x432   : > { %v16969_v14 = vpop.f32.mrb[201].mxu1 }
 0x433   : > { %v16970_v48 = vadd.f32 %v16969_v14, %v16968_v49  ;;  %v16971_v35 = vpop.f32.mrb[202].mxu1  ;;  %v20207_v14 = vld [vmem:[%s25332_s4 + $0xea0] ss:$12 sps:$4 sm:$0xff]  }
 0x434   : > { %12558 = vmatpush1.bf16.msra.mxu0 %v20186_v53  ;;  %v16972_v19 = vpop.f32.mrb[203].mxu1 }
 0x435   : > { %12559 = vmatprep.subr.bf16.mxu0 %v20196_v24  ;;  %v16973_v60 = vadd.f32 %v16972_v19, %v16971_v35  ;;  %v24170_v56 = vadd.f32 %v16970_v48, %v23959_v4  ;;  %v20206_v24 = vld [vmem:[%s22342_s16 + $0x550] ss:$108 sps:$4 sm:$0xff]  }
 0x436   : > { %13953 = vmatmul.mubr.bf16.gmra.mrb[52].mxu1 %v20193_v20  ;;  %v20214_v48 = vld [vmem:[%s25332_s4 + $0xebc] ss:$12 sps:$4 sm:$0xff]  }
 0x437   : > { %12509 = vmatmul.mubr.bf16.gmra.mrb[20].mxu0 %v20193_v20  ;;  %v24176_v62 = vadd.f32 %v16973_v60, %v23968_v30  ;;  %13960 = vmatprep.mubr.bf16.mxu1 %v20204_v36  ;;  %v20217_v20 = vld [vmem:[%s22342_s16 + $0x62c] ss:$108 sps:$4 sm:$0xff]  }
 0x438   : > { %12560 = vmatpush1.bf16.msra.mxu0 %v20194_v51  ;;  %12518 = vmatprep.mubr.bf16.mxu0 %v20204_v36  ;;  %v20212_v36 = vld [vmem:[%s25332_s4 + $0xeb8] ss:$12 sps:$4 sm:$0xff]  }
 0x439   : > { %12561 = vmatprep.subr.bf16.mxu0 %v20201_v63  ;;  %v16974_v4 = vpop.f32.mrb[204].mxu1  ;;  %v20222_v63 = vld [vmem:[%s25332_s4 + $0xed4] ss:$12 sps:$4 sm:$0xff]  }
 0x43a   : > { %v16975_v53 = vpop.f32.mrb[205].mxu1 }
 0x43b   : > { %v16976_v49 = vadd.f32 %v16975_v53, %v16974_v4  ;;  %v16977_v10 = vpop.f32.mrb[206].mxu1  ;;  %v20220_v4 = vld [vmem:[%s25332_s4 + $0xed0] ss:$12 sps:$4 sm:$0xff]   ;;  %v20232_v53 = vld [vmem:[%s22342_s16 + $0x4c] ss:$108 sps:$4 sm:$0xff]  }
 0x43c   : > { %12562 = vmatpush1.bf16.msra.mxu0 %v20199_v17  ;;  %v16978_v30 = vpop.f32.mrb[207].mxu1 }
 0x43d   : > { %12563 = vmatprep.subr.bf16.mxu0 %v20209_v61  ;;  %v16979_v35 = vadd.f32 %v16978_v30, %v16977_v10  ;;  %v24190_v51 = vadd.f32 %v16976_v49, %v23982_v2 }
 0x43e   : > { %13961 = vmatmul.mubr.bf16.gmra.mrb[56].mxu1 %v20206_v24 }
 0x43f   : > { %12519 = vmatmul.mubr.bf16.gmra.mrb[24].mxu0 %v20206_v24  ;;  %v24196_v19 = vadd.f32 %v16979_v35, %v23988_v22  ;;  %13968 = vmatprep.mubr.bf16.mxu1 %v20217_v20  ;;  %v20227_v22 = vld [vmem:[%s25332_s4 + $0xeec] ss:$12 sps:$4 sm:$0xff]   ;;  %v20230_v35 = vld [vmem:[%s22342_s16 + $0x48] ss:$108 sps:$4 sm:$0xff]  }
 0x440   : > { %12564 = vmatpush1.bf16.msra.mxu0 %v20207_v14  ;;  %12528 = vmatprep.mubr.bf16.mxu0 %v20217_v20  ;;  %v20225_v20 = vld [vmem:[%s25332_s4 + $0xee8] ss:$12 sps:$4 sm:$0xff]  }
 0x441   : > { %12565 = vmatprep.subr.bf16.mxu0 %v20214_v48  ;;  %v16980_v2 = vpop.f32.mrb[208].mxu1 }
 0x442   : > { %v16981_v60 = vpop.f32.mrb[209].mxu1 }
 0x443   : > { %v16982_v17 = vadd.f32 %v16981_v60, %v16980_v2  ;;  %v16983_v61 = vpop.f32.mrb[210].mxu1  ;;  %v20239_v2 = vld [vmem:[%s22342_s16 + $0x124] ss:$108 sps:$4 sm:$0xff]  }
 0x444   : > { %12566 = vmatpush1.bf16.msra.mxu0 %v20212_v36  ;;  %v16984_v24 = vpop.f32.mrb[211].mxu1 }
 0x445   : > { %12567 = vmatprep.subr.bf16.mxu0 %v20222_v63  ;;  %v24210_v49 = vadd.f32 %v16982_v17, %v24005_v54  ;;  %v16985_v10 = vadd.f32 %v16984_v24, %v16983_v61  ;;  %v20235_v54 = vld [vmem:[%s25332_s4 + $0xf04] ss:$12 sps:$4 sm:$0xff]  }
 0x446   : > { %13969 = vmatmul.mubr.bf16.gmra.mrb[60].mxu1 %v20219_v0 }
 0x447   : > { %12529 = vmatmul.mubr.bf16.gmra.mrb[28].mxu0 %v20219_v0  ;;  %v24213_v14 = vadd.f32 %v16985_v10, %v24008_v50  ;;  %14009 = vmatprep.mubr.bf16.mxu1 %v20232_v53  ;;  %v20233_v50 = vld [vmem:[%s25332_s4 + $0xf00] ss:$12 sps:$4 sm:$0xff]   ;;  %v20238_v0 = vld [vmem:[%s25332_s4 + $0xf1c] ss:$12 sps:$4 sm:$0xff]  }
 0x448   : > { %12568 = vmatpush1.bf16.msra.mxu0 %v20220_v4  ;;  %12571 = vmatprep.mubr.bf16.mxu0 %v20232_v53  ;;  %v20273_v4 = vld [vmem:[%s25332_s4 + $0xf08] ss:$12 sps:$4 sm:$0xff]   ;;  %v20277_v53 = vld [vmem:[%s25332_s4 + $0xfe0] ss:$12 sps:$4 sm:$0xff]  }
 0x449   : > { %12569 = vmatprep.subr.bf16.mxu0 %v20227_v22  ;;  %v16986_v30 = vpop.f32.mrb[212].mxu1  ;;  %v20244_v22 = vld [vmem:[%s25332_s4 + $0xf34] ss:$12 sps:$4 sm:$0xff]  }
 0x44a   : > { %v16987_v48 = vpop.f32.mrb[213].mxu1 }
 0x44b   : > { %v16988_v36 = vadd.f32 %v16987_v48, %v16986_v30  ;;  %v16989_v63 = vpop.f32.mrb[214].mxu1 }
 0x44c   : > { %12570 = vmatpush1.bf16.msra.mxu0 %v20225_v20  ;;  %v16990_v60 = vpop.f32.mrb[215].mxu1 }
 0x44d   : > { %12652 = vmatprep.subr.bf16.mxu0 %v20235_v54  ;;  %v24230_v17 = vadd.f32 %v16988_v36, %v24031_v28  ;;  %v16991_v61 = vadd.f32 %v16990_v60, %v16989_v63  ;;  %v20236_v28 = vld [vmem:[%s25332_s4 + $0xf18] ss:$12 sps:$4 sm:$0xff]   ;;  %v20241_v54 = vld [vmem:[%s22342_s16 + $0x120] ss:$108 sps:$4 sm:$0xff]   ;;  %v20248_v36 = vld [vmem:[%s22342_s16 + $0x1fc] ss:$108 sps:$4 sm:$0xff]  }
 0x44e   : > { %14010 = vmatmul.mubr.bf16.vlgmr.msra.gmra.mrb[64].mxu1 %v20230_v35 }
 0x44f   : > { %12572 = vmatmul.mubr.bf16.vlgmr.msra.gmra.mrb[0].mxu0 %v20230_v35  ;;  %v24239_v24 = vadd.f32 %v16991_v61, %v24034_v18  ;;  %14017 = vmatprep.mubr.bf16.mxu1 %v20239_v2  ;;  %v20278_v18 = vld [vmem:[%s25332_s4 + $0xf20] ss:$12 sps:$4 sm:$0xff]   ;;  %v20242_v35 = vld [vmem:[%s25332_s4 + $0xf30] ss:$12 sps:$4 sm:$0xff]   ;;  %v20286_v61 = vld [vmem:[%s25332_s4 + $0xf38] ss:$12 sps:$4 sm:$0xff]  }
 0x450   : > { %12653 = vmatpush1.bf16.msra.mxu0 %v20233_v50  ;;  %12581 = vmatprep.mubr.bf16.mxu0 %v20239_v2  ;;  %v20247_v50 = vld [vmem:[%s25332_s4 + $0xf4c] ss:$12 sps:$4 sm:$0xff]  }
 0x451   : > { %12654 = vmatprep.subr.bf16.mxu0 %v20238_v0  ;;  %v16992_v10 = vpop.f32.mrb[216].mxu1  ;;  %17261 = vmatpush3.bf16.msra.mxu1 %v20273_v4  ;;  %v20285_v0 = vld [vmem:[%s25332_s4 + $0xff8] ss:$12 sps:$4 sm:$0xff]  }
 0x452   : > { %v16993_v20 = vpop.f32.mrb[217].mxu1  ;;  %17262 = vmatprep.subr.bf16.mxu1 %v20277_v53  ;;  %v20290_v53 = vld [vmem:[%s25332_s4 + $0x1010] ss:$12 sps:$4 sm:$0xff]  }
 0x453   : > { %v16994_v30 = vadd.f32 %v16993_v20, %v16992_v10  ;;  %v16995_v48 = vpop.f32.mrb[218].mxu1  ;;  %v20250_v10 = vld [vmem:[%s22342_s16 + $0x1f8] ss:$108 sps:$4 sm:$0xff]  }
 0x454   : > { %12655 = vmatpush1.bf16.msra.mxu0 %v20236_v28  ;;  %v16996_v63 = vpop.f32.mrb[219].mxu1  ;;  %v20253_v28 = vld [vmem:[%s25332_s4 + $0xf64] ss:$12 sps:$4 sm:$0xff]  }
 0x455   : > { %12656 = vmatprep.subr.bf16.mxu0 %v20244_v22  ;;  %v24259_v2 = vadd.f32 %v16994_v30, %v24054_v7  ;;  %v16997_v60 = vadd.f32 %v16996_v63, %v16995_v48  ;;  %17263 = vmatpush3.bf16.msra.mxu1 %v20278_v18  ;;  %v20245_v7 = vld [vmem:[%s25332_s4 + $0xf48] ss:$12 sps:$4 sm:$0xff]  }
 0x456   : > { %14018 = vmatmul.mubr.bf16.gmra.mrb[68].mxu1 %v20241_v54  ;;  %17264 = vmatprep.subr.bf16.mxu1 %v20285_v0  ;;  %v20257_v30 = vld [vmem:[%s22342_s16 + $0x2d4] ss:$108 sps:$4 sm:$0xff]  }
 0x457   : > { %12582 = vmatmul.mubr.bf16.gmra.mrb[4].mxu0 %v20241_v54  ;;  %v24268_v4 = vadd.f32 %v16997_v60, %v24066_v40  ;;  %14025 = vmatprep.mubr.bf16.mxu1 %v20248_v36  ;;  %v20251_v54 = vld [vmem:[%s25332_s4 + $0xf60] ss:$12 sps:$4 sm:$0xff]   ;;  %v20298_v60 = vld [vmem:[%s25332_s4 + $0x1028] ss:$12 sps:$4 sm:$0xff]  }
 0x458   : > { %12657 = vmatpush1.bf16.msra.mxu0 %v20242_v35  ;;  %12591 = vmatprep.mubr.bf16.mxu0 %v20248_v36  ;;  %v20256_v35 = vld [vmem:[%s25332_s4 + $0xf7c] ss:$12 sps:$4 sm:$0xff]  }
 0x459   : > { %12658 = vmatprep.subr.bf16.mxu0 %v20247_v50  ;;  %v16998_v22 = vpop.f32.mrb[220].mxu1  ;;  %17265 = vmatpush3.bf16.msra.mxu1 %v20286_v61  ;;  %v20291_v50 = vld [vmem:[%s25332_s4 + $0xf50] ss:$12 sps:$4 sm:$0xff]   ;;  %v20262_v61 = vld [vmem:[%s25332_s4 + $0xf94] ss:$12 sps:$4 sm:$0xff]  }
 0x45a   : > { %v16999_v40 = vpop.f32.mrb[221].mxu1  ;;  %17266 = vmatprep.subr.bf16.mxu1 %v20290_v53 }
 0x45b   : > { %v17000_v18 = vadd.f32 %v16999_v40, %v16998_v22  ;;  %v17001_v20 = vpop.f32.mrb[222].mxu1 }
 0x45c   : > { %12659 = vmatpush1.bf16.msra.mxu0 %v20245_v7  ;;  %v17002_v48 = vpop.f32.mrb[223].mxu1 }
 0x45d   : > { %12660 = vmatprep.subr.bf16.mxu0 %v20253_v28  ;;  %v24288_v36 = vadd.f32 %v17000_v18, %v24083_v9  ;;  %v17003_v63 = vadd.f32 %v17002_v48, %v17001_v20  ;;  %v20254_v9 = vld [vmem:[%s25332_s4 + $0xf78] ss:$12 sps:$4 sm:$0xff]   ;;  %17267 = vmatpush3.bf16.msra.mxu1 %v20291_v50  ;;  %v20259_v28 = vld [vmem:[%s22342_s16 + $0x2d0] ss:$108 sps:$4 sm:$0xff]  }
 0x45e   : > { %14026 = vmatmul.mubr.bf16.gmra.mrb[72].mxu1 %v20250_v10  ;;  %17268 = vmatprep.subr.bf16.mxu1 %v20298_v60  ;;  %v20266_v18 = vld [vmem:[%s22342_s16 + $0x3ac] ss:$108 sps:$4 sm:$0xff]  }
 0x45f   : > { %12592 = vmatmul.mubr.bf16.gmra.mrb[8].mxu0 %v20250_v10  ;;  %v24297_v0 = vadd.f32 %v17003_v63, %v24092_v38  ;;  %14033 = vmatprep.mubr.bf16.mxu1 %v20257_v30  ;;  %v20299_v38 = vld [vmem:[%s25332_s4 + $0xf68] ss:$12 sps:$4 sm:$0xff]   ;;  %v20260_v10 = vld [vmem:[%s25332_s4 + $0xf90] ss:$12 sps:$4 sm:$0xff]   ;;  %v20304_v63 = vld [vmem:[%s25332_s4 + $0xf80] ss:$12 sps:$4 sm:$0xff]  }
 0x460   : > { %12661 = vmatpush1.bf16.msra.mxu0 %v20251_v54  ;;  %12601 = vmatprep.mubr.bf16.mxu0 %v20257_v30  ;;  %v20265_v54 = vld [vmem:[%s25332_s4 + $0xfac] ss:$12 sps:$4 sm:$0xff]  }
 0x461   : > { %12662 = vmatprep.subr.bf16.mxu0 %v20256_v35  ;;  %v17020_v7 = vpop.f32.mrb[224].mxu1  ;;  %17269 = vmatpush3.bf16.msra.mxu1 %v20299_v38  ;;  %v20303_v35 = vld [vmem:[%s25332_s4 + $0x1040] ss:$12 sps:$4 sm:$0xff]   ;;  %v20311_v60 = vld [vmem:[%s25332_s4 + $0x1058] ss:$12 sps:$4 sm:$0xff]  }
 0x462   : > { %v17021_v53 = vpop.f32.mrb[225].mxu1  ;;  %17270 = vmatprep.subr.bf16.mxu1 %v20303_v35 }
 0x463   : > { %v17022_v22 = vadd.f32 %v17021_v53, %v17020_v7  ;;  %v17023_v40 = vpop.f32.mrb[226].mxu1  ;;  %v20268_v7 = vld [vmem:[%s22342_s16 + $0x3a8] ss:$108 sps:$4 sm:$0xff]  }
 0x464   : > { %12663 = vmatpush1.bf16.msra.mxu0 %v20254_v9  ;;  %v17024_v20 = vpop.f32.mrb[227].mxu1  ;;  %v20271_v9 = vld [vmem:[%s25332_s4 + $0xfc4] ss:$12 sps:$4 sm:$0xff]  }
 0x465   : > { %12664 = vmatprep.subr.bf16.mxu0 %v20262_v61  ;;  %v24317_v30 = vadd.f32 %v17022_v22, %v24112_v12  ;;  %v17025_v48 = vadd.f32 %v17024_v20, %v17023_v40  ;;  %v20263_v12 = vld [vmem:[%s25332_s4 + $0xfa8] ss:$12 sps:$4 sm:$0xff]   ;;  %17271 = vmatpush3.bf16.msra.mxu1 %v20304_v63  ;;  %v20279_v22 = vld [vmem:[%s22342_s16 + $0x484] ss:$108 sps:$4 sm:$0xff]  }
 0x466   : > { %14034 = vmatmul.mubr.bf16.gmra.mrb[76].mxu1 %v20259_v28  ;;  %17272 = vmatprep.subr.bf16.mxu1 %v20311_v60  ;;  %v20284_v63 = vld [vmem:[%s25332_s4 + $0xff4] ss:$12 sps:$4 sm:$0xff]  }
 0x467   : > { %12602 = vmatmul.mubr.bf16.gmra.mrb[12].mxu0 %v20259_v28  ;;  %v24326_v50 = vadd.f32 %v17025_v48, %v24124_v33  ;;  %14041 = vmatprep.mubr.bf16.mxu1 %v20266_v18  ;;  %v20269_v28 = vld [vmem:[%s25332_s4 + $0xfc0] ss:$12 sps:$4 sm:$0xff]   ;;  %v20316_v48 = vld [vmem:[%s25332_s4 + $0x1070] ss:$12 sps:$4 sm:$0xff]  }
 0x468   : > { %12665 = vmatpush1.bf16.msra.mxu0 %v20260_v10  ;;  %12611 = vmatprep.mubr.bf16.mxu0 %v20266_v18  ;;  %v20276_v10 = vld [vmem:[%s25332_s4 + $0xfdc] ss:$12 sps:$4 sm:$0xff]  }
 0x469   : > { %12666 = vmatprep.subr.bf16.mxu0 %v20265_v54  ;;  %v17026_v61 = vpop.f32.mrb[228].mxu1  ;;  %v20312_v54 = vld [vmem:[%s25332_s4 + $0xf98] ss:$12 sps:$4 sm:$0xff]  }
 0x46a   : > { %v17027_v33 = vpop.f32.mrb[229].mxu1  ;;  %17273 = vmatpush3.bf16.msra.mxu1 %v20312_v54  ;;  %v20287_v54 = vld [vmem:[%s25332_s4 + $0x1008] ss:$12 sps:$4 sm:$0xff]  }
 0x46b   : > { %v17028_v38 = vadd.f32 %v17027_v33, %v17026_v61  ;;  %v17029_v53 = vpop.f32.mrb[230].mxu1  ;;  %17274 = vmatprep.subr.bf16.mxu1 %v20316_v48 }
 0x46c   : > { %12667 = vmatpush1.bf16.msra.mxu0 %v20263_v12  ;;  %v17030_v40 = vpop.f32.mrb[231].mxu1 }
 0x46d   : > { %12668 = vmatprep.subr.bf16.mxu0 %v20271_v9  ;;  %v24346_v18 = vadd.f32 %v17028_v38, %v24141_v34  ;;  %v17031_v20 = vadd.f32 %v17030_v40, %v17029_v53  ;;  %v20274_v34 = vld [vmem:[%s25332_s4 + $0xfd8] ss:$12 sps:$4 sm:$0xff]   ;;  %v20281_v9 = vld [vmem:[%s22342_s16 + $0x480] ss:$108 sps:$4 sm:$0xff]   ;;  %v20292_v38 = vld [vmem:[%s22342_s16 + $0x55c] ss:$108 sps:$4 sm:$0xff]  }
 0x46e   : > { %14042 = vmatmul.mubr.bf16.gmra.mrb[80].mxu1 %v20268_v7 }
 0x46f   : > { %12612 = vmatmul.mubr.bf16.gmra.mrb[16].mxu0 %v20268_v7  ;;  %v24355_v35 = vadd.f32 %v17031_v20, %v24150_v44  ;;  %14049 = vmatprep.mubr.bf16.mxu1 %v20279_v22  ;;  %v20317_v44 = vld [vmem:[%s25332_s4 + $0xfb0] ss:$12 sps:$4 sm:$0xff]  }
 0x470   : > { %12669 = vmatpush1.bf16.msra.mxu0 %v20269_v28  ;;  %12621 = vmatprep.mubr.bf16.mxu0 %v20279_v22  ;;  %v20282_v7 = vld [vmem:[%s25332_s4 + $0xff0] ss:$12 sps:$4 sm:$0xff]   ;;  %v20289_v28 = vld [vmem:[%s25332_s4 + $0x100c] ss:$12 sps:$4 sm:$0xff]  }
 0x471   : > { %12670 = vmatprep.subr.bf16.mxu0 %v20276_v10  ;;  %v17032_v12 = vpop.f32.mrb[232].mxu1  ;;  %17275 = vmatpush3.bf16.msra.mxu1 %v20317_v44  ;;  %v20360_v10 = vld [vmem:[%s25332_s4 + $0x1148] ss:$12 sps:$4 sm:$0xff]   ;;  %v20295_v44 = vld [vmem:[%s25332_s4 + $0x1020] ss:$12 sps:$4 sm:$0xff]  }
 0x472   : > { %v17033_v60 = vpop.f32.mrb[233].mxu1  ;;  %17324 = vmatprep.subr.bf16.mxu1 %v20360_v10  ;;  %v20307_v10 = vld [vmem:[%s22342_s16 + $0x630] ss:$108 sps:$4 sm:$0xff]  }
 0x473   : > { %v17034_v61 = vadd.f32 %v17033_v60, %v17032_v12  ;;  %v17035_v33 = vpop.f32.mrb[234].mxu1  ;;  %v20305_v60 = vld [vmem:[%s22342_s16 + $0x634] ss:$108 sps:$4 sm:$0xff]  }
 0x474   : > { %12671 = vmatpush1.bf16.msra.mxu0 %v20274_v34  ;;  %v17036_v53 = vpop.f32.mrb[235].mxu1 }
 0x475   : > { %12672 = vmatprep.subr.bf16.mxu0 %v20284_v63  ;;  %v24375_v22 = vadd.f32 %v17034_v61, %v24170_v56  ;;  %v17037_v40 = vadd.f32 %v17036_v53, %v17035_v33  ;;  %v20297_v56 = vld [vmem:[%s25332_s4 + $0x1024] ss:$12 sps:$4 sm:$0xff]   ;;  %v20302_v61 = vld [vmem:[%s25332_s4 + $0x103c] ss:$12 sps:$4 sm:$0xff]  }
 0x476   : > { %14050 = vmatmul.mubr.bf16.gmra.mrb[84].mxu1 %v20281_v9  ;;  %v20294_v63 = vld [vmem:[%s22342_s16 + $0x558] ss:$108 sps:$4 sm:$0xff]  }
 0x477   : > { %12622 = vmatmul.mubr.bf16.gmra.mrb[20].mxu0 %v20281_v9  ;;  %v24381_v20 = vadd.f32 %v17037_v40, %v24176_v62  ;;  %14057 = vmatprep.mubr.bf16.mxu1 %v20292_v38  ;;  %v20300_v53 = vld [vmem:[%s25332_s4 + $0x1038] ss:$12 sps:$4 sm:$0xff]  }
 0x478   : > { %12673 = vmatpush1.bf16.msra.mxu0 %v20282_v7  ;;  %12631 = vmatprep.mubr.bf16.mxu0 %v20292_v38 }
 0x479   : > { %12674 = vmatprep.subr.bf16.mxu0 %v20289_v28  ;;  %v17038_v48 = vpop.f32.mrb[236].mxu1 }
 0x47a   : > { %v17039_v34 = vpop.f32.mrb[237].mxu1 }
 0x47b   : > { %v17040_v12 = vadd.f32 %v17039_v34, %v17038_v48  ;;  %v17041_v62 = vpop.f32.mrb[238].mxu1  ;;  %v20320_v48 = vld [vmem:[%s22342_s16 + $0x54] ss:$108 sps:$4 sm:$0xff]  }
 0x47c   : > { %12675 = vmatpush1.bf16.msra.mxu0 %v20287_v54  ;;  %v17042_v9 = vpop.f32.mrb[239].mxu1 }
 0x47d   : > { %12676 = vmatprep.subr.bf16.mxu0 %v20297_v56  ;;  %v24398_v33 = vadd.f32 %v17040_v12, %v24190_v51  ;;  %v17043_v7 = vadd.f32 %v17042_v9, %v17041_v62  ;;  %v20310_v51 = vld [vmem:[%s25332_s4 + $0x1054] ss:$12 sps:$4 sm:$0xff]  }
 0x47e   : > { %14058 = vmatmul.mubr.bf16.gmra.mrb[88].mxu1 %v20294_v63 }
 0x47f   : > { %12632 = vmatmul.mubr.bf16.gmra.mrb[24].mxu0 %v20294_v63  ;;  %v24401_v38 = vadd.f32 %v17043_v7, %v24196_v19  ;;  %14065 = vmatprep.mubr.bf16.mxu1 %v20305_v60  ;;  %v20308_v19 = vld [vmem:[%s25332_s4 + $0x1050] ss:$12 sps:$4 sm:$0xff]   ;;  %v20315_v63 = vld [vmem:[%s25332_s4 + $0x106c] ss:$12 sps:$4 sm:$0xff]  }
 0x480   : > { %12677 = vmatpush1.bf16.msra.mxu0 %v20295_v44  ;;  %12641 = vmatprep.mubr.bf16.mxu0 %v20305_v60  ;;  %v20313_v60 = vld [vmem:[%s25332_s4 + $0x1068] ss:$12 sps:$4 sm:$0xff]   ;;  %v20318_v7 = vld [vmem:[%s22342_s16 + $0x50] ss:$108 sps:$4 sm:$0xff]  }
 0x481   : > { %12678 = vmatprep.subr.bf16.mxu0 %v20302_v61  ;;  %v17044_v28 = vpop.f32.mrb[240].mxu1 }
 0x482   : > { %v17045_v40 = vpop.f32.mrb[241].mxu1 }
 0x483   : > { %v17046_v54 = vadd.f32 %v17045_v40, %v17044_v28  ;;  %v17047_v56 = vpop.f32.mrb[242].mxu1  ;;  %v20327_v28 = vld [vmem:[%s22342_s16 + $0x12c] ss:$108 sps:$4 sm:$0xff]  }
 0x484   : > { %12679 = vmatpush1.bf16.msra.mxu0 %v20300_v53  ;;  %v17048_v34 = vpop.f32.mrb[243].mxu1 }
 0x485   : > { %12680 = vmatprep.subr.bf16.mxu0 %v20310_v51  ;;  %v24418_v12 = vadd.f32 %v17046_v54, %v24210_v49  ;;  %v17049_v62 = vadd.f32 %v17048_v34, %v17047_v56  ;;  %v20323_v49 = vld [vmem:[%s25332_s4 + $0x1084] ss:$12 sps:$4 sm:$0xff]  }
 0x486   : > { %14066 = vmatmul.mubr.bf16.gmra.mrb[92].mxu1 %v20307_v10 }
 0x487   : > { %12642 = vmatmul.mubr.bf16.gmra.mrb[28].mxu0 %v20307_v10  ;;  %v24421_v44 = vadd.f32 %v17049_v62, %v24213_v14  ;;  %14106 = vmatprep.mubr.bf16.mxu1 %v20320_v48  ;;  %v20321_v14 = vld [vmem:[%s25332_s4 + $0x1080] ss:$12 sps:$4 sm:$0xff]   ;;  %v20326_v10 = vld [vmem:[%s25332_s4 + $0x109c] ss:$12 sps:$4 sm:$0xff]  }
 0x488   : > { %12681 = vmatpush1.bf16.msra.mxu0 %v20308_v19  ;;  %12684 = vmatprep.mubr.bf16.mxu0 %v20320_v48  ;;  %v20361_v19 = vld [vmem:[%s25332_s4 + $0x1088] ss:$12 sps:$4 sm:$0xff]   ;;  %v20365_v48 = vld [vmem:[%s25332_s4 + $0x1160] ss:$12 sps:$4 sm:$0xff]  }
 0x489   : > { %12682 = vmatprep.subr.bf16.mxu0 %v20315_v63  ;;  %v17050_v9 = vpop.f32.mrb[244].mxu1  ;;  %v20332_v63 = vld [vmem:[%s25332_s4 + $0x10b4] ss:$12 sps:$4 sm:$0xff]  }
 0x48a   : > { %v17051_v61 = vpop.f32.mrb[245].mxu1 }
 0x48b   : > { %v17052_v53 = vadd.f32 %v17051_v61, %v17050_v9  ;;  %v17053_v51 = vpop.f32.mrb[246].mxu1 }
 0x48c   : > { %12683 = vmatpush1.bf16.msra.mxu0 %v20313_v60  ;;  %v17054_v40 = vpop.f32.mrb[247].mxu1 }
 0x48d   : > { %12765 = vmatprep.subr.bf16.mxu0 %v20323_v49  ;;  %v24438_v54 = vadd.f32 %v17052_v53, %v24230_v17  ;;  %v17055_v56 = vadd.f32 %v17054_v40, %v17053_v51  ;;  %v20324_v17 = vld [vmem:[%s25332_s4 + $0x1098] ss:$12 sps:$4 sm:$0xff]   ;;  %v20329_v49 = vld [vmem:[%s22342_s16 + $0x128] ss:$108 sps:$4 sm:$0xff]  }
 0x48e   : > { %14107 = vmatmul.mubr.bf16.vlgmr.msra.gmra.mrb[96].mxu1 %v20318_v7  ;;  %v20336_v53 = vld [vmem:[%s22342_s16 + $0x204] ss:$108 sps:$4 sm:$0xff]  }
 0x48f   : > { %12685 = vmatmul.mubr.bf16.vlgmr.msra.gmra.mrb[0].mxu0 %v20318_v7  ;;  %v24447_v34 = vadd.f32 %v17055_v56, %v24239_v24  ;;  %14114 = vmatprep.mubr.bf16.mxu1 %v20327_v28  ;;  %v20366_v24 = vld [vmem:[%s25332_s4 + $0x10a0] ss:$12 sps:$4 sm:$0xff]   ;;  %v20330_v7 = vld [vmem:[%s25332_s4 + $0x10b0] ss:$12 sps:$4 sm:$0xff]   ;;  %v20374_v56 = vld [vmem:[%s25332_s4 + $0x10b8] ss:$12 sps:$4 sm:$0xff]  }
 0x490   : > { %12766 = vmatpush1.bf16.msra.mxu0 %v20321_v14  ;;  %12694 = vmatprep.mubr.bf16.mxu0 %v20327_v28  ;;  %v20335_v14 = vld [vmem:[%s25332_s4 + $0x10cc] ss:$12 sps:$4 sm:$0xff]  }
 0x491   : > { %12767 = vmatprep.subr.bf16.mxu0 %v20326_v10  ;;  %v17056_v62 = vpop.f32.mrb[248].mxu1  ;;  %17325 = vmatpush3.bf16.msra.mxu1 %v20361_v19  ;;  %v20373_v10 = vld [vmem:[%s25332_s4 + $0x1178] ss:$12 sps:$4 sm:$0xff]  }
 0x492   : > { %v17057_v60 = vpop.f32.mrb[249].mxu1  ;;  %17326 = vmatprep.subr.bf16.mxu1 %v20365_v48  ;;  %v20378_v48 = vld [vmem:[%s25332_s4 + $0x1190] ss:$12 sps:$4 sm:$0xff]  }
 0x493   : > { %v17058_v9 = vadd.f32 %v17057_v60, %v17056_v62  ;;  %v17059_v61 = vpop.f32.mrb[250].mxu1  ;;  %v20338_v62 = vld [vmem:[%s22342_s16 + $0x200] ss:$108 sps:$4 sm:$0xff]  }
 0x494   : > { %12768 = vmatpush1.bf16.msra.mxu0 %v20324_v17  ;;  %v17060_v51 = vpop.f32.mrb[251].mxu1  ;;  %v20341_v17 = vld [vmem:[%s25332_s4 + $0x10e4] ss:$12 sps:$4 sm:$0xff]  }
 0x495   : > { %12769 = vmatprep.subr.bf16.mxu0 %v20332_v63  ;;  %v24467_v28 = vadd.f32 %v17058_v9, %v24259_v2  ;;  %v17061_v40 = vadd.f32 %v17060_v51, %v17059_v61  ;;  %17327 = vmatpush3.bf16.msra.mxu1 %v20366_v24  ;;  %v20333_v2 = vld [vmem:[%s25332_s4 + $0x10c8] ss:$12 sps:$4 sm:$0xff]  }
 0x496   : > { %14115 = vmatmul.mubr.bf16.gmra.mrb[100].mxu1 %v20329_v49  ;;  %17328 = vmatprep.subr.bf16.mxu1 %v20373_v10  ;;  %v20345_v9 = vld [vmem:[%s22342_s16 + $0x2dc] ss:$108 sps:$4 sm:$0xff]  }
 0x497   : > { %12695 = vmatmul.mubr.bf16.gmra.mrb[4].mxu0 %v20329_v49  ;;  %v24476_v19 = vadd.f32 %v17061_v40, %v24268_v4  ;;  %14122 = vmatprep.mubr.bf16.mxu1 %v20336_v53  ;;  %v20339_v49 = vld [vmem:[%s25332_s4 + $0x10e0] ss:$12 sps:$4 sm:$0xff]   ;;  %v20386_v40 = vld [vmem:[%s25332_s4 + $0x11a8] ss:$12 sps:$4 sm:$0xff]  }
 0x498   : > { %12770 = vmatpush1.bf16.msra.mxu0 %v20330_v7  ;;  %12704 = vmatprep.mubr.bf16.mxu0 %v20336_v53  ;;  %v20344_v7 = vld [vmem:[%s25332_s4 + $0x10fc] ss:$12 sps:$4 sm:$0xff]  }
 0x499   : > { %12771 = vmatprep.subr.bf16.mxu0 %v20335_v14  ;;  %v17062_v63 = vpop.f32.mrb[252].mxu1  ;;  %17329 = vmatpush3.bf16.msra.mxu1 %v20374_v56  ;;  %v20379_v14 = vld [vmem:[%s25332_s4 + $0x10d0] ss:$12 sps:$4 sm:$0xff]   ;;  %v20350_v56 = vld [vmem:[%s25332_s4 + $0x1114] ss:$12 sps:$4 sm:$0xff]  }
 0x49a   : > { %v17063_v4 = vpop.f32.mrb[253].mxu1  ;;  %17330 = vmatprep.subr.bf16.mxu1 %v20378_v48 }
 0x49b   : > { %v17064_v24 = vadd.f32 %v17063_v4, %v17062_v63  ;;  %v17065_v60 = vpop.f32.mrb[254].mxu1 }
 0x49c   : > { %12772 = vmatpush1.bf16.msra.mxu0 %v20333_v2  ;;  %v17066_v61 = vpop.f32.mrb[255].mxu1 }
 0x49d   : > { %12773 = vmatprep.subr.bf16.mxu0 %v20341_v17  ;;  %v24496_v53 = vadd.f32 %v17064_v24, %v24288_v36  ;;  %v17067_v51 = vadd.f32 %v17066_v61, %v17065_v60  ;;  %v20342_v36 = vld [vmem:[%s25332_s4 + $0x10f8] ss:$12 sps:$4 sm:$0xff]   ;;  %17331 = vmatpush3.bf16.msra.mxu1 %v20379_v14  ;;  %v20354_v24 = vld [vmem:[%s22342_s16 + $0x3b4] ss:$108 sps:$4 sm:$0xff]  }
 0x49e   : > { %14123 = vmatmul.mubr.bf16.gmra.mrb[104].mxu1 %v20338_v62  ;;  %v20347_v17 = vld [vmem:[%s22342_s16 + $0x2d8] ss:$108 sps:$4 sm:$0xff]   ;;  %17332 = vmatprep.subr.bf16.mxu1 %v20386_v40 }
 0x49f   : > { %12705 = vmatmul.mubr.bf16.gmra.mrb[8].mxu0 %v20338_v62  ;;  %v24505_v10 = vadd.f32 %v17067_v51, %v24297_v0  ;;  %14130 = vmatprep.mubr.bf16.mxu1 %v20345_v9  ;;  %v20387_v0 = vld [vmem:[%s25332_s4 + $0x10e8] ss:$12 sps:$4 sm:$0xff]   ;;  %v20348_v62 = vld [vmem:[%s25332_s4 + $0x1110] ss:$12 sps:$4 sm:$0xff]   ;;  %v20392_v51 = vld [vmem:[%s25332_s4 + $0x1100] ss:$12 sps:$4 sm:$0xff]  }
 0x4a0   : > { %12774 = vmatpush1.bf16.msra.mxu0 %v20339_v49  ;;  %12714 = vmatprep.mubr.bf16.mxu0 %v20345_v9  ;;  %v20353_v49 = vld [vmem:[%s25332_s4 + $0x112c] ss:$12 sps:$4 sm:$0xff]  }
 0x4a1   : > { %12775 = vmatprep.subr.bf16.mxu0 %v20344_v7  ;;  %v17084_v2 = vpop.f32.mrb[0].mxu1  ;;  %17333 = vmatpush3.bf16.msra.mxu1 %v20387_v0  ;;  %v20391_v7 = vld [vmem:[%s25332_s4 + $0x11c0] ss:$12 sps:$4 sm:$0xff]   ;;  %v20399_v40 = vld [vmem:[%s25332_s4 + $0x11d8] ss:$12 sps:$4 sm:$0xff]  }
 0x4a2   : > { %v17085_v48 = vpop.f32.mrb[1].mxu1  ;;  %17334 = vmatprep.subr.bf16.mxu1 %v20391_v7 }
 0x4a3   : > { %v17086_v63 = vadd.f32 %v17085_v48, %v17084_v2  ;;  %v17087_v4 = vpop.f32.mrb[2].mxu1  ;;  %v20356_v2 = vld [vmem:[%s22342_s16 + $0x3b0] ss:$108 sps:$4 sm:$0xff]  }
 0x4a4   : > { %12776 = vmatpush1.bf16.msra.mxu0 %v20342_v36  ;;  %v17088_v60 = vpop.f32.mrb[3].mxu1  ;;  %v20359_v36 = vld [vmem:[%s25332_s4 + $0x1144] ss:$12 sps:$4 sm:$0xff]  }
 0x4a5   : > { %12777 = vmatprep.subr.bf16.mxu0 %v20350_v56  ;;  %v24525_v9 = vadd.f32 %v17086_v63, %v24317_v30  ;;  %v17089_v61 = vadd.f32 %v17088_v60, %v17087_v4  ;;  %v20351_v30 = vld [vmem:[%s25332_s4 + $0x1128] ss:$12 sps:$4 sm:$0xff]   ;;  %17335 = vmatpush3.bf16.msra.mxu1 %v20392_v51  ;;  %v20367_v63 = vld [vmem:[%s22342_s16 + $0x48c] ss:$108 sps:$4 sm:$0xff]  }
 0x4a6   : > { %14131 = vmatmul.mubr.bf16.gmra.mrb[108].mxu1 %v20347_v17  ;;  %17336 = vmatprep.subr.bf16.mxu1 %v20399_v40  ;;  %v20372_v51 = vld [vmem:[%s25332_s4 + $0x1174] ss:$12 sps:$4 sm:$0xff]  }
 0x4a7   : > { %12715 = vmatmul.mubr.bf16.gmra.mrb[12].mxu0 %v20347_v17  ;;  %v24534_v14 = vadd.f32 %v17089_v61, %v24326_v50  ;;  %14138 = vmatprep.mubr.bf16.mxu1 %v20354_v24  ;;  %v20357_v17 = vld [vmem:[%s25332_s4 + $0x1140] ss:$12 sps:$4 sm:$0xff]   ;;  %v20404_v61 = vld [vmem:[%s25332_s4 + $0x11f0] ss:$12 sps:$4 sm:$0xff]  }
 0x4a8   : > { %12778 = vmatpush1.bf16.msra.mxu0 %v20348_v62  ;;  %12724 = vmatprep.mubr.bf16.mxu0 %v20354_v24  ;;  %v20364_v62 = vld [vmem:[%s25332_s4 + $0x115c] ss:$12 sps:$4 sm:$0xff]  }
 0x4a9   : > { %12779 = vmatprep.subr.bf16.mxu0 %v20353_v49  ;;  %v17090_v56 = vpop.f32.mrb[4].mxu1  ;;  %v20400_v49 = vld [vmem:[%s25332_s4 + $0x1118] ss:$12 sps:$4 sm:$0xff]  }
 0x4aa   : > { %v17091_v50 = vpop.f32.mrb[5].mxu1  ;;  %17337 = vmatpush3.bf16.msra.mxu1 %v20400_v49  ;;  %v20375_v49 = vld [vmem:[%s25332_s4 + $0x1188] ss:$12 sps:$4 sm:$0xff]  }
 0x4ab   : > { %v17092_v0 = vadd.f32 %v17091_v50, %v17090_v56  ;;  %v17093_v48 = vpop.f32.mrb[6].mxu1  ;;  %17338 = vmatprep.subr.bf16.mxu1 %v20404_v61 }
 0x4ac   : > { %12780 = vmatpush1.bf16.msra.mxu0 %v20351_v30  ;;  %v17094_v4 = vpop.f32.mrb[7].mxu1 }
 0x4ad   : > { %12781 = vmatprep.subr.bf16.mxu0 %v20359_v36  ;;  %v24554_v24 = vadd.f32 %v17092_v0, %v24346_v18  ;;  %v17095_v60 = vadd.f32 %v17094_v4, %v17093_v48  ;;  %v20362_v18 = vld [vmem:[%s25332_s4 + $0x1158] ss:$12 sps:$4 sm:$0xff]   ;;  %v20369_v36 = vld [vmem:[%s22342_s16 + $0x488] ss:$108 sps:$4 sm:$0xff]  }
 0x4ae   : > { %14139 = vmatmul.mubr.bf16.gmra.mrb[112].mxu1 %v20356_v2  ;;  %v20380_v0 = vld [vmem:[%s22342_s16 + $0x564] ss:$108 sps:$4 sm:$0xff]  }
 0x4af   : > { %12725 = vmatmul.mubr.bf16.gmra.mrb[16].mxu0 %v20356_v2  ;;  %v24563_v7 = vadd.f32 %v17095_v60, %v24355_v35  ;;  %14146 = vmatprep.mubr.bf16.mxu1 %v20367_v63  ;;  %v20405_v35 = vld [vmem:[%s25332_s4 + $0x1130] ss:$12 sps:$4 sm:$0xff]  }
 0x4b0   : > { %12782 = vmatpush1.bf16.msra.mxu0 %v20357_v17  ;;  %12734 = vmatprep.mubr.bf16.mxu0 %v20367_v63  ;;  %v20370_v2 = vld [vmem:[%s25332_s4 + $0x1170] ss:$12 sps:$4 sm:$0xff]   ;;  %v20377_v17 = vld [vmem:[%s25332_s4 + $0x118c] ss:$12 sps:$4 sm:$0xff]  }
 0x4b1   : > { %12783 = vmatprep.subr.bf16.mxu0 %v20364_v62  ;;  %v17096_v30 = vpop.f32.mrb[8].mxu1  ;;  %17339 = vmatpush3.bf16.msra.mxu1 %v20405_v35  ;;  %v20448_v62 = vld [vmem:[%s25332_s4 + $0x12c8] ss:$12 sps:$4 sm:$0xff]   ;;  %v20383_v35 = vld [vmem:[%s25332_s4 + $0x11a0] ss:$12 sps:$4 sm:$0xff]  }
 0x4b2   : > { %v17097_v40 = vpop.f32.mrb[9].mxu1  ;;  %17388 = vmatprep.subr.bf16.mxu1 %v20448_v62  ;;  %v20395_v62 = vld [vmem:[%s22342_s16 + $0x638] ss:$108 sps:$4 sm:$0xff]  }
 0x4b3   : > { %v17098_v56 = vadd.f32 %v17097_v40, %v17096_v30  ;;  %v17099_v50 = vpop.f32.mrb[10].mxu1  ;;  %v20393_v40 = vld [vmem:[%s22342_s16 + $0x63c] ss:$108 sps:$4 sm:$0xff]  }
 0x4b4   : > { %12784 = vmatpush1.bf16.msra.mxu0 %v20362_v18  ;;  %v17100_v48 = vpop.f32.mrb[11].mxu1 }
 0x4b5   : > { %12785 = vmatprep.subr.bf16.mxu0 %v20372_v51  ;;  %v24583_v63 = vadd.f32 %v17098_v56, %v24375_v22  ;;  %v17101_v4 = vadd.f32 %v17100_v48, %v17099_v50  ;;  %v20385_v22 = vld [vmem:[%s25332_s4 + $0x11a4] ss:$12 sps:$4 sm:$0xff]   ;;  %v20382_v51 = vld [vmem:[%s22342_s16 + $0x560] ss:$108 sps:$4 sm:$0xff]   ;;  %v20390_v56 = vld [vmem:[%s25332_s4 + $0x11bc] ss:$12 sps:$4 sm:$0xff]  }
 0x4b6   : > { %14147 = vmatmul.mubr.bf16.gmra.mrb[116].mxu1 %v20369_v36  ;;  %v20388_v48 = vld [vmem:[%s25332_s4 + $0x11b8] ss:$12 sps:$4 sm:$0xff]  }
 0x4b7   : > { %12735 = vmatmul.mubr.bf16.gmra.mrb[20].mxu0 %v20369_v36  ;;  %v24589_v60 = vadd.f32 %v17101_v4, %v24381_v20  ;;  %14154 = vmatprep.mubr.bf16.mxu1 %v20380_v0 }
 0x4b8   : > { %12786 = vmatpush1.bf16.msra.mxu0 %v20370_v2  ;;  %12744 = vmatprep.mubr.bf16.mxu0 %v20380_v0 }
 0x4b9   : > { %12787 = vmatprep.subr.bf16.mxu0 %v20377_v17  ;;  %v17102_v61 = vpop.f32.mrb[12].mxu1 }
 0x4ba   : > { %v17103_v18 = vpop.f32.mrb[13].mxu1 }
 0x4bb   : > { %v17104_v30 = vadd.f32 %v17103_v18, %v17102_v61  ;;  %v17105_v20 = vpop.f32.mrb[14].mxu1  ;;  %v20408_v61 = vld [vmem:[%s22342_s16 + $0x5c] ss:$108 sps:$4 sm:$0xff]  }
 0x4bc   : > { %12788 = vmatpush1.bf16.msra.mxu0 %v20375_v49  ;;  %v17106_v36 = vpop.f32.mrb[15].mxu1 }
 0x4bd   : > { %12789 = vmatprep.subr.bf16.mxu0 %v20385_v22  ;;  %v24606_v50 = vadd.f32 %v17104_v30, %v24398_v33  ;;  %v17107_v2 = vadd.f32 %v17106_v36, %v17105_v20  ;;  %v20398_v33 = vld [vmem:[%s25332_s4 + $0x11d4] ss:$12 sps:$4 sm:$0xff]  }
 0x4be   : > { %14155 = vmatmul.mubr.bf16.gmra.mrb[120].mxu1 %v20382_v51 }
 0x4bf   : > { %12745 = vmatmul.mubr.bf16.gmra.mrb[24].mxu0 %v20382_v51  ;;  %v24609_v0 = vadd.f32 %v17107_v2, %v24401_v38  ;;  %14162 = vmatprep.mubr.bf16.mxu1 %v20393_v40  ;;  %v20396_v38 = vld [vmem:[%s25332_s4 + $0x11d0] ss:$12 sps:$4 sm:$0xff]   ;;  %v20403_v51 = vld [vmem:[%s25332_s4 + $0x11ec] ss:$12 sps:$4 sm:$0xff]  }
 0x4c0   : > { %12790 = vmatpush1.bf16.msra.mxu0 %v20383_v35  ;;  %12754 = vmatprep.mubr.bf16.mxu0 %v20393_v40  ;;  %v20401_v40 = vld [vmem:[%s25332_s4 + $0x11e8] ss:$12 sps:$4 sm:$0xff]   ;;  %v20406_v2 = vld [vmem:[%s22342_s16 + $0x58] ss:$108 sps:$4 sm:$0xff]  }
 0x4c1   : > { %12791 = vmatprep.subr.bf16.mxu0 %v20390_v56  ;;  %v17108_v17 = vpop.f32.mrb[16].mxu1 }
 0x4c2   : > { %v17109_v4 = vpop.f32.mrb[17].mxu1 }
 0x4c3   : > { %v17110_v49 = vadd.f32 %v17109_v4, %v17108_v17  ;;  %v17111_v22 = vpop.f32.mrb[18].mxu1  ;;  %v20415_v17 = vld [vmem:[%s22342_s16 + $0x134] ss:$108 sps:$4 sm:$0xff]  }
 0x4c4   : > { %12792 = vmatpush1.bf16.msra.mxu0 %v20388_v48  ;;  %v17112_v18 = vpop.f32.mrb[19].mxu1 }
 0x4c5   : > { %12793 = vmatprep.subr.bf16.mxu0 %v20398_v33  ;;  %v24626_v30 = vadd.f32 %v17110_v49, %v24418_v12  ;;  %v17113_v20 = vadd.f32 %v17112_v18, %v17111_v22  ;;  %v20411_v12 = vld [vmem:[%s25332_s4 + $0x1204] ss:$12 sps:$4 sm:$0xff]  }
 0x4c6   : > { %14163 = vmatmul.mubr.bf16.gmra.mrb[124].mxu1 %v20395_v62 }
 0x4c7   : > { %12755 = vmatmul.mubr.bf16.gmra.mrb[28].mxu0 %v20395_v62  ;;  %v24629_v35 = vadd.f32 %v17113_v20, %v24421_v44  ;;  %14203 = vmatprep.mubr.bf16.mxu1 %v20408_v61  ;;  %v20409_v44 = vld [vmem:[%s25332_s4 + $0x1200] ss:$12 sps:$4 sm:$0xff]   ;;  %v20414_v62 = vld [vmem:[%s25332_s4 + $0x121c] ss:$12 sps:$4 sm:$0xff]  }
 0x4c8   : > { %12794 = vmatpush1.bf16.msra.mxu0 %v20396_v38  ;;  %12797 = vmatprep.mubr.bf16.mxu0 %v20408_v61  ;;  %v20449_v38 = vld [vmem:[%s25332_s4 + $0x1208] ss:$12 sps:$4 sm:$0xff]   ;;  %v20453_v61 = vld [vmem:[%s25332_s4 + $0x12e0] ss:$12 sps:$4 sm:$0xff]  }
 0x4c9   : > { %12795 = vmatprep.subr.bf16.mxu0 %v20403_v51  ;;  %v17114_v36 = vpop.f32.mrb[20].mxu1  ;;  %v20420_v51 = vld [vmem:[%s25332_s4 + $0x1234] ss:$12 sps:$4 sm:$0xff]  }
 0x4ca   : > { %v17115_v56 = vpop.f32.mrb[21].mxu1 }
 0x4cb   : > { %v17116_v48 = vadd.f32 %v17115_v56, %v17114_v36  ;;  %v17117_v33 = vpop.f32.mrb[22].mxu1 }
 0x4cc   : > { %12796 = vmatpush1.bf16.msra.mxu0 %v20401_v40  ;;  %v17118_v4 = vpop.f32.mrb[23].mxu1 }
 0x4cd   : > { %12878 = vmatprep.subr.bf16.mxu0 %v20411_v12  ;;  %v24646_v49 = vadd.f32 %v17116_v48, %v24438_v54  ;;  %v17119_v22 = vadd.f32 %v17118_v4, %v17117_v33  ;;  %v20412_v54 = vld [vmem:[%s25332_s4 + $0x1218] ss:$12 sps:$4 sm:$0xff]   ;;  %v20417_v12 = vld [vmem:[%s22342_s16 + $0x130] ss:$108 sps:$4 sm:$0xff]  }
 0x4ce   : > { %14204 = vmatmul.mubr.bf16.vlgmr.msra.gmra.mrb[128].mxu1 %v20406_v2  ;;  %v20424_v48 = vld [vmem:[%s22342_s16 + $0x20c] ss:$108 sps:$4 sm:$0xff]  }
 0x4cf   : > { %12798 = vmatmul.mubr.bf16.vlgmr.msra.gmra.mrb[0].mxu0 %v20406_v2  ;;  %v24655_v18 = vadd.f32 %v17119_v22, %v24447_v34  ;;  %14211 = vmatprep.mubr.bf16.mxu1 %v20415_v17  ;;  %v20454_v34 = vld [vmem:[%s25332_s4 + $0x1220] ss:$12 sps:$4 sm:$0xff]   ;;  %v20418_v2 = vld [vmem:[%s25332_s4 + $0x1230] ss:$12 sps:$4 sm:$0xff]   ;;  %v20462_v22 = vld [vmem:[%s25332_s4 + $0x1238] ss:$12 sps:$4 sm:$0xff]  }
 0x4d0   : > { %12879 = vmatpush1.bf16.msra.mxu0 %v20409_v44  ;;  %12807 = vmatprep.mubr.bf16.mxu0 %v20415_v17  ;;  %v20423_v44 = vld [vmem:[%s25332_s4 + $0x124c] ss:$12 sps:$4 sm:$0xff]  }
 0x4d1   : > { %12880 = vmatprep.subr.bf16.mxu0 %v20414_v62  ;;  %v17120_v20 = vpop.f32.mrb[24].mxu1  ;;  %17389 = vmatpush3.bf16.msra.mxu1 %v20449_v38  ;;  %v20461_v62 = vld [vmem:[%s25332_s4 + $0x12f8] ss:$12 sps:$4 sm:$0xff]  }
 0x4d2   : > { %v17121_v40 = vpop.f32.mrb[25].mxu1  ;;  %17390 = vmatprep.subr.bf16.mxu1 %v20453_v61  ;;  %v20466_v61 = vld [vmem:[%s25332_s4 + $0x1310] ss:$12 sps:$4 sm:$0xff]  }
 0x4d3   : > { %v17122_v36 = vadd.f32 %v17121_v40, %v17120_v20  ;;  %v17123_v56 = vpop.f32.mrb[26].mxu1  ;;  %v20426_v20 = vld [vmem:[%s22342_s16 + $0x208] ss:$108 sps:$4 sm:$0xff]  }
 0x4d4   : > { %12881 = vmatpush1.bf16.msra.mxu0 %v20412_v54  ;;  %v17124_v33 = vpop.f32.mrb[27].mxu1  ;;  %v20429_v54 = vld [vmem:[%s25332_s4 + $0x1264] ss:$12 sps:$4 sm:$0xff]  }
 0x4d5   : > { %12882 = vmatprep.subr.bf16.mxu0 %v20420_v51  ;;  %v24675_v17 = vadd.f32 %v17122_v36, %v24467_v28  ;;  %v17125_v4 = vadd.f32 %v17124_v33, %v17123_v56  ;;  %17391 = vmatpush3.bf16.msra.mxu1 %v20454_v34  ;;  %v20421_v28 = vld [vmem:[%s25332_s4 + $0x1248] ss:$12 sps:$4 sm:$0xff]   ;;  %v20433_v36 = vld [vmem:[%s22342_s16 + $0x2e4] ss:$108 sps:$4 sm:$0xff]  }
 0x4d6   : > { %14212 = vmatmul.mubr.bf16.gmra.mrb[132].mxu1 %v20417_v12  ;;  %17392 = vmatprep.subr.bf16.mxu1 %v20461_v62 }
 0x4d7   : > { %12808 = vmatmul.mubr.bf16.gmra.mrb[4].mxu0 %v20417_v12  ;;  %v24684_v38 = vadd.f32 %v17125_v4, %v24476_v19  ;;  %14219 = vmatprep.mubr.bf16.mxu1 %v20424_v48  ;;  %v20427_v12 = vld [vmem:[%s25332_s4 + $0x1260] ss:$12 sps:$4 sm:$0xff]   ;;  %v20474_v4 = vld [vmem:[%s25332_s4 + $0x1328] ss:$12 sps:$4 sm:$0xff]  }
 0x4d8   : > { %12883 = vmatpush1.bf16.msra.mxu0 %v20418_v2  ;;  %12817 = vmatprep.mubr.bf16.mxu0 %v20424_v48  ;;  %v20432_v2 = vld [vmem:[%s25332_s4 + $0x127c] ss:$12 sps:$4 sm:$0xff]  }
 0x4d9   : > { %12884 = vmatprep.subr.bf16.mxu0 %v20423_v44  ;;  %v17126_v51 = vpop.f32.mrb[28].mxu1  ;;  %17393 = vmatpush3.bf16.msra.mxu1 %v20462_v22  ;;  %v20467_v44 = vld [vmem:[%s25332_s4 + $0x1250] ss:$12 sps:$4 sm:$0xff]   ;;  %v20438_v22 = vld [vmem:[%s25332_s4 + $0x1294] ss:$12 sps:$4 sm:$0xff]  }
 0x4da   : > { %v17127_v19 = vpop.f32.mrb[29].mxu1  ;;  %17394 = vmatprep.subr.bf16.mxu1 %v20466_v61 }
 0x4db   : > { %v17128_v34 = vadd.f32 %v17127_v19, %v17126_v51  ;;  %v17129_v40 = vpop.f32.mrb[30].mxu1 }
 0x4dc   : > { %12885 = vmatpush1.bf16.msra.mxu0 %v20421_v28  ;;  %v17130_v56 = vpop.f32.mrb[31].mxu1 }
 0x4dd   : > { %12886 = vmatprep.subr.bf16.mxu0 %v20429_v54  ;;  %v24704_v48 = vadd.f32 %v17128_v34, %v24496_v53  ;;  %v17131_v33 = vadd.f32 %v17130_v56, %v17129_v40  ;;  %v20430_v53 = vld [vmem:[%s25332_s4 + $0x1278] ss:$12 sps:$4 sm:$0xff]   ;;  %17395 = vmatpush3.bf16.msra.mxu1 %v20467_v44  ;;  %v20435_v54 = vld [vmem:[%s22342_s16 + $0x2e0] ss:$108 sps:$4 sm:$0xff]   ;;  %v20442_v34 = vld [vmem:[%s22342_s16 + $0x3bc] ss:$108 sps:$4 sm:$0xff]  }
 0x4de   : > { %14220 = vmatmul.mubr.bf16.gmra.mrb[136].mxu1 %v20426_v20  ;;  %17396 = vmatprep.subr.bf16.mxu1 %v20474_v4  ;;  %v20487_v4 = vld [vmem:[%s25332_s4 + $0x1358] ss:$12 sps:$4 sm:$0xff]  }
 0x4df   : > { %12818 = vmatmul.mubr.bf16.gmra.mrb[8].mxu0 %v20426_v20  ;;  %v24713_v62 = vadd.f32 %v17131_v33, %v24505_v10  ;;  %14227 = vmatprep.mubr.bf16.mxu1 %v20433_v36  ;;  %v20475_v10 = vld [vmem:[%s25332_s4 + $0x1268] ss:$12 sps:$4 sm:$0xff]   ;;  %v20436_v20 = vld [vmem:[%s25332_s4 + $0x1290] ss:$12 sps:$4 sm:$0xff]   ;;  %v20480_v33 = vld [vmem:[%s25332_s4 + $0x1280] ss:$12 sps:$4 sm:$0xff]  }
 0x4e0   : > { %12887 = vmatpush1.bf16.msra.mxu0 %v20427_v12  ;;  %12827 = vmatprep.mubr.bf16.mxu0 %v20433_v36  ;;  %v20441_v12 = vld [vmem:[%s25332_s4 + $0x12ac] ss:$12 sps:$4 sm:$0xff]  }
 0x4e1   : > { %12888 = vmatprep.subr.bf16.mxu0 %v20432_v2  ;;  %v17148_v28 = vpop.f32.mrb[32].mxu1  ;;  %17397 = vmatpush3.bf16.msra.mxu1 %v20475_v10  ;;  %v20479_v2 = vld [vmem:[%s25332_s4 + $0x1340] ss:$12 sps:$4 sm:$0xff]  }
 0x4e2   : > { %v17149_v61 = vpop.f32.mrb[33].mxu1  ;;  %17398 = vmatprep.subr.bf16.mxu1 %v20479_v2 }
 0x4e3   : > { %v17150_v51 = vadd.f32 %v17149_v61, %v17148_v28  ;;  %v17151_v19 = vpop.f32.mrb[34].mxu1  ;;  %v20444_v28 = vld [vmem:[%s22342_s16 + $0x3b8] ss:$108 sps:$4 sm:$0xff]  }
 0x4e4   : > { %12889 = vmatpush1.bf16.msra.mxu0 %v20430_v53  ;;  %v17152_v40 = vpop.f32.mrb[35].mxu1  ;;  %v20447_v53 = vld [vmem:[%s25332_s4 + $0x12c4] ss:$12 sps:$4 sm:$0xff]  }
 0x4e5   : > { %12890 = vmatprep.subr.bf16.mxu0 %v20438_v22  ;;  %v24733_v36 = vadd.f32 %v17150_v51, %v24525_v9  ;;  %v17153_v56 = vadd.f32 %v17152_v40, %v17151_v19  ;;  %v20439_v9 = vld [vmem:[%s25332_s4 + $0x12a8] ss:$12 sps:$4 sm:$0xff]   ;;  %17399 = vmatpush3.bf16.msra.mxu1 %v20480_v33 }
 0x4e6   : > { %14228 = vmatmul.mubr.bf16.gmra.mrb[140].mxu1 %v20435_v54  ;;  %v20455_v51 = vld [vmem:[%s22342_s16 + $0x494] ss:$108 sps:$4 sm:$0xff]   ;;  %17400 = vmatprep.subr.bf16.mxu1 %v20487_v4 }
 0x4e7   : > { %12828 = vmatmul.mubr.bf16.gmra.mrb[12].mxu0 %v20435_v54  ;;  %v24742_v44 = vadd.f32 %v17153_v56, %v24534_v14  ;;  %14235 = vmatprep.mubr.bf16.mxu1 %v20442_v34  ;;  %v20445_v54 = vld [vmem:[%s25332_s4 + $0x12c0] ss:$12 sps:$4 sm:$0xff]   ;;  %v20492_v56 = vld [vmem:[%s25332_s4 + $0x1370] ss:$12 sps:$4 sm:$0xff]  }
 0x4e8   : > { %12891 = vmatpush1.bf16.msra.mxu0 %v20436_v20  ;;  %12837 = vmatprep.mubr.bf16.mxu0 %v20442_v34  ;;  %v20452_v20 = vld [vmem:[%s25332_s4 + $0x12dc] ss:$12 sps:$4 sm:$0xff]   ;;  %v20460_v33 = vld [vmem:[%s25332_s4 + $0x12f4] ss:$12 sps:$4 sm:$0xff]  }
 0x4e9   : > { %12892 = vmatprep.subr.bf16.mxu0 %v20441_v12  ;;  %v17154_v22 = vpop.f32.mrb[36].mxu1  ;;  %v20488_v12 = vld [vmem:[%s25332_s4 + $0x1298] ss:$12 sps:$4 sm:$0xff]  }
 0x4ea   : > { %v17155_v14 = vpop.f32.mrb[37].mxu1  ;;  %17401 = vmatpush3.bf16.msra.mxu1 %v20488_v12  ;;  %v20473_v12 = vld [vmem:[%s25332_s4 + $0x1324] ss:$12 sps:$4 sm:$0xff]  }
 0x4eb   : > { %v17156_v10 = vadd.f32 %v17155_v14, %v17154_v22  ;;  %v17157_v61 = vpop.f32.mrb[38].mxu1  ;;  %17402 = vmatprep.subr.bf16.mxu1 %v20492_v56 }
 0x4ec   : > { %12893 = vmatpush1.bf16.msra.mxu0 %v20439_v9  ;;  %v17158_v19 = vpop.f32.mrb[39].mxu1 }
 0x4ed   : > { %12894 = vmatprep.subr.bf16.mxu0 %v20447_v53  ;;  %v24762_v34 = vadd.f32 %v17156_v10, %v24554_v24  ;;  %v17159_v40 = vadd.f32 %v17158_v19, %v17157_v61  ;;  %v20450_v24 = vld [vmem:[%s25332_s4 + $0x12d8] ss:$12 sps:$4 sm:$0xff]   ;;  %v20457_v53 = vld [vmem:[%s22342_s16 + $0x490] ss:$108 sps:$4 sm:$0xff]  }
 0x4ee   : > { %14236 = vmatmul.mubr.bf16.gmra.mrb[144].mxu1 %v20444_v28  ;;  %v20468_v10 = vld [vmem:[%s22342_s16 + $0x56c] ss:$108 sps:$4 sm:$0xff]  }
 0x4ef   : > { %12838 = vmatmul.mubr.bf16.gmra.mrb[16].mxu0 %v20444_v28  ;;  %v24771_v2 = vadd.f32 %v17159_v40, %v24563_v7  ;;  %14243 = vmatprep.mubr.bf16.mxu1 %v20455_v51  ;;  %v20493_v7 = vld [vmem:[%s25332_s4 + $0x12b0] ss:$12 sps:$4 sm:$0xff]  }
 0x4f0   : > { %12895 = vmatpush1.bf16.msra.mxu0 %v20445_v54  ;;  %12847 = vmatprep.mubr.bf16.mxu0 %v20455_v51  ;;  %v20458_v28 = vld [vmem:[%s25332_s4 + $0x12f0] ss:$12 sps:$4 sm:$0xff]   ;;  %v20465_v54 = vld [vmem:[%s25332_s4 + $0x130c] ss:$12 sps:$4 sm:$0xff]  }
 0x4f1   : > { %12896 = vmatprep.subr.bf16.mxu0 %v20452_v20  ;;  %v17160_v9 = vpop.f32.mrb[40].mxu1  ;;  %17403 = vmatpush3.bf16.msra.mxu1 %v20493_v7  ;;  %v24796_v20 = vld [vmem:[%s25332_s4 + $0x1388] ss:$12 sps:$4 sm:$0xff]   ;;  %v20471_v7 = vld [vmem:[%s25332_s4 + $0x1320] ss:$12 sps:$4 sm:$0xff]  }
 0x4f2   : > { %v17161_v4 = vpop.f32.mrb[41].mxu1  ;;  %17468 = vmatprep.subr.bf16.mxu1 %v24796_v20 }
 0x4f3   : > { %v17162_v22 = vadd.f32 %v17161_v4, %v17160_v9  ;;  %v17163_v14 = vpop.f32.mrb[42].mxu1  ;;  %v20481_v4 = vld [vmem:[%s22342_s16 + $0x644] ss:$108 sps:$4 sm:$0xff]  }
 0x4f4   : > { %12897 = vmatpush1.bf16.msra.mxu0 %v20450_v24  ;;  %v17164_v61 = vpop.f32.mrb[43].mxu1 }
 0x4f5   : > { %12898 = vmatprep.subr.bf16.mxu0 %v20460_v33  ;;  %v24791_v51 = vadd.f32 %v17162_v22, %v24583_v63  ;;  %v17165_v19 = vadd.f32 %v17164_v61, %v17163_v14  ;;  %v20463_v63 = vld [vmem:[%s25332_s4 + $0x1308] ss:$12 sps:$4 sm:$0xff]   ;;  %v20476_v61 = vld [vmem:[%s25332_s4 + $0x1338] ss:$12 sps:$4 sm:$0xff]  }
 0x4f6   : > { %14244 = vmatmul.mubr.bf16.gmra.mrb[148].mxu1 %v20457_v53  ;;  %v20470_v33 = vld [vmem:[%s22342_s16 + $0x568] ss:$108 sps:$4 sm:$0xff]  }
 0x4f7   : > { %12848 = vmatmul.mubr.bf16.gmra.mrb[20].mxu0 %v20457_v53  ;;  %v24799_v40 = vadd.f32 %v17165_v19, %v24589_v60  ;;  %14251 = vmatprep.mubr.bf16.mxu1 %v20468_v10  ;;  %v20478_v22 = vld [vmem:[%s25332_s4 + $0x133c] ss:$12 sps:$4 sm:$0xff]  }
 0x4f8   : > { %12899 = vmatpush1.bf16.msra.mxu0 %v20458_v28  ;;  %12857 = vmatprep.mubr.bf16.mxu0 %v20468_v10 }
 0x4f9   : > { %12900 = vmatprep.subr.bf16.mxu0 %v20465_v54  ;;  %v17166_v56 = vpop.f32.mrb[44].mxu1 }
 0x4fa   : > { %v17167_v24 = vpop.f32.mrb[45].mxu1 }
 0x4fb   : > { %v17168_v9 = vadd.f32 %v17167_v24, %v17166_v56  ;;  %v17169_v60 = vpop.f32.mrb[46].mxu1  ;;  %v20496_v24 = vld [vmem:[%s22342_s16 + $0x64] ss:$108 sps:$4 sm:$0xff]  }
 0x4fc   : > { %12901 = vmatpush1.bf16.msra.mxu0 %v20463_v63  ;;  %v17170_v53 = vpop.f32.mrb[47].mxu1  ;;  %v20483_v63 = vld [vmem:[%s22342_s16 + $0x640] ss:$108 sps:$4 sm:$0xff]  }
 0x4fd   : > { %12902 = vmatprep.subr.bf16.mxu0 %v20473_v12  ;;  %v24817_v14 = vadd.f32 %v17168_v9, %v24606_v50  ;;  %v17171_v28 = vadd.f32 %v17170_v53, %v17169_v60  ;;  %v20486_v50 = vld [vmem:[%s25332_s4 + $0x1354] ss:$12 sps:$4 sm:$0xff]   ;;  %v20491_v9 = vld [vmem:[%s25332_s4 + $0x136c] ss:$12 sps:$4 sm:$0xff]  }
 0x4fe   : > { %14252 = vmatmul.mubr.bf16.gmra.mrb[152].mxu1 %v20470_v33  ;;  %v20489_v53 = vld [vmem:[%s25332_s4 + $0x1368] ss:$12 sps:$4 sm:$0xff]  }
 0x4ff   : > { %12858 = vmatmul.mubr.bf16.gmra.mrb[24].mxu0 %v20470_v33  ;;  %v24820_v10 = vadd.f32 %v17171_v28, %v24609_v0  ;;  %14259 = vmatprep.mubr.bf16.mxu1 %v20481_v4  ;;  %v20484_v0 = vld [vmem:[%s25332_s4 + $0x1350] ss:$12 sps:$4 sm:$0xff]  }
 0x500   : > { %12903 = vmatpush1.bf16.msra.mxu0 %v20471_v7  ;;  %12867 = vmatprep.mubr.bf16.mxu0 %v20481_v4 }
 0x501   : > { %12904 = vmatprep.subr.bf16.mxu0 %v20478_v22  ;;  %v17172_v54 = vpop.f32.mrb[48].mxu1 }
 0x502   : > { %v17173_v19 = vpop.f32.mrb[49].mxu1 }
 0x503   : > { %v17174_v12 = vadd.f32 %v17173_v19, %v17172_v54  ;;  %v17175_v56 = vpop.f32.mrb[50].mxu1  ;;  %v20500_v19 = vld [vmem:[%s22342_s16 + $0x13c] ss:$108 sps:$4 sm:$0xff]  }
 0x504   : > { %12905 = vmatpush1.bf16.msra.mxu0 %v20476_v61  ;;  %v17176_v33 = vpop.f32.mrb[51].mxu1  ;;  %v20494_v61 = vld [vmem:[%s22342_s16 + $0x60] ss:$108 sps:$4 sm:$0xff]  }
 0x505   : > { %12906 = vmatprep.subr.bf16.mxu0 %v20486_v50  ;;  %v24837_v60 = vadd.f32 %v17174_v12, %v24626_v30  ;;  %v17177_v7 = vadd.f32 %v17176_v33, %v17175_v56  ;;  %v20499_v30 = vld [vmem:[%s25332_s4 + $0x1384] ss:$12 sps:$4 sm:$0xff]   ;;  %v20505_v12 = vld [vmem:[%s25332_s4 + $0x139c] ss:$12 sps:$4 sm:$0xff]  }
 0x506   : > { %14260 = vmatmul.mubr.bf16.gmra.mrb[156].mxu1 %v20483_v63 }
 0x507   : > { %12868 = vmatmul.mubr.bf16.gmra.mrb[28].mxu0 %v20483_v63  ;;  %v24840_v4 = vadd.f32 %v17177_v7, %v24629_v35  ;;  %14300 = vmatprep.mubr.bf16.mxu1 %v20496_v24  ;;  %v20497_v35 = vld [vmem:[%s25332_s4 + $0x1380] ss:$12 sps:$4 sm:$0xff]  }
 0x508   : > { %12907 = vmatpush1.bf16.msra.mxu0 %v20484_v0  ;;  %12910 = vmatprep.mubr.bf16.mxu0 %v20496_v24  ;;  %v20525_v24 = vld [vmem:[%s25332_s4 + $0x13a0] ss:$12 sps:$4 sm:$0xff]  }
 0x509   : > { %12908 = vmatprep.subr.bf16.mxu0 %v20491_v9  ;;  %v17178_v22 = vpop.f32.mrb[52].mxu1  ;;  %v20503_v9 = vld [vmem:[%s25332_s4 + $0x1398] ss:$12 sps:$4 sm:$0xff]  }
 0x50a   : > { %v17179_v28 = vpop.f32.mrb[53].mxu1 }
 0x50b   : > { %v17180_v50 = vadd.f32 %v17179_v28, %v17178_v22  ;;  %v17181_v54 = vpop.f32.mrb[54].mxu1  ;;  %v20506_v28 = vld [vmem:[%s22342_s16 + $0x214] ss:$108 sps:$4 sm:$0xff]  }
 0x50c   : > { %12909 = vmatpush1.bf16.msra.mxu0 %v20489_v53  ;;  %v17182_v63 = vpop.f32.mrb[55].mxu1 }
 0x50d   : > { %12991 = vmatprep.subr.bf16.mxu0 %v20499_v30  ;;  %v24857_v56 = vadd.f32 %v17180_v50, %v24646_v49  ;;  %v17183_v0 = vadd.f32 %v17182_v63, %v17181_v54  ;;  %v20511_v49 = vld [vmem:[%s25332_s4 + $0x13b4] ss:$12 sps:$4 sm:$0xff]   ;;  %v20502_v30 = vld [vmem:[%s22342_s16 + $0x138] ss:$108 sps:$4 sm:$0xff]   ;;  %v20509_v50 = vld [vmem:[%s25332_s4 + $0x13b0] ss:$12 sps:$4 sm:$0xff]  }
 0x50e   : > { %14301 = vmatmul.mubr.bf16.vlgmr.msra.gmra.mrb[160].mxu1 %v20494_v61  ;;  %v20532_v54 = vld [vmem:[%s25332_s4 + $0x13b8] ss:$12 sps:$4 sm:$0xff]   ;;  %v20533_v63 = vld [vmem:[%s25332_s4 + $0x13d0] ss:$12 sps:$4 sm:$0xff]  }
 0x50f   : > { %12911 = vmatmul.mubr.bf16.vlgmr.msra.gmra.mrb[0].mxu0 %v20494_v61  ;;  %v24863_v33 = vadd.f32 %v17183_v0, %v24655_v18  ;;  %14308 = vmatprep.mubr.bf16.mxu1 %v20500_v19 }
 0x510   : > { %12992 = vmatpush1.bf16.msra.mxu0 %v20497_v35  ;;  %12920 = vmatprep.mubr.bf16.mxu0 %v20500_v19  ;;  %v20517_v19 = vld [vmem:[%s25332_s4 + $0x13cc] ss:$12 sps:$4 sm:$0xff]  }
 0x511   : > { %12993 = vmatprep.subr.bf16.mxu0 %v20505_v12  ;;  %v17184_v7 = vpop.f32.mrb[56].mxu1  ;;  %17469 = vmatpush3.bf16.msra.mxu1 %v24796_v20 }
 0x512   : > { %v17185_v53 = vpop.f32.mrb[57].mxu1  ;;  %17470 = vmatprep.subr.bf16.mxu1 %v20525_v24 }
 0x513   : > { %v17186_v18 = vadd.f32 %v17185_v53, %v17184_v7  ;;  %v17187_v22 = vpop.f32.mrb[58].mxu1  ;;  %v20512_v53 = vld [vmem:[%s22342_s16 + $0x2ec] ss:$108 sps:$4 sm:$0xff]  }
 0x514   : > { %12994 = vmatpush1.bf16.msra.mxu0 %v20503_v9  ;;  %v17188_v61 = vpop.f32.mrb[59].mxu1 }
 0x515   : > { %12995 = vmatprep.subr.bf16.mxu0 %v20511_v49  ;;  %v24881_v35 = vadd.f32 %v17186_v18, %v24675_v17  ;;  %v17189_v20 = vadd.f32 %v17188_v61, %v17187_v22  ;;  %17471 = vmatpush3.bf16.msra.mxu1 %v20525_v24  ;;  %v20515_v17 = vld [vmem:[%s25332_s4 + $0x13c8] ss:$12 sps:$4 sm:$0xff]   ;;  %v20523_v24 = vld [vmem:[%s25332_s4 + $0x13e4] ss:$12 sps:$4 sm:$0xff]   ;;  %v20521_v18 = vld [vmem:[%s25332_s4 + $0x13e0] ss:$12 sps:$4 sm:$0xff]  }
 0x516   : > { %14309 = vmatmul.mubr.bf16.gmra.mrb[164].mxu1 %v20502_v30  ;;  %17472 = vmatprep.subr.bf16.mxu1 %v20532_v54  ;;  %v20508_v49 = vld [vmem:[%s22342_s16 + $0x210] ss:$108 sps:$4 sm:$0xff]   ;;  %v20540_v22 = vld [vmem:[%s25332_s4 + $0x13e8] ss:$12 sps:$4 sm:$0xff]  }
 0x517   : > { %12921 = vmatmul.mubr.bf16.gmra.mrb[4].mxu0 %v20502_v30  ;;  %v24890_v12 = vadd.f32 %v17189_v20, %v24684_v38  ;;  %14316 = vmatprep.mubr.bf16.mxu1 %v20506_v28 }
 0x518   : > { %12930 = vmatprep.mubr.bf16.mxu0 %v20506_v28  ;;  %12996 = vmatpush1.bf16.msra.mxu0 %v20509_v50  ;;  %v20531_v50 = vld [vmem:[%s25332_s4 + $0x13fc] ss:$12 sps:$4 sm:$0xff]  }
 0x519   : > { %v17190_v0 = vpop.f32.mrb[60].mxu1  ;;  %12997 = vmatprep.subr.bf16.mxu0 %v20517_v19  ;;  %17473 = vmatpush3.bf16.msra.mxu1 %v20532_v54  ;;  %v20541_v54 = vld [vmem:[%s25332_s4 + $0x1400] ss:$12 sps:$4 sm:$0xff]  }
 0x51a   : > { %v17191_v9 = vpop.f32.mrb[61].mxu1  ;;  %17474 = vmatprep.subr.bf16.mxu1 %v20533_v63 }
 0x51b   : > { %v17192_v38 = vadd.f32 %v17191_v9, %v17190_v0  ;;  %v17193_v7 = vpop.f32.mrb[62].mxu1  ;;  %v20514_v0 = vld [vmem:[%s22342_s16 + $0x2e8] ss:$108 sps:$4 sm:$0xff]   ;;  %v20518_v9 = vld [vmem:[%s22342_s16 + $0x3c4] ss:$108 sps:$4 sm:$0xff]  }
 0x51c   : > { %v17194_v30 = vpop.f32.mrb[63].mxu1  ;;  %12998 = vmatpush1.bf16.msra.mxu0 %v20515_v17 }
 0x51d   : > { %v24907_v28 = vadd.f32 %v17192_v38, %v24704_v48  ;;  %v17195_v61 = vadd.f32 %v17194_v30, %v17193_v7  ;;  %12999 = vmatprep.subr.bf16.mxu0 %v20523_v24  ;;  %17475 = vmatpush3.bf16.msra.mxu1 %v20533_v63  ;;  %v20529_v48 = vld [vmem:[%s25332_s4 + $0x13f8] ss:$12 sps:$4 sm:$0xff]   ;;  %v20539_v63 = vld [vmem:[%s25332_s4 + $0x1414] ss:$12 sps:$4 sm:$0xff]   ;;  %v20537_v38 = vld [vmem:[%s25332_s4 + $0x1410] ss:$12 sps:$4 sm:$0xff]  }
 0x51e   : > { %14317 = vmatmul.mubr.bf16.gmra.mrb[168].mxu1 %v20508_v49  ;;  %17476 = vmatprep.subr.bf16.mxu1 %v20540_v22  ;;  %v20548_v7 = vld [vmem:[%s25332_s4 + $0x1418] ss:$12 sps:$4 sm:$0xff]  }
 0x51f   : > { %12931 = vmatmul.mubr.bf16.gmra.mrb[8].mxu0 %v20508_v49  ;;  %v24916_v20 = vadd.f32 %v17195_v61, %v24713_v62  ;;  %14324 = vmatprep.mubr.bf16.mxu1 %v20512_v53 }
 0x520   : > { %12940 = vmatprep.mubr.bf16.mxu0 %v20512_v53  ;;  %13000 = vmatpush1.bf16.msra.mxu0 %v20521_v18  ;;  %v20547_v18 = vld [vmem:[%s25332_s4 + $0x142c] ss:$12 sps:$4 sm:$0xff]  }
 0x521   : > { %v17212_v19 = vpop.f32.mrb[64].mxu1  ;;  %13001 = vmatprep.subr.bf16.mxu0 %v20531_v50  ;;  %17477 = vmatpush3.bf16.msra.mxu1 %v20540_v22  ;;  %v20549_v22 = vld [vmem:[%s25332_s4 + $0x1430] ss:$12 sps:$4 sm:$0xff]  }
 0x522   : > { %v17213_v17 = vpop.f32.mrb[65].mxu1  ;;  %17478 = vmatprep.subr.bf16.mxu1 %v20541_v54 }
 0x523   : > { %v17214_v62 = vadd.f32 %v17213_v17, %v17212_v19  ;;  %v17215_v24 = vpop.f32.mrb[66].mxu1  ;;  %v20526_v17 = vld [vmem:[%s22342_s16 + $0x49c] ss:$108 sps:$4 sm:$0xff]  }
 0x524   : > { %v17216_v49 = vpop.f32.mrb[67].mxu1  ;;  %13002 = vmatpush1.bf16.msra.mxu0 %v20529_v48  ;;  %v20520_v48 = vld [vmem:[%s22342_s16 + $0x3c0] ss:$108 sps:$4 sm:$0xff]  }
 0x525   : > { %v24933_v53 = vadd.f32 %v17214_v62, %v24733_v36  ;;  %v17217_v30 = vadd.f32 %v17216_v49, %v17215_v24  ;;  %13003 = vmatprep.subr.bf16.mxu0 %v20539_v63  ;;  %17479 = vmatpush3.bf16.msra.mxu1 %v20541_v54  ;;  %v20545_v36 = vld [vmem:[%s25332_s4 + $0x1428] ss:$12 sps:$4 sm:$0xff]  }
 0x526   : > { %14325 = vmatmul.mubr.bf16.gmra.mrb[172].mxu1 %v20514_v0  ;;  %17480 = vmatprep.subr.bf16.mxu1 %v20548_v7 }
 0x527   : > { %12941 = vmatmul.mubr.bf16.gmra.mrb[12].mxu0 %v20514_v0  ;;  %v24942_v61 = vadd.f32 %v17217_v30, %v24742_v44  ;;  %14332 = vmatprep.mubr.bf16.mxu1 %v20518_v9 }
 0x528   : > { %12950 = vmatprep.mubr.bf16.mxu0 %v20518_v9  ;;  %13004 = vmatpush1.bf16.msra.mxu0 %v20537_v38  ;;  %v20528_v38 = vld [vmem:[%s22342_s16 + $0x498] ss:$108 sps:$4 sm:$0xff]  }
 0x529   : > { %v17218_v50 = vpop.f32.mrb[68].mxu1  ;;  %13005 = vmatprep.subr.bf16.mxu0 %v20547_v18  ;;  %17481 = vmatpush3.bf16.msra.mxu1 %v20548_v7  ;;  %v20534_v18 = vld [vmem:[%s22342_s16 + $0x574] ss:$108 sps:$4 sm:$0xff]  }
 0x52a   : > { %v17219_v54 = vpop.f32.mrb[69].mxu1  ;;  %17482 = vmatprep.subr.bf16.mxu1 %v20549_v22 }
 0x52b   : > { %v17220_v19 = vadd.f32 %v17219_v54, %v17218_v50  ;;  %v17221_v63 = vpop.f32.mrb[70].mxu1 }
 0x52c   : > { %v17222_v44 = vpop.f32.mrb[71].mxu1  ;;  %13006 = vmatpush1.bf16.msra.mxu0 %v20545_v36 }
 0x52d   : > { %v24950_v0 = vadd.f32 %v17220_v19, %v24762_v34  ;;  %v17223_v62 = vadd.f32 %v17222_v44, %v17221_v63  ;;  %17483 = vmatpush3.bf16.msra.mxu1 %v20549_v22 }
 0x52e   : > { %14333 = vmatmul.mubr.bf16.gmra.mrb[176].mxu1 %v20520_v48 }
 0x52f   : > { %12951 = vmatmul.mubr.bf16.gmra.mrb[16].mxu0 %v20520_v48  ;;  %v24953_v24 = vadd.f32 %v17223_v62, %v24771_v2  ;;  %14340 = vmatprep.mubr.bf16.mxu1 %v20526_v17  ;;  %v20536_v48 = vld [vmem:[%s22342_s16 + $0x570] ss:$108 sps:$4 sm:$0xff]  }
 0x530   : > { %12960 = vmatprep.mubr.bf16.mxu0 %v20526_v17  ;;  %v20542_v17 = vld [vmem:[%s22342_s16 + $0x64c] ss:$108 sps:$4 sm:$0xff]  }
 0x531   : > { %v17224_v9 = vpop.f32.mrb[72].mxu1 }
 0x532   : > { %v17225_v49 = vpop.f32.mrb[73].mxu1 }
 0x533   : > { %v17226_v7 = vadd.f32 %v17225_v49, %v17224_v9  ;;  %v17227_v30 = vpop.f32.mrb[74].mxu1 }
 0x534   : > { %v17228_v36 = vpop.f32.mrb[75].mxu1 }
 0x535   : > { %v24958_v34 = vadd.f32 %v17226_v7, %v24791_v51  ;;  %v17229_v22 = vadd.f32 %v17228_v36, %v17227_v30 }
 0x536   : > { %14341 = vmatmul.mubr.bf16.gmra.mrb[180].mxu1 %v20528_v38 }
 0x537   : > { %12961 = vmatmul.mubr.bf16.gmra.mrb[20].mxu0 %v20528_v38  ;;  %v24961_v2 = vadd.f32 %v17229_v22, %v24799_v40  ;;  %14348 = vmatprep.mubr.bf16.mxu1 %v20534_v18  ;;  %v20544_v38 = vld [vmem:[%s22342_s16 + $0x648] ss:$108 sps:$4 sm:$0xff]  }
 0x538   : > { %12970 = vmatprep.mubr.bf16.mxu0 %v20534_v18  ;;  %v20550_v18 = vld [vmem:[%s22342_s16 + $0x68] ss:$108 sps:$4 sm:$0xff]  }
 0x539   : > { %v17230_v50 = vpop.f32.mrb[76].mxu1 }
 0x53a   : > { %v17231_v54 = vpop.f32.mrb[77].mxu1 }
 0x53b   : > { %v17232_v19 = vadd.f32 %v17231_v54, %v17230_v50  ;;  %v17233_v63 = vpop.f32.mrb[78].mxu1  ;;  %v25343_v50 = vmov 0  }
 0x53c   : > { %v17234_v44 = vpop.f32.mrb[79].mxu1 }
 0x53d   : > { %v24966_v51 = vadd.f32 %v17232_v19, %v24817_v14  ;;  %v17235_v62 = vadd.f32 %v17234_v44, %v17233_v63  ;;  %v20551_v19 = vld [vmem:[%s22342_s16 + $0x140] ss:$108 sps:$4 sm:$0xff]   ;;  %v20552_v44 = vld [vmem:[%s22342_s16 + $0x218] ss:$108 sps:$4 sm:$0xff]  }
 0x53e   : > { %14349 = vmatmul.mubr.bf16.gmra.mrb[184].mxu1 %v20536_v48 }
 0x53f   : > { %12971 = vmatmul.mubr.bf16.gmra.mrb[24].mxu0 %v20536_v48  ;;  %v24969_v40 = vadd.f32 %v17235_v62, %v24820_v10  ;;  %14356 = vmatprep.mubr.bf16.mxu1 %v20542_v17 }
 0x540   : > { %12980 = vmatprep.mubr.bf16.mxu0 %v20542_v17 }
 0x541   : > { %v17236_v9 = vpop.f32.mrb[80].mxu1 }
 0x542   : > { %v17237_v49 = vpop.f32.mrb[81].mxu1 }
 0x543   : > { %v17238_v7 = vadd.f32 %v17237_v49, %v17236_v9  ;;  %v17239_v30 = vpop.f32.mrb[82].mxu1 }
 0x544   : > { %v17240_v36 = vpop.f32.mrb[83].mxu1 }
 0x545   : > { %v24974_v14 = vadd.f32 %v17238_v7, %v24837_v60  ;;  %v17241_v22 = vadd.f32 %v17240_v36, %v17239_v30  ;;  %v20553_v7 = vld [vmem:[%s22342_s16 + $0x2f0] ss:$108 sps:$4 sm:$0xff]  }
 0x546   : > { %14357 = vmatmul.mubr.bf16.gmra.mrb[188].mxu1 %v20544_v38 }
 0x547   : > { %12981 = vmatmul.mubr.bf16.gmra.mrb[28].mxu0 %v20544_v38  ;;  %v24977_v10 = vadd.f32 %v17241_v22, %v24840_v4  ;;  %17484 = vmatprep.mubr.bf16.mxu1 %v20550_v18  ;;  %v20554_v22 = vld [vmem:[%s22342_s16 + $0x3c8] ss:$108 sps:$4 sm:$0xff]  }
 0x548   : > { %13023 = vmatprep.mubr.bf16.mxu0 %v25343_v50 }
 0x549   : > { %v17242_v54 = vpop.f32.mrb[84].mxu1 }
 0x54a   : > { %v17243_v48 = vpop.f32.mrb[85].mxu1 }
 0x54b   : > { %v17244_v63 = vadd.f32 %v17243_v48, %v17242_v54  ;;  %v17245_v17 = vpop.f32.mrb[86].mxu1 }
 0x54c   : > { %v17246_v62 = vpop.f32.mrb[87].mxu1 }
 0x54d   : > { %v24983_v60 = vadd.f32 %v17244_v63, %v24857_v56  ;;  %v17247_v9 = vadd.f32 %v17246_v62, %v17245_v17  ;;  %v20555_v17 = vld [vmem:[%s22342_s16 + $0x4a0] ss:$108 sps:$4 sm:$0xff]  }
 0x54e   : > { %17485 = vmatmul.mubr.bf16.vlgmr.msra.gmra.mrb[192].mxu1 %v20551_v19 }
 0x54f   : > { %13024 = vmatmul.mubr.bf16.vlgmr.msra.gmra.mrb[0].mxu0 %v20550_v18  ;;  %v24986_v4 = vadd.f32 %v17247_v9, %v24863_v33  ;;  %17488 = vmatprep.mubr.bf16.mxu1 %v20552_v44 }
 0x550   : > { %13033 = vmatprep.mubr.bf16.mxu0 %v25343_v50 }
 0x551   : > { %v17248_v49 = vpop.f32.mrb[88].mxu1 }
 0x552   : > { %v17249_v38 = vpop.f32.mrb[89].mxu1 }
 0x553   : > { %v17250_v30 = vadd.f32 %v17249_v38, %v17248_v49  ;;  %v17251_v36 = vpop.f32.mrb[90].mxu1  ;;  %v20556_v49 = vld [vmem:[%s22342_s16 + $0x578] ss:$108 sps:$4 sm:$0xff]  }
 0x554   : > { %v17252_v54 = vpop.f32.mrb[91].mxu1 }
 0x555   : > { %v24992_v56 = vadd.f32 %v17250_v30, %v24881_v35  ;;  %v17253_v18 = vadd.f32 %v17252_v54, %v17251_v36  ;;  %v20557_v54 = vld [vmem:[%s22342_s16 + $0x650] ss:$108 sps:$4 sm:$0xff]  }
 0x556   : > { %17489 = vmatmul.mubr.bf16.gmra.mrb[196].mxu1 %v20553_v7 }
 0x557   : > { %13034 = vmatmul.mubr.bf16.gmra.mrb[4].mxu0 %v20551_v19  ;;  %v24995_v33 = vadd.f32 %v17253_v18, %v24890_v12  ;;  %17492 = vmatprep.mubr.bf16.mxu1 %v20554_v22 }
 0x558   : > { %13043 = vmatprep.mubr.bf16.mxu0 %v25343_v50 }
 0x559   : > { %v17254_v48 = vpop.f32.mrb[92].mxu1 }
 0x55a   : > { %v17255_v63 = vpop.f32.mrb[93].mxu1 }
 0x55b   : > { %v17256_v62 = vadd.f32 %v17255_v63, %v17254_v48  ;;  %v17257_v9 = vpop.f32.mrb[94].mxu1 }
 0x55c   : > { %v17258_v38 = vpop.f32.mrb[95].mxu1 }
 0x55d   : > { %v25001_v35 = vadd.f32 %v17256_v62, %v24907_v28  ;;  %v17259_v30 = vadd.f32 %v17258_v38, %v17257_v9 }
 0x55e   : > { %17493 = vmatmul.mubr.bf16.gmra.mrb[200].mxu1 %v20555_v17 }
 0x55f   : > { %13044 = vmatmul.mubr.bf16.gmra.mrb[8].mxu0 %v20552_v44  ;;  %v25004_v12 = vadd.f32 %v17259_v30, %v24916_v20  ;;  %17496 = vmatprep.mubr.bf16.mxu1 %v20556_v49 }
 0x560   : > { %13053 = vmatprep.mubr.bf16.mxu0 %v25343_v50 }
 0x561   : > { %v17276_v19 = vpop.f32.mrb[96].mxu1 }
 0x562   : > { %v17277_v36 = vpop.f32.mrb[97].mxu1 }
 0x563   : > { %v17278_v18 = vadd.f32 %v17277_v36, %v17276_v19  ;;  %v17279_v48 = vpop.f32.mrb[98].mxu1 }
 0x564   : > { %v17280_v63 = vpop.f32.mrb[99].mxu1 }
 0x565   : > { %v25009_v58 = vadd.f32 %v17278_v18, %v24933_v53  ;;  %v17281_v28 = vadd.f32 %v17280_v63, %v17279_v48 }
 0x566   : > { %17497 = vmatmul.mubr.bf16.gmra.mrb[204].mxu1 %v20557_v54 }
 0x567   : > { %13054 = vmatmul.mubr.bf16.gmra.mrb[12].mxu0 %v20553_v7  ;;  %v25012_v44 = vadd.f32 %v17281_v28, %v24942_v61 }
 0x568   : > { %13063 = vmatprep.mubr.bf16.mxu0 %v25343_v50 }
 0x569   : > { %v17282_v20 = vpop.f32.mrb[100].mxu1 }
 0x56a   : > { %v17283_v62 = vpop.f32.mrb[101].mxu1 }
 0x56b   : > { %v17284_v9 = vadd.f32 %v17283_v62, %v17282_v20  ;;  %v17285_v38 = vpop.f32.mrb[102].mxu1 }
 0x56c   : > { %v17286_v30 = vpop.f32.mrb[103].mxu1 }
 0x56d   : > { %v25016_v19 = vadd.f32 %v17284_v9, %v24950_v0  ;;  %v17287_v36 = vadd.f32 %v17286_v30, %v17285_v38 }
 0x56f   : > { %13064 = vmatmul.mubr.bf16.gmra.mrb[16].mxu0 %v20554_v22  ;;  %v25019_v53 = vadd.f32 %v17287_v36, %v24953_v24 }
 0x570   : > { %13073 = vmatprep.mubr.bf16.mxu0 %v25343_v50 }
 0x571   : > { %v17288_v7 = vpop.f32.mrb[104].mxu1 }
 0x572   : > { %v17289_v61 = vpop.f32.mrb[105].mxu1 }
 0x573   : > { %v17290_v18 = vadd.f32 %v17289_v61, %v17288_v7  ;;  %v17291_v48 = vpop.f32.mrb[106].mxu1 }
 0x574   : > { %v17292_v63 = vpop.f32.mrb[107].mxu1 }
 0x575   : > { %v25023_v28 = vadd.f32 %v17290_v18, %v24958_v34  ;;  %v17293_v20 = vadd.f32 %v17292_v63, %v17291_v48 }
 0x577   : > { %13074 = vmatmul.mubr.bf16.gmra.mrb[20].mxu0 %v20555_v17  ;;  %v25026_v0 = vadd.f32 %v17293_v20, %v24961_v2 }
 0x578   : > { %13083 = vmatprep.mubr.bf16.mxu0 %v25343_v50 }
 0x579   : > { %v17294_v22 = vpop.f32.mrb[108].mxu1 }
 0x57a   : > { %v17295_v24 = vpop.f32.mrb[109].mxu1 }
 0x57b   : > { %v17296_v62 = vadd.f32 %v17295_v24, %v17294_v22  ;;  %v17297_v9 = vpop.f32.mrb[110].mxu1 }
 0x57c   : > { %v17298_v38 = vpop.f32.mrb[111].mxu1 }
 0x57d   : > { %v25030_v30 = vadd.f32 %v17296_v62, %v24966_v51  ;;  %v17299_v36 = vadd.f32 %v17298_v38, %v17297_v9 }
 0x57f   : > { %13084 = vmatmul.mubr.bf16.gmra.mrb[24].mxu0 %v20556_v49  ;;  %v25033_v34 = vadd.f32 %v17299_v36, %v24969_v40 }
 0x580   : > { %13093 = vmatprep.mubr.bf16.mxu0 %v25343_v50 }
 0x581   : > { %v17300_v17 = vpop.f32.mrb[112].mxu1 }
 0x582   : > { %v17301_v2 = vpop.f32.mrb[113].mxu1 }
 0x583   : > { %v17302_v7 = vadd.f32 %v17301_v2, %v17300_v17  ;;  %v17303_v61 = vpop.f32.mrb[114].mxu1 }
 0x584   : > { %v17304_v18 = vpop.f32.mrb[115].mxu1 }
 0x585   : > { %v25037_v48 = vadd.f32 %v17302_v7, %v24974_v14  ;;  %v17305_v63 = vadd.f32 %v17304_v18, %v17303_v61 }
 0x587   : > { %13094 = vmatmul.mubr.bf16.gmra.mrb[28].mxu0 %v20557_v54  ;;  %v25040_v51 = vadd.f32 %v17305_v63, %v24977_v10 }
 0x589   : > { %v17306_v20 = vpop.f32.mrb[116].mxu1 }
 0x58a   : > { %v17307_v49 = vpop.f32.mrb[117].mxu1 }
 0x58b   : > { %v17308_v22 = vadd.f32 %v17307_v49, %v17306_v20  ;;  %v17309_v40 = vpop.f32.mrb[118].mxu1 }
 0x58c   : > { %v17310_v24 = vpop.f32.mrb[119].mxu1 }
 0x58d   : > { %v25043_v50 = vadd.f32 %v17308_v22, %v24983_v60  ;;  %v17311_v62 = vadd.f32 %v17310_v24, %v17309_v40 }
 0x58f   : > { %v25046_v9 = vadd.f32 %v17311_v62, %v24986_v4 }
 0x591   : > { %v17312_v38 = vpop.f32.mrb[120].mxu1 }
 0x592   : > { %v17313_v14 = vpop.f32.mrb[121].mxu1 }
 0x593   : > { %v17314_v36 = vadd.f32 %v17313_v14, %v17312_v38  ;;  %v17315_v17 = vpop.f32.mrb[122].mxu1 }
 0x594   : > { %v17316_v54 = vpop.f32.mrb[123].mxu1 }
 0x595   : > { %v25049_v10 = vadd.f32 %v17314_v36, %v24992_v56  ;;  %v17317_v2 = vadd.f32 %v17316_v54, %v17315_v17 }
 0x597   : > { %v25052_v7 = vadd.f32 %v17317_v2, %v24995_v33 }
 0x599   : > { %v17318_v61 = vpop.f32.mrb[124].mxu1 }
 0x59a   : > { %v17319_v18 = vpop.f32.mrb[125].mxu1 }
 0x59b   : > { %v17320_v60 = vadd.f32 %v17319_v18, %v17318_v61  ;;  %v17321_v63 = vpop.f32.mrb[126].mxu1 }
 0x59c   : > { %v17322_v20 = vpop.f32.mrb[127].mxu1 }
 0x59d   : > { %v25055_v4 = vadd.f32 %v17320_v60, %v25001_v35  ;;  %v17323_v49 = vadd.f32 %v17322_v20, %v17321_v63 }
 0x59f   : > { %v25058_v22 = vadd.f32 %v17323_v49, %v25004_v12 }
 0x5a1   : > { %v17340_v40 = vpop.f32.mrb[128].mxu1 }
 0x5a2   : > { %v17341_v24 = vpop.f32.mrb[129].mxu1 }
 0x5a3   : > { %v17342_v56 = vadd.f32 %v17341_v24, %v17340_v40  ;;  %v17343_v62 = vpop.f32.mrb[130].mxu1 }
 0x5a4   : > { %v17344_v38 = vpop.f32.mrb[131].mxu1 }
 0x5a5   : > { %v25061_v33 = vadd.f32 %v17342_v56, %v25009_v58  ;;  %v17345_v14 = vadd.f32 %v17344_v38, %v17343_v62 }
 0x5a7   : > { %v25064_v36 = vadd.f32 %v17345_v14, %v25012_v44 }
 0x5a9   : > { %v17346_v17 = vpop.f32.mrb[132].mxu1 }
 0x5aa   : > { %v17347_v54 = vpop.f32.mrb[133].mxu1 }
 0x5ab   : > { %v17348_v35 = vadd.f32 %v17347_v54, %v17346_v17  ;;  %v17349_v2 = vpop.f32.mrb[134].mxu1 }
 0x5ac   : > { %v17350_v61 = vpop.f32.mrb[135].mxu1 }
 0x5ad   : > { %v25067_v12 = vadd.f32 %v17348_v35, %v25016_v19  ;;  %v17351_v18 = vadd.f32 %v17350_v61, %v17349_v2 }
 0x5af   : > { %v25070_v60 = vadd.f32 %v17351_v18, %v25019_v53 }
 0x5b1   : > { %v17352_v63 = vpop.f32.mrb[136].mxu1 }
 0x5b2   : > { %v17353_v20 = vpop.f32.mrb[137].mxu1 }
 0x5b3   : > { %v17354_v58 = vadd.f32 %v17353_v20, %v17352_v63  ;;  %v17355_v49 = vpop.f32.mrb[138].mxu1 }
 0x5b4   : > { %v17356_v40 = vpop.f32.mrb[139].mxu1 }
 0x5b5   : > { %v25073_v44 = vadd.f32 %v17354_v58, %v25023_v28  ;;  %v17357_v24 = vadd.f32 %v17356_v40, %v17355_v49 }
 0x5b7   : > { %v25076_v56 = vadd.f32 %v17357_v24, %v25026_v0 }
 0x5b9   : > { %v17358_v62 = vpop.f32.mrb[140].mxu1 }
 0x5ba   : > { %v17359_v38 = vpop.f32.mrb[141].mxu1 }
 0x5bb   : > { %v17360_v19 = vadd.f32 %v17359_v38, %v17358_v62  ;;  %v17361_v14 = vpop.f32.mrb[142].mxu1 }
 0x5bc   : > { %v17362_v17 = vpop.f32.mrb[143].mxu1 }
 0x5bd   : > { %v25079_v53 = vadd.f32 %v17360_v19, %v25030_v30  ;;  %v17363_v54 = vadd.f32 %v17362_v17, %v17361_v14 }
 0x5bf   : > { %v25082_v35 = vadd.f32 %v17363_v54, %v25033_v34 }
 0x5c1   : > { %v17364_v2 = vpop.f32.mrb[144].mxu1 }
 0x5c2   : > { %v17365_v61 = vpop.f32.mrb[145].mxu1 }
 0x5c3   : > { %v17366_v28 = vadd.f32 %v17365_v61, %v17364_v2  ;;  %v17367_v18 = vpop.f32.mrb[146].mxu1 }
 0x5c4   : > { %v17368_v63 = vpop.f32.mrb[147].mxu1 }
 0x5c5   : > { %v25085_v0 = vadd.f32 %v17366_v28, %v25037_v48  ;;  %v17369_v20 = vadd.f32 %v17368_v63, %v17367_v18 }
 0x5c7   : > { %v25088_v58 = vadd.f32 %v17369_v20, %v25040_v51 }
 0x5c9   : > { %v17370_v49 = vpop.f32.mrb[148].mxu1 }
 0x5ca   : > { %v17371_v40 = vpop.f32.mrb[149].mxu1 }
 0x5cb   : > { %v17372_v30 = vadd.f32 %v17371_v40, %v17370_v49  ;;  %v17373_v24 = vpop.f32.mrb[150].mxu1 }
 0x5cc   : > { %v17374_v62 = vpop.f32.mrb[151].mxu1 }
 0x5cd   : > { %v25091_v34 = vadd.f32 %v17372_v30, %v25043_v50  ;;  %v17375_v38 = vadd.f32 %v17374_v62, %v17373_v24 }
 0x5cf   : > { %v25094_v19 = vadd.f32 %v17375_v38, %v25046_v9 }
 0x5d1   : > { %v17376_v14 = vpop.f32.mrb[152].mxu1 }
 0x5d2   : > { %v17377_v17 = vpop.f32.mrb[153].mxu1 }
 0x5d3   : > { %v17378_v48 = vadd.f32 %v17377_v17, %v17376_v14  ;;  %v17379_v54 = vpop.f32.mrb[154].mxu1 }
 0x5d4   : > { %v17380_v2 = vpop.f32.mrb[155].mxu1 }
 0x5d5   : > { %v25097_v51 = vadd.f32 %v17378_v48, %v25049_v10  ;;  %v17381_v61 = vadd.f32 %v17380_v2, %v17379_v54 }
 0x5d7   : > { %v25100_v28 = vadd.f32 %v17381_v61, %v25052_v7 }
 0x5d9   : > { %v17382_v18 = vpop.f32.mrb[156].mxu1 }
 0x5da   : > { %v17383_v63 = vpop.f32.mrb[157].mxu1 }
 0x5db   : > { %v17384_v50 = vadd.f32 %v17383_v63, %v17382_v18  ;;  %v17385_v20 = vpop.f32.mrb[158].mxu1 }
 0x5dc   : > { %v17386_v49 = vpop.f32.mrb[159].mxu1 }
 0x5dd   : > { %v25103_v9 = vadd.f32 %v17384_v50, %v25055_v4  ;;  %v17387_v40 = vadd.f32 %v17386_v49, %v17385_v20 }
 0x5df   : > { %v25106_v30 = vadd.f32 %v17387_v40, %v25058_v22 }
 0x5e1   : > { %v17404_v24 = vpop.f32.mrb[160].mxu1 }
 0x5e2   : > { %v17405_v62 = vpop.f32.mrb[161].mxu1 }
 0x5e3   : > { %v17406_v10 = vadd.f32 %v17405_v62, %v17404_v24  ;;  %v17407_v38 = vpop.f32.mrb[162].mxu1 }
 0x5e4   : > { %v17408_v14 = vpop.f32.mrb[163].mxu1 }
 0x5e5   : > { %v17409_v17 = vadd.f32 %v17408_v14, %v17407_v38  ;;  %v25109_v7 = vadd.f32 %v17406_v10, %v25061_v33 }
 0x5e7   : > { %v25112_v48 = vadd.f32 %v17409_v17, %v25064_v36 }
 0x5e9   : > { %v17410_v54 = vpop.f32.mrb[164].mxu1 }
 0x5ea   : > { %v17411_v2 = vpop.f32.mrb[165].mxu1 }
 0x5eb   : > { %v17412_v4 = vadd.f32 %v17411_v2, %v17410_v54  ;;  %v17413_v61 = vpop.f32.mrb[166].mxu1 }
 0x5ec   : > { %v17414_v18 = vpop.f32.mrb[167].mxu1 }
 0x5ed   : > { %v17415_v63 = vadd.f32 %v17414_v18, %v17413_v61  ;;  %v14311_v22 = vadd.f32 %v17412_v4, %v25067_v12 }
 0x5ef   : > { %v25116_v50 = vadd.f32 %v17415_v63, %v25070_v60 }
 0x5f1   : > { %v17416_v20 = vpop.f32.mrb[168].mxu1 }
 0x5f2   : > { %v17417_v49 = vpop.f32.mrb[169].mxu1 }
 0x5f3   : > { %v17418_v40 = vadd.f32 %v17417_v49, %v17416_v20  ;;  %v17419_v24 = vpop.f32.mrb[170].mxu1 }
 0x5f4   : > { %v17420_v33 = vpop.f32.mrb[171].mxu1 }
 0x5f5   : > { %v17421_v62 = vadd.f32 %v17420_v33, %v17419_v24  ;;  %v25119_v36 = vadd.f32 %v17418_v40, %v25073_v44 }
 0x5f7   : > { %v25122_v10 = vadd.f32 %v17421_v62, %v25076_v56 }
 0x5f9   : > { %v17422_v38 = vpop.f32.mrb[172].mxu1 }
 0x5fa   : > { %v17423_v14 = vpop.f32.mrb[173].mxu1 }
 0x5fb   : > { %v17424_v17 = vadd.f32 %v17423_v14, %v17422_v38  ;;  %v17425_v54 = vpop.f32.mrb[174].mxu1 }
 0x5fc   : > { %v17426_v12 = vpop.f32.mrb[175].mxu1 }
 0x5fd   : > { %v17427_v2 = vadd.f32 %v17426_v12, %v17425_v54  ;;  %v25125_v60 = vadd.f32 %v17424_v17, %v25079_v53 }
 0x5ff   : > { %v25128_v4 = vadd.f32 %v17427_v2, %v25082_v35 }
 0x601   : > { %v17428_v61 = vpop.f32.mrb[176].mxu1 }
 0x602   : > { %v17429_v18 = vpop.f32.mrb[177].mxu1 }
 0x603   : > { %v17430_v63 = vadd.f32 %v17429_v18, %v17428_v61  ;;  %v17431_v44 = vpop.f32.mrb[178].mxu1 }
 0x604   : > { %v17432_v20 = vpop.f32.mrb[179].mxu1 }
 0x605   : > { %v17433_v49 = vadd.f32 %v17432_v20, %v17431_v44  ;;  %v25131_v56 = vadd.f32 %v17430_v63, %v25085_v0  ;;  %v6965_v44 = vsub.s32 0, %v23214_v8  ;;  %v6969_v20 = vsub.s32 1, %v23214_v8 }
 0x607   : > { %v25134_v40 = vadd.f32 %v17433_v49, %v25088_v58 }
 0x609   : > { %v17434_v24 = vpop.f32.mrb[180].mxu1 }
 0x60a   : > { %v17435_v33 = vpop.f32.mrb[181].mxu1 }
 0x60b   : > { %v17436_v62 = vadd.f32 %v17435_v33, %v17434_v24  ;;  %v17437_v53 = vpop.f32.mrb[182].mxu1 }
 0x60c   : > { %v17438_v38 = vpop.f32.mrb[183].mxu1 }
 0x60d   : > { %v17439_v14 = vadd.f32 %v17438_v38, %v17437_v53  ;;  %v25137_v35 = vadd.f32 %v17436_v62, %v25091_v34  ;;  %v20686_v62 = vld [vmem:[%s25333_s5] sm:$0x7] }
 0x60e   : > { %v25153_v53 = vrot.slane %v20686_v62, %v6965_v44  ;;  %v25155_v38 = vrot.slane %v20686_v62, %v6969_v20 }
 0x60f   : > { %v25140_v17 = vadd.f32 %v17439_v14, %v25094_v19 }
 0x610   : > { %v17500_v14 = vadd.f32 %v25153_v53, %v22826_v26 }
 0x611   : > { %v17440_v54 = vpop.f32.mrb[184].mxu1 }
 0x612   : > { %v17441_v12 = vpop.f32.mrb[185].mxu1 }
 0x613   : > { %v17442_v2 = vadd.f32 %v17441_v12, %v17440_v54  ;;  %v17443_v0 = vpop.f32.mrb[186].mxu1 }
 0x614   : > { %v17444_v61 = vpop.f32.mrb[187].mxu1 }
 0x615   : > { %v17445_v58 = vadd.f32 %v17444_v61, %v17443_v0  ;;  %v25143_v18 = vadd.f32 %v17442_v2, %v25097_v51 }
 0x617   : > { %v25146_v63 = vadd.f32 %v17445_v58, %v25100_v28  ;;  %v17504_v58 = vadd.f32 %v25153_v53, %v22837_v31 }
 0x619   : > { %v17446_v34 = vpop.f32.mrb[188].mxu1 }
 0x61a   : > { %v17447_v19 = vpop.f32.mrb[189].mxu1 }
 0x61b   : > { %v17448_v49 = vadd.f32 %v17447_v19, %v17446_v34  ;;  %v17449_v24 = vpop.f32.mrb[190].mxu1  ;;  %v17506_v19 = vadd.f32 %v25155_v38, %v22839_v32  ;;  %v17508_v32 = vadd.f32 %v25153_v53, %v22859_v39 }
 0x61c   : > { %v17450_v33 = vpop.f32.mrb[191].mxu1 }
 0x61d   : > { %v17451_v51 = vadd.f32 %v17450_v33, %v17449_v24  ;;  %v25158_v28 = vadd.f32 %v17448_v49, %v25103_v9  ;;  %v17502_v9 = vadd.f32 %v25155_v38, %v22834_v29 }
 0x61f   : > { %v25164_v8 = vadd.f32 %v17451_v51, %v25106_v30 }
 0x621   : > { %v17486_v12 = vpop.f32.mrb[192].mxu1 }
 0x622   : > { %v13025_v54 = vpop.f32.mrb[0].mxu0  ;;  %v14408_v0 = vadd.f32 %v17486_v12, %v14311_v22  ;;  %v14399_v30 = vpop.f32.mrb[193].mxu1  ;;  %v17510_v12 = vadd.f32 %v25155_v38, %v22862_v41 }
 0x623   : > { %v17501_v2 = vadd.f32 %v17500_v14, %v13025_v54  ;;  %v13027_v61 = vpop.f32.mrb[1].mxu0  ;;  %v14400_v44 = vadd.f32 %v14399_v30, %v25109_v7  ;;  %v17487_v20 = vpop.f32.mrb[194].mxu1 }
 0x624   : > { %v17503_v26 = vadd.f32 %v17502_v9, %v13027_v61  ;;  %v13029_v34 = vpop.f32.mrb[2].mxu0  ;;  %14816 = vst [vmem:[%s25172_s19 + $0x10] sm:$0xff] %v14408_v0  ;;  %v14411_v22 = vadd.f32 %v17487_v20, %v25116_v50  ;;  %v14402_v33 = vpop.f32.mrb[195].mxu1  ;;  %v17512_v61 = vadd.f32 %v25153_v53, %v22867_v43 }
 0x625   : > { %v16507_v49 = vmul.f32 -1.442695, %v17501_v2  ;;  %v17505_v29 = vadd.f32 %v17504_v58, %v13029_v34  ;;  %v13031_v24 = vpop.f32.mrb[3].mxu0  ;;  %14814 = vst [vmem:[%s25172_s19] sm:$0xff] %v14400_v44  ;;  %v14403_v51 = vadd.f32 %v14402_v33, %v25112_v48  ;;  %v17514_v44 = vadd.f32 %v25155_v38, %v22870_v45 }
 0x626   : > { %v16508_v62 = vmul.f32 -1.442695, %v17503_v26  ;;  %v17507_v31 = vadd.f32 %v17506_v19, %v13031_v24  ;;  %14817 = vst [vmem:[%s25172_s19 + $0x18] sm:$0xff] %v14411_v22  ;;  %v17516_v24 = vadd.f32 %v25153_v53, %v22887_v52  ;;  %v17522_v52 = vadd.f32 %v25155_v38, %v22901_v59 }
 0x627   : > { %20558 = vpow2.f32 %v16507_v49  ;;  %v16509_v7 = vmul.f32 -1.442695, %v17505_v29  ;;  %14815 = vst [vmem:[%s25172_s19 + $0x8] sm:$0xff] %v14403_v51  ;;  %v17518_v51 = vadd.f32 %v25155_v38, %v22893_v55 }
 0x628   : > { %20560 = vpow2.f32 %v16508_v62  ;;  %v16510_v14 = vmul.f32 -1.442695, %v17507_v31 }
 0x629   : > { %20562 = vpow2.f32 %v16509_v7  ;;  %v17490_v54 = vpop.f32.mrb[196].mxu1 }
 0x62a   : > { %20564 = vpow2.f32 %v16510_v14  ;;  %v13035_v50 = vpop.f32.mrb[4].mxu0  ;;  %v14424_v48 = vadd.f32 %v17490_v54, %v25125_v60  ;;  %v14415_v0 = vpop.f32.mrb[197].mxu1 }
 0x62b   : > { %v17509_v9 = vadd.f32 %v17508_v32, %v13035_v50  ;;  %v13037_v2 = vpop.f32.mrb[5].mxu0  ;;  %v14416_v58 = vadd.f32 %v14415_v0, %v25119_v36  ;;  %v17491_v26 = vpop.f32.mrb[198].mxu1 }
 0x62c   : > { %v17511_v30 = vadd.f32 %v17510_v12, %v13037_v2  ;;  %v13039_v39 = vpop.f32.mrb[6].mxu0  ;;  %14820 = vst [vmem:[%s25172_s19 + $0x30] sm:$0xff] %v14424_v48  ;;  %v14427_v60 = vadd.f32 %v17491_v26, %v25128_v4  ;;  %v14418_v19 = vpop.f32.mrb[199].mxu1 }
 0x62d   : > { %v16511_v41 = vmul.f32 -1.442695, %v17509_v9  ;;  %v17513_v34 = vadd.f32 %v17512_v61, %v13039_v39  ;;  %v13041_v20 = vpop.f32.mrb[7].mxu0  ;;  %14818 = vst [vmem:[%s25172_s19 + $0x20] sm:$0xff] %v14416_v58  ;;  %v14419_v29 = vadd.f32 %v14418_v19, %v25122_v10  ;;  %v17520_v10 = vadd.f32 %v25153_v53, %v22898_v57 }
 0x62e   : > { %v16512_v49 = vmul.f32 -1.442695, %v17511_v30  ;;  %v17515_v43 = vadd.f32 %v17514_v44, %v13041_v20  ;;  %14821 = vst [vmem:[%s25172_s19 + $0x38] sm:$0xff] %v14427_v60  ;;  %v17524_v20 = vadd.f32 %v25153_v53, %v22916_v1  ;;  %v17526_v19 = vadd.f32 %v25155_v38, %v22921_v3 }
 0x62f   : > { %20566 = vpow2.f32 %v16511_v41  ;;  %v16513_v36 = vmul.f32 -1.442695, %v17513_v34  ;;  %14819 = vst [vmem:[%s25172_s19 + $0x28] sm:$0xff] %v14419_v29 }
 0x630   : > { %20568 = vpow2.f32 %v16512_v49  ;;  %v16514_v22 = vmul.f32 -1.442695, %v17515_v43 }
 0x631   : > { %v20559_v45 = vpop.eup %20558  ;;  %20570 = vpow2.f32 %v16513_v36  ;;  %v17494_v31 = vpop.f32.mrb[200].mxu1  ;;  %v17530_v36 = vadd.f32 %v25155_v38, %v22926_v6 }
 0x632   : > { %v20561_v33 = vpop.eup %20560  ;;  %v14590_v4 = vadd.f32 1.0, %v20559_v45  ;;  %20572 = vpow2.f32 %v16514_v22  ;;  %v13045_v62 = vpop.f32.mrb[8].mxu0  ;;  %v14440_v50 = vadd.f32 %v17494_v31, %v25137_v35 }
 0x633   : > { %v20563_v7 = vpop.eup %20562  ;;  %v14591_v14 = vadd.f32 1.0, %v20561_v33  ;;  %v17517_v32 = vadd.f32 %v17516_v24, %v13045_v62  ;;  %v13047_v54 = vpop.f32.mrb[9].mxu0 }
 0x634   : > { %v14431_v12 = vpop.f32.mrb[201].mxu1  ;;  %v20565_v9 = vpop.eup %20564  ;;  %20574 = vrcp.f32 %v14590_v4  ;;  %v14592_v48 = vadd.f32 1.0, %v20563_v7  ;;  %v17519_v2 = vadd.f32 %v17518_v51, %v13047_v54  ;;  %14824 = vst [vmem:[%s25172_s19 + $0x50] sm:$0xff] %v14440_v50 }
 0x635   : > { %v14432_v55 = vadd.f32 %v14431_v12, %v25131_v56  ;;  %v13049_v0 = vpop.f32.mrb[10].mxu0  ;;  %v17495_v57 = vpop.f32.mrb[202].mxu1  ;;  %20576 = vrcp.f32 %v14591_v14  ;;  %v14593_v61 = vadd.f32 1.0, %v20565_v9  ;;  %v16515_v30 = vmul.f32 -1.442695, %v17517_v32  ;;  %v14702_v9 = vld [vmem:[%s25238_s25] sm:$0xff] }
 0x636   : > { %v17521_v35 = vadd.f32 %v17520_v10, %v13049_v0  ;;  %v13051_v58 = vpop.f32.mrb[11].mxu0  ;;  %v14434_v39 = vpop.f32.mrb[203].mxu1  ;;  %20578 = vrcp.f32 %v14592_v48  ;;  %v16516_v59 = vmul.f32 -1.442695, %v17519_v2  ;;  %v14443_v26 = vadd.f32 %v17495_v57, %v25140_v17  ;;  %v14703_v48 = vld [vmem:[%s25238_s25 + $0x8] sm:$0xff] }
 0x637   : > { %14822 = vst [vmem:[%s25172_s19 + $0x40] sm:$0xff] %v14432_v55  ;;  %v17523_v44 = vadd.f32 %v17522_v52, %v13051_v58  ;;  %20580 = vrcp.f32 %v14593_v61  ;;  %v14435_v56 = vadd.f32 %v14434_v39, %v25134_v40  ;;  %v17528_v40 = vadd.f32 %v25153_v53, %v22924_v5 }
 0x638   : > { %v16517_v41 = vmul.f32 -1.442695, %v17521_v35  ;;  %20582 = vpow2.f32 %v16515_v30  ;;  %14825 = vst [vmem:[%s25172_s19 + $0x58] sm:$0xff] %v14443_v26 }
 0x639   : > { %v16518_v34 = vmul.f32 -1.442695, %v17523_v44  ;;  %v20567_v60 = vpop.eup %20566  ;;  %20584 = vpow2.f32 %v16516_v59  ;;  %14823 = vst [vmem:[%s25172_s19 + $0x48] sm:$0xff] %v14435_v56  ;;  %v17498_v29 = vpop.f32.mrb[204].mxu1 }
 0x63a   : > { %v20569_v49 = vpop.eup %20568  ;;  %v14594_v17 = vadd.f32 1.0, %v20567_v60  ;;  %20586 = vpow2.f32 %v16517_v41  ;;  %v13055_v43 = vpop.f32.mrb[12].mxu0  ;;  %v14456_v3 = vadd.f32 %v17498_v29, %v25158_v28 }
 0x63b   : > { %v20571_v22 = vpop.eup %20570  ;;  %v14595_v45 = vadd.f32 1.0, %v20569_v49  ;;  %20588 = vpow2.f32 %v16518_v34  ;;  %v17525_v1 = vadd.f32 %v17524_v20, %v13055_v43  ;;  %v13057_v24 = vpop.f32.mrb[13].mxu0 }
 0x63c   : > { %v14447_v33 = vpop.f32.mrb[205].mxu1  ;;  %v20573_v4 = vpop.eup %20572  ;;  %20590 = vrcp.f32 %v14594_v17  ;;  %v14596_v5 = vadd.f32 1.0, %v20571_v22  ;;  %v17527_v6 = vadd.f32 %v17526_v19, %v13057_v24  ;;  %14828 = vst [vmem:[%s25172_s19 + $0x70] sm:$0xff] %v14456_v3  ;;  %v17538_v19 = vadd.f32 %v25155_v38, %v22948_v16  ;;  %v14704_v3 = vld [vmem:[%s25238_s25 + $0x10] sm:$0xff]  ;;  %v14705_v24 = vld [vmem:[%s25238_s25 + $0x18] sm:$0xff] }
 0x63d   : > { %v14448_v62 = vadd.f32 %v14447_v33, %v25143_v18  ;;  %v13059_v28 = vpop.f32.mrb[14].mxu0  ;;  %v17499_v31 = vpop.f32.mrb[206].mxu1  ;;  %20592 = vrcp.f32 %v14595_v45  ;;  %v14597_v51 = vadd.f32 1.0, %v20573_v4  ;;  %v16519_v10 = vmul.f32 -1.442695, %v17525_v1 }
 0x63e   : > { %v17529_v7 = vadd.f32 %v17528_v40, %v13059_v28  ;;  %v13061_v14 = vpop.f32.mrb[15].mxu0  ;;  %v14450_v32 = vpop.f32.mrb[207].mxu1  ;;  %20594 = vrcp.f32 %v14596_v5  ;;  %v16520_v54 = vmul.f32 -1.442695, %v17527_v6  ;;  %v14459_v18 = vadd.f32 %v17499_v31, %v25164_v8 }
 0x63f   : > { %v20575_v50 = vpop.eup %20574  ;;  %14826 = vst [vmem:[%s25172_s19 + $0x60] sm:$0xff] %v14448_v62  ;;  %v17531_v12 = vadd.f32 %v17530_v36, %v13061_v14  ;;  %20596 = vrcp.f32 %v14597_v51  ;;  %v14451_v55 = vadd.f32 %v14450_v32, %v25146_v63  ;;  %v17532_v8 = vadd.f32 %v25153_v53, %v22938_v11 }
 0x640   : > { %v20577_v52 = vpop.eup %20576  ;;  %14686 = vst [vmem:[%s25232_s10] sm:$0xff] %v20575_v50  ;;  %v16521_v2 = vmul.f32 -1.442695, %v17529_v7  ;;  %20598 = vpow2.f32 %v16519_v10  ;;  %14829 = vst [vmem:[%s25172_s19 + $0x78] sm:$0xff] %v14459_v18  ;;  %v17534_v63 = vadd.f32 %v25155_v38, %v22943_v13  ;;  %v17536_v11 = vadd.f32 %v25153_v53, %v22946_v15 }
 0x641   : > { %v20579_v0 = vpop.eup %20578  ;;  %v16522_v57 = vmul.f32 -1.442695, %v17531_v12  ;;  %20600 = vpow2.f32 %v16520_v54  ;;  %14827 = vst [vmem:[%s25172_s19 + $0x68] sm:$0xff] %v14451_v55  ;;  %v14718_v35 = vmul.f32 %v20577_v52, %v14702_v9  ;;  %v17540_v6 = vadd.f32 %v25153_v53, %v22960_v21 }
 0x642   : > { %v20581_v61 = vpop.eup %20580  ;;  %14687 = vst [vmem:[%s25232_s10 + $0x8] sm:$0xff] %v20579_v0  ;;  %20602 = vpow2.f32 %v16521_v2  ;;  %v13065_v39 = vpop.f32.mrb[16].mxu0  ;;  %v17542_v62 = vadd.f32 %v25155_v38, %v22965_v23  ;;  %v17544_v7 = vadd.f32 %v25153_v53, %v22968_v25  ;;  %v17546_v21 = vadd.f32 %v25155_v38, %v22970_v27 }
 0x643   : > { %v20583_v30 = vpop.eup %20582  ;;  %v14719_v58 = vmul.f32 %v20581_v61, %v14703_v48  ;;  %20604 = vpow2.f32 %v16522_v57  ;;  %v17533_v44 = vadd.f32 %v17532_v8, %v13065_v39  ;;  %v13067_v41 = vpop.f32.mrb[17].mxu0  ;;  %v14707_v39 = vld [vmem:[%s25238_s25 + $0x28] sm:$0xff] }
 0x644   : > { %v20585_v59 = vpop.eup %20584  ;;  %v14598_v26 = vadd.f32 1.0, %v20583_v30  ;;  %v17535_v20 = vadd.f32 %v17534_v63, %v13067_v41  ;;  %v13069_v13 = vpop.f32.mrb[18].mxu0 }
 0x645   : > { %v20587_v56 = vpop.eup %20586  ;;  %v16576_v34 = vpack.c.bf16 %v14719_v58, %v14718_v35  ;;  %v14599_v60 = vadd.f32 1.0, %v20585_v59  ;;  %v16523_v43 = vmul.f32 -1.442695, %v17533_v44  ;;  %v17537_v29 = vadd.f32 %v17536_v11, %v13069_v13  ;;  %v13071_v40 = vpop.f32.mrb[19].mxu0  ;;  %v14706_v58 = vld [vmem:[%s25238_s25 + $0x20] sm:$0xff] }
 0x646   : > { %v20589_v49 = vpop.eup %20588  ;;  %20606 = vrcp.f32 %v14598_v26  ;;  %v14600_v17 = vadd.f32 1.0, %v20587_v56  ;;  %v16524_v22 = vmul.f32 -1.442695, %v17535_v20  ;;  %v17539_v45 = vadd.f32 %v17538_v19, %v13071_v40 }
 0x647   : > { %v20591_v36 = vpop.eup %20590  ;;  %16577 = vst [vmem:[%s25259_s9] sm:$0xff] %v16576_v34   ;;  %20608 = vrcp.f32 %v14599_v60  ;;  %v14601_v15 = vadd.f32 1.0, %v20589_v49  ;;  %v16525_v16 = vmul.f32 -1.442695, %v17537_v29  ;;  %v17548_v26 = vadd.f32 %v25153_v53, %v22988_v37 }
 0x648   : > { %v20593_v1 = vpop.eup %20592  ;;  %14688 = vst [vmem:[%s25232_s10 + $0x10] sm:$0xff] %v20591_v36  ;;  %20610 = vrcp.f32 %v14600_v17  ;;  %v16526_v4 = vmul.f32 -1.442695, %v17539_v45  ;;  %v17550_v11 = vadd.f32 %v25155_v38, %v22996_v42  ;;  %v17552_v56 = vadd.f32 %v25153_v53, %v22999_v46 }
 0x649   : > { %v20595_v33 = vpop.eup %20594  ;;  %20612 = vrcp.f32 %v14601_v15  ;;  %v14720_v31 = vmul.f32 %v20593_v1, %v14704_v3  ;;  %v17554_v29 = vadd.f32 %v25155_v38, %v23001_v47 }
 0x64a   : > { %v20597_v5 = vpop.eup %20596  ;;  %14689 = vst [vmem:[%s25232_s10 + $0x18] sm:$0xff] %v20595_v33  ;;  %20614 = vpow2.f32 %v16523_v43  ;;  %v13075_v10 = vpop.f32.mrb[20].mxu0 }
 0x64b   : > { %v20599_v28 = vpop.eup %20598  ;;  %v14721_v51 = vmul.f32 %v20597_v5, %v14705_v24  ;;  %20616 = vpow2.f32 %v16524_v22  ;;  %v17541_v50 = vadd.f32 %v17540_v6, %v13075_v10  ;;  %v13077_v54 = vpop.f32.mrb[21].mxu0  ;;  %v14709_v5 = vld [vmem:[%s25238_s25 + $0x38] sm:$0xff] }
 0x64c   : > { %v20601_v14 = vpop.eup %20600  ;;  %v14602_v32 = vadd.f32 1.0, %v20599_v28  ;;  %20618 = vpow2.f32 %v16525_v16  ;;  %v17543_v52 = vadd.f32 %v17542_v62, %v13077_v54  ;;  %v13079_v9 = vpop.f32.mrb[22].mxu0 }
 0x64d   : > { %v20603_v18 = vpop.eup %20602  ;;  %v16581_v12 = vpack.c.bf16 %v14721_v51, %v14720_v31  ;;  %v14603_v23 = vadd.f32 1.0, %v20601_v14  ;;  %20620 = vpow2.f32 %v16526_v4  ;;  %v16527_v2 = vmul.f32 -1.442695, %v17541_v50  ;;  %v13081_v0 = vpop.f32.mrb[23].mxu0  ;;  %v14708_v4 = vld [vmem:[%s25238_s25 + $0x30] sm:$0xff]  ;;  %v25344_v31 = vld [vmem:[#allocation2_spill] sm:$0xff] }
 0x64e   : > { %v20605_v48 = vpop.eup %20604  ;;  %20622 = vrcp.f32 %v14602_v32  ;;  %v14604_v25 = vadd.f32 1.0, %v20603_v18  ;;  %v17545_v55 = vadd.f32 %v17544_v7, %v13079_v9  ;;  %v16528_v27 = vmul.f32 -1.442695, %v17543_v52  ;;  %v25345_v14 = vld [vmem:[#allocation3_spill] sm:$0xff] }
 0x64f   : > { %16613 = vst [vmem:[%s25259_s9 + $0x8] sm:$0xff] %v16581_v12   ;;  %20624 = vrcp.f32 %v14603_v23  ;;  %v14605_v57 = vadd.f32 1.0, %v20605_v48  ;;  %v17547_v61 = vadd.f32 %v17546_v21, %v13081_v0  ;;  %v17556_v51 = vadd.f32 %v25153_v53, %v25344_v31 }
 0x650   : > { %v20607_v8 = vpop.eup %20606  ;;  %20626 = vrcp.f32 %v14604_v25  ;;  %v16529_v30 = vmul.f32 -1.442695, %v17545_v55  ;;  %v17558_v32 = vadd.f32 %v25155_v38, %v25345_v14  ;;  %v25346_v25 = vld [vmem:[#allocation4_spill] sm:$0xff]  ;;  %v14714_v14 = vld [vmem:[%s25238_s25 + $0x60] sm:$0xff] }
 0x651   : > { %v20609_v35 = vpop.eup %20608  ;;  %14690 = vst [vmem:[%s25232_s10 + $0x20] sm:$0xff] %v20607_v8  ;;  %20628 = vrcp.f32 %v14605_v57  ;;  %v16530_v63 = vmul.f32 -1.442695, %v17547_v61  ;;  %v25347_v61 = vld [vmem:[#allocation5_spill] sm:$0xff] }
 0x652   : > { %v20611_v59 = vpop.eup %20610  ;;  %20630 = vpow2.f32 %v16527_v2  ;;  %v13085_v41 = vpop.f32.mrb[24].mxu0  ;;  %v14722_v60 = vmul.f32 %v20609_v35, %v14706_v58  ;;  %v17560_v2 = vadd.f32 %v25153_v53, %v25346_v25  ;;  %v17562_v8 = vadd.f32 %v25155_v38, %v25347_v61  ;;  %v14711_v38 = vld [vmem:[%s25238_s25 + $0x48] sm:$0xff] }
 0x653   : > { %v20613_v44 = vpop.eup %20612  ;;  %14691 = vst [vmem:[%s25232_s10 + $0x28] sm:$0xff] %v20611_v59  ;;  %20632 = vpow2.f32 %v16528_v27  ;;  %v17549_v13 = vadd.f32 %v17548_v26, %v13085_v41  ;;  %v13087_v19 = vpop.f32.mrb[25].mxu0 }
 0x654   : > { %v20615_v34 = vpop.eup %20614  ;;  %v14723_v20 = vmul.f32 %v20613_v44, %v14707_v39  ;;  %20634 = vpow2.f32 %v16529_v30  ;;  %v17551_v37 = vadd.f32 %v17550_v11, %v13087_v19  ;;  %v13089_v43 = vpop.f32.mrb[26].mxu0  ;;  %v14710_v11 = vld [vmem:[%s25238_s25 + $0x40] sm:$0xff] }
 0x655   : > { %v20617_v49 = vpop.eup %20616  ;;  %v14606_v17 = vadd.f32 1.0, %v20615_v34  ;;  %20636 = vpow2.f32 %v16530_v63  ;;  %v17553_v36 = vadd.f32 %v17552_v56, %v13089_v43  ;;  %v13091_v15 = vpop.f32.mrb[27].mxu0  ;;  %v16531_v1 = vmul.f32 -1.442695, %v17549_v13 }
 0x656   : > { %v20619_v40 = vpop.eup %20618  ;;  %v16586_v42 = vpack.c.bf16 %v14723_v20, %v14722_v60  ;;  %v14607_v46 = vadd.f32 1.0, %v20617_v49  ;;  %v17555_v3 = vadd.f32 %v17554_v29, %v13091_v15  ;;  %v16532_v33 = vmul.f32 -1.442695, %v17551_v37 }
 0x657   : > { %v20621_v22 = vpop.eup %20620  ;;  %20638 = vrcp.f32 %v14606_v17  ;;  %v14608_v45 = vadd.f32 1.0, %v20619_v40  ;;  %v16533_v6 = vmul.f32 -1.442695, %v17553_v36 }
 0x658   : > { %v20623_v24 = vpop.eup %20622  ;;  %16614 = vst [vmem:[%s25259_s9 + $0x10] sm:$0xff] %v16586_v42   ;;  %20640 = vrcp.f32 %v14607_v46  ;;  %v14609_v16 = vadd.f32 1.0, %v20621_v22  ;;  %v16534_v28 = vmul.f32 -1.442695, %v17555_v3  ;;  %v14712_v22 = vld [vmem:[%s25238_s25 + $0x50] sm:$0xff] }
 0x659   : > { %v20625_v47 = vpop.eup %20624  ;;  %14692 = vst [vmem:[%s25232_s10 + $0x30] sm:$0xff] %v20623_v24  ;;  %20642 = vrcp.f32 %v14608_v45  ;;  %v14713_v45 = vld [vmem:[%s25238_s25 + $0x58] sm:$0xff] }
 0x65a   : > { %v20627_v62 = vpop.eup %20626  ;;  %20644 = vrcp.f32 %v14609_v16  ;;  %v13095_v7 = vpop.f32.mrb[28].mxu0  ;;  %v14724_v54 = vmul.f32 %v20625_v47, %v14708_v4 }
 0x65b   : > { %v20629_v10 = vpop.eup %20628  ;;  %14693 = vst [vmem:[%s25232_s10 + $0x38] sm:$0xff] %v20627_v62  ;;  %20646 = vpow2.f32 %v16531_v1  ;;  %v17557_v18 = vadd.f32 %v17556_v51, %v13095_v7  ;;  %v13097_v12 = vpop.f32.mrb[29].mxu0 }
 0x65c   : > { %v20631_v50 = vpop.eup %20630  ;;  %v14725_v21 = vmul.f32 %v20629_v10, %v14709_v5  ;;  %20648 = vpow2.f32 %v16532_v33  ;;  %v17559_v9 = vadd.f32 %v17558_v32, %v13097_v12  ;;  %v13099_v48 = vpop.f32.mrb[30].mxu0  ;;  %v14715_v32 = vld [vmem:[%s25238_s25 + $0x68] sm:$0xff] }
 0x65d   : > { %v20633_v23 = vpop.eup %20632  ;;  %v14610_v52 = vadd.f32 1.0, %v20631_v50  ;;  %20650 = vpow2.f32 %v16533_v6  ;;  %v13101_v27 = vpop.f32.mrb[31].mxu0  ;;  %v16535_v58 = vmul.f32 -1.442695, %v17557_v18  ;;  %v17561_v39 = vadd.f32 %v17560_v2, %v13099_v48  ;;  %v14717_v48 = vld [vmem:[%s25238_s25 + $0x78] sm:$0xff] }
 0x65e   : > { %v20635_v55 = vpop.eup %20634  ;;  %v16591_v0 = vpack.c.bf16 %v14725_v21, %v14724_v54  ;;  %v14611_v57 = vadd.f32 1.0, %v20633_v23  ;;  %20652 = vpow2.f32 %v16534_v28  ;;  %v16536_v63 = vmul.f32 -1.442695, %v17559_v9  ;;  %v14716_v9 = vld [vmem:[%s25238_s25 + $0x70] sm:$0xff] }
 0x65f   : > { %v20637_v30 = vpop.eup %20636  ;;  %20654 = vrcp.f32 %v14610_v52  ;;  %v14612_v35 = vadd.f32 1.0, %v20635_v55  ;;  %v17563_v59 = vadd.f32 %v17562_v8, %v13101_v27  ;;  %v16537_v44 = vmul.f32 -1.442695, %v17561_v39 }
 0x660   : > { %16615 = vst [vmem:[%s25259_s9 + $0x18] sm:$0xff] %v16591_v0   ;;  %20656 = vrcp.f32 %v14611_v57  ;;  %v14613_v53 = vadd.f32 1.0, %v20637_v30 }
 0x661   : > { %v20639_v26 = vpop.eup %20638  ;;  %20658 = vrcp.f32 %v14612_v35  ;;  %v16538_v56 = vmul.f32 -1.442695, %v17563_v59 }
 0x662   : > { %v20641_v41 = vpop.eup %20640  ;;  %14694 = vst [vmem:[%s25232_s10 + $0x40] sm:$0xff] %v20639_v26  ;;  %20660 = vrcp.f32 %v14613_v53 }
 0x663   : > { %v20643_v34 = vpop.eup %20642  ;;  %20662 = vpow2.f32 %v16535_v58  ;;  %v14726_v13 = vmul.f32 %v20641_v41, %v14710_v11 }
 0x664   : > { %v20645_v60 = vpop.eup %20644  ;;  %14695 = vst [vmem:[%s25232_s10 + $0x48] sm:$0xff] %v20643_v34  ;;  %20664 = vpow2.f32 %v16536_v63 }
 0x665   : > { %v20647_v20 = vpop.eup %20646  ;;  %v14727_v19 = vmul.f32 %v20645_v60, %v14711_v38  ;;  %20666 = vpow2.f32 %v16537_v44 }
 0x666   : > { %v20649_v49 = vpop.eup %20648  ;;  %v14614_v17 = vadd.f32 1.0, %v20647_v20  ;;  %20668 = vpow2.f32 %v16538_v56 }
 0x667   : > { %v20651_v37 = vpop.eup %20650  ;;  %v16596_v43 = vpack.c.bf16 %v14727_v19, %v14726_v13  ;;  %v14615_v29 = vadd.f32 1.0, %v20649_v49 }
 0x668   : > { %v20653_v40 = vpop.eup %20652  ;;  %20670 = vrcp.f32 %v14614_v17  ;;  %v14616_v42 = vadd.f32 1.0, %v20651_v37 }
 0x669   : > { %v20655_v46 = vpop.eup %20654  ;;  %16616 = vst [vmem:[%s25259_s9 + $0x20] sm:$0xff] %v16596_v43   ;;  %20672 = vrcp.f32 %v14615_v29  ;;  %v14617_v36 = vadd.f32 1.0, %v20653_v40 }
 0x66a   : > { %v20657_v15 = vpop.eup %20656  ;;  %14696 = vst [vmem:[%s25232_s10 + $0x50] sm:$0xff] %v20655_v46  ;;  %20674 = vrcp.f32 %v14616_v42 }
 0x66b   : > { %v20659_v1 = vpop.eup %20658  ;;  %20676 = vrcp.f32 %v14617_v36  ;;  %v14728_v16 = vmul.f32 %v20657_v15, %v14712_v22 }
 0x66c   : > { %v20661_v3 = vpop.eup %20660  ;;  %14697 = vst [vmem:[%s25232_s10 + $0x58] sm:$0xff] %v20659_v1 }
 0x66d   : > { %v20663_v24 = vpop.eup %20662  ;;  %v14729_v33 = vmul.f32 %v20661_v3, %v14713_v45 }
 0x66e   : > { %v20665_v47 = vpop.eup %20664  ;;  %v14618_v4 = vadd.f32 1.0, %v20663_v24 }
 0x66f   : > { %v20667_v5 = vpop.eup %20666  ;;  %v16601_v6 = vpack.c.bf16 %v14729_v33, %v14728_v16  ;;  %v14619_v62 = vadd.f32 1.0, %v20665_v47 }
 0x670   : > { %v20669_v28 = vpop.eup %20668  ;;  %20678 = vrcp.f32 %v14618_v4  ;;  %v14620_v31 = vadd.f32 1.0, %v20667_v5 }
 0x671   : > { %16617 = vst [vmem:[%s25259_s9 + $0x28] sm:$0xff] %v16601_v6   ;;  %20680 = vrcp.f32 %v14619_v62  ;;  %v14621_v51 = vadd.f32 1.0, %v20669_v28 }
 0x672   : > { %v20671_v10 = vpop.eup %20670  ;;  %20682 = vrcp.f32 %v14620_v31 }
 0x673   : > { %v20673_v7 = vpop.eup %20672  ;;  %14698 = vst [vmem:[%s25232_s10 + $0x60] sm:$0xff] %v20671_v10  ;;  %20684 = vrcp.f32 %v14621_v51 }
 0x674   : > { %v20675_v50 = vpop.eup %20674  ;;  %v14730_v21 = vmul.f32 %v20673_v7, %v14714_v14 }
 0x675   : > { %v20677_v54 = vpop.eup %20676  ;;  %14699 = vst [vmem:[%s25232_s10 + $0x68] sm:$0xff] %v20675_v50 }
 0x676   : > { %v14731_v18 = vmul.f32 %v20677_v54, %v14715_v32 }
 0x678   : > { %v16606_v12 = vpack.c.bf16 %v14731_v18, %v14730_v21 }
 0x67a   : > { %v20679_v23 = vpop.eup %20678  ;;  %16618 = vst [vmem:[%s25259_s9 + $0x30] sm:$0xff] %v16606_v12  }
 0x67b   : > { %v20681_v52 = vpop.eup %20680  ;;  %14700 = vst [vmem:[%s25232_s10 + $0x70] sm:$0xff] %v20679_v23 }
 0x67c   : > { %v20683_v25 = vpop.eup %20682  ;;  %v14732_v55 = vmul.f32 %v20681_v52, %v14716_v9 }
 0x67d   : > { %v20685_v2 = vpop.eup %20684  ;;  %14701 = vst [vmem:[%s25232_s10 + $0x78] sm:$0xff] %v20683_v25 }
 0x67e   : > { %v14733_v0 = vmul.f32 %v20685_v2, %v14717_v48 }
 0x680   : > { %v16611_v57 = vpack.c.bf16 %v14733_v0, %v14732_v55 }
 0x682   : > { %16619 = vst [vmem:[%s25259_s9 + $0x38] sm:$0xff] %v16611_v57  }
 0x683 PF: > { %s19_s27 = sadd.s32 1, %s20693_s27  }
 0x684   : > { %p16_p4 = scmp.ge.s32.totalorder %s19_s27, 4  }
 0x686   :  { %18 = sbr.rel (!%p16_p4) target bundleno = 1 (0x1), region = 104 }

</bundles_post_ra>
